<compile_context>
chip_gen: v7x
topology: tpu7x:2x2x1
jax: 0.10.0
libtpu: 0.0.40
codegen_flags: <defaults>
</compile_context>

<pallas_src>
import jax
import jax.numpy as jnp
import numpy as np
from jax.experimental import pallas as pl
from jax.experimental.pallas import tpu as pltpu


def _freq_attn_kernel(x_ref, k1_ref, b1_ref, k2_ref, b2_ref, k3_ref, b3_ref,
                      e_ref, o_ref):
    # x: (Bt, C*F*T) lane-dense slab for a block of batch elements.
    x = x_ref[...]

    # avg-pool over t + Conv1d(k=1)+BN + the three k=3 input taps, all folded
    # into one constant operator: (Bt, C*F*T) @ (C*F*T, 3*Cm*F).
    y1 = jnp.dot(x, k1_ref[...], preferred_element_type=jnp.float32) + b1_ref[...]
    y1 = jnp.maximum(y1, 0.0)

    # Conv1d(k=3, p=1) + folded BN + ReLU: one matmul over the stacked taps.
    y2 = jnp.dot(y1, k2_ref[...], preferred_element_type=jnp.float32) + b2_ref[...]
    y2 = jnp.maximum(y2, 0.0)

    # Conv1d(k=1) + folded BN, then sigmoid (EUP).
    y3 = jnp.dot(y2, k3_ref[...], preferred_element_type=jnp.float32) + b3_ref[...]
    se = jax.nn.sigmoid(y3)                                   # (Bt, C*F)

    # Broadcast the per-(c, f) gate over t ((Bt, C*F) @ (C*F, C*F*T)) and
    # apply it; the store is full-lane-width.
    gate = jnp.dot(se, e_ref[...], preferred_element_type=jnp.float32)
    o_ref[...] = (x * gate).astype(o_ref.dtype)


def frequency_attention(x, w1, bn1, w2, bn2, w3, bn3, *, eps=1e-5,
                        block_bytes=2 * 1024 * 1024):
    """x: (B, C, F, T) f32.  w1:(Cm,C,1)  w2:(Cm,Cm,3)  w3:(C,Cm,1).
    bn* = (gamma, beta, running_mean, running_var).  Returns (B, C, F, T)."""
    B, C, F, T = x.shape
    Cm = w1.shape[0]
    assert w3.shape[0] == C, "expand_as in the reference module needs chs_out == chs_in"
    L = C * F * T

    # ---- fold eval-mode BatchNorm into conv weights / biases (host side) ----
    def fold_scale(p):
        g, b, m, v = p
        s = g / jnp.sqrt(v + eps)
        return s, b - s * m

    s1, b1f = fold_scale(bn1)
    s2, b2f = fold_scale(bn2)
    s3, b3f = fold_scale(bn3)
    w1f = (s1[:, None] * w1[:, :, 0]).astype(jnp.float32)          # (Cm, C)
    w2f = (s2[:, None, None] * w2).astype(jnp.float32)             # (Cm, Cm, 3)
    w3f = (s3[:, None] * w3[:, :, 0]).astype(jnp.float32)          # (C, Cm)

    # ---- host-built flat operators (f32, VMEM-resident across the grid) ----
    # D[k, f, g] = 1 iff f == g + k - 1 (k=3, pad=1 tap structure).
    kk = np.arange(3)[:, None, None]
    ff = np.arange(F)[None, :, None]
    gg = np.arange(F)[None, None, :]
    D = (ff == gg + kk - 1).astype(np.float32)                     # (3, F, F)
    valid = D.sum(axis=1)                                          # (3, F) in {0,1}
    eye_f = np.eye(F, dtype=np.float32)

    # K1: x(c,f,t) -> three shifted copies of the conv1 pre-activation (k,m,g).
    K1 = jnp.einsum('mc,kfg->cfkmg', w1f, jnp.asarray(D))          # (C,F,3,Cm,F)
    K1 = (jnp.broadcast_to(K1[:, :, None], (C, F, T, 3, Cm, F)) / T
          ).reshape(L, 3 * Cm * F).astype(jnp.float32)
    b1v = (jnp.asarray(valid)[:, None, :]
           * b1f.astype(jnp.float32)[None, :, None]).reshape(1, 3 * Cm * F)

    # K2: stacked taps (k,m,g) -> conv2 output (n,g).
    K2 = jnp.einsum('nmk,gh->kmgnh', w2f, jnp.asarray(eye_f)
                    ).reshape(3 * Cm * F, Cm * F).astype(jnp.float32)
    b2v = jnp.repeat(b2f.astype(jnp.float32), F)[None, :]          # (1, Cm*F)

    # K3: (m,g) -> conv3 output (c,g).
    K3 = jnp.einsum('om,gh->mgoh', w3f, jnp.asarray(eye_f)
                    ).reshape(Cm * F, C * F).astype(jnp.float32)
    b3v = jnp.repeat(b3f.astype(jnp.float32), F)[None, :]          # (1, C*F)

    # E: broadcast the (c, f) gate over t.
    E = jnp.asarray(np.kron(np.eye(C * F, dtype=np.float32),
                            np.ones((1, T), dtype=np.float32)))    # (C*F, L)

    x_flat = x.reshape(B, L).astype(jnp.float32)

    # ---- batch blocking: ~block_bytes per x slab, padded to a whole grid ----
    bt_cap = max(1, block_bytes // (L * 4))
    if B <= bt_cap:
        Bt, Bp = B, B
    else:
        Bt = max(8, (bt_cap // 8) * 8)
        Bp = ((B + Bt - 1) // Bt) * Bt
        if Bp != B:
            x_flat = jnp.pad(x_flat, ((0, Bp - B), (0, 0)))
    grid = (Bp // Bt,)

    out = pl.pallas_call(
        _freq_attn_kernel,
        out_shape=jax.ShapeDtypeStruct((Bp, L), jnp.float32),
        grid_spec=pltpu.PrefetchScalarGridSpec(
            num_scalar_prefetch=0,
            grid=grid,
            in_specs=[
                pl.BlockSpec((Bt, L), lambda i: (i, 0)),               # x slab
                pl.BlockSpec((L, 3 * Cm * F), lambda i: (0, 0)),       # K1
                pl.BlockSpec((1, 3 * Cm * F), lambda i: (0, 0)),       # b1
                pl.BlockSpec((3 * Cm * F, Cm * F), lambda i: (0, 0)),  # K2
                pl.BlockSpec((1, Cm * F), lambda i: (0, 0)),           # b2
                pl.BlockSpec((Cm * F, C * F), lambda i: (0, 0)),       # K3
                pl.BlockSpec((1, C * F), lambda i: (0, 0)),            # b3
                pl.BlockSpec((C * F, L), lambda i: (0, 0)),            # E
            ],
            out_specs=pl.BlockSpec((Bt, L), lambda i: (i, 0)),
        ),
        compiler_params=pltpu.CompilerParams(
            dimension_semantics=("parallel",),
            vmem_limit_bytes=48 * 1024 * 1024),
    )(x_flat, K1, b1v, K2, b2v, K3, b3v, E)

    return out[:B].reshape(B, C, F, T)


def _reference(x, w1, bn1, w2, bn2, w3, bn3, eps=1e-5):
    """Pure-JAX reference of FrequencyAttention.forward (eval-mode BN)."""
    B, C, F, T = x.shape

    def bn(y, p):
        g, b, m, v = p
        return (g[None, :, None] * (y - m[None, :, None])
                / jnp.sqrt(v[None, :, None] + eps) + b[None, :, None])

    avg = jnp.mean(x, axis=-1)                                        # (B, C, F)
    y1 = jnp.maximum(bn(jnp.einsum('mc,bcf->bmf', w1[:, :, 0], avg), bn1), 0.0)
    yp = jnp.pad(y1, ((0, 0), (0, 0), (1, 1)))
    y2 = (jnp.einsum('mc,bcf->bmf', w2[:, :, 0], yp[:, :, 0:F])
          + jnp.einsum('mc,bcf->bmf', w2[:, :, 1], yp[:, :, 1:F + 1])
          + jnp.einsum('mc,bcf->bmf', w2[:, :, 2], yp[:, :, 2:F + 2]))
    y2 = jnp.maximum(bn(y2, bn2), 0.0)
    y3 = bn(jnp.einsum('oc,bcf->bof', w3[:, :, 0], y2), bn3)
    se = jax.nn.sigmoid(y3)                                           # (B, C, F)
    return x * se[:, :, :, None]


if __name__ == "__main__":
    # FrequencyAttention(chs_in=32, chs_out=32, size=16) on (B, C, F, T) input.
    B, C, F, T = 2, 32, 16, 8
    C_mid = C // 16  # expansion = 16

    key = jax.random.PRNGKey(0)
    ks = jax.random.split(key, 7)

    x = jax.random.normal(ks[0], (B, C, F, T), dtype=jnp.float32)
    w1 = 0.3 * jax.random.normal(ks[1], (C_mid, C, 1), dtype=jnp.float32)
    w2 = 0.3 * jax.random.normal(ks[2], (C_mid, C_mid, 3), dtype=jnp.float32)
    w3 = 0.3 * jax.random.normal(ks[3], (C, C_mid, 1), dtype=jnp.float32)

    def bn_params(k, n):
        k1, k2, k3, k4 = jax.random.split(k, 4)
        return (1.0 + 0.1 * jax.random.normal(k1, (n,), jnp.float32),
                0.1 * jax.random.normal(k2, (n,), jnp.float32),
                0.1 * jax.random.normal(k3, (n,), jnp.float32),
                1.0 + 0.1 * jax.random.uniform(k4, (n,), jnp.float32))

    bn1 = bn_params(ks[4], C_mid)
    bn2 = bn_params(ks[5], C_mid)
    bn3 = bn_params(ks[6], C)

    y = frequency_attention(x, w1, bn1, w2, bn2, w3, bn3)
    jax.block_until_ready(y)

    y_ref = _reference(x, w1, bn1, w2, bn2, w3, bn3)
    assert y.shape == (B, C, F, T)
    assert np.allclose(np.asarray(y), np.asarray(y_ref), rtol=2e-3, atol=2e-3), \
        float(jnp.max(jnp.abs(y - y_ref)))
    print("KERNEL_OK")
</pallas_src>

<mosaic_0001>
module attributes {stable_mosaic.version = 11 : i64} {
  func.func @_freq_attn_kernel(%arg0: i32, %arg1: memref<2x4096xf32, #tpu.memory_space<vmem>>, %arg2: memref<4096x96xf32, #tpu.memory_space<vmem>>, %arg3: memref<1x96xf32, #tpu.memory_space<vmem>>, %arg4: memref<96x32xf32, #tpu.memory_space<vmem>>, %arg5: memref<1x32xf32, #tpu.memory_space<vmem>>, %arg6: memref<32x512xf32, #tpu.memory_space<vmem>>, %arg7: memref<1x512xf32, #tpu.memory_space<vmem>>, %arg8: memref<512x4096xf32, #tpu.memory_space<vmem>>, %arg9: memref<2x4096xf32, #tpu.memory_space<vmem>>) attributes {dimension_semantics = [#tpu.dimension_semantics<parallel>], iteration_bounds = array<i64: 1>, scalar_prefetch = 0 : i64, scratch_operands = 0 : i64, tpu.core_type = #tpu.core_type<tc>, window_params = [{transform_indices = @transform_0, window_bounds = array<i64: 2, 4096>}, {pipeline_mode = #tpu.pipeline_mode<synchronous>, transform_indices = @transform_1, window_bounds = array<i64: 4096, 96>}, {pipeline_mode = #tpu.pipeline_mode<synchronous>, transform_indices = @transform_2, window_bounds = array<i64: 1, 96>}, {pipeline_mode = #tpu.pipeline_mode<synchronous>, transform_indices = @transform_3, window_bounds = array<i64: 96, 32>}, {pipeline_mode = #tpu.pipeline_mode<synchronous>, transform_indices = @transform_4, window_bounds = array<i64: 1, 32>}, {pipeline_mode = #tpu.pipeline_mode<synchronous>, transform_indices = @transform_5, window_bounds = array<i64: 32, 512>}, {pipeline_mode = #tpu.pipeline_mode<synchronous>, transform_indices = @transform_6, window_bounds = array<i64: 1, 512>}, {pipeline_mode = #tpu.pipeline_mode<synchronous>, transform_indices = @transform_7, window_bounds = array<i64: 512, 4096>}, {transform_indices = @transform_8, window_bounds = array<i64: 2, 4096>}]} {
    %c0 = arith.constant 0 : index
    %c0_0 = arith.constant 0 : index
    %0 = vector.load %arg1[%c0, %c0_0] : memref<2x4096xf32, #tpu.memory_space<vmem>>, vector<2x4096xf32>
    %c0_1 = arith.constant 0 : index
    %c0_2 = arith.constant 0 : index
    %1 = vector.load %arg2[%c0_1, %c0_2] : memref<4096x96xf32, #tpu.memory_space<vmem>>, vector<4096x96xf32>
    %cst = arith.constant dense<0.000000e+00> : vector<2x96xf32>
    %2 = tpu.matmul %0, %1, %cst {dimension_numbers = #tpu.dot_dimension_numbers<[1], [0], [0], [1], [0, 0, 1, 1], [], []>} : vector<2x4096xf32>, vector<4096x96xf32>, vector<2x96xf32> -> vector<2x96xf32>
    %c0_3 = arith.constant 0 : index
    %c0_4 = arith.constant 0 : index
    %3 = vector.load %arg3[%c0_3, %c0_4] : memref<1x96xf32, #tpu.memory_space<vmem>>, vector<1x96xf32>
    %4 = vector.broadcast %3 : vector<1x96xf32> to vector<2x96xf32>
    %5 = arith.addf %2, %4 : vector<2x96xf32>
    %cst_5 = arith.constant 0.000000e+00 : f32
    %6 = vector.broadcast %cst_5 : f32 to vector<2x96xf32>
    %7 = arith.maximumf %5, %6 : vector<2x96xf32>
    %c0_6 = arith.constant 0 : index
    %c0_7 = arith.constant 0 : index
    %8 = vector.load %arg4[%c0_6, %c0_7] : memref<96x32xf32, #tpu.memory_space<vmem>>, vector<96x32xf32>
    %cst_8 = arith.constant dense<0.000000e+00> : vector<2x32xf32>
    %9 = tpu.matmul %7, %8, %cst_8 {dimension_numbers = #tpu.dot_dimension_numbers<[1], [0], [0], [1], [0, 0, 1, 1], [], []>} : vector<2x96xf32>, vector<96x32xf32>, vector<2x32xf32> -> vector<2x32xf32>
    %c0_9 = arith.constant 0 : index
    %c0_10 = arith.constant 0 : index
    %10 = vector.load %arg5[%c0_9, %c0_10] : memref<1x32xf32, #tpu.memory_space<vmem>>, vector<1x32xf32>
    %11 = vector.broadcast %10 : vector<1x32xf32> to vector<2x32xf32>
    %12 = arith.addf %9, %11 : vector<2x32xf32>
    %cst_11 = arith.constant 0.000000e+00 : f32
    %13 = vector.broadcast %cst_11 : f32 to vector<2x32xf32>
    %14 = arith.maximumf %12, %13 : vector<2x32xf32>
    %c0_12 = arith.constant 0 : index
    %c0_13 = arith.constant 0 : index
    %15 = vector.load %arg6[%c0_12, %c0_13] : memref<32x512xf32, #tpu.memory_space<vmem>>, vector<32x512xf32>
    %cst_14 = arith.constant dense<0.000000e+00> : vector<2x512xf32>
    %16 = tpu.matmul %14, %15, %cst_14 {dimension_numbers = #tpu.dot_dimension_numbers<[1], [0], [0], [1], [0, 0, 1, 1], [], []>} : vector<2x32xf32>, vector<32x512xf32>, vector<2x512xf32> -> vector<2x512xf32>
    %c0_15 = arith.constant 0 : index
    %c0_16 = arith.constant 0 : index
    %17 = vector.load %arg7[%c0_15, %c0_16] : memref<1x512xf32, #tpu.memory_space<vmem>>, vector<1x512xf32>
    %18 = vector.broadcast %17 : vector<1x512xf32> to vector<2x512xf32>
    %19 = arith.addf %16, %18 : vector<2x512xf32>
    %20 = arith.negf %19 : vector<2x512xf32>
    %21 = math.exp %20 : vector<2x512xf32>
    %cst_17 = arith.constant 1.000000e+00 : f32
    %22 = vector.broadcast %cst_17 : f32 to vector<2x512xf32>
    %23 = arith.addf %22, %21 : vector<2x512xf32>
    %24 = arith.divf %22, %23 : vector<2x512xf32>
    %c0_18 = arith.constant 0 : index
    %c0_19 = arith.constant 0 : index
    %25 = vector.load %arg8[%c0_18, %c0_19] : memref<512x4096xf32, #tpu.memory_space<vmem>>, vector<512x4096xf32>
    %cst_20 = arith.constant dense<0.000000e+00> : vector<2x4096xf32>
    %26 = tpu.matmul %24, %25, %cst_20 {dimension_numbers = #tpu.dot_dimension_numbers<[1], [0], [0], [1], [0, 0, 1, 1], [], []>} : vector<2x512xf32>, vector<512x4096xf32>, vector<2x4096xf32> -> vector<2x4096xf32>
    %27 = arith.mulf %0, %26 : vector<2x4096xf32>
    %c0_21 = arith.constant 0 : index
    %c0_22 = arith.constant 0 : index
    %28 = vector.load %arg9[%c0_21, %c0_22] : memref<2x4096xf32, #tpu.memory_space<vmem>>, vector<2x4096xf32>
    tpu.vector_store %arg9[%c0_21, %c0_22], %27 {strides = array<i32>} : memref<2x4096xf32, #tpu.memory_space<vmem>>, vector<2x4096xf32>,
    return
  }
  func.func @transform_0(%arg0: i32) -> (i32, i32) {
    %c0_i32 = arith.constant 0 : i32
    %c0_i32_0 = arith.constant 0 : i32
    return %arg0, %c0_i32 : i32, i32
  }
  func.func @transform_1(%arg0: i32) -> (i32, i32) {
    %c0_i32 = arith.constant 0 : i32
    %c0_i32_0 = arith.constant 0 : i32
    %c0_i32_1 = arith.constant 0 : i32
    return %c0_i32, %c0_i32_0 : i32, i32
  }
  func.func @transform_2(%arg0: i32) -> (i32, i32) {
    %c0_i32 = arith.constant 0 : i32
    %c0_i32_0 = arith.constant 0 : i32
    %c0_i32_1 = arith.constant 0 : i32
    return %c0_i32, %c0_i32_0 : i32, i32
  }
  func.func @transform_3(%arg0: i32) -> (i32, i32) {
    %c0_i32 = arith.constant 0 : i32
    %c0_i32_0 = arith.constant 0 : i32
    %c0_i32_1 = arith.constant 0 : i32
    return %c0_i32, %c0_i32_0 : i32, i32
  }
  func.func @transform_4(%arg0: i32) -> (i32, i32) {
    %c0_i32 = arith.constant 0 : i32
    %c0_i32_0 = arith.constant 0 : i32
    %c0_i32_1 = arith.constant 0 : i32
    return %c0_i32, %c0_i32_0 : i32, i32
  }
  func.func @transform_5(%arg0: i32) -> (i32, i32) {
    %c0_i32 = arith.constant 0 : i32
    %c0_i32_0 = arith.constant 0 : i32
    %c0_i32_1 = arith.constant 0 : i32
    return %c0_i32, %c0_i32_0 : i32, i32
  }
  func.func @transform_6(%arg0: i32) -> (i32, i32) {
    %c0_i32 = arith.constant 0 : i32
    %c0_i32_0 = arith.constant 0 : i32
    %c0_i32_1 = arith.constant 0 : i32
    return %c0_i32, %c0_i32_0 : i32, i32
  }
  func.func @transform_7(%arg0: i32) -> (i32, i32) {
    %c0_i32 = arith.constant 0 : i32
    %c0_i32_0 = arith.constant 0 : i32
    %c0_i32_1 = arith.constant 0 : i32
    return %c0_i32, %c0_i32_0 : i32, i32
  }
  func.func @transform_8(%arg0: i32) -> (i32, i32) {
    %c0_i32 = arith.constant 0 : i32
    %c0_i32_0 = arith.constant 0 : i32
    return %arg0, %c0_i32 : i32, i32
  }
}

</mosaic_0001>

<bundles_post_ra>
// kernel: tpu_custom_call.1
= control target key start
LH: loop header
LB: loop body
LE: loop exit
PB: predicated region body
PF: predicated region fallthrough
CT: control target
= control target key end

     0   :  { %13 = vsyncpa [#allocation3], 0  ;;  %s11971_s0 = inlined_call_operand.vmem [shape: f32[2,4096], index: 0, kind: input, shape index: {}]   ;;  %s11972_s1 = inlined_call_operand.vmem [shape: f32[4096,96], index: 1, kind: input, shape index: {}]   ;;  %s11973_s2 = inlined_call_operand.vmem [shape: f32[1,96], index: 2, kind: input, shape index: {}]   ;;  %s11974_s3 = inlined_call_operand.vmem [shape: f32[96,32], index: 3, kind: input, shape index: {}]   ;;  %s11975_s4 = inlined_call_operand.vmem [shape: f32[1,32], index: 4, kind: input, shape index: {}]   ;;  %s11976_s5 = inlined_call_operand.vmem [shape: f32[32,512], index: 5, kind: input, shape index: {}]   ;;  %s11977_s6 = inlined_call_operand.vmem [shape: f32[1,512], index: 6, kind: input, shape index: {}]   ;;  %s11978_s7 = inlined_call_operand.hbm [shape: f32[512,4096], index: 7, kind: input, shape index: {}]   ;;  %s11979_s8 = inlined_call_operand.hbm [shape: f32[2,4096], index: 8, kind: output, shape index: {}]  }
   0x1   :  { %14 = vsyncpa [#allocation4], 0  ;;  %s10020_s27 = smov [#allocation2]   ;;  %s9972_s9 = scalar_lea.hbm %s11978_s7, 262144 }
   0x2   :  { %s34_s28 = sshll.u32 %s10020_s27, 4  ;;  %p9973_p0 = scmp.ne.s32.totalorder %s11978_s7, %s9972_s9  ;;  %s35_s28 = int_to_ptr.vmem [resolvable:$true] %s34_s28 }
   0x3   :  { %p9976_p1 = scmp.lt.u32.totalorder %s9972_s9, %s11978_s7 }
   0x5   :  { %p9978_p2 = pnand %p9976_p1, %p9973_p0 }
   0x7   :  { %9981 = shalt.err (!%p9978_p2)
}
   0x8   :  { %s9982_s14 = scalar_lea.vmem %s35_s28, 262144  ;;  %p9987_p4 = scmp.lt.s32.totalorder %s35_s28, %s35_s28 }
   0x9   :  { %p9983_p3 = scmp.ne.s32.totalorder %s35_s28, %s9982_s14  ;;  %p9988_p5 = scmp.lt.s32.totalorder %s9982_s14, %s9982_s14 }
   0xb   :  { %p9989_p6 = por %p9988_p5, %p9987_p4 }
   0xd   :  { %p9990_p7 = pnand %p9989_p6, %p9983_p3 }
   0xf   :  { %9993 = shalt.err (!%p9990_p7)
}
  0x10   :  { %s10021_s15 = smov 4096   ;;  %s10022_s16 = smov 256  }
  0x11   :  { %40 = dma.hbm_to_vmem [thread:$0]  %s11978_s7, 262144, %s35_s28, [#allocation3], %s10021_s15, %s10021_s15, %s10022_s16  }
  0x12   :  { %10016 = dma.done.wait [#allocation3], 262144  }
  0x13   :  { %10017 = vsyncadd [#allocation3], 4294705152  ;;  %v68_v0 = vld [vmem:[%s11972_s1 + $0x80] sm:$0xff]  ;;  %v69_v1 = vld [vmem:[%s11972_s1 + $0x88] sm:$0xff]  ;;  %v10023_v47 = vmov 1983009808   ;;  %v583_v49 = vlaneseq }
  0x14   :  { %v52_v2 = vld [vmem:[%s11972_s1] sm:$0xff]  ;;  %v7306_v3 = vpack.c.bf16 %v69_v1, %v68_v0  ;;  %v53_v4 = vld [vmem:[%s11972_s1 + $0x8] sm:$0xff]  ;;  %v70_v11 = vld [vmem:[%s11972_s1 + $0x90] sm:$0xff]  ;;  %v581_v48 = vunpack.c.l.s4 %v10023_v47  ;;  %vm10025_vm0 = vmmov 0   ;;  %vm1887_vm1 = vcmask 785408   ;;  %s10027_s19 = smov [#allocation5]  }
  0x15   :  { %v100_v5 = vld [vmem:[%s11972_s1 + $0x180] sm:$0xff]  ;;  %v101_v6 = vld [vmem:[%s11972_s1 + $0x188] sm:$0xff]  ;;  %v7308_v7 = vpack.c.bf16 %v53_v4, %v52_v2  ;;  %v71_v13 = vld [vmem:[%s11972_s1 + $0x98] sm:$0xff]  ;;  %v10211_v0 = vshrl.u32 %v583_v49, 7  ;;  %vm2000_vm2 = vcmask 261120   ;;  %s6688_s20 = sshll.u32 %s10027_s19, 4  ;;  %s6689_s20 = int_to_ptr.vmem [resolvable:$true] %s6688_s20 }
  0x16   :  { %v7338_v8 = vpack.c.bf16 %v101_v6, %v100_v5  ;;  %v84_v9 = vld [vmem:[%s11972_s1 + $0x100] sm:$0xff]  ;;  %v85_v10 = vld [vmem:[%s11972_s1 + $0x108] sm:$0xff]  ;;  %7307 = vmatprep.subr.bf16.mxu0 %v7306_v3  ;;  %v54_v14 = vld [vmem:[%s11972_s1 + $0x10] sm:$0xff]  ;;  %v7310_v16 = vpack.c.bf16 %v71_v13, %v70_v11  ;;  %v582_v63 = vunpack.c.0.s8 %v581_v48  ;;  %s9994_s23 = scalar_lea.vmem %s6689_s20, 1024  ;;  %p9999_p9 = scmp.lt.s32.totalorder %s6689_s20, %s6689_s20 }
  0x17   :  { %v7340_v12 = vpack.c.bf16 %v85_v10, %v84_v9  ;;  %v55_v15 = vld [vmem:[%s11972_s1 + $0x18] sm:$0xff]  ;;  %7309 = vmatpush3.bf16.msra.mxu0 %v7308_v7  ;;  %v102_v18 = vld [vmem:[%s11972_s1 + $0x190] sm:$0xff]  ;;  %v72_v23 = vld [vmem:[%s11972_s1 + $0xa0] sm:$0xff]  ;;  %p9995_p8 = scmp.ne.s32.totalorder %s6689_s20, %s9994_s23  ;;  %p10000_p10 = scmp.lt.s32.totalorder %s9994_s23, %s9994_s23 }
  0x18   :  { %7339 = vmatprep.subr.bf16.mxu1 %v7338_v8  ;;  %v7312_v17 = vpack.c.bf16 %v55_v15, %v54_v14  ;;  %v103_v19 = vld [vmem:[%s11972_s1 + $0x198] sm:$0xff]  ;;  %v86_v20 = vld [vmem:[%s11972_s1 + $0x110] sm:$0xff]  ;;  %v73_v24 = vld [vmem:[%s11972_s1 + $0xa8] sm:$0xff]  ;;  %7311 = vmatprep.subr.bf16.mxu0 %v7310_v16  ;;  %v10238_v13 = vsub.s32 %v582_v63, %v10211_v0 }
  0x19   :  { %7341 = vmatpush3.bf16.msra.mxu1 %v7340_v12  ;;  %v7342_v21 = vpack.c.bf16 %v103_v19, %v102_v18  ;;  %v87_v22 = vld [vmem:[%s11972_s1 + $0x118] sm:$0xff]  ;;  %v7314_v26 = vpack.c.bf16 %v73_v24, %v72_v23  ;;  %v56_v27 = vld [vmem:[%s11972_s1 + $0x20] sm:$0xff]  ;;  %v57_v28 = vld [vmem:[%s11972_s1 + $0x28] sm:$0xff]  ;;  %p10001_p11 = por %p10000_p10, %p9999_p9 }
  0x1a   :  { %v7344_v25 = vpack.c.bf16 %v87_v22, %v86_v20  ;;  %v104_v29 = vld [vmem:[%s11972_s1 + $0x1a0] sm:$0xff]  ;;  %v105_v30 = vld [vmem:[%s11972_s1 + $0x1a8] sm:$0xff]  ;;  %v7316_v33 = vpack.c.bf16 %v57_v28, %v56_v27  ;;  %v74_v35 = vld [vmem:[%s11972_s1 + $0xb0] sm:$0xff] }
  0x1b   :  { %7343 = vmatprep.subr.bf16.mxu1 %v7342_v21  ;;  %v88_v31 = vld [vmem:[%s11972_s1 + $0x120] sm:$0xff]  ;;  %v89_v32 = vld [vmem:[%s11972_s1 + $0x128] sm:$0xff]  ;;  %7313 = vmatpush3.bf16.msra.mxu0 %v7312_v17  ;;  %v7346_v34 = vpack.c.bf16 %v105_v30, %v104_v29  ;;  %v75_v36 = vld [vmem:[%s11972_s1 + $0xb8] sm:$0xff]  ;;  %p10002_p12 = pnand %p10001_p11, %p9995_p8 }
  0x1c   :  { %v58_v37 = vld [vmem:[%s11972_s1 + $0x30] sm:$0xff]  ;;  %7315 = vmatprep.subr.bf16.mxu0 %v7314_v26  ;;  %v7348_v38 = vpack.c.bf16 %v89_v32, %v88_v31  ;;  %v7318_v39 = vpack.c.bf16 %v75_v36, %v74_v35  ;;  %v59_v40 = vld [vmem:[%s11972_s1 + $0x38] sm:$0xff]  ;;  %v76_v46 = vld [vmem:[%s11972_s1 + $0xc0] sm:$0xff] }
  0x1d   :  { %7345 = vmatpush3.bf16.msra.mxu1 %v7344_v25  ;;  %v106_v41 = vld [vmem:[%s11972_s1 + $0x1b0] sm:$0xff]  ;;  %v107_v42 = vld [vmem:[%s11972_s1 + $0x1b8] sm:$0xff]  ;;  %v77_v50 = vld [vmem:[%s11972_s1 + $0xc8] sm:$0xff]  ;;  %v7320_v51 = vpack.c.bf16 %v59_v40, %v58_v37 }
  0x1e   :  { %7347 = vmatprep.subr.bf16.mxu1 %v7346_v34  ;;  %v7350_v43 = vpack.c.bf16 %v107_v42, %v106_v41  ;;  %v90_v44 = vld [vmem:[%s11972_s1 + $0x130] sm:$0xff]  ;;  %v91_v45 = vld [vmem:[%s11972_s1 + $0x138] sm:$0xff]  ;;  %v108_v52 = vld [vmem:[%s11972_s1 + $0x1c0] sm:$0xff]  ;;  %v7322_v55 = vpack.c.bf16 %v77_v50, %v76_v46 }
  0x1f   :  { %7317 = vmatpush3.bf16.msra.mxu0 %v7316_v33  ;;  %v109_v53 = vld [vmem:[%s11972_s1 + $0x1c8] sm:$0xff]  ;;  %v7352_v54 = vpack.c.bf16 %v91_v45, %v90_v44  ;;  %v60_v56 = vld [vmem:[%s11972_s1 + $0x40] sm:$0xff]  ;;  %v78_v61 = vld [vmem:[%s11972_s1 + $0xd0] sm:$0xff] }
  0x20   :  { %7319 = vmatprep.subr.bf16.mxu0 %v7318_v39  ;;  %v61_v57 = vld [vmem:[%s11972_s1 + $0x48] sm:$0xff]  ;;  %v92_v58 = vld [vmem:[%s11972_s1 + $0x140] sm:$0xff]  ;;  %v7354_v59 = vpack.c.bf16 %v109_v53, %v108_v52  ;;  %v79_v62 = vld [vmem:[%s11972_s1 + $0xd8] sm:$0xff] }
  0x21   :  { %7349 = vmatpush3.bf16.msra.mxu1 %v7348_v38  ;;  %v93_v60 = vld [vmem:[%s11972_s1 + $0x148] sm:$0xff]  ;;  %v110_v1 = vld [vmem:[%s11972_s1 + $0x1d0] sm:$0xff]  ;;  %v111_v2 = vld [vmem:[%s11972_s1 + $0x1d8] sm:$0xff]  ;;  %v7324_v3 = vpack.c.bf16 %v61_v57, %v60_v56  ;;  %v7326_v5 = vpack.c.bf16 %v79_v62, %v78_v61 }
  0x22   :  { %7351 = vmatprep.subr.bf16.mxu1 %v7350_v43  ;;  %v7356_v4 = vpack.c.bf16 %v93_v60, %v92_v58  ;;  %v62_v6 = vld [vmem:[%s11972_s1 + $0x50] sm:$0xff]  ;;  %v63_v7 = vld [vmem:[%s11972_s1 + $0x58] sm:$0xff]  ;;  %v7358_v9 = vpack.c.bf16 %v111_v2, %v110_v1  ;;  %v80_v11 = vld [vmem:[%s11972_s1 + $0xe0] sm:$0xff] }
  0x23   :  { %7321 = vmatpush3.bf16.msra.mxu0 %v7320_v51  ;;  %v94_v8 = vld [vmem:[%s11972_s1 + $0x150] sm:$0xff]  ;;  %v95_v10 = vld [vmem:[%s11972_s1 + $0x158] sm:$0xff]  ;;  %v81_v12 = vld [vmem:[%s11972_s1 + $0xe8] sm:$0xff]  ;;  %v7328_v16 = vpack.c.bf16 %v63_v7, %v62_v6 }
  0x24   :  { %7323 = vmatprep.subr.bf16.mxu0 %v7322_v55  ;;  %v112_v14 = vld [vmem:[%s11972_s1 + $0x1e0] sm:$0xff]  ;;  %v113_v15 = vld [vmem:[%s11972_s1 + $0x1e8] sm:$0xff]  ;;  %v7360_v18 = vpack.c.bf16 %v95_v10, %v94_v8  ;;  %v7330_v19 = vpack.c.bf16 %v81_v12, %v80_v11  ;;  %v82_v25 = vld [vmem:[%s11972_s1 + $0xf0] sm:$0xff] }
  0x25   :  { %7353 = vmatpush3.bf16.msra.mxu1 %v7352_v54  ;;  %v64_v17 = vld [vmem:[%s11972_s1 + $0x60] sm:$0xff]  ;;  %v65_v20 = vld [vmem:[%s11972_s1 + $0x68] sm:$0xff]  ;;  %v7362_v23 = vpack.c.bf16 %v113_v15, %v112_v14  ;;  %v83_v26 = vld [vmem:[%s11972_s1 + $0xf8] sm:$0xff] }
  0x26   :  { %7355 = vmatprep.subr.bf16.mxu1 %v7354_v59  ;;  %v96_v21 = vld [vmem:[%s11972_s1 + $0x160] sm:$0xff]  ;;  %v97_v24 = vld [vmem:[%s11972_s1 + $0x168] sm:$0xff]  ;;  %v114_v29 = vld [vmem:[%s11972_s1 + $0x1f0] sm:$0xff]  ;;  %v7332_v31 = vpack.c.bf16 %v65_v20, %v64_v17  ;;  %v7334_v35 = vpack.c.bf16 %v83_v26, %v82_v25 }
  0x27   :  { %7325 = vmatpush3.bf16.msra.mxu0 %v7324_v3  ;;  %v44_v22 = vld [vmem:[%s11971_s0] sm:$0xff]  ;;  %v115_v30 = vld [vmem:[%s11972_s1 + $0x1f8] sm:$0xff]  ;;  %v7364_v34 = vpack.c.bf16 %v97_v24, %v96_v21  ;;  %v66_v36 = vld [vmem:[%s11972_s1 + $0x70] sm:$0xff] }
  0x28   :  { %7327 = vmatprep.subr.bf16.mxu0 %v7326_v5  ;;  %v586_v27 = vrot.slane %v44_v22, %v10238_v13  ;;  %v579_v28 = vcombine.high %v44_v22, %v44_v22  ;;  %v67_v37 = vld [vmem:[%s11972_s1 + $0x78] sm:$0xff]  ;;  %v98_v38 = vld [vmem:[%s11972_s1 + $0x170] sm:$0xff]  ;;  %v7366_v39 = vpack.c.bf16 %v115_v30, %v114_v29  ;;  %v132_v41 = vld [vmem:[%s11972_s1 + $0x280] sm:$0xff] }
  0x29   :  { %7357 = vmatpush3.bf16.msra.mxu1 %v7356_v4  ;;  %v99_v40 = vld [vmem:[%s11972_s1 + $0x178] sm:$0xff]  ;;  %v133_v42 = vld [vmem:[%s11972_s1 + $0x288] sm:$0xff]  ;;  %v164_v44 = vld [vmem:[%s11972_s1 + $0x380] sm:$0xff]  ;;  %v7336_v46 = vpack.c.bf16 %v67_v37, %v66_v36 }
  0x2a   :  { %7359 = vmatprep.subr.bf16.mxu1 %v7358_v9  ;;  %v594_v32 = vcombine.high %v586_v27, %v586_v27  ;;  %v593_v33 = vrot.slane %v579_v28, %v10238_v13  ;;  %v165_v45 = vld [vmem:[%s11972_s1 + $0x388] sm:$0xff]  ;;  %v7368_v47 = vpack.c.bf16 %v99_v40, %v98_v38  ;;  %v7370_v48 = vpack.c.bf16 %v133_v42, %v132_v41  ;;  %v116_v49 = vld [vmem:[%s11972_s1 + $0x200] sm:$0xff]  ;;  %v134_v54 = vld [vmem:[%s11972_s1 + $0x290] sm:$0xff] }
  0x2b   :  { %7329 = vmatpush3.bf16.msra.mxu0 %v7328_v16  ;;  %v117_v50 = vld [vmem:[%s11972_s1 + $0x208] sm:$0xff]  ;;  %v148_v51 = vld [vmem:[%s11972_s1 + $0x300] sm:$0xff]  ;;  %v7402_v52 = vpack.c.bf16 %v165_v45, %v164_v44  ;;  %v135_v55 = vld [vmem:[%s11972_s1 + $0x298] sm:$0xff] }
  0x2c   :  { %7331 = vmatprep.subr.bf16.mxu0 %v7330_v19  ;;  %811 = vmatprep.mubr.f32.mxu0 %v594_v32  ;;  %v595_v43 = vcombine.high %v593_v33, %v593_v33  ;;  %v149_v53 = vld [vmem:[%s11972_s1 + $0x308] sm:$0xff]  ;;  %v166_v56 = vld [vmem:[%s11972_s1 + $0x390] sm:$0xff]  ;;  %v167_v57 = vld [vmem:[%s11972_s1 + $0x398] sm:$0xff]  ;;  %v7372_v58 = vpack.c.bf16 %v117_v50, %v116_v49  ;;  %v7374_v60 = vpack.c.bf16 %v135_v55, %v134_v54 }
  0x2d   :  { %7361 = vmatpush3.bf16.msra.mxu1 %v7360_v18  ;;  %v7404_v59 = vpack.c.bf16 %v149_v53, %v148_v51  ;;  %v118_v61 = vld [vmem:[%s11972_s1 + $0x210] sm:$0xff]  ;;  %v119_v62 = vld [vmem:[%s11972_s1 + $0x218] sm:$0xff]  ;;  %v7406_v1 = vpack.c.bf16 %v167_v57, %v166_v56  ;;  %v136_v3 = vld [vmem:[%s11972_s1 + $0x2a0] sm:$0xff] }
  0x2e   :  { %7363 = vmatprep.subr.bf16.mxu1 %v7362_v23  ;;  %881 = vmatprep.mubr.f32.mxu1 %v595_v43  ;;  %v150_v63 = vld [vmem:[%s11972_s1 + $0x310] sm:$0xff]  ;;  %v151_v2 = vld [vmem:[%s11972_s1 + $0x318] sm:$0xff]  ;;  %v137_v4 = vld [vmem:[%s11972_s1 + $0x2a8] sm:$0xff]  ;;  %v7376_v7 = vpack.c.bf16 %v119_v62, %v118_v61 }
  0x2f   :  { %7333 = vmatpush3.bf16.msra.mxu0 %v7332_v31  ;;  %v168_v5 = vld [vmem:[%s11972_s1 + $0x3a0] sm:$0xff]  ;;  %v169_v6 = vld [vmem:[%s11972_s1 + $0x3a8] sm:$0xff]  ;;  %v7408_v8 = vpack.c.bf16 %v151_v2, %v150_v63  ;;  %v7378_v9 = vpack.c.bf16 %v137_v4, %v136_v3  ;;  %v138_v16 = vld [vmem:[%s11972_s1 + $0x2b0] sm:$0xff] }
  0x30   :  { %7335 = vmatprep.subr.bf16.mxu0 %v7334_v35  ;;  %v120_v10 = vld [vmem:[%s11972_s1 + $0x220] sm:$0xff]  ;;  %v121_v11 = vld [vmem:[%s11972_s1 + $0x228] sm:$0xff]  ;;  %v7410_v14 = vpack.c.bf16 %v169_v6, %v168_v5  ;;  %v139_v17 = vld [vmem:[%s11972_s1 + $0x2b8] sm:$0xff] }
  0x31   :  { %7365 = vmatpush3.bf16.msra.mxu1 %v7364_v34  ;;  %v152_v12 = vld [vmem:[%s11972_s1 + $0x320] sm:$0xff]  ;;  %v153_v15 = vld [vmem:[%s11972_s1 + $0x328] sm:$0xff]  ;;  %v170_v18 = vld [vmem:[%s11972_s1 + $0x3b0] sm:$0xff]  ;;  %v7380_v20 = vpack.c.bf16 %v121_v11, %v120_v10  ;;  %v7382_v22 = vpack.c.bf16 %v139_v17, %v138_v16 }
  0x32   :  { %7367 = vmatprep.subr.bf16.mxu1 %v7366_v39  ;;  %v171_v19 = vld [vmem:[%s11972_s1 + $0x3b8] sm:$0xff]  ;;  %v7412_v21 = vpack.c.bf16 %v153_v15, %v152_v12  ;;  %v122_v23 = vld [vmem:[%s11972_s1 + $0x230] sm:$0xff]  ;;  %v140_v28 = vld [vmem:[%s11972_s1 + $0x2c0] sm:$0xff] }
  0x33   :  { %7337 = vmatpush3.bf16.msra.mxu0 %v7336_v46  ;;  %v123_v24 = vld [vmem:[%s11972_s1 + $0x238] sm:$0xff]  ;;  %v154_v25 = vld [vmem:[%s11972_s1 + $0x330] sm:$0xff]  ;;  %v7414_v26 = vpack.c.bf16 %v171_v19, %v170_v18  ;;  %v141_v29 = vld [vmem:[%s11972_s1 + $0x2c8] sm:$0xff] }
  0x34   :  { %7371 = vmatprep.subr.bf16.mxu0 %v7370_v48  ;;  %v172_v30 = vld [vmem:[%s11972_s1 + $0x3c0] sm:$0xff]  ;;  %v173_v31 = vld [vmem:[%s11972_s1 + $0x3c8] sm:$0xff]  ;;  %v7386_v37 = vpack.c.bf16 %v141_v29, %v140_v28  ;;  %v142_v43 = vld [vmem:[%s11972_s1 + $0x2d0] sm:$0xff] }
  0x35   :  { %7369 = vmatpush3.bf16.msra.mxu1 %v7368_v47  ;;  %v45_v32 = vld [vmem:[%s11971_s0 + $0x8] sm:$0xff]  ;;  %v124_v38 = vld [vmem:[%s11972_s1 + $0x240] sm:$0xff]  ;;  %v7418_v41 = vpack.c.bf16 %v173_v31, %v172_v30  ;;  %v143_v44 = vld [vmem:[%s11972_s1 + $0x2d8] sm:$0xff] }
  0x36   :  { %7403 = vmatprep.subr.bf16.mxu1 %v7402_v52  ;;  %812 = vmatmul.mubr.f32.vlgmr.msra.gmra.mrb[0].mxu0 %v586_v27  ;;  %v155_v27 = vld [vmem:[%s11972_s1 + $0x338] sm:$0xff]  ;;  %v10399_v34 = vrot.slane %v45_v32, %v10238_v13  ;;  %v596_v35 = vcombine.high %v45_v32, %v45_v32  ;;  %v125_v39 = vld [vmem:[%s11972_s1 + $0x248] sm:$0xff]  ;;  %v156_v40 = vld [vmem:[%s11972_s1 + $0x340] sm:$0xff]  ;;  %v7390_v52 = vpack.c.bf16 %v143_v44, %v142_v43 }
  0x37   :  { %7373 = vmatpush3.bf16.msra.mxu0 %v7372_v58  ;;  %v7416_v36 = vpack.c.bf16 %v155_v27, %v154_v25  ;;  %v157_v42 = vld [vmem:[%s11972_s1 + $0x348] sm:$0xff]  ;;  %v174_v47 = vld [vmem:[%s11972_s1 + $0x3d0] sm:$0xff]  ;;  %v175_v48 = vld [vmem:[%s11972_s1 + $0x3d8] sm:$0xff]  ;;  %v7388_v49 = vpack.c.bf16 %v125_v39, %v124_v38 }
  0x38   :  { %882 = vmatmul.mubr.f32.vlgmr.msra.gmra.mrb[0].mxu1 %v593_v33  ;;  %7375 = vmatprep.subr.bf16.mxu0 %v7374_v60  ;;  %v7384_v33 = vpack.c.bf16 %v123_v24, %v122_v23  ;;  %v611_v45 = vcombine.high %v10399_v34, %v10399_v34  ;;  %v10422_v46 = vrot.slane %v596_v35, %v10238_v13  ;;  %v126_v53 = vld [vmem:[%s11972_s1 + $0x250] sm:$0xff]  ;;  %v127_v54 = vld [vmem:[%s11972_s1 + $0x258] sm:$0xff]  ;;  %v144_v58 = vld [vmem:[%s11972_s1 + $0x2e0] sm:$0xff] }
  0x39   :  { %7405 = vmatpush3.bf16.msra.mxu1 %v7404_v59  ;;  %v7420_v51 = vpack.c.bf16 %v157_v42, %v156_v40  ;;  %v158_v55 = vld [vmem:[%s11972_s1 + $0x350] sm:$0xff]  ;;  %v7422_v56 = vpack.c.bf16 %v175_v48, %v174_v47  ;;  %v159_v57 = vld [vmem:[%s11972_s1 + $0x358] sm:$0xff]  ;;  %v145_v59 = vld [vmem:[%s11972_s1 + $0x2e8] sm:$0xff]  ;;  %v7392_v62 = vpack.c.bf16 %v127_v54, %v126_v53 }
  0x3a   :  { %7407 = vmatprep.subr.bf16.mxu1 %v7406_v1  ;;  %951 = vmatprep.mubr.f32.mxu0 %v611_v45  ;;  %v612_v50 = vcombine.high %v10422_v46, %v10422_v46  ;;  %v176_v60 = vld [vmem:[%s11972_s1 + $0x3e0] sm:$0xff]  ;;  %v177_v61 = vld [vmem:[%s11972_s1 + $0x3e8] sm:$0xff]  ;;  %v7424_v63 = vpack.c.bf16 %v159_v57, %v158_v55  ;;  %v7394_v1 = vpack.c.bf16 %v145_v59, %v144_v58  ;;  %v179_v10 = vld [vmem:[%s11972_s1 + $0x3f8] sm:$0xff] }
  0x3b   :  { %7377 = vmatpush3.bf16.msra.mxu0 %v7376_v7  ;;  %v128_v2 = vld [vmem:[%s11972_s1 + $0x260] sm:$0xff]  ;;  %v129_v3 = vld [vmem:[%s11972_s1 + $0x268] sm:$0xff]  ;;  %v7426_v5 = vpack.c.bf16 %v177_v61, %v176_v60  ;;  %v146_v7 = vld [vmem:[%s11972_s1 + $0x2f0] sm:$0xff] }
  0x3c   :  { %7379 = vmatprep.subr.bf16.mxu0 %v7378_v9  ;;  %1021 = vmatprep.mubr.f32.mxu1 %v612_v50  ;;  %v160_v4 = vld [vmem:[%s11972_s1 + $0x360] sm:$0xff]  ;;  %v161_v6 = vld [vmem:[%s11972_s1 + $0x368] sm:$0xff]  ;;  %v178_v9 = vld [vmem:[%s11972_s1 + $0x3f0] sm:$0xff]  ;;  %v7396_v11 = vpack.c.bf16 %v129_v3, %v128_v2 }
  0x3d   :  { %7409 = vmatpush3.bf16.msra.mxu1 %v7408_v8  ;;  %v147_v8 = vld [vmem:[%s11972_s1 + $0x2f8] sm:$0xff]  ;;  %v7428_v12 = vpack.c.bf16 %v161_v6, %v160_v4  ;;  %v130_v15 = vld [vmem:[%s11972_s1 + $0x270] sm:$0xff]  ;;  %v7430_v18 = vpack.c.bf16 %v179_v10, %v178_v9  ;;  %v229_v23 = vld [vmem:[%s11972_s1 + $0x588] sm:$0xff] }
  0x3e   :  { %7411 = vmatprep.subr.bf16.mxu1 %v7410_v14  ;;  %v7398_v14 = vpack.c.bf16 %v147_v8, %v146_v7  ;;  %v131_v16 = vld [vmem:[%s11972_s1 + $0x278] sm:$0xff]  ;;  %v162_v17 = vld [vmem:[%s11972_s1 + $0x370] sm:$0xff]  ;;  %v180_v25 = vld [vmem:[%s11972_s1 + $0x400] sm:$0xff] }
  0x3f   :  { %7381 = vmatpush3.bf16.msra.mxu0 %v7380_v20  ;;  %v163_v19 = vld [vmem:[%s11972_s1 + $0x378] sm:$0xff]  ;;  %v196_v20 = vld [vmem:[%s11972_s1 + $0x480] sm:$0xff]  ;;  %v7400_v24 = vpack.c.bf16 %v131_v16, %v130_v15  ;;  %v181_v28 = vld [vmem:[%s11972_s1 + $0x408] sm:$0xff] }
  0x40   :  { %7383 = vmatprep.subr.bf16.mxu0 %v7382_v22  ;;  %v228_v22 = vld [vmem:[%s11972_s1 + $0x580] sm:$0xff]  ;;  %v213_v30 = vld [vmem:[%s11972_s1 + $0x508] sm:$0xff]  ;;  %v198_v32 = vld [vmem:[%s11972_s1 + $0x490] sm:$0xff] }
  0x41   :  { %7413 = vmatpush3.bf16.msra.mxu1 %v7412_v21  ;;  %v197_v21 = vld [vmem:[%s11972_s1 + $0x488] sm:$0xff]  ;;  %v212_v29 = vld [vmem:[%s11972_s1 + $0x500] sm:$0xff]  ;;  %v7466_v31 = vpack.c.bf16 %v229_v23, %v228_v22  ;;  %v230_v35 = vld [vmem:[%s11972_s1 + $0x590] sm:$0xff] }
  0x42   :  { %7415 = vmatprep.subr.bf16.mxu1 %v7414_v26  ;;  %v7432_v26 = vpack.c.bf16 %v163_v19, %v162_v17  ;;  %v7434_v27 = vpack.c.bf16 %v197_v21, %v196_v20  ;;  %v7468_v38 = vpack.c.bf16 %v213_v30, %v212_v29  ;;  %v46_v39 = vld [vmem:[%s11971_s0 + $0x10] sm:$0xff]  ;;  %v183_v42 = vld [vmem:[%s11972_s1 + $0x418] sm:$0xff]  ;;  %v201_v50 = vld [vmem:[%s11972_s1 + $0x4a8] sm:$0xff] }
  0x43   :  { %7385 = vmatpush3.bf16.msra.mxu0 %v7384_v33  ;;  %v199_v33 = vld [vmem:[%s11972_s1 + $0x498] sm:$0xff]  ;;  %v214_v43 = vld [vmem:[%s11972_s1 + $0x510] sm:$0xff]  ;;  %v10541_v44 = vrot.slane %v46_v39, %v10238_v13  ;;  %v613_v45 = vcombine.high %v46_v39, %v46_v39  ;;  %v184_v57 = vld [vmem:[%s11972_s1 + $0x420] sm:$0xff] }
  0x44   :  { %7387 = vmatprep.subr.bf16.mxu0 %v7386_v37  ;;  %v7436_v37 = vpack.c.bf16 %v181_v28, %v180_v25  ;;  %v7438_v40 = vpack.c.bf16 %v199_v33, %v198_v32  ;;  %v215_v48 = vld [vmem:[%s11972_s1 + $0x518] sm:$0xff]  ;;  %v185_v58 = vld [vmem:[%s11972_s1 + $0x428] sm:$0xff]  ;;  %v216_v59 = vld [vmem:[%s11972_s1 + $0x520] sm:$0xff] }
  0x45   :  { %7417 = vmatpush3.bf16.msra.mxu1 %v7416_v36  ;;  %v231_v36 = vld [vmem:[%s11972_s1 + $0x598] sm:$0xff]  ;;  %v628_v53 = vcombine.high %v10541_v44, %v10541_v44  ;;  %v10562_v54 = vrot.slane %v613_v45, %v10238_v13  ;;  %v217_v61 = vld [vmem:[%s11972_s1 + $0x528] sm:$0xff]  ;;  %v7444_v3 = vpack.c.bf16 %v185_v58, %v184_v57  ;;  %v186_v6 = vld [vmem:[%s11972_s1 + $0x430] sm:$0xff] }
  0x46   :  { %7419 = vmatprep.subr.bf16.mxu1 %v7418_v41  ;;  %v182_v41 = vld [vmem:[%s11972_s1 + $0x410] sm:$0xff]  ;;  %v7470_v47 = vpack.c.bf16 %v231_v36, %v230_v35  ;;  %v235_v2 = vld [vmem:[%s11972_s1 + $0x5b8] sm:$0xff]  ;;  %v7476_v4 = vpack.c.bf16 %v217_v61, %v216_v59  ;;  %v237_v15 = vld [vmem:[%s11972_s1 + $0x5c8] sm:$0xff] }
  0x47   :  { %7389 = vmatpush3.bf16.msra.mxu0 %v7388_v49  ;;  %v200_v49 = vld [vmem:[%s11972_s1 + $0x4a0] sm:$0xff]  ;;  %v7440_v55 = vpack.c.bf16 %v183_v42, %v182_v41  ;;  %v187_v7 = vld [vmem:[%s11972_s1 + $0x438] sm:$0xff]  ;;  %v218_v8 = vld [vmem:[%s11972_s1 + $0x530] sm:$0xff] }
  0x48   :  { %7391 = vmatprep.subr.bf16.mxu0 %v7390_v52  ;;  %v233_v52 = vld [vmem:[%s11972_s1 + $0x5a8] sm:$0xff]  ;;  %v219_v10 = vld [vmem:[%s11972_s1 + $0x538] sm:$0xff]  ;;  %v7448_v16 = vpack.c.bf16 %v187_v7, %v186_v6  ;;  %v188_v19 = vld [vmem:[%s11972_s1 + $0x440] sm:$0xff] }
  0x49   :  { %7421 = vmatpush3.bf16.msra.mxu1 %v7420_v51  ;;  %v232_v51 = vld [vmem:[%s11972_s1 + $0x5a0] sm:$0xff]  ;;  %v7480_v17 = vpack.c.bf16 %v219_v10, %v218_v8  ;;  %v189_v20 = vld [vmem:[%s11972_s1 + $0x448] sm:$0xff]  ;;  %v207_v25 = vld [vmem:[%s11972_s1 + $0x4d8] sm:$0xff] }
  0x4a   :  { %7423 = vmatprep.subr.bf16.mxu1 %v7422_v56  ;;  %v7442_v56 = vpack.c.bf16 %v201_v50, %v200_v49  ;;  %v7474_v60 = vpack.c.bf16 %v233_v52, %v232_v51  ;;  %v220_v21 = vld [vmem:[%s11972_s1 + $0x540] sm:$0xff]  ;;  %v221_v23 = vld [vmem:[%s11972_s1 + $0x548] sm:$0xff]  ;;  %v7452_v28 = vpack.c.bf16 %v189_v20, %v188_v19  ;;  %v191_v32 = vld [vmem:[%s11972_s1 + $0x458] sm:$0xff] }
  0x4b   :  { %7393 = vmatpush3.bf16.msra.mxu0 %v7392_v62  ;;  %v202_v62 = vld [vmem:[%s11972_s1 + $0x4b0] sm:$0xff]  ;;  %v7484_v29 = vpack.c.bf16 %v221_v23, %v220_v21  ;;  %v223_v36 = vld [vmem:[%s11972_s1 + $0x558] sm:$0xff]  ;;  %v240_v39 = vld [vmem:[%s11972_s1 + $0x5e0] sm:$0xff] }
  0x4c   :  { %7395 = vmatprep.subr.bf16.mxu0 %v7394_v1  ;;  %v234_v1 = vld [vmem:[%s11972_s1 + $0x5b0] sm:$0xff]  ;;  %v192_v45 = vld [vmem:[%s11972_s1 + $0x460] sm:$0xff]  ;;  %v225_v50 = vld [vmem:[%s11972_s1 + $0x568] sm:$0xff] }
  0x4d   :  { %7425 = vmatpush3.bf16.msra.mxu1 %v7424_v63  ;;  %v203_v63 = vld [vmem:[%s11972_s1 + $0x4b8] sm:$0xff]  ;;  %v7478_v9 = vpack.c.bf16 %v235_v2, %v234_v1  ;;  %v222_v33 = vld [vmem:[%s11972_s1 + $0x550] sm:$0xff]  ;;  %v261_v1 = vld [vmem:[%s11972_s1 + $0x688] sm:$0xff] }
  0x4e   :  { %7427 = vmatprep.subr.bf16.mxu1 %v7426_v5  ;;  %v7446_v5 = vpack.c.bf16 %v203_v63, %v202_v62  ;;  %v7488_v42 = vpack.c.bf16 %v223_v36, %v222_v33  ;;  %v210_v51 = vld [vmem:[%s11972_s1 + $0x4f0] sm:$0xff]  ;;  %v211_v52 = vld [vmem:[%s11972_s1 + $0x4f8] sm:$0xff]  ;;  %v260_v63 = vld [vmem:[%s11972_s1 + $0x680] sm:$0xff] }
  0x4f   :  { %7397 = vmatpush3.bf16.msra.mxu0 %v7396_v11  ;;  %v204_v11 = vld [vmem:[%s11972_s1 + $0x4c0] sm:$0xff]  ;;  %v7462_v58 = vpack.c.bf16 %v211_v52, %v210_v51  ;;  %v194_v59 = vld [vmem:[%s11972_s1 + $0x470] sm:$0xff]  ;;  %v227_v62 = vld [vmem:[%s11972_s1 + $0x578] sm:$0xff]  ;;  %v7498_v7 = vpack.c.bf16 %v261_v1, %v260_v63 }
  0x50   :  { %7399 = vmatprep.subr.bf16.mxu0 %v7398_v14  ;;  %v236_v14 = vld [vmem:[%s11972_s1 + $0x5c0] sm:$0xff]  ;;  %v246_v23 = vld [vmem:[%s11972_s1 + $0x610] sm:$0xff]  ;;  %v251_v51 = vld [vmem:[%s11972_s1 + $0x638] sm:$0xff] }
  0x51   :  { %7429 = vmatpush3.bf16.msra.mxu1 %v7428_v12  ;;  %v205_v12 = vld [vmem:[%s11972_s1 + $0x4c8] sm:$0xff]  ;;  %v7482_v22 = vpack.c.bf16 %v237_v15, %v236_v14  ;;  %v292_v2 = vld [vmem:[%s11972_s1 + $0x780] sm:$0xff]  ;;  %v262_v14 = vld [vmem:[%s11972_s1 + $0x690] sm:$0xff] }
  0x52   :  { %7431 = vmatprep.subr.bf16.mxu1 %v7430_v18  ;;  %v7450_v18 = vpack.c.bf16 %v205_v12, %v204_v11  ;;  %v244_v8 = vld [vmem:[%s11972_s1 + $0x600] sm:$0xff]  ;;  %v277_v12 = vld [vmem:[%s11972_s1 + $0x708] sm:$0xff]  ;;  %v263_v15 = vld [vmem:[%s11972_s1 + $0x698] sm:$0xff] }
  0x53   :  { %7401 = vmatpush3.bf16.msra.mxu0 %v7400_v24  ;;  %v206_v24 = vld [vmem:[%s11972_s1 + $0x4d0] sm:$0xff]  ;;  %v276_v10 = vld [vmem:[%s11972_s1 + $0x700] sm:$0xff] }
  0x54   :  { %7435 = vmatprep.subr.bf16.mxu0 %v7434_v27  ;;  %v239_v27 = vld [vmem:[%s11972_s1 + $0x5d8] sm:$0xff]  ;;  %v7454_v30 = vpack.c.bf16 %v207_v25, %v206_v24  ;;  %v7532_v21 = vpack.c.bf16 %v277_v12, %v276_v10  ;;  %v278_v25 = vld [vmem:[%s11972_s1 + $0x710] sm:$0xff]  ;;  %v284_v63 = vld [vmem:[%s11972_s1 + $0x740] sm:$0xff] }
  0x55   :  { %7433 = vmatpush3.bf16.msra.mxu1 %v7432_v26  ;;  %v238_v26 = vld [vmem:[%s11972_s1 + $0x5d0] sm:$0xff]  ;;  %v247_v24 = vld [vmem:[%s11972_s1 + $0x618] sm:$0xff] }
  0x56   :  { %7467 = vmatprep.subr.bf16.mxu1 %v7466_v31  ;;  %952 = vmatmul.mubr.f32.vlgmr.msra.gmra.mrb[2].mxu0 %v10399_v34  ;;  %v7472_v34 = vpack.c.bf16 %v215_v48, %v214_v43  ;;  %v190_v31 = vld [vmem:[%s11972_s1 + $0x450] sm:$0xff]  ;;  %v7486_v35 = vpack.c.bf16 %v239_v27, %v238_v26  ;;  %v224_v48 = vld [vmem:[%s11972_s1 + $0x560] sm:$0xff]  ;;  %v279_v27 = vld [vmem:[%s11972_s1 + $0x718] sm:$0xff] }
  0x57   :  { %7437 = vmatpush3.bf16.msra.mxu0 %v7436_v37  ;;  %1091 = vmatprep.mubr.f32.mxu0 %v628_v53  ;;  %v208_v37 = vld [vmem:[%s11972_s1 + $0x4e0] sm:$0xff]  ;;  %v7456_v41 = vpack.c.bf16 %v191_v32, %v190_v31  ;;  %v242_v53 = vld [vmem:[%s11972_s1 + $0x5f0] sm:$0xff]  ;;  %v7492_v57 = vpack.c.bf16 %v225_v50, %v224_v48  ;;  %v297_v32 = vld [vmem:[%s11972_s1 + $0x7a8] sm:$0xff]  ;;  %v7536_v36 = vpack.c.bf16 %v279_v27, %v278_v25 }
  0x58   :  { %1022 = vmatmul.mubr.f32.vlgmr.msra.gmra.mrb[2].mxu1 %v10422_v46  ;;  %7439 = vmatprep.subr.bf16.mxu0 %v7438_v40  ;;  %v629_v46 = vcombine.high %v10562_v54, %v10562_v54  ;;  %v241_v40 = vld [vmem:[%s11972_s1 + $0x5e8] sm:$0xff]  ;;  %v296_v31 = vld [vmem:[%s11972_s1 + $0x7a0] sm:$0xff]  ;;  %v250_v50 = vld [vmem:[%s11972_s1 + $0x630] sm:$0xff] }
  0x59   :  { %7469 = vmatpush3.bf16.msra.mxu1 %v7468_v38  ;;  %v209_v38 = vld [vmem:[%s11972_s1 + $0x4e8] sm:$0xff]  ;;  %v7490_v49 = vpack.c.bf16 %v241_v40, %v240_v39  ;;  %v280_v39 = vld [vmem:[%s11972_s1 + $0x720] sm:$0xff]  ;;  %v7538_v40 = vpack.c.bf16 %v297_v32, %v296_v31  ;;  %v282_v52 = vld [vmem:[%s11972_s1 + $0x730] sm:$0xff] }
  0x5a   :  { %7471 = vmatprep.subr.bf16.mxu1 %v7470_v47  ;;  %1161 = vmatprep.mubr.f32.mxu1 %v629_v46  ;;  %v7458_v43 = vpack.c.bf16 %v209_v38, %v208_v37  ;;  %v193_v47 = vld [vmem:[%s11972_s1 + $0x468] sm:$0xff]  ;;  %v195_v46 = vld [vmem:[%s11972_s1 + $0x478] sm:$0xff]  ;;  %v254_v10 = vld [vmem:[%s11972_s1 + $0x650] sm:$0xff] }
  0x5b   :  { %7441 = vmatpush3.bf16.msra.mxu0 %v7440_v55  ;;  %v243_v55 = vld [vmem:[%s11972_s1 + $0x5f8] sm:$0xff]  ;;  %v249_v38 = vld [vmem:[%s11972_s1 + $0x628] sm:$0xff]  ;;  %v286_v12 = vld [vmem:[%s11972_s1 + $0x750] sm:$0xff] }
  0x5c   :  { %7443 = vmatprep.subr.bf16.mxu0 %v7442_v56  ;;  %v47_v56 = vld [vmem:[%s11971_s0 + $0x18] sm:$0xff]  ;;  %v7494_v61 = vpack.c.bf16 %v243_v55, %v242_v53  ;;  %v256_v25 = vld [vmem:[%s11972_s1 + $0x660] sm:$0xff]  ;;  %v306_v32 = vld [vmem:[%s11972_s1 + $0x7f0] sm:$0xff] }
  0x5d   :  { %7473 = vmatpush3.bf16.msra.mxu1 %v7472_v34  ;;  %v7460_v34 = vpack.c.bf16 %v193_v47, %v192_v45  ;;  %v299_v45 = vld [vmem:[%s11972_s1 + $0x7b8] sm:$0xff]  ;;  %v288_v27 = vld [vmem:[%s11972_s1 + $0x760] sm:$0xff] }
  0x5e   :  { %7475 = vmatprep.subr.bf16.mxu1 %v7474_v60  ;;  %v226_v60 = vld [vmem:[%s11972_s1 + $0x570] sm:$0xff]  ;;  %v283_v55 = vld [vmem:[%s11972_s1 + $0x738] sm:$0xff] }
  0x5f   :  { %7445 = vmatpush3.bf16.msra.mxu0 %v7444_v3  ;;  %v293_v3 = vld [vmem:[%s11972_s1 + $0x788] sm:$0xff]  ;;  %v7496_v6 = vpack.c.bf16 %v227_v62, %v226_v60  ;;  %v275_v31 = vld [vmem:[%s11972_s1 + $0x6f8] sm:$0xff] }
  0x60   :  { %7447 = vmatprep.subr.bf16.mxu0 %v7446_v5  ;;  %v7464_v5 = vpack.c.bf16 %v195_v46, %v194_v59  ;;  %v7530_v11 = vpack.c.bf16 %v293_v3, %v292_v2  ;;  %v7512_v59 = vpack.c.bf16 %v251_v51, %v250_v50  ;;  %v7544_v46 = vpack.c.bf16 %v283_v55, %v282_v52  ;;  %v253_v62 = vld [vmem:[%s11972_s1 + $0x648] sm:$0xff]  ;;  %v270_v3 = vld [vmem:[%s11972_s1 + $0x6d0] sm:$0xff]  ;;  %v308_v52 = vld [vmem:[%s11972_s1 + $0x800] sm:$0xff] }
  0x61   :  { %7477 = vmatpush3.bf16.msra.mxu1 %v7476_v4  ;;  %v630_v4 = vcombine.high %v47_v56, %v47_v56  ;;  %v285_v2 = vld [vmem:[%s11972_s1 + $0x748] sm:$0xff]  ;;  %v340_v55 = vld [vmem:[%s11972_s1 + $0x900] sm:$0xff] }
  0x62   :  { %7479 = vmatprep.subr.bf16.mxu1 %v7478_v9  ;;  %v245_v9 = vld [vmem:[%s11972_s1 + $0x608] sm:$0xff] }
  0x63   :  { %7449 = vmatpush3.bf16.msra.mxu0 %v7448_v16  ;;  %v10733_v16 = vrot.slane %v47_v56, %v10238_v13  ;;  %v10742_v19 = vrot.slane %v630_v4, %v10238_v13  ;;  %v7500_v20 = vpack.c.bf16 %v245_v9, %v244_v8  ;;  %v269_v56 = vld [vmem:[%s11972_s1 + $0x6c8] sm:$0xff]  ;;  %v271_v4 = vld [vmem:[%s11972_s1 + $0x6d8] sm:$0xff]  ;;  %v7548_v8 = vpack.c.bf16 %v285_v2, %v284_v63  ;;  %v310_v2 = vld [vmem:[%s11972_s1 + $0x810] sm:$0xff] }
  0x64   :  { %7451 = vmatprep.subr.bf16.mxu0 %v7450_v18  ;;  %v295_v18 = vld [vmem:[%s11972_s1 + $0x798] sm:$0xff]  ;;  %v7518_v9 = vpack.c.bf16 %v271_v4, %v270_v3  ;;  %v342_v4 = vld [vmem:[%s11972_s1 + $0x910] sm:$0xff] }
  0x65   :  { %7481 = vmatpush3.bf16.msra.mxu1 %v7480_v17  ;;  %v294_v17 = vld [vmem:[%s11972_s1 + $0x790] sm:$0xff]  ;;  %v646_v33 = vcombine.high %v10742_v19, %v10742_v19  ;;  %v311_v3 = vld [vmem:[%s11972_s1 + $0x818] sm:$0xff] }
  0x66   :  { %7483 = vmatprep.subr.bf16.mxu1 %v7482_v22  ;;  %v7502_v22 = vpack.c.bf16 %v263_v15, %v262_v14  ;;  %v7534_v26 = vpack.c.bf16 %v295_v18, %v294_v17  ;;  %v287_v15 = vld [vmem:[%s11972_s1 + $0x758] sm:$0xff]  ;;  %v272_v17 = vld [vmem:[%s11972_s1 + $0x6e0] sm:$0xff]  ;;  %v273_v18 = vld [vmem:[%s11972_s1 + $0x6e8] sm:$0xff] }
  0x67   :  { %7453 = vmatpush3.bf16.msra.mxu0 %v7452_v28  ;;  %v264_v28 = vld [vmem:[%s11972_s1 + $0x6a0] sm:$0xff] }
  0x68   :  { %7455 = vmatprep.subr.bf16.mxu0 %v7454_v30  ;;  %v645_v30 = vcombine.high %v10733_v16, %v10733_v16 }
  0x69   :  { %7485 = vmatpush3.bf16.msra.mxu1 %v7484_v29  ;;  %v265_v29 = vld [vmem:[%s11972_s1 + $0x6a8] sm:$0xff] }
  0x6a   :  { %7487 = vmatprep.subr.bf16.mxu1 %v7486_v35  ;;  %v7504_v35 = vpack.c.bf16 %v247_v24, %v246_v23  ;;  %v7506_v37 = vpack.c.bf16 %v265_v29, %v264_v28  ;;  %v7552_v23 = vpack.c.bf16 %v287_v15, %v286_v12  ;;  %v7522_v24 = vpack.c.bf16 %v273_v18, %v272_v17  ;;  %v289_v29 = vld [vmem:[%s11972_s1 + $0x768] sm:$0xff] }
  0x6b   :  { %7457 = vmatpush3.bf16.msra.mxu0 %v7456_v41  ;;  %v266_v41 = vld [vmem:[%s11972_s1 + $0x6b0] sm:$0xff]  ;;  %v313_v18 = vld [vmem:[%s11972_s1 + $0x828] sm:$0xff] }
  0x6c   :  { %7459 = vmatprep.subr.bf16.mxu0 %v7458_v43  ;;  %v298_v43 = vld [vmem:[%s11972_s1 + $0x7b0] sm:$0xff] }
  0x6d   :  { %7489 = vmatpush3.bf16.msra.mxu1 %v7488_v42  ;;  %v267_v42 = vld [vmem:[%s11972_s1 + $0x6b8] sm:$0xff]  ;;  %v7542_v53 = vpack.c.bf16 %v299_v45, %v298_v43  ;;  %v325_v43 = vld [vmem:[%s11972_s1 + $0x888] sm:$0xff]  ;;  %v356_v45 = vld [vmem:[%s11972_s1 + $0x980] sm:$0xff] }
  0x6e   :  { %7491 = vmatprep.subr.bf16.mxu1 %v7490_v49  ;;  %v7510_v49 = vpack.c.bf16 %v267_v42, %v266_v41  ;;  %v291_v41 = vld [vmem:[%s11972_s1 + $0x778] sm:$0xff]  ;;  %v324_v42 = vld [vmem:[%s11972_s1 + $0x880] sm:$0xff] }
  0x6f   :  { %7461 = vmatpush3.bf16.msra.mxu0 %v7460_v34  ;;  %v268_v34 = vld [vmem:[%s11972_s1 + $0x6c0] sm:$0xff]  ;;  %v7562_v51 = vpack.c.bf16 %v325_v43, %v324_v42 }
  0x70   :  { %7463 = vmatprep.subr.bf16.mxu0 %v7462_v58  ;;  %v301_v58 = vld [vmem:[%s11972_s1 + $0x7c8] sm:$0xff]  ;;  %v7514_v60 = vpack.c.bf16 %v269_v56, %v268_v34  ;;  %v348_v42 = vld [vmem:[%s11972_s1 + $0x940] sm:$0xff] }
  0x71   :  { %7493 = vmatpush3.bf16.msra.mxu1 %v7492_v57  ;;  %v300_v57 = vld [vmem:[%s11972_s1 + $0x7c0] sm:$0xff]  ;;  %v341_v56 = vld [vmem:[%s11972_s1 + $0x908] sm:$0xff] }
  0x72   :  { %7495 = vmatprep.subr.bf16.mxu1 %v7494_v61  ;;  %v252_v61 = vld [vmem:[%s11972_s1 + $0x640] sm:$0xff]  ;;  %v7546_v1 = vpack.c.bf16 %v301_v58, %v300_v57  ;;  %v326_v57 = vld [vmem:[%s11972_s1 + $0x890] sm:$0xff]  ;;  %v327_v58 = vld [vmem:[%s11972_s1 + $0x898] sm:$0xff]  ;;  %v7596_v63 = vpack.c.bf16 %v341_v56, %v340_v55 }
  0x73   :  { %7465 = vmatpush3.bf16.msra.mxu0 %v7464_v5  ;;  %v302_v5 = vld [vmem:[%s11972_s1 + $0x7d0] sm:$0xff] }
  0x74   :  { %7499 = vmatprep.subr.bf16.mxu0 %v7498_v7  ;;  %v7516_v7 = vpack.c.bf16 %v253_v62, %v252_v61  ;;  %v318_v55 = vld [vmem:[%s11972_s1 + $0x850] sm:$0xff] }
  0x75   :  { %7497 = vmatpush3.bf16.msra.mxu1 %v7496_v6  ;;  %v303_v6 = vld [vmem:[%s11972_s1 + $0x7d8] sm:$0xff]  ;;  %v350_v56 = vld [vmem:[%s11972_s1 + $0x950] sm:$0xff] }
  0x76   :  { %7531 = vmatprep.subr.bf16.mxu1 %v7530_v11  ;;  %1092 = vmatmul.mubr.f32.vlgmr.msra.gmra.mrb[4].mxu0 %v10541_v44  ;;  %v248_v44 = vld [vmem:[%s11972_s1 + $0x620] sm:$0xff]  ;;  %v255_v11 = vld [vmem:[%s11972_s1 + $0x658] sm:$0xff]  ;;  %v7550_v14 = vpack.c.bf16 %v303_v6, %v302_v5 }
  0x77   :  { %7501 = vmatpush3.bf16.msra.mxu0 %v7500_v20  ;;  %1231 = vmatprep.mubr.f32.mxu0 %v645_v30  ;;  %v7508_v47 = vpack.c.bf16 %v249_v38, %v248_v44  ;;  %v304_v20 = vld [vmem:[%s11972_s1 + $0x7e0] sm:$0xff]  ;;  %v274_v30 = vld [vmem:[%s11972_s1 + $0x6f0] sm:$0xff]  ;;  %v343_v6 = vld [vmem:[%s11972_s1 + $0x918] sm:$0xff] }
  0x78   :  { %1162 = vmatmul.mubr.f32.vlgmr.msra.gmra.mrb[4].mxu1 %v10562_v54  ;;  %7503 = vmatprep.subr.bf16.mxu0 %v7502_v22  ;;  %v281_v54 = vld [vmem:[%s11972_s1 + $0x728] sm:$0xff]  ;;  %v7520_v22 = vpack.c.bf16 %v255_v11, %v254_v10  ;;  %v7526_v44 = vpack.c.bf16 %v275_v31, %v274_v30  ;;  %v258_v38 = vld [vmem:[%s11972_s1 + $0x670] sm:$0xff]  ;;  %v360_v10 = vld [vmem:[%s11972_s1 + $0x9a0] sm:$0xff]  ;;  %v7600_v15 = vpack.c.bf16 %v343_v6, %v342_v4 }
  0x79   :  { %7533 = vmatpush3.bf16.msra.mxu1 %v7532_v21  ;;  %1301 = vmatprep.mubr.f32.mxu1 %v646_v33  ;;  %v7540_v48 = vpack.c.bf16 %v281_v54, %v280_v39  ;;  %v305_v21 = vld [vmem:[%s11972_s1 + $0x7e8] sm:$0xff]  ;;  %v307_v33 = vld [vmem:[%s11972_s1 + $0x7f8] sm:$0xff]  ;;  %v346_v31 = vld [vmem:[%s11972_s1 + $0x930] sm:$0xff] }
  0x7a   :  { %7535 = vmatprep.subr.bf16.mxu1 %v7534_v26  ;;  %v257_v26 = vld [vmem:[%s11972_s1 + $0x668] sm:$0xff]  ;;  %v7554_v28 = vpack.c.bf16 %v305_v21, %v304_v20  ;;  %v259_v39 = vld [vmem:[%s11972_s1 + $0x678] sm:$0xff]  ;;  %v7558_v54 = vpack.c.bf16 %v307_v33, %v306_v32  ;;  %v344_v20 = vld [vmem:[%s11972_s1 + $0x920] sm:$0xff] }
  0x7b   :  { %7505 = vmatpush3.bf16.msra.mxu0 %v7504_v35  ;;  %v7524_v35 = vpack.c.bf16 %v257_v26, %v256_v25  ;;  %v361_v11 = vld [vmem:[%s11972_s1 + $0x9a8] sm:$0xff]  ;;  %v363_v25 = vld [vmem:[%s11972_s1 + $0x9b8] sm:$0xff]  ;;  %v320_v4 = vld [vmem:[%s11972_s1 + $0x860] sm:$0xff] }
  0x7c   :  { %7507 = vmatprep.subr.bf16.mxu0 %v7506_v37  ;;  %v7556_v37 = vpack.c.bf16 %v289_v29, %v288_v27  ;;  %v7602_v21 = vpack.c.bf16 %v361_v11, %v360_v10  ;;  %v314_v29 = vld [vmem:[%s11972_s1 + $0x830] sm:$0xff]  ;;  %v315_v30 = vld [vmem:[%s11972_s1 + $0x838] sm:$0xff]  ;;  %v352_v6 = vld [vmem:[%s11972_s1 + $0x960] sm:$0xff] }
  0x7d   :  { %7537 = vmatpush3.bf16.msra.mxu1 %v7536_v36  ;;  %v48_v36 = vld [vmem:[%s11971_s0 + $0x20] sm:$0xff]  ;;  %v347_v33 = vld [vmem:[%s11972_s1 + $0x938] sm:$0xff]  ;;  %v370_v11 = vld [vmem:[%s11972_s1 + $0x9f0] sm:$0xff] }
  0x7e   :  { %7539 = vmatprep.subr.bf16.mxu1 %v7538_v40  ;;  %v290_v40 = vld [vmem:[%s11972_s1 + $0x770] sm:$0xff]  ;;  %v339_v10 = vld [vmem:[%s11972_s1 + $0x8f8] sm:$0xff] }
  0x7f   :  { %7509 = vmatpush3.bf16.msra.mxu0 %v7508_v47  ;;  %v357_v47 = vld [vmem:[%s11972_s1 + $0x988] sm:$0xff]  ;;  %v7560_v50 = vpack.c.bf16 %v291_v41, %v290_v40 }
  0x80   :  { %7511 = vmatprep.subr.bf16.mxu0 %v7510_v49  ;;  %v7528_v49 = vpack.c.bf16 %v259_v39, %v258_v38  ;;  %v7594_v34 = vpack.c.bf16 %v357_v47, %v356_v45  ;;  %v7576_v38 = vpack.c.bf16 %v315_v30, %v314_v29  ;;  %v7608_v39 = vpack.c.bf16 %v347_v33, %v346_v31  ;;  %v317_v41 = vld [vmem:[%s11972_s1 + $0x848] sm:$0xff]  ;;  %v334_v47 = vld [vmem:[%s11972_s1 + $0x8d0] sm:$0xff]  ;;  %v372_v31 = vld [vmem:[%s11972_s1 + $0xa00] sm:$0xff] }
  0x81   :  { %7541 = vmatpush3.bf16.msra.mxu1 %v7540_v48  ;;  %v647_v48 = vcombine.high %v48_v36, %v48_v36  ;;  %v349_v45 = vld [vmem:[%s11972_s1 + $0x948] sm:$0xff]  ;;  %v404_v33 = vld [vmem:[%s11972_s1 + $0xb00] sm:$0xff] }
  0x82   :  { %7543 = vmatprep.subr.bf16.mxu1 %v7542_v53  ;;  %v309_v53 = vld [vmem:[%s11972_s1 + $0x808] sm:$0xff] }
  0x83   :  { %7513 = vmatpush3.bf16.msra.mxu0 %v7512_v59  ;;  %v10940_v59 = vrot.slane %v48_v36, %v10238_v13  ;;  %v10949_v61 = vrot.slane %v647_v48, %v10238_v13  ;;  %v7564_v62 = vpack.c.bf16 %v309_v53, %v308_v52  ;;  %v333_v36 = vld [vmem:[%s11972_s1 + $0x8c8] sm:$0xff]  ;;  %v335_v48 = vld [vmem:[%s11972_s1 + $0x8d8] sm:$0xff]  ;;  %v7612_v52 = vpack.c.bf16 %v349_v45, %v348_v42  ;;  %v374_v45 = vld [vmem:[%s11972_s1 + $0xa10] sm:$0xff] }
  0x84   :  { %7515 = vmatprep.subr.bf16.mxu0 %v7514_v60  ;;  %v359_v60 = vld [vmem:[%s11972_s1 + $0x998] sm:$0xff]  ;;  %v7582_v53 = vpack.c.bf16 %v335_v48, %v334_v47  ;;  %v406_v48 = vld [vmem:[%s11972_s1 + $0xb10] sm:$0xff] }
  0x85   :  { %7545 = vmatpush3.bf16.msra.mxu1 %v7544_v46  ;;  %v358_v46 = vld [vmem:[%s11972_s1 + $0x990] sm:$0xff]  ;;  %v663_v12 = vcombine.high %v10949_v61, %v10949_v61  ;;  %v375_v47 = vld [vmem:[%s11972_s1 + $0xa18] sm:$0xff] }
  0x86   :  { %7547 = vmatprep.subr.bf16.mxu1 %v7546_v1  ;;  %v7566_v1 = vpack.c.bf16 %v327_v58, %v326_v57  ;;  %v7598_v5 = vpack.c.bf16 %v359_v60, %v358_v46  ;;  %v351_v58 = vld [vmem:[%s11972_s1 + $0x958] sm:$0xff]  ;;  %v336_v46 = vld [vmem:[%s11972_s1 + $0x8e0] sm:$0xff]  ;;  %v337_v60 = vld [vmem:[%s11972_s1 + $0x8e8] sm:$0xff] }
  0x87   :  { %7517 = vmatpush3.bf16.msra.mxu0 %v7516_v7  ;;  %v328_v7 = vld [vmem:[%s11972_s1 + $0x8a0] sm:$0xff] }
  0x88   :  { %7519 = vmatprep.subr.bf16.mxu0 %v7518_v9  ;;  %v662_v9 = vcombine.high %v10940_v59, %v10940_v59 }
  0x89   :  { %7549 = vmatpush3.bf16.msra.mxu1 %v7548_v8  ;;  %v329_v8 = vld [vmem:[%s11972_s1 + $0x8a8] sm:$0xff] }
  0x8a   :  { %7551 = vmatprep.subr.bf16.mxu1 %v7550_v14  ;;  %v7568_v14 = vpack.c.bf16 %v311_v3, %v310_v2  ;;  %v7570_v17 = vpack.c.bf16 %v329_v8, %v328_v7  ;;  %v7616_v2 = vpack.c.bf16 %v351_v58, %v350_v56  ;;  %v7586_v3 = vpack.c.bf16 %v337_v60, %v336_v46  ;;  %v353_v8 = vld [vmem:[%s11972_s1 + $0x968] sm:$0xff] }
  0x8b   :  { %7521 = vmatpush3.bf16.msra.mxu0 %v7520_v22  ;;  %v330_v22 = vld [vmem:[%s11972_s1 + $0x8b0] sm:$0xff]  ;;  %v377_v60 = vld [vmem:[%s11972_s1 + $0xa28] sm:$0xff] }
  0x8c   :  { %7523 = vmatprep.subr.bf16.mxu0 %v7522_v24  ;;  %v362_v24 = vld [vmem:[%s11972_s1 + $0x9b0] sm:$0xff] }
  0x8d   :  { %7553 = vmatpush3.bf16.msra.mxu1 %v7552_v23  ;;  %v331_v23 = vld [vmem:[%s11972_s1 + $0x8b8] sm:$0xff]  ;;  %v7606_v32 = vpack.c.bf16 %v363_v25, %v362_v24  ;;  %v389_v24 = vld [vmem:[%s11972_s1 + $0xa88] sm:$0xff]  ;;  %v420_v25 = vld [vmem:[%s11972_s1 + $0xb80] sm:$0xff] }
  0x8e   :  { %7555 = vmatprep.subr.bf16.mxu1 %v7554_v28  ;;  %v7574_v28 = vpack.c.bf16 %v331_v23, %v330_v22  ;;  %v355_v22 = vld [vmem:[%s11972_s1 + $0x978] sm:$0xff]  ;;  %v388_v23 = vld [vmem:[%s11972_s1 + $0xa80] sm:$0xff] }
  0x8f   :  { %7525 = vmatpush3.bf16.msra.mxu0 %v7524_v35  ;;  %v332_v35 = vld [vmem:[%s11972_s1 + $0x8c0] sm:$0xff]  ;;  %v7626_v30 = vpack.c.bf16 %v389_v24, %v388_v23 }
  0x90   :  { %7527 = vmatprep.subr.bf16.mxu0 %v7526_v44  ;;  %v365_v44 = vld [vmem:[%s11972_s1 + $0x9c8] sm:$0xff]  ;;  %v7578_v40 = vpack.c.bf16 %v333_v36, %v332_v35  ;;  %v412_v23 = vld [vmem:[%s11972_s1 + $0xb40] sm:$0xff] }
  0x91   :  { %7557 = vmatpush3.bf16.msra.mxu1 %v7556_v37  ;;  %v364_v37 = vld [vmem:[%s11972_s1 + $0x9c0] sm:$0xff]  ;;  %v405_v36 = vld [vmem:[%s11972_s1 + $0xb08] sm:$0xff] }
  0x92   :  { %7559 = vmatprep.subr.bf16.mxu1 %v7558_v54  ;;  %v316_v54 = vld [vmem:[%s11972_s1 + $0x840] sm:$0xff]  ;;  %v7610_v43 = vpack.c.bf16 %v365_v44, %v364_v37  ;;  %v390_v37 = vld [vmem:[%s11972_s1 + $0xa90] sm:$0xff]  ;;  %v391_v44 = vld [vmem:[%s11972_s1 + $0xa98] sm:$0xff]  ;;  %v7660_v42 = vpack.c.bf16 %v405_v36, %v404_v33 }
  0x93   :  { %7529 = vmatpush3.bf16.msra.mxu0 %v7528_v49  ;;  %v366_v49 = vld [vmem:[%s11972_s1 + $0x9d0] sm:$0xff] }
  0x94   :  { %7563 = vmatprep.subr.bf16.mxu0 %v7562_v51  ;;  %v7580_v51 = vpack.c.bf16 %v317_v41, %v316_v54  ;;  %v382_v33 = vld [vmem:[%s11972_s1 + $0xa50] sm:$0xff] }
  0x95   :  { %7561 = vmatpush3.bf16.msra.mxu1 %v7560_v50  ;;  %v367_v50 = vld [vmem:[%s11972_s1 + $0x9d8] sm:$0xff]  ;;  %v414_v36 = vld [vmem:[%s11972_s1 + $0xb50] sm:$0xff] }
  0x96   :  { %7595 = vmatprep.subr.bf16.mxu1 %v7594_v34  ;;  %1232 = vmatmul.mubr.f32.vlgmr.msra.gmra.mrb[6].mxu0 %v10733_v16  ;;  %v312_v16 = vld [vmem:[%s11972_s1 + $0x820] sm:$0xff]  ;;  %v319_v34 = vld [vmem:[%s11972_s1 + $0x858] sm:$0xff]  ;;  %v7614_v57 = vpack.c.bf16 %v367_v50, %v366_v49 }
  0x97   :  { %7565 = vmatpush3.bf16.msra.mxu0 %v7564_v62  ;;  %1371 = vmatprep.mubr.f32.mxu0 %v662_v9  ;;  %v7572_v26 = vpack.c.bf16 %v313_v18, %v312_v16  ;;  %v368_v62 = vld [vmem:[%s11972_s1 + $0x9e0] sm:$0xff]  ;;  %v338_v9 = vld [vmem:[%s11972_s1 + $0x8f0] sm:$0xff]  ;;  %v407_v50 = vld [vmem:[%s11972_s1 + $0xb18] sm:$0xff] }
  0x98   :  { %1302 = vmatmul.mubr.f32.vlgmr.msra.gmra.mrb[6].mxu1 %v10742_v19  ;;  %7567 = vmatprep.subr.bf16.mxu0 %v7566_v1  ;;  %v345_v19 = vld [vmem:[%s11972_s1 + $0x928] sm:$0xff]  ;;  %v7584_v1 = vpack.c.bf16 %v319_v34, %v318_v55  ;;  %v7590_v16 = vpack.c.bf16 %v339_v10, %v338_v9  ;;  %v322_v18 = vld [vmem:[%s11972_s1 + $0x870] sm:$0xff]  ;;  %v424_v55 = vld [vmem:[%s11972_s1 + $0xba0] sm:$0xff]  ;;  %v7664_v58 = vpack.c.bf16 %v407_v50, %v406_v48 }
  0x99   :  { %7597 = vmatpush3.bf16.msra.mxu1 %v7596_v63  ;;  %1441 = vmatprep.mubr.f32.mxu1 %v663_v12  ;;  %v7604_v27 = vpack.c.bf16 %v345_v19, %v344_v20  ;;  %v369_v63 = vld [vmem:[%s11972_s1 + $0x9e8] sm:$0xff]  ;;  %v371_v12 = vld [vmem:[%s11972_s1 + $0x9f8] sm:$0xff]  ;;  %v410_v10 = vld [vmem:[%s11972_s1 + $0xb30] sm:$0xff] }
  0x9a   :  { %7599 = vmatprep.subr.bf16.mxu1 %v7598_v5  ;;  %v321_v5 = vld [vmem:[%s11972_s1 + $0x868] sm:$0xff]  ;;  %v7618_v7 = vpack.c.bf16 %v369_v63, %v368_v62  ;;  %v323_v20 = vld [vmem:[%s11972_s1 + $0x878] sm:$0xff]  ;;  %v7622_v19 = vpack.c.bf16 %v371_v12, %v370_v11  ;;  %v408_v62 = vld [vmem:[%s11972_s1 + $0xb20] sm:$0xff] }
  0x9b   :  { %7569 = vmatpush3.bf16.msra.mxu0 %v7568_v14  ;;  %v7588_v14 = vpack.c.bf16 %v321_v5, %v320_v4  ;;  %v425_v34 = vld [vmem:[%s11972_s1 + $0xba8] sm:$0xff]  ;;  %v427_v4 = vld [vmem:[%s11972_s1 + $0xbb8] sm:$0xff]  ;;  %v384_v48 = vld [vmem:[%s11972_s1 + $0xa60] sm:$0xff] }
  0x9c   :  { %7571 = vmatprep.subr.bf16.mxu0 %v7570_v17  ;;  %v7620_v17 = vpack.c.bf16 %v353_v8, %v352_v6  ;;  %v7666_v63 = vpack.c.bf16 %v425_v34, %v424_v55  ;;  %v378_v8 = vld [vmem:[%s11972_s1 + $0xa30] sm:$0xff]  ;;  %v379_v9 = vld [vmem:[%s11972_s1 + $0xa38] sm:$0xff]  ;;  %v416_v50 = vld [vmem:[%s11972_s1 + $0xb60] sm:$0xff] }
  0x9d   :  { %7601 = vmatpush3.bf16.msra.mxu1 %v7600_v15  ;;  %v49_v15 = vld [vmem:[%s11971_s0 + $0x28] sm:$0xff]  ;;  %v411_v12 = vld [vmem:[%s11972_s1 + $0xb38] sm:$0xff]  ;;  %v434_v34 = vld [vmem:[%s11972_s1 + $0xbf0] sm:$0xff] }
  0x9e   :  { %7603 = vmatprep.subr.bf16.mxu1 %v7602_v21  ;;  %v354_v21 = vld [vmem:[%s11972_s1 + $0x970] sm:$0xff]  ;;  %v403_v55 = vld [vmem:[%s11972_s1 + $0xaf8] sm:$0xff] }
  0x9f   :  { %7573 = vmatpush3.bf16.msra.mxu0 %v7572_v26  ;;  %v421_v26 = vld [vmem:[%s11972_s1 + $0xb88] sm:$0xff]  ;;  %v7624_v29 = vpack.c.bf16 %v355_v22, %v354_v21 }
  0xa0   :  { %7575 = vmatprep.subr.bf16.mxu0 %v7574_v28  ;;  %v7592_v28 = vpack.c.bf16 %v323_v20, %v322_v18  ;;  %v7658_v35 = vpack.c.bf16 %v421_v26, %v420_v25  ;;  %v7640_v18 = vpack.c.bf16 %v379_v9, %v378_v8  ;;  %v7672_v20 = vpack.c.bf16 %v411_v12, %v410_v10  ;;  %v381_v22 = vld [vmem:[%s11972_s1 + $0xa48] sm:$0xff]  ;;  %v398_v26 = vld [vmem:[%s11972_s1 + $0xad0] sm:$0xff]  ;;  %v436_v10 = vld [vmem:[%s11972_s1 + $0xc00] sm:$0xff] }
  0xa1   :  { %7605 = vmatpush3.bf16.msra.mxu1 %v7604_v27  ;;  %v664_v27 = vcombine.high %v49_v15, %v49_v15  ;;  %v413_v25 = vld [vmem:[%s11972_s1 + $0xb48] sm:$0xff]  ;;  %v468_v12 = vld [vmem:[%s11972_s1 + $0xd00] sm:$0xff] }
  0xa2   :  { %7607 = vmatprep.subr.bf16.mxu1 %v7606_v32  ;;  %v373_v32 = vld [vmem:[%s11972_s1 + $0xa08] sm:$0xff] }
  0xa3   :  { %7577 = vmatpush3.bf16.msra.mxu0 %v7576_v38  ;;  %v11147_v38 = vrot.slane %v49_v15, %v10238_v13  ;;  %v11156_v54 = vrot.slane %v664_v27, %v10238_v13  ;;  %v7628_v41 = vpack.c.bf16 %v373_v32, %v372_v31  ;;  %v397_v15 = vld [vmem:[%s11972_s1 + $0xac8] sm:$0xff]  ;;  %v399_v27 = vld [vmem:[%s11972_s1 + $0xad8] sm:$0xff]  ;;  %v7676_v31 = vpack.c.bf16 %v413_v25, %v412_v23  ;;  %v438_v25 = vld [vmem:[%s11972_s1 + $0xc10] sm:$0xff] }
  0xa4   :  { %7579 = vmatprep.subr.bf16.mxu0 %v7578_v40  ;;  %v423_v40 = vld [vmem:[%s11972_s1 + $0xb98] sm:$0xff]  ;;  %v7646_v32 = vpack.c.bf16 %v399_v27, %v398_v26  ;;  %v470_v27 = vld [vmem:[%s11972_s1 + $0xd10] sm:$0xff] }
  0xa5   :  { %7609 = vmatpush3.bf16.msra.mxu1 %v7608_v39  ;;  %v422_v39 = vld [vmem:[%s11972_s1 + $0xb90] sm:$0xff]  ;;  %v680_v56 = vcombine.high %v11156_v54, %v11156_v54  ;;  %v439_v26 = vld [vmem:[%s11972_s1 + $0xc18] sm:$0xff] }
  0xa6   :  { %7611 = vmatprep.subr.bf16.mxu1 %v7610_v43  ;;  %v7630_v43 = vpack.c.bf16 %v391_v44, %v390_v37  ;;  %v7662_v49 = vpack.c.bf16 %v423_v40, %v422_v39  ;;  %v415_v44 = vld [vmem:[%s11972_s1 + $0xb58] sm:$0xff]  ;;  %v400_v39 = vld [vmem:[%s11972_s1 + $0xae0] sm:$0xff]  ;;  %v401_v40 = vld [vmem:[%s11972_s1 + $0xae8] sm:$0xff] }
  0xa7   :  { %7581 = vmatpush3.bf16.msra.mxu0 %v7580_v51  ;;  %v392_v51 = vld [vmem:[%s11972_s1 + $0xaa0] sm:$0xff] }
  0xa8   :  { %7583 = vmatprep.subr.bf16.mxu0 %v7582_v53  ;;  %v679_v53 = vcombine.high %v11147_v38, %v11147_v38 }
  0xa9   :  { %7613 = vmatpush3.bf16.msra.mxu1 %v7612_v52  ;;  %v393_v52 = vld [vmem:[%s11972_s1 + $0xaa8] sm:$0xff] }
  0xaa   :  { %7615 = vmatprep.subr.bf16.mxu1 %v7614_v57  ;;  %v7632_v57 = vpack.c.bf16 %v375_v47, %v374_v45  ;;  %v7634_v46 = vpack.c.bf16 %v393_v52, %v392_v51  ;;  %v7680_v45 = vpack.c.bf16 %v415_v44, %v414_v36  ;;  %v7650_v47 = vpack.c.bf16 %v401_v40, %v400_v39  ;;  %v417_v52 = vld [vmem:[%s11972_s1 + $0xb68] sm:$0xff] }
  0xab   :  { %7585 = vmatpush3.bf16.msra.mxu0 %v7584_v1  ;;  %v394_v1 = vld [vmem:[%s11972_s1 + $0xab0] sm:$0xff]  ;;  %v441_v40 = vld [vmem:[%s11972_s1 + $0xc28] sm:$0xff] }
  0xac   :  { %7587 = vmatprep.subr.bf16.mxu0 %v7586_v3  ;;  %v426_v3 = vld [vmem:[%s11972_s1 + $0xbb0] sm:$0xff] }
  0xad   :  { %7617 = vmatpush3.bf16.msra.mxu1 %v7616_v2  ;;  %v395_v2 = vld [vmem:[%s11972_s1 + $0xab8] sm:$0xff]  ;;  %v7670_v11 = vpack.c.bf16 %v427_v4, %v426_v3  ;;  %v453_v3 = vld [vmem:[%s11972_s1 + $0xc88] sm:$0xff]  ;;  %v484_v4 = vld [vmem:[%s11972_s1 + $0xd80] sm:$0xff] }
  0xae   :  { %7619 = vmatprep.subr.bf16.mxu1 %v7618_v7  ;;  %v7638_v7 = vpack.c.bf16 %v395_v2, %v394_v1  ;;  %v419_v1 = vld [vmem:[%s11972_s1 + $0xb78] sm:$0xff]  ;;  %v452_v2 = vld [vmem:[%s11972_s1 + $0xc80] sm:$0xff] }
  0xaf   :  { %7589 = vmatpush3.bf16.msra.mxu0 %v7588_v14  ;;  %v396_v14 = vld [vmem:[%s11972_s1 + $0xac0] sm:$0xff]  ;;  %v7690_v9 = vpack.c.bf16 %v453_v3, %v452_v2 }
  0xb0   :  { %7591 = vmatprep.subr.bf16.mxu0 %v7590_v16  ;;  %v429_v16 = vld [vmem:[%s11972_s1 + $0xbc8] sm:$0xff]  ;;  %v7642_v21 = vpack.c.bf16 %v397_v15, %v396_v14  ;;  %v476_v2 = vld [vmem:[%s11972_s1 + $0xd40] sm:$0xff] }
  0xb1   :  { %7621 = vmatpush3.bf16.msra.mxu1 %v7620_v17  ;;  %v428_v17 = vld [vmem:[%s11972_s1 + $0xbc0] sm:$0xff]  ;;  %v469_v15 = vld [vmem:[%s11972_s1 + $0xd08] sm:$0xff] }
  0xb2   :  { %7623 = vmatprep.subr.bf16.mxu1 %v7622_v19  ;;  %v380_v19 = vld [vmem:[%s11972_s1 + $0xa40] sm:$0xff]  ;;  %v7674_v24 = vpack.c.bf16 %v429_v16, %v428_v17  ;;  %v454_v17 = vld [vmem:[%s11972_s1 + $0xc90] sm:$0xff]  ;;  %v455_v16 = vld [vmem:[%s11972_s1 + $0xc98] sm:$0xff]  ;;  %v7724_v23 = vpack.c.bf16 %v469_v15, %v468_v12 }
  0xb3   :  { %7593 = vmatpush3.bf16.msra.mxu0 %v7592_v28  ;;  %v430_v28 = vld [vmem:[%s11972_s1 + $0xbd0] sm:$0xff] }
  0xb4   :  { %7627 = vmatprep.subr.bf16.mxu0 %v7626_v30  ;;  %v7644_v30 = vpack.c.bf16 %v381_v22, %v380_v19  ;;  %v446_v12 = vld [vmem:[%s11972_s1 + $0xc50] sm:$0xff] }
  0xb5   :  { %7625 = vmatpush3.bf16.msra.mxu1 %v7624_v29  ;;  %v431_v29 = vld [vmem:[%s11972_s1 + $0xbd8] sm:$0xff]  ;;  %v478_v15 = vld [vmem:[%s11972_s1 + $0xd50] sm:$0xff] }
  0xb6   :  { %7659 = vmatprep.subr.bf16.mxu1 %v7658_v35  ;;  %1372 = vmatmul.mubr.f32.vlgmr.msra.gmra.mrb[8].mxu0 %v10940_v59  ;;  %v376_v59 = vld [vmem:[%s11972_s1 + $0xa20] sm:$0xff]  ;;  %v383_v35 = vld [vmem:[%s11972_s1 + $0xa58] sm:$0xff]  ;;  %v7678_v37 = vpack.c.bf16 %v431_v29, %v430_v28 }
  0xb7   :  { %7629 = vmatpush3.bf16.msra.mxu0 %v7628_v41  ;;  %1511 = vmatprep.mubr.f32.mxu0 %v679_v53  ;;  %v7636_v5 = vpack.c.bf16 %v377_v60, %v376_v59  ;;  %v432_v41 = vld [vmem:[%s11972_s1 + $0xbe0] sm:$0xff]  ;;  %v402_v53 = vld [vmem:[%s11972_s1 + $0xaf0] sm:$0xff]  ;;  %v471_v29 = vld [vmem:[%s11972_s1 + $0xd18] sm:$0xff] }
  0xb8   :  { %1442 = vmatmul.mubr.f32.vlgmr.msra.gmra.mrb[8].mxu1 %v10949_v61  ;;  %7631 = vmatprep.subr.bf16.mxu0 %v7630_v43  ;;  %v409_v61 = vld [vmem:[%s11972_s1 + $0xb28] sm:$0xff]  ;;  %v7648_v43 = vpack.c.bf16 %v383_v35, %v382_v33  ;;  %v7654_v59 = vpack.c.bf16 %v403_v55, %v402_v53  ;;  %v386_v60 = vld [vmem:[%s11972_s1 + $0xa70] sm:$0xff]  ;;  %v488_v33 = vld [vmem:[%s11972_s1 + $0xda0] sm:$0xff]  ;;  %v7728_v44 = vpack.c.bf16 %v471_v29, %v470_v27 }
  0xb9   :  { %7661 = vmatpush3.bf16.msra.mxu1 %v7660_v42  ;;  %1581 = vmatprep.mubr.f32.mxu1 %v680_v56  ;;  %v7668_v6 = vpack.c.bf16 %v409_v61, %v408_v62  ;;  %v433_v42 = vld [vmem:[%s11972_s1 + $0xbe8] sm:$0xff]  ;;  %v435_v56 = vld [vmem:[%s11972_s1 + $0xbf8] sm:$0xff]  ;;  %v474_v55 = vld [vmem:[%s11972_s1 + $0xd30] sm:$0xff] }
  0xba   :  { %7663 = vmatprep.subr.bf16.mxu1 %v7662_v49  ;;  %v385_v49 = vld [vmem:[%s11972_s1 + $0xa68] sm:$0xff]  ;;  %v7682_v51 = vpack.c.bf16 %v433_v42, %v432_v41  ;;  %v387_v62 = vld [vmem:[%s11972_s1 + $0xa78] sm:$0xff]  ;;  %v7686_v61 = vpack.c.bf16 %v435_v56, %v434_v34  ;;  %v472_v41 = vld [vmem:[%s11972_s1 + $0xd20] sm:$0xff] }
  0xbb   :  { %7633 = vmatpush3.bf16.msra.mxu0 %v7632_v57  ;;  %v7652_v57 = vpack.c.bf16 %v385_v49, %v384_v48  ;;  %v489_v35 = vld [vmem:[%s11972_s1 + $0xda8] sm:$0xff]  ;;  %v491_v48 = vld [vmem:[%s11972_s1 + $0xdb8] sm:$0xff]  ;;  %v448_v27 = vld [vmem:[%s11972_s1 + $0xc60] sm:$0xff] }
  0xbc   :  { %7635 = vmatprep.subr.bf16.mxu0 %v7634_v46  ;;  %v7684_v46 = vpack.c.bf16 %v417_v52, %v416_v50  ;;  %v7730_v42 = vpack.c.bf16 %v489_v35, %v488_v33  ;;  %v442_v52 = vld [vmem:[%s11972_s1 + $0xc30] sm:$0xff]  ;;  %v443_v53 = vld [vmem:[%s11972_s1 + $0xc38] sm:$0xff]  ;;  %v480_v29 = vld [vmem:[%s11972_s1 + $0xd60] sm:$0xff] }
  0xbd   :  { %7665 = vmatpush3.bf16.msra.mxu1 %v7664_v58  ;;  %v50_v58 = vld [vmem:[%s11971_s0 + $0x30] sm:$0xff]  ;;  %v475_v56 = vld [vmem:[%s11972_s1 + $0xd38] sm:$0xff] }
  0xbe   :  { %7667 = vmatprep.subr.bf16.mxu1 %v7666_v63  ;;  %v418_v63 = vld [vmem:[%s11972_s1 + $0xb70] sm:$0xff]  ;;  %v467_v33 = vld [vmem:[%s11972_s1 + $0xcf8] sm:$0xff] }
  0xbf   :  { %7637 = vmatpush3.bf16.msra.mxu0 %v7636_v5  ;;  %v485_v5 = vld [vmem:[%s11972_s1 + $0xd88] sm:$0xff]  ;;  %v7688_v8 = vpack.c.bf16 %v419_v1, %v418_v63  ;;  %v498_v35 = vld [vmem:[%s11972_s1 + $0xdf0] sm:$0xff] }
  0xc0   :  { %7639 = vmatprep.subr.bf16.mxu0 %v7638_v7  ;;  %v7656_v7 = vpack.c.bf16 %v387_v62, %v386_v60  ;;  %v7722_v14 = vpack.c.bf16 %v485_v5, %v484_v4  ;;  %v7704_v60 = vpack.c.bf16 %v443_v53, %v442_v52  ;;  %v7736_v62 = vpack.c.bf16 %v475_v56, %v474_v55  ;;  %v445_v1 = vld [vmem:[%s11972_s1 + $0xc48] sm:$0xff]  ;;  %v462_v5 = vld [vmem:[%s11972_s1 + $0xcd0] sm:$0xff]  ;;  %v500_v55 = vld [vmem:[%s11972_s1 + $0xe00] sm:$0xff] }
  0xc1   :  { %7669 = vmatpush3.bf16.msra.mxu1 %v7668_v6  ;;  %v681_v6 = vcombine.high %v50_v58, %v50_v58  ;;  %v477_v4 = vld [vmem:[%s11972_s1 + $0xd48] sm:$0xff]  ;;  %v532_v56 = vld [vmem:[%s11972_s1 + $0xf00] sm:$0xff] }
  0xc2   :  { %7671 = vmatprep.subr.bf16.mxu1 %v7670_v11  ;;  %v437_v11 = vld [vmem:[%s11972_s1 + $0xc08] sm:$0xff] }
  0xc3   :  { %7641 = vmatpush3.bf16.msra.mxu0 %v7640_v18  ;;  %v11354_v18 = vrot.slane %v50_v58, %v10238_v13  ;;  %v11363_v19 = vrot.slane %v681_v6, %v10238_v13  ;;  %v7692_v22 = vpack.c.bf16 %v437_v11, %v436_v10  ;;  %v461_v58 = vld [vmem:[%s11972_s1 + $0xcc8] sm:$0xff]  ;;  %v463_v6 = vld [vmem:[%s11972_s1 + $0xcd8] sm:$0xff]  ;;  %v7740_v10 = vpack.c.bf16 %v477_v4, %v476_v2  ;;  %v502_v4 = vld [vmem:[%s11972_s1 + $0xe10] sm:$0xff] }
  0xc4   :  { %7643 = vmatprep.subr.bf16.mxu0 %v7642_v21  ;;  %v487_v21 = vld [vmem:[%s11972_s1 + $0xd98] sm:$0xff]  ;;  %v7710_v11 = vpack.c.bf16 %v463_v6, %v462_v5  ;;  %v534_v6 = vld [vmem:[%s11972_s1 + $0xf10] sm:$0xff] }
  0xc5   :  { %7673 = vmatpush3.bf16.msra.mxu1 %v7672_v20  ;;  %v486_v20 = vld [vmem:[%s11972_s1 + $0xd90] sm:$0xff]  ;;  %v697_v36 = vcombine.high %v11363_v19, %v11363_v19  ;;  %v503_v5 = vld [vmem:[%s11972_s1 + $0xe18] sm:$0xff] }
  0xc6   :  { %7675 = vmatprep.subr.bf16.mxu1 %v7674_v24  ;;  %v7694_v24 = vpack.c.bf16 %v455_v16, %v454_v17  ;;  %v7726_v28 = vpack.c.bf16 %v487_v21, %v486_v20  ;;  %v479_v16 = vld [vmem:[%s11972_s1 + $0xd58] sm:$0xff]  ;;  %v464_v20 = vld [vmem:[%s11972_s1 + $0xce0] sm:$0xff]  ;;  %v465_v21 = vld [vmem:[%s11972_s1 + $0xce8] sm:$0xff] }
  0xc7   :  { %7645 = vmatpush3.bf16.msra.mxu0 %v7644_v30  ;;  %v456_v30 = vld [vmem:[%s11972_s1 + $0xca0] sm:$0xff] }
  0xc8   :  { %7647 = vmatprep.subr.bf16.mxu0 %v7646_v32  ;;  %v696_v32 = vcombine.high %v11354_v18, %v11354_v18 }
  0xc9   :  { %7677 = vmatpush3.bf16.msra.mxu1 %v7676_v31  ;;  %v457_v31 = vld [vmem:[%s11972_s1 + $0xca8] sm:$0xff] }
  0xca   :  { %7679 = vmatprep.subr.bf16.mxu1 %v7678_v37  ;;  %v7696_v37 = vpack.c.bf16 %v439_v26, %v438_v25  ;;  %v7698_v39 = vpack.c.bf16 %v457_v31, %v456_v30  ;;  %v7744_v25 = vpack.c.bf16 %v479_v16, %v478_v15  ;;  %v7714_v26 = vpack.c.bf16 %v465_v21, %v464_v20  ;;  %v481_v31 = vld [vmem:[%s11972_s1 + $0xd68] sm:$0xff] }
  0xcb   :  { %7649 = vmatpush3.bf16.msra.mxu0 %v7648_v43  ;;  %v458_v43 = vld [vmem:[%s11972_s1 + $0xcb0] sm:$0xff]  ;;  %v505_v21 = vld [vmem:[%s11972_s1 + $0xe28] sm:$0xff] }
  0xcc   :  { %7651 = vmatprep.subr.bf16.mxu0 %v7650_v47  ;;  %v490_v47 = vld [vmem:[%s11972_s1 + $0xdb0] sm:$0xff] }
  0xcd   :  { %7681 = vmatpush3.bf16.msra.mxu1 %v7680_v45  ;;  %v459_v45 = vld [vmem:[%s11972_s1 + $0xcb8] sm:$0xff]  ;;  %v7734_v34 = vpack.c.bf16 %v491_v48, %v490_v47  ;;  %v517_v47 = vld [vmem:[%s11972_s1 + $0xe88] sm:$0xff]  ;;  %v548_v48 = vld [vmem:[%s11972_s1 + $0xf80] sm:$0xff] }
  0xce   :  { %7683 = vmatprep.subr.bf16.mxu1 %v7682_v51  ;;  %v7702_v51 = vpack.c.bf16 %v459_v45, %v458_v43  ;;  %v483_v43 = vld [vmem:[%s11972_s1 + $0xd78] sm:$0xff]  ;;  %v516_v45 = vld [vmem:[%s11972_s1 + $0xe80] sm:$0xff] }
  0xcf   :  { %7653 = vmatpush3.bf16.msra.mxu0 %v7652_v57  ;;  %v460_v57 = vld [vmem:[%s11972_s1 + $0xcc0] sm:$0xff]  ;;  %v7754_v53 = vpack.c.bf16 %v517_v47, %v516_v45 }
  0xd0   :  { %7655 = vmatprep.subr.bf16.mxu0 %v7654_v59  ;;  %v493_v59 = vld [vmem:[%s11972_s1 + $0xdc8] sm:$0xff]  ;;  %v7706_v63 = vpack.c.bf16 %v461_v58, %v460_v57  ;;  %v540_v45 = vld [vmem:[%s11972_s1 + $0xf40] sm:$0xff] }
  0xd1   :  { %7685 = vmatpush3.bf16.msra.mxu1 %v7684_v46  ;;  %v492_v46 = vld [vmem:[%s11972_s1 + $0xdc0] sm:$0xff]  ;;  %v533_v58 = vld [vmem:[%s11972_s1 + $0xf08] sm:$0xff] }
  0xd2   :  { %7687 = vmatprep.subr.bf16.mxu1 %v7686_v61  ;;  %v444_v61 = vld [vmem:[%s11972_s1 + $0xc40] sm:$0xff]  ;;  %v7738_v3 = vpack.c.bf16 %v493_v59, %v492_v46  ;;  %v518_v46 = vld [vmem:[%s11972_s1 + $0xe90] sm:$0xff]  ;;  %v519_v59 = vld [vmem:[%s11972_s1 + $0xe98] sm:$0xff]  ;;  %v7788_v2 = vpack.c.bf16 %v533_v58, %v532_v56 }
  0xd3   :  { %7657 = vmatpush3.bf16.msra.mxu0 %v7656_v7  ;;  %v494_v7 = vld [vmem:[%s11972_s1 + $0xdd0] sm:$0xff] }
  0xd4   :  { %7691 = vmatprep.subr.bf16.mxu0 %v7690_v9  ;;  %v7708_v9 = vpack.c.bf16 %v445_v1, %v444_v61  ;;  %v510_v56 = vld [vmem:[%s11972_s1 + $0xe50] sm:$0xff] }
  0xd5   :  { %7689 = vmatpush3.bf16.msra.mxu1 %v7688_v8  ;;  %v495_v8 = vld [vmem:[%s11972_s1 + $0xdd8] sm:$0xff]  ;;  %v542_v58 = vld [vmem:[%s11972_s1 + $0xf50] sm:$0xff] }
  0xd6   :  { %7723 = vmatprep.subr.bf16.mxu1 %v7722_v14  ;;  %1512 = vmatmul.mubr.f32.vlgmr.msra.gmra.mrb[10].mxu0 %v11147_v38  ;;  %v440_v38 = vld [vmem:[%s11972_s1 + $0xc20] sm:$0xff]  ;;  %v447_v14 = vld [vmem:[%s11972_s1 + $0xc58] sm:$0xff]  ;;  %v7742_v17 = vpack.c.bf16 %v495_v8, %v494_v7 }
  0xd7   :  { %7693 = vmatpush3.bf16.msra.mxu0 %v7692_v22  ;;  %1651 = vmatprep.mubr.f32.mxu0 %v696_v32  ;;  %v7700_v49 = vpack.c.bf16 %v441_v40, %v440_v38  ;;  %v496_v22 = vld [vmem:[%s11972_s1 + $0xde0] sm:$0xff]  ;;  %v466_v32 = vld [vmem:[%s11972_s1 + $0xcf0] sm:$0xff]  ;;  %v535_v8 = vld [vmem:[%s11972_s1 + $0xf18] sm:$0xff] }
  0xd8   :  { %1582 = vmatmul.mubr.f32.vlgmr.msra.gmra.mrb[10].mxu1 %v11156_v54  ;;  %7695 = vmatprep.subr.bf16.mxu0 %v7694_v24  ;;  %v473_v54 = vld [vmem:[%s11972_s1 + $0xd28] sm:$0xff]  ;;  %v7712_v24 = vpack.c.bf16 %v447_v14, %v446_v12  ;;  %v7718_v38 = vpack.c.bf16 %v467_v33, %v466_v32  ;;  %v450_v40 = vld [vmem:[%s11972_s1 + $0xc70] sm:$0xff]  ;;  %v552_v12 = vld [vmem:[%s11972_s1 + $0xfa0] sm:$0xff]  ;;  %v7792_v16 = vpack.c.bf16 %v535_v8, %v534_v6 }
  0xd9   :  { %7725 = vmatpush3.bf16.msra.mxu1 %v7724_v23  ;;  %1721 = vmatprep.mubr.f32.mxu1 %v697_v36  ;;  %v7732_v50 = vpack.c.bf16 %v473_v54, %v472_v41  ;;  %v497_v23 = vld [vmem:[%s11972_s1 + $0xde8] sm:$0xff]  ;;  %v499_v36 = vld [vmem:[%s11972_s1 + $0xdf8] sm:$0xff]  ;;  %v538_v33 = vld [vmem:[%s11972_s1 + $0xf30] sm:$0xff] }
  0xda   :  { %7727 = vmatprep.subr.bf16.mxu1 %v7726_v28  ;;  %v449_v28 = vld [vmem:[%s11972_s1 + $0xc68] sm:$0xff]  ;;  %v7746_v30 = vpack.c.bf16 %v497_v23, %v496_v22  ;;  %v451_v41 = vld [vmem:[%s11972_s1 + $0xc78] sm:$0xff]  ;;  %v7750_v54 = vpack.c.bf16 %v499_v36, %v498_v35  ;;  %v536_v22 = vld [vmem:[%s11972_s1 + $0xf20] sm:$0xff] }
  0xdb   :  { %7697 = vmatpush3.bf16.msra.mxu0 %v7696_v37  ;;  %v7716_v37 = vpack.c.bf16 %v449_v28, %v448_v27  ;;  %v553_v14 = vld [vmem:[%s11972_s1 + $0xfa8] sm:$0xff]  ;;  %v555_v27 = vld [vmem:[%s11972_s1 + $0xfb8] sm:$0xff]  ;;  %v512_v6 = vld [vmem:[%s11972_s1 + $0xe60] sm:$0xff] }
  0xdc   :  { %7699 = vmatprep.subr.bf16.mxu0 %v7698_v39  ;;  %v7748_v39 = vpack.c.bf16 %v481_v31, %v480_v29  ;;  %v7794_v23 = vpack.c.bf16 %v553_v14, %v552_v12  ;;  %v506_v31 = vld [vmem:[%s11972_s1 + $0xe30] sm:$0xff]  ;;  %v507_v32 = vld [vmem:[%s11972_s1 + $0xe38] sm:$0xff]  ;;  %v544_v8 = vld [vmem:[%s11972_s1 + $0xf60] sm:$0xff] }
  0xdd   :  { %7729 = vmatpush3.bf16.msra.mxu1 %v7728_v44  ;;  %v51_v44 = vld [vmem:[%s11971_s0 + $0x38] sm:$0xff]  ;;  %v530_v12 = vld [vmem:[%s11972_s1 + $0xef0] sm:$0xff] }
  0xde   :  { %7731 = vmatprep.subr.bf16.mxu1 %v7730_v42  ;;  %v482_v42 = vld [vmem:[%s11972_s1 + $0xd70] sm:$0xff]  ;;  %v539_v36 = vld [vmem:[%s11972_s1 + $0xf38] sm:$0xff] }
  0xdf   :  { %7701 = vmatpush3.bf16.msra.mxu0 %v7700_v49  ;;  %v549_v49 = vld [vmem:[%s11972_s1 + $0xf88] sm:$0xff]  ;;  %v7752_v52 = vpack.c.bf16 %v483_v43, %v482_v42  ;;  %v531_v14 = vld [vmem:[%s11972_s1 + $0xef8] sm:$0xff] }
  0xe0   :  { %7703 = vmatprep.subr.bf16.mxu0 %v7702_v51  ;;  %v7720_v51 = vpack.c.bf16 %v451_v41, %v450_v40  ;;  %v7786_v57 = vpack.c.bf16 %v549_v49, %v548_v48  ;;  %v7768_v40 = vpack.c.bf16 %v507_v32, %v506_v31  ;;  %v7800_v41 = vpack.c.bf16 %v539_v36, %v538_v33  ;;  %v509_v43 = vld [vmem:[%s11972_s1 + $0xe48] sm:$0xff]  ;;  %v526_v49 = vld [vmem:[%s11972_s1 + $0xed0] sm:$0xff]  ;;  %v547_v31 = vld [vmem:[%s11972_s1 + $0xf78] sm:$0xff] }
  0xe1   :  { %7733 = vmatpush3.bf16.msra.mxu1 %v7732_v50  ;;  %v698_v50 = vcombine.high %v51_v44, %v51_v44  ;;  %v541_v48 = vld [vmem:[%s11972_s1 + $0xf48] sm:$0xff] }
  0xe2   :  { %7735 = vmatprep.subr.bf16.mxu1 %v7734_v34  ;;  %v501_v34 = vld [vmem:[%s11972_s1 + $0xe08] sm:$0xff] }
  0xe3   :  { %7705 = vmatpush3.bf16.msra.mxu0 %v7704_v60  ;;  %v11561_v60 = vrot.slane %v51_v44, %v10238_v13  ;;  %v11570_v61 = vrot.slane %v698_v50, %v10238_v13  ;;  %v7756_v1 = vpack.c.bf16 %v501_v34, %v500_v55  ;;  %v525_v44 = vld [vmem:[%s11972_s1 + $0xec8] sm:$0xff]  ;;  %v527_v50 = vld [vmem:[%s11972_s1 + $0xed8] sm:$0xff]  ;;  %v7804_v55 = vpack.c.bf16 %v541_v48, %v540_v45 }
  0xe4   :  { %7707 = vmatprep.subr.bf16.mxu0 %v7706_v63  ;;  %v551_v63 = vld [vmem:[%s11972_s1 + $0xf98] sm:$0xff]  ;;  %v7774_v34 = vpack.c.bf16 %v527_v50, %v526_v49 }
  0xe5   :  { %7737 = vmatpush3.bf16.msra.mxu1 %v7736_v62  ;;  %v550_v62 = vld [vmem:[%s11972_s1 + $0xf90] sm:$0xff]  ;;  %v714_v15 = vcombine.high %v11570_v61, %v11570_v61 }
  0xe6   :  { %7739 = vmatprep.subr.bf16.mxu1 %v7738_v3  ;;  %v7758_v3 = vpack.c.bf16 %v519_v59, %v518_v46  ;;  %v7790_v7 = vpack.c.bf16 %v551_v63, %v550_v62  ;;  %v543_v59 = vld [vmem:[%s11972_s1 + $0xf58] sm:$0xff]  ;;  %v528_v62 = vld [vmem:[%s11972_s1 + $0xee0] sm:$0xff]  ;;  %v529_v63 = vld [vmem:[%s11972_s1 + $0xee8] sm:$0xff] }
  0xe7   :  { %7709 = vmatpush3.bf16.msra.mxu0 %v7708_v9  ;;  %v520_v9 = vld [vmem:[%s11972_s1 + $0xea0] sm:$0xff] }
  0xe8   :  { %7711 = vmatprep.subr.bf16.mxu0 %v7710_v11  ;;  %v713_v11 = vcombine.high %v11561_v60, %v11561_v60 }
  0xe9   :  { %7741 = vmatpush3.bf16.msra.mxu1 %v7740_v10  ;;  %v521_v10 = vld [vmem:[%s11972_s1 + $0xea8] sm:$0xff] }
  0xea   :  { %7743 = vmatprep.subr.bf16.mxu1 %v7742_v17  ;;  %v7760_v17 = vpack.c.bf16 %v503_v5, %v502_v4  ;;  %v7762_v20 = vpack.c.bf16 %v521_v10, %v520_v9  ;;  %v7808_v4 = vpack.c.bf16 %v543_v59, %v542_v58  ;;  %v7778_v5 = vpack.c.bf16 %v529_v63, %v528_v62  ;;  %v1873_v58 = vld [vmem:[%s11974_s3 + $0x28] sm:$0xff]  ;;  %v1874_v59 = vld [vmem:[%s11974_s3 + $0x30] sm:$0xff]  ;;  %v1875_v62 = vld [vmem:[%s11974_s3 + $0x38] sm:$0xff] }
  0xeb   :  { %7713 = vmatpush3.bf16.msra.mxu0 %v7712_v24  ;;  %v522_v24 = vld [vmem:[%s11972_s1 + $0xeb0] sm:$0xff]  ;;  %v7828_v63 = vpack.c.bf16 %v1875_v62, %v1874_v59  ;;  %v1965_v62 = vld [vmem:[%s11976_s5 + $0x18] sm:$0xff] }
  0xec   :  { %7715 = vmatprep.subr.bf16.mxu0 %v7714_v26  ;;  %v554_v26 = vld [vmem:[%s11972_s1 + $0xfb0] sm:$0xff] }
  0xed   :  { %7745 = vmatpush3.bf16.msra.mxu1 %v7744_v25  ;;  %v523_v25 = vld [vmem:[%s11972_s1 + $0xeb8] sm:$0xff]  ;;  %v7798_v35 = vpack.c.bf16 %v555_v27, %v554_v26  ;;  %v514_v26 = vld [vmem:[%s11972_s1 + $0xe70] sm:$0xff] }
  0xee   :  { %7747 = vmatprep.subr.bf16.mxu1 %v7746_v30  ;;  %v7766_v30 = vpack.c.bf16 %v523_v25, %v522_v24  ;;  %v7782_v25 = vpack.c.bf16 %v531_v14, %v530_v12  ;;  %v515_v27 = vld [vmem:[%s11972_s1 + $0xe78] sm:$0xff] }
  0xef   :  { %7717 = vmatpush3.bf16.msra.mxu0 %v7716_v37  ;;  %v524_v37 = vld [vmem:[%s11972_s1 + $0xec0] sm:$0xff]  ;;  %v7784_v33 = vpack.c.bf16 %v515_v27, %v514_v26  ;;  %v1879_v12 = vld [vmem:[%s11974_s3 + $0x58] sm:$0xff] }
  0xf0   :  { %7719 = vmatprep.subr.bf16.mxu0 %v7718_v38  ;;  %v557_v38 = vld [vmem:[%s11972_s1 + $0xfc8] sm:$0xff]  ;;  %v7770_v42 = vpack.c.bf16 %v525_v44, %v524_v37 }
  0xf1   :  { %7749 = vmatpush3.bf16.msra.mxu1 %v7748_v39  ;;  %v556_v39 = vld [vmem:[%s11972_s1 + $0xfc0] sm:$0xff] }
  0xf2   :  { %7751 = vmatprep.subr.bf16.mxu1 %v7750_v54  ;;  %v508_v54 = vld [vmem:[%s11972_s1 + $0xe40] sm:$0xff]  ;;  %v7802_v47 = vpack.c.bf16 %v557_v38, %v556_v39 }
  0xf3   :  { %7721 = vmatpush3.bf16.msra.mxu0 %v7720_v51  ;;  %v558_v51 = vld [vmem:[%s11972_s1 + $0xfd0] sm:$0xff] }
  0xf4   :  { %7755 = vmatprep.subr.bf16.mxu0 %v7754_v53  ;;  %v7772_v53 = vpack.c.bf16 %v509_v43, %v508_v54 }
  0xf5   :  { %7753 = vmatpush3.bf16.msra.mxu1 %v7752_v52  ;;  %v559_v52 = vld [vmem:[%s11972_s1 + $0xfd8] sm:$0xff] }
  0xf6   :  { %7787 = vmatprep.subr.bf16.mxu1 %v7786_v57  ;;  %1652 = vmatmul.mubr.f32.vlgmr.msra.gmra.mrb[12].mxu0 %v11354_v18  ;;  %v504_v18 = vld [vmem:[%s11972_s1 + $0xe20] sm:$0xff]  ;;  %v511_v57 = vld [vmem:[%s11972_s1 + $0xe58] sm:$0xff]  ;;  %v7806_v46 = vpack.c.bf16 %v559_v52, %v558_v51  ;;  %v1870_v52 = vld [vmem:[%s11974_s3 + $0x10] sm:$0xff] }
  0xf7   :  { %7757 = vmatpush3.bf16.msra.mxu0 %v7756_v1  ;;  %1791 = vmatprep.mubr.f32.mxu0 %v713_v11  ;;  %v7764_v28 = vpack.c.bf16 %v505_v21, %v504_v18  ;;  %v560_v1 = vld [vmem:[%s11972_s1 + $0xfe0] sm:$0xff]  ;;  %v545_v11 = vld [vmem:[%s11972_s1 + $0xf68] sm:$0xff]  ;;  %v563_v18 = vld [vmem:[%s11972_s1 + $0xff8] sm:$0xff] }
  0xf8   :  { %1722 = vmatmul.mubr.f32.vlgmr.msra.gmra.mrb[12].mxu1 %v11363_v19  ;;  %7759 = vmatprep.subr.bf16.mxu0 %v7758_v3  ;;  %v537_v19 = vld [vmem:[%s11972_s1 + $0xf28] sm:$0xff]  ;;  %v7776_v3 = vpack.c.bf16 %v511_v57, %v510_v56  ;;  %v7812_v24 = vpack.c.bf16 %v545_v11, %v544_v8  ;;  %v1872_v57 = vld [vmem:[%s11974_s3 + $0x20] sm:$0xff]  ;;  %v1878_v11 = vld [vmem:[%s11974_s3 + $0x50] sm:$0xff] }
  0xf9   :  { %7789 = vmatpush3.bf16.msra.mxu1 %v7788_v2  ;;  %1861 = vmatprep.mubr.f32.mxu1 %v714_v15  ;;  %v7796_v29 = vpack.c.bf16 %v537_v19, %v536_v22  ;;  %v561_v2 = vld [vmem:[%s11972_s1 + $0xfe8] sm:$0xff]  ;;  %v6697_v15 = vld [vmem:[%s11973_s2] ss:$0 sm:$0xff]  ;;  %v7834_v14 = vpack.c.bf16 %v1879_v12, %v1878_v11  ;;  %v2236_v11 = vld [vmem:[#allocation2 + $0x210] sm:$0xff] }
  0xfa   :  { %7791 = vmatprep.subr.bf16.mxu1 %v7790_v7  ;;  %v513_v7 = vld [vmem:[%s11972_s1 + $0xe68] sm:$0xff]  ;;  %v7810_v10 = vpack.c.bf16 %v561_v2, %v560_v1  ;;  %v1876_v2 = vld [vmem:[%s11974_s3 + $0x40] sm:$0xff]  ;;  %v2268_v12 = vld [vmem:[#allocation2 + $0x310] sm:$0xff] }
  0xfb   :  { %7761 = vmatpush3.bf16.msra.mxu0 %v7760_v17 }
  0xfc   :  { %7763 = vmatprep.subr.bf16.mxu0 %v7762_v20  ;;  %v562_v20 = vld [vmem:[%s11972_s1 + $0xff0] sm:$0xff] }
  0xfd   :  { %7793 = vmatpush3.bf16.msra.mxu1 %v7792_v16 }
  0xfe   :  { %7795 = vmatprep.subr.bf16.mxu1 %v7794_v23  ;;  %v7780_v23 = vpack.c.bf16 %v513_v7, %v512_v6 }
  0xff   :  { %7765 = vmatpush3.bf16.msra.mxu0 %v7764_v28 }
 0x100   :  { %7767 = vmatprep.subr.bf16.mxu0 %v7766_v30  ;;  %v546_v30 = vld [vmem:[%s11972_s1 + $0xf70] sm:$0xff] }
 0x101   :  { %7797 = vmatpush3.bf16.msra.mxu1 %v7796_v29  ;;  %v7814_v29 = vpack.c.bf16 %v563_v18, %v562_v20  ;;  %v1967_v20 = vld [vmem:[%s11976_s5 + $0x28] sm:$0xff]  ;;  %v1962_v18 = vld [vmem:[%s11976_s5] sm:$0xff] }
 0x102   :  { %7799 = vmatprep.subr.bf16.mxu1 %v7798_v35  ;;  %v7816_v35 = vpack.c.bf16 %v547_v31, %v546_v30 }
 0x103   :  { %7769 = vmatpush3.bf16.msra.mxu0 %v7768_v40 }
 0x104   :  { %7771 = vmatprep.subr.bf16.mxu0 %v7770_v42 }
 0x105   :  { %7801 = vmatpush3.bf16.msra.mxu1 %v7800_v41 }
 0x106   :  { %7803 = vmatprep.subr.bf16.mxu1 %v7802_v47 }
 0x107   :  { %7773 = vmatpush3.bf16.msra.mxu0 %v7772_v53  ;;  %v10024_v53 = vmov 0.0|0.0  }
 0x108   :  { %7775 = vmatprep.subr.bf16.mxu0 %v7774_v34  ;;  %v1871_v34 = vld [vmem:[%s11974_s3 + $0x18] sm:$0xff] }
 0x109   :  { %7805 = vmatpush3.bf16.msra.mxu1 %v7804_v55  ;;  %v6738_v9 = vpop.f32.mrb[0].mxu0  ;;  %v7822_v56 = vpack.c.bf16 %v1871_v34, %v1870_v52  ;;  %v1971_v34 = vld [vmem:[%s11976_s5 + $0x48] sm:$0xff] }
 0x10a   :  { %7807 = vmatprep.subr.bf16.mxu1 %v7806_v46  ;;  %v6739_v17 = vpop.f32.mrb[1].mxu0  ;;  %v7825_v46 = vpack.c.bf16 %v1873_v58, %v1872_v57  ;;  %v1970_v58 = vld [vmem:[%s11976_s5 + $0x40] sm:$0xff] }
 0x10b   :  { %v6773_v16 = vpop.f32.mrb[0].mxu1  ;;  %v6740_v21 = vadd.f32 %v6739_v17, %v6738_v9  ;;  %7777 = vmatpush3.bf16.msra.mxu0 %v7776_v3  ;;  %v1877_v3 = vld [vmem:[%s11974_s3 + $0x48] sm:$0xff]  ;;  %v10026_v17 = vmov 0.0  }
 0x10c   :  { %v6774_v22 = vpop.f32.mrb[1].mxu1  ;;  %7779 = vmatprep.subr.bf16.mxu0 %v7778_v5  ;;  %v7831_v6 = vpack.c.bf16 %v1877_v3, %v1876_v2  ;;  %v2173_v2 = vld [vmem:[#allocation2 + $0x18] sm:$0xff] }
 0x10d   :  { %v6775_v19 = vadd.f32 %v6774_v22, %v6773_v16  ;;  %7809 = vmatpush3.bf16.msra.mxu1 %v7808_v4  ;;  %v814_v28 = vadd.f32 %v6740_v21, %v6697_v15  ;;  %v1963_v16 = vld [vmem:[%s11976_s5 + $0x8] sm:$0xff]  ;;  %v1966_v22 = vld [vmem:[%s11976_s5 + $0x20] sm:$0xff]  ;;  %v2205_v3 = vld [vmem:[#allocation2 + $0x118] sm:$0xff] }
 0x10e   :  { %7811 = vmatprep.subr.bf16.mxu1 %v7810_v10  ;;  %v7836_v21 = vpack.c.bf16 %v1967_v20, %v1963_v16  ;;  %v2333_v16 = vld [vmem:[#allocation2 + $0x518] sm:$0xff] }
 0x10f   :  { %v884_v32 = vadd.f32 %v6775_v19, %v814_v28  ;;  %7781 = vmatpush3.bf16.msra.mxu0 %v7780_v23  ;;  %v7838_v23 = vpack.c.bf16 %v1966_v22, %v1962_v18  ;;  %v2300_v18 = vld [vmem:[#allocation2 + $0x410] sm:$0xff] }
 0x110   :  { %7783 = vmatprep.subr.bf16.mxu0 %v7782_v25 }
 0x111   :  { %7813 = vmatpush3.bf16.msra.mxu1 %v7812_v24 }
 0x112   :  { %7815 = vmatprep.subr.bf16.mxu1 %v7814_v29 }
 0x113   :  { %7785 = vmatpush3.bf16.msra.mxu0 %v7784_v33 }
 0x114   :  { %7818 = vmatprep.subr.bf16.mxu0 %v10024_v53 }
 0x115   :  { %7817 = vmatpush3.bf16.msra.mxu1 %v7816_v35 }
 0x116   :  { %1792 = vmatmul.mubr.f32.vlgmr.msra.gmra.mrb[14].mxu0 %v11561_v60  ;;  %v1868_v60 = vld [vmem:[%s11974_s3] sm:$0xff]  ;;  %7837 = vmatprep.subr.bf16.mxu1 %v7836_v21  ;;  %v2332_v21 = vld [vmem:[#allocation2 + $0x510] sm:$0xff] }
 0x117   :  { %7303 = vmatprep.mubr.msk.f32.mxu0 %vm10025_vm0, %v10026_v17  ;;  %v7990_v22 = vpack.c.bf16 %v2332_v21, %v2300_v18  ;;  %v2234_v21 = vld [vmem:[#allocation2 + $0x200] sm:$0xff] }
 0x118   :  { %1862 = vmatmul.mubr.f32.vlgmr.msra.gmra.mrb[14].mxu1 %v11570_v61  ;;  %v1869_v61 = vld [vmem:[%s11974_s3 + $0x8] sm:$0xff] }
 0x119   :  { %v7819_v55 = vpack.c.bf16 %v1869_v61, %v1868_v60  ;;  %2068 = vmatprep.mubr.f32.mxu1 %v10026_v17  ;;  %7839 = vmatpush1.bf16.msra.mxu1 %v7838_v23  ;;  %v2365_v23 = vld [vmem:[#allocation2 + $0x618] sm:$0xff] }
 0x11b   :  { %7820 = vmatpush3.bf16.msra.mxu0 %v7819_v55 }
 0x11c   :  { %7821 = vmatprep.subr.bf16.mxu0 %v10024_v53 }
 0x11f   :  { %7823 = vmatpush3.bf16.msra.mxu0 %v7822_v56  ;;  %v1975_v56 = vld [vmem:[%s11976_s5 + $0x68] sm:$0xff] }
 0x120   :  { %7824 = vmatprep.subr.bf16.mxu0 %v10024_v53  ;;  %v7840_v57 = vpack.c.bf16 %v1975_v56, %v1971_v34  ;;  %v2716_v34 = vld [vmem:[#allocation2 + $0x1110] sm:$0xff] }
 0x122   :  { %7841 = vmatprep.subr.bf16.mxu1 %v7840_v57  ;;  %v6698_v57 = vld [vmem:[%s11975_s4] ss:$0 sm:$0xff] }
 0x123   :  { %7826 = vmatpush3.bf16.msra.mxu0 %v7825_v46  ;;  %v1974_v46 = vld [vmem:[%s11976_s5 + $0x60] sm:$0xff] }
 0x124   :  { %7827 = vmatprep.subr.bf16.mxu0 %v10024_v53  ;;  %v7842_v59 = vpack.c.bf16 %v1974_v46, %v1970_v58  ;;  %v1964_v58 = vld [vmem:[%s11976_s5 + $0x10] sm:$0xff] }
 0x125   :  { %v1968_v46 = vld [vmem:[%s11976_s5 + $0x30] sm:$0xff] }
 0x126   :  { %7843 = vmatpush1.bf16.msra.mxu1 %v7842_v59 }
 0x127   :  { %7829 = vmatpush3.bf16.msra.mxu0 %v7828_v63  ;;  %v1969_v63 = vld [vmem:[%s11976_s5 + $0x38] sm:$0xff] }
 0x128   :  { %7830 = vmatprep.subr.bf16.mxu0 %v10024_v53 }
 0x129   :  { %v6808_v36 = vpop.f32.mrb[2].mxu0 }
 0x12a   :  { %v6809_v37 = vpop.f32.mrb[3].mxu0 }
 0x12b   :  { %v6843_v44 = vpop.f32.mrb[2].mxu1  ;;  %v6810_v39 = vadd.f32 %v6809_v37, %v6808_v36  ;;  %7832 = vmatpush3.bf16.msra.mxu0 %v7831_v6  ;;  %v2204_v6 = vld [vmem:[#allocation2 + $0x110] sm:$0xff] }
 0x12c   :  { %v6844_v38 = vpop.f32.mrb[3].mxu1  ;;  %7833 = vmatprep.subr.bf16.mxu0 %v10024_v53 }
 0x12d   :  { %v6845_v40 = vadd.f32 %v6844_v38, %v6843_v44  ;;  %v954_v41 = vadd.f32 %v6810_v39, %v884_v32 }
 0x12f   :  { %v1024_v42 = vadd.f32 %v6845_v40, %v954_v41  ;;  %7835 = vmatpush3.bf16.msra.mxu0 %v7834_v14  ;;  %v7986_v14 = vpack.c.bf16 %v2268_v12, %v2236_v11  ;;  %v2170_v12 = vld [vmem:[#allocation2] sm:$0xff] }
 0x149   :  { %v6878_v54 = vpop.f32.mrb[4].mxu0 }
 0x14a   :  { %v6879_v43 = vpop.f32.mrb[5].mxu0 }
 0x14b   :  { %v6913_v45 = vpop.f32.mrb[4].mxu1  ;;  %v6880_v47 = vadd.f32 %v6879_v43, %v6878_v54 }
 0x14c   :  { %v6914_v48 = vpop.f32.mrb[5].mxu1 }
 0x14d   :  { %v6915_v49 = vadd.f32 %v6914_v48, %v6913_v45  ;;  %v1094_v50 = vadd.f32 %v6880_v47, %v1024_v42 }
 0x14f   :  { %v1164_v51 = vadd.f32 %v6915_v49, %v1094_v50 }
 0x169   :  { %v6948_v1 = vpop.f32.mrb[6].mxu0 }
 0x16a   :  { %v6949_v4 = vpop.f32.mrb[7].mxu0 }
 0x16b   :  { %v6983_v5 = vpop.f32.mrb[6].mxu1  ;;  %v6950_v7 = vadd.f32 %v6949_v4, %v6948_v1  ;;  %v7844_v1 = vpack.c.bf16 %v1969_v63, %v1965_v62  ;;  %v7980_v4 = vpack.c.bf16 %v2205_v3, %v2173_v2  ;;  %v1973_v62 = vld [vmem:[%s11976_s5 + $0x58] sm:$0xff]  ;;  %v7846_v3 = vpack.c.bf16 %v1968_v46, %v1964_v58 }
 0x16c   :  { %v6984_v8 = vpop.f32.mrb[7].mxu1  ;;  %v1977_v63 = vld [vmem:[%s11976_s5 + $0x78] sm:$0xff] }
 0x16d   :  { %v6985_v9 = vadd.f32 %v6984_v8, %v6983_v5  ;;  %v1234_v10 = vadd.f32 %v6950_v7, %v1164_v51  ;;  %7845 = vmatprep.subr.bf16.mxu1 %v7844_v1  ;;  %v2172_v5 = vld [vmem:[#allocation2 + $0x10] sm:$0xff]  ;;  %v2237_v8 = vld [vmem:[#allocation2 + $0x218] sm:$0xff]  ;;  %7981 = vmatprep.subr.bf16.mxu0 %v7980_v4 }
 0x16e   :  { %v7982_v7 = vpack.c.bf16 %v2204_v6, %v2172_v5  ;;  %v7848_v5 = vpack.c.bf16 %v1977_v63, %v1973_v62  ;;  %v1972_v6 = vld [vmem:[%s11976_s5 + $0x50] sm:$0xff]  ;;  %v2714_v62 = vld [vmem:[#allocation2 + $0x1100] sm:$0xff] }
 0x16f   :  { %v1304_v15 = vadd.f32 %v6985_v9, %v1234_v10  ;;  %v2269_v9 = vld [vmem:[#allocation2 + $0x318] sm:$0xff] }
 0x170   :  { %v7984_v10 = vpack.c.bf16 %v2269_v9, %v2237_v8  ;;  %v2171_v8 = vld [vmem:[#allocation2 + $0x8] sm:$0xff] }
 0x171   :  { %v2203_v9 = vld [vmem:[#allocation2 + $0x108] sm:$0xff] }
 0x172   :  { %v7852_v11 = vpack.c.bf16 %v2203_v9, %v2171_v8 }
 0x189   :  { %v7018_v19 = vpop.f32.mrb[8].mxu0 }
 0x18a   :  { %v7019_v24 = vpop.f32.mrb[9].mxu0 }
 0x18b   :  { %v7053_v25 = vpop.f32.mrb[8].mxu1  ;;  %v7020_v26 = vadd.f32 %v7019_v24, %v7018_v19  ;;  %v2397_v19 = vld [vmem:[#allocation2 + $0x718] sm:$0xff] }
 0x18c   :  { %v7054_v27 = vpop.f32.mrb[9].mxu1  ;;  %v7992_v24 = vpack.c.bf16 %v2397_v19, %v2365_v23  ;;  %v2299_v23 = vld [vmem:[#allocation2 + $0x408] sm:$0xff] }
 0x18d   :  { %v7055_v28 = vadd.f32 %v7054_v27, %v7053_v25  ;;  %v1374_v29 = vadd.f32 %v7020_v26, %v1304_v15  ;;  %v2301_v15 = vld [vmem:[#allocation2 + $0x418] sm:$0xff]  ;;  %v2364_v25 = vld [vmem:[#allocation2 + $0x610] sm:$0xff]  ;;  %v2331_v19 = vld [vmem:[#allocation2 + $0x508] sm:$0xff] }
 0x18e   :  { %v7988_v20 = vpack.c.bf16 %v2333_v16, %v2301_v15  ;;  %v2396_v26 = vld [vmem:[#allocation2 + $0x710] sm:$0xff]  ;;  %v2235_v15 = vld [vmem:[#allocation2 + $0x208] sm:$0xff] }
 0x18f   :  { %v1444_v30 = vadd.f32 %v7055_v28, %v1374_v29  ;;  %v7994_v27 = vpack.c.bf16 %v2396_v26, %v2364_v25  ;;  %v2429_v28 = vld [vmem:[#allocation2 + $0x818] sm:$0xff]  ;;  %v2267_v16 = vld [vmem:[#allocation2 + $0x308] sm:$0xff]  ;;  %v2298_v25 = vld [vmem:[#allocation2 + $0x400] sm:$0xff] }
 0x190   :  { %v2461_v29 = vld [vmem:[#allocation2 + $0x918] sm:$0xff]  ;;  %v7856_v18 = vpack.c.bf16 %v2267_v16, %v2235_v15  ;;  %v2330_v26 = vld [vmem:[#allocation2 + $0x500] sm:$0xff]  ;;  %v2843_v15 = vld [vmem:[#allocation2 + $0x1508] sm:$0xff] }
 0x191   :  { %v2813_v16 = vld [vmem:[#allocation2 + $0x1418] sm:$0xff] }
 0x1a9   :  { %v7088_v31 = vpop.f32.mrb[10].mxu0 }
 0x1aa   :  { %v7089_v32 = vpop.f32.mrb[11].mxu0 }
 0x1ab   :  { %v7123_v33 = vpop.f32.mrb[10].mxu1  ;;  %v7090_v35 = vadd.f32 %v7089_v32, %v7088_v31  ;;  %v2428_v31 = vld [vmem:[#allocation2 + $0x810] sm:$0xff] }
 0x1ac   :  { %v7124_v36 = vpop.f32.mrb[11].mxu1  ;;  %v2460_v32 = vld [vmem:[#allocation2 + $0x910] sm:$0xff] }
 0x1ad   :  { %v7125_v37 = vadd.f32 %v7124_v36, %v7123_v33  ;;  %v1514_v44 = vadd.f32 %v7090_v35, %v1444_v30  ;;  %v7996_v30 = vpack.c.bf16 %v2461_v29, %v2429_v28  ;;  %v7998_v33 = vpack.c.bf16 %v2460_v32, %v2428_v31  ;;  %v2493_v35 = vld [vmem:[#allocation2 + $0xa18] sm:$0xff]  ;;  %v2395_v28 = vld [vmem:[#allocation2 + $0x708] sm:$0xff]  ;;  %v2362_v31 = vld [vmem:[#allocation2 + $0x600] sm:$0xff] }
 0x1ae   :  { %v2525_v36 = vld [vmem:[#allocation2 + $0xb18] sm:$0xff]  ;;  %v7862_v29 = vpack.c.bf16 %v2330_v26, %v2298_v25  ;;  %v2394_v32 = vld [vmem:[#allocation2 + $0x700] sm:$0xff]  ;;  %v2875_v26 = vld [vmem:[#allocation2 + $0x1608] sm:$0xff] }
 0x1af   :  { %v1584_v39 = vadd.f32 %v7125_v37, %v1514_v44  ;;  %v8000_v37 = vpack.c.bf16 %v2525_v36, %v2493_v35  ;;  %v2492_v44 = vld [vmem:[#allocation2 + $0xa10] sm:$0xff]  ;;  %v2459_v35 = vld [vmem:[#allocation2 + $0x908] sm:$0xff]  ;;  %v7866_v36 = vpack.c.bf16 %v2394_v32, %v2362_v31  ;;  %v2874_v31 = vld [vmem:[#allocation2 + $0x1600] sm:$0xff] }
 0x1b0   :  { %v2906_v32 = vld [vmem:[#allocation2 + $0x1700] sm:$0xff] }
 0x1c9   :  { %v7158_v38 = vpop.f32.mrb[12].mxu0 }
 0x1ca   :  { %v7159_v40 = vpop.f32.mrb[13].mxu0 }
 0x1cb   :  { %v7193_v41 = vpop.f32.mrb[12].mxu1  ;;  %v7160_v42 = vadd.f32 %v7159_v40, %v7158_v38  ;;  %v2557_v40 = vld [vmem:[#allocation2 + $0xc18] sm:$0xff] }
 0x1cc   :  { %v7194_v54 = vpop.f32.mrb[13].mxu1 }
 0x1cd   :  { %v7195_v43 = vadd.f32 %v7194_v54, %v7193_v41  ;;  %v1654_v45 = vadd.f32 %v7160_v42, %v1584_v39  ;;  %v2524_v39 = vld [vmem:[#allocation2 + $0xb10] sm:$0xff]  ;;  %v2589_v41 = vld [vmem:[#allocation2 + $0xd18] sm:$0xff] }
 0x1ce   :  { %v8002_v38 = vpack.c.bf16 %v2524_v39, %v2492_v44  ;;  %v8004_v42 = vpack.c.bf16 %v2589_v41, %v2557_v40  ;;  %v2556_v54 = vld [vmem:[#allocation2 + $0xc10] sm:$0xff]  ;;  %v2426_v44 = vld [vmem:[#allocation2 + $0x800] sm:$0xff]  ;;  %v2523_v40 = vld [vmem:[#allocation2 + $0xb08] sm:$0xff] }
 0x1cf   :  { %v1724_v47 = vadd.f32 %v7195_v43, %v1654_v45  ;;  %v2588_v43 = vld [vmem:[#allocation2 + $0xd10] sm:$0xff]  ;;  %v2458_v39 = vld [vmem:[#allocation2 + $0x900] sm:$0xff] }
 0x1d0   :  { %v8006_v45 = vpack.c.bf16 %v2588_v43, %v2556_v54  ;;  %v7870_v41 = vpack.c.bf16 %v2458_v39, %v2426_v44  ;;  %v2490_v54 = vld [vmem:[#allocation2 + $0xa00] sm:$0xff]  ;;  %v2939_v39 = vld [vmem:[#allocation2 + $0x1808] sm:$0xff] }
 0x1d1   :  { %v2522_v43 = vld [vmem:[#allocation2 + $0xb00] sm:$0xff] }
 0x1e9   :  { %v7228_v48 = vpop.f32.mrb[14].mxu0 }
 0x1ea   :  { %v7229_v49 = vpop.f32.mrb[15].mxu0 }
 0x1eb   :  { %v7263_v50 = vpop.f32.mrb[14].mxu1  ;;  %v7230_v51 = vadd.f32 %v7229_v49, %v7228_v48  ;;  %v2653_v48 = vld [vmem:[#allocation2 + $0xf18] sm:$0xff] }
 0x1ec   :  { %v7264_v60 = vpop.f32.mrb[15].mxu1 }
 0x1ed   :  { %v7265_v61 = vadd.f32 %v7264_v60, %v7263_v50  ;;  %v1794_v52 = vadd.f32 %v7230_v51, %v1724_v47  ;;  %v2621_v47 = vld [vmem:[#allocation2 + $0xe18] sm:$0xff]  ;;  %v2620_v50 = vld [vmem:[#allocation2 + $0xe10] sm:$0xff] }
 0x1ee   :  { %v8008_v49 = vpack.c.bf16 %v2653_v48, %v2621_v47  ;;  %v2652_v51 = vld [vmem:[#allocation2 + $0xf10] sm:$0xff]  ;;  %v2587_v47 = vld [vmem:[#allocation2 + $0xd08] sm:$0xff]  ;;  %v7874_v48 = vpack.c.bf16 %v2522_v43, %v2490_v54  ;;  %v2938_v54 = vld [vmem:[#allocation2 + $0x1800] sm:$0xff] }
 0x1ef   :  { %v1864_v53 = vadd.f32 %v7265_v61, %v1794_v52  ;;  %v8010_v60 = vpack.c.bf16 %v2652_v51, %v2620_v50  ;;  %v2685_v61 = vld [vmem:[#allocation2 + $0x1018] sm:$0xff]  ;;  %v2554_v50 = vld [vmem:[#allocation2 + $0xc00] sm:$0xff] }
 0x1f0   :  { %v2717_v52 = vld [vmem:[#allocation2 + $0x1118] sm:$0xff]  ;;  %v2586_v51 = vld [vmem:[#allocation2 + $0xd00] sm:$0xff] }
 0x1f1   :  { %v1867_v55 = vmax.f32 %v1864_v53, 0.0  ;;  %v8012_v53 = vpack.c.bf16 %v2717_v52, %v2685_v61  ;;  %v2651_v61 = vld [vmem:[#allocation2 + $0xf08] sm:$0xff]  ;;  %v7878_v52 = vpack.c.bf16 %v2586_v51, %v2554_v50  ;;  %v2970_v43 = vld [vmem:[#allocation2 + $0x1900] sm:$0xff] }
 0x1f2   :  { %v3003_v51 = vld [vmem:[#allocation2 + $0x1a08] sm:$0xff] }
 0x1f3   :  { %7304 = vmatmul.mubr.msk.f32.vlgmr.msra.gmra.mrb[16].mxu0 %vm1887_vm1, %v1867_v55  ;;  %v2684_v55 = vld [vmem:[#allocation2 + $0x1010] sm:$0xff] }
 0x1f4   :  { %7983 = vmatpush1.bf16.msra.mxu0 %v7982_v7  ;;  %v8014_v56 = vpack.c.bf16 %v2716_v34, %v2684_v55  ;;  %v1976_v7 = vld [vmem:[%s11976_s5 + $0x70] sm:$0xff]  ;;  %v2618_v55 = vld [vmem:[#allocation2 + $0xe00] sm:$0xff] }
 0x1f5   :  { %7985 = vmatprep.subr.bf16.mxu0 %v7984_v10  ;;  %v7850_v10 = vpack.c.bf16 %v1976_v7, %v1972_v6  ;;  %v2650_v34 = vld [vmem:[#allocation2 + $0xf00] sm:$0xff] }
 0x1f6   :  { %v7882_v58 = vpack.c.bf16 %v2650_v34, %v2618_v55  ;;  %v2746_v6 = vld [vmem:[#allocation2 + $0x1200] sm:$0xff] }
 0x1f7   :  { %v2778_v7 = vld [vmem:[#allocation2 + $0x1300] sm:$0xff] }
 0x1f8   :  { %7987 = vmatpush1.bf16.msra.mxu0 %v7986_v14  ;;  %v2202_v14 = vld [vmem:[#allocation2 + $0x100] sm:$0xff]  ;;  %v7890_v9 = vpack.c.bf16 %v2778_v7, %v2746_v6 }
 0x1f9   :  { %7989 = vmatprep.subr.bf16.mxu0 %v7988_v20  ;;  %v7854_v20 = vpack.c.bf16 %v2202_v14, %v2170_v12  ;;  %v2811_v14 = vld [vmem:[#allocation2 + $0x1408] sm:$0xff]  ;;  %v3002_v55 = vld [vmem:[#allocation2 + $0x1a00] sm:$0xff] }
 0x1fa   :  { %v3034_v34 = vld [vmem:[#allocation2 + $0x1b00] sm:$0xff] }
 0x1fc   :  { %7991 = vmatpush1.bf16.msra.mxu0 %v7990_v22  ;;  %v2266_v22 = vld [vmem:[#allocation2 + $0x300] sm:$0xff] }
 0x1fd   :  { %7993 = vmatprep.subr.bf16.mxu0 %v7992_v24  ;;  %v7858_v24 = vpack.c.bf16 %v2266_v22, %v2234_v21  ;;  %v2810_v21 = vld [vmem:[#allocation2 + $0x1400] sm:$0xff] }
 0x1fe   :  { %v2842_v22 = vld [vmem:[#allocation2 + $0x1500] sm:$0xff] }
 0x200   :  { %7995 = vmatpush1.bf16.msra.mxu0 %v7994_v27  ;;  %v2363_v27 = vld [vmem:[#allocation2 + $0x608] sm:$0xff] }
 0x201   :  { %7997 = vmatprep.subr.bf16.mxu0 %v7996_v30  ;;  %v7864_v30 = vpack.c.bf16 %v2395_v28, %v2363_v27  ;;  %v2907_v27 = vld [vmem:[#allocation2 + $0x1708] sm:$0xff]  ;;  %v2877_v28 = vld [vmem:[#allocation2 + $0x1618] sm:$0xff] }
 0x204   :  { %7999 = vmatpush1.bf16.msra.mxu0 %v7998_v33  ;;  %v2427_v33 = vld [vmem:[#allocation2 + $0x808] sm:$0xff] }
 0x205   :  { %8001 = vmatprep.subr.bf16.mxu0 %v8000_v37  ;;  %v7868_v37 = vpack.c.bf16 %v2459_v35, %v2427_v33  ;;  %v7898_v35 = vpack.c.bf16 %v2906_v32, %v2874_v31  ;;  %v11835_v31 = vld [vmem:[%s11977_s6] sm:$0xf]  ;;  %v1986_v32 = vsub.s32 1, %v10211_v0 }
 0x208   :  { %8003 = vmatpush1.bf16.msra.mxu0 %v8002_v38  ;;  %v2491_v38 = vld [vmem:[#allocation2 + $0xa08] sm:$0xff] }
 0x209   :  { %8005 = vmatprep.subr.bf16.mxu0 %v8004_v42  ;;  %v7872_v42 = vpack.c.bf16 %v2523_v40, %v2491_v38  ;;  %v2971_v38 = vld [vmem:[#allocation2 + $0x1908] sm:$0xff]  ;;  %v2941_v40 = vld [vmem:[#allocation2 + $0x1818] sm:$0xff] }
 0x20c   :  { %8007 = vmatpush1.bf16.msra.mxu0 %v8006_v45  ;;  %v2555_v45 = vld [vmem:[#allocation2 + $0xc08] sm:$0xff] }
 0x20d   :  { %8009 = vmatprep.subr.bf16.mxu0 %v8008_v49  ;;  %v7876_v49 = vpack.c.bf16 %v2587_v47, %v2555_v45  ;;  %v7902_v47 = vpack.c.bf16 %v2970_v43, %v2938_v54 }
 0x210   :  { %8011 = vmatpush1.bf16.msra.mxu0 %v8010_v60  ;;  %v2619_v60 = vld [vmem:[#allocation2 + $0xe08] sm:$0xff] }
 0x211   :  { %8013 = vmatprep.subr.bf16.mxu0 %v8012_v53  ;;  %v7880_v53 = vpack.c.bf16 %v2651_v61, %v2619_v60  ;;  %v3035_v60 = vld [vmem:[#allocation2 + $0x1b08] sm:$0xff]  ;;  %v3005_v61 = vld [vmem:[#allocation2 + $0x1a18] sm:$0xff] }
 0x214   :  { %8015 = vmatpush1.bf16.msra.mxu0 %v8014_v56  ;;  %v2683_v56 = vld [vmem:[#allocation2 + $0x1008] sm:$0xff] }
 0x2c6   :  { %v1957_v59 = vpop.f32.mrb[16].mxu0 }
 0x2c7   :  { %v1958_v1 = vadd.f32 %v6698_v57, %v1957_v59  ;;  %v7305_v2 = vpop.f32.mrb[17].mxu0  ;;  %v2715_v57 = vld [vmem:[#allocation2 + $0x1108] sm:$0xff]  ;;  %v2682_v59 = vld [vmem:[#allocation2 + $0x1000] sm:$0xff] }
 0x2c8   :  { %v7884_v46 = vpack.c.bf16 %v2715_v57, %v2683_v56  ;;  %v7886_v63 = vpack.c.bf16 %v2714_v62, %v2682_v59  ;;  %v2779_v2 = vld [vmem:[#allocation2 + $0x1308] sm:$0xff]  ;;  %v7906_v57 = vpack.c.bf16 %v3034_v34, %v3002_v55  ;;  %v3196_v55 = vld [vmem:[#allocation2 + $0x2010] sm:$0xff] }
 0x2c9   :  { %v1961_v4 = vmax.f32 %v1958_v1, 0.0  ;;  %v2747_v1 = vld [vmem:[#allocation2 + $0x1208] sm:$0xff]  ;;  %v3228_v34 = vld [vmem:[#allocation2 + $0x2110] sm:$0xff] }
 0x2ca   :  { %v3067_v62 = vld [vmem:[#allocation2 + $0x1c08] sm:$0xff] }
 0x2cb   :  { %6700 = vmatmul.mubr.msk.f32.vlgmr.msra.gmra.mrb[16].mxu1 %vm2000_vm2, %v1961_v4 }
 0x2cc   :  { %7847 = vmatpush1.bf16.msra.mxu1 %v7846_v3  ;;  %2139 = vmatprep.mubr.f32.mxu1 %v10026_v17  ;;  %v7860_v17 = vpack.c.bf16 %v2331_v19, %v2299_v23  ;;  %v2749_v3 = vld [vmem:[#allocation2 + $0x1218] sm:$0xff]  ;;  %v7894_v19 = vpack.c.bf16 %v2842_v22, %v2810_v21 }
 0x2cd   :  { %7849 = vmatprep.subr.bf16.mxu1 %v7848_v5  ;;  %v2781_v5 = vld [vmem:[#allocation2 + $0x1318] sm:$0xff] }
 0x2ce   :  { %v8016_v8 = vpack.c.bf16 %v2781_v5, %v2749_v3  ;;  %v3101_v3 = vld [vmem:[#allocation2 + $0x1d18] sm:$0xff]  ;;  %v3098_v5 = vld [vmem:[#allocation2 + $0x1d00] sm:$0xff] }
 0x2d0   :  { %7851 = vmatpush1.bf16.msra.mxu1 %v7850_v10  ;;  %v2748_v10 = vld [vmem:[#allocation2 + $0x1210] sm:$0xff]  ;;  %8017 = vmatprep.subr.bf16.mxu0 %v8016_v8 }
 0x2d1   :  { %7853 = vmatprep.subr.bf16.mxu1 %v7852_v11  ;;  %v2780_v11 = vld [vmem:[#allocation2 + $0x1310] sm:$0xff] }
 0x2d2   :  { %v8018_v12 = vpack.c.bf16 %v2780_v11, %v2748_v10  ;;  %v3068_v8 = vld [vmem:[#allocation2 + $0x1c10] sm:$0xff]  ;;  %v3131_v11 = vld [vmem:[#allocation2 + $0x1e08] sm:$0xff] }
 0x2d3   :  { %6701 = vmatmul.mubr.msk.f32.vlgmr.msra.gmra.mrb[18].mxu1 %vm2000_vm2, %v1961_v4  ;;  %v7888_v4 = vpack.c.bf16 %v2779_v2, %v2747_v1  ;;  %v3069_v1 = vld [vmem:[#allocation2 + $0x1c18] sm:$0xff] }
 0x2d4   :  { %7855 = vmatpush1.bf16.msra.mxu1 %v7854_v20  ;;  %8019 = vmatpush1.bf16.msra.mxu0 %v8018_v12  ;;  %v7892_v20 = vpack.c.bf16 %v2843_v15, %v2811_v14  ;;  %v8036_v6 = vpack.c.bf16 %v3101_v3, %v3069_v1  ;;  %v3163_v12 = vld [vmem:[#allocation2 + $0x1f08] sm:$0xff]  ;;  %v3133_v14 = vld [vmem:[#allocation2 + $0x1e18] sm:$0xff]  ;;  %v3290_v1 = vld [vmem:[#allocation2 + $0x2300] sm:$0xff] }
 0x2d5   :  { %7857 = vmatprep.subr.bf16.mxu1 %v7856_v18  ;;  %v2845_v18 = vld [vmem:[#allocation2 + $0x1518] sm:$0xff]  ;;  %v7912_v15 = vpack.c.bf16 %v3163_v12, %v3131_v11 }
 0x2d6   :  { %v8020_v23 = vpack.c.bf16 %v2845_v18, %v2813_v16  ;;  %v3165_v16 = vld [vmem:[#allocation2 + $0x1f18] sm:$0xff]  ;;  %v3162_v18 = vld [vmem:[#allocation2 + $0x1f00] sm:$0xff] }
 0x2d7   :  { %v8040_v21 = vpack.c.bf16 %v3165_v16, %v3133_v14  ;;  %v3357_v11 = vld [vmem:[#allocation2 + $0x2518] sm:$0xff]  ;;  %v3354_v16 = vld [vmem:[#allocation2 + $0x2500] sm:$0xff] }
 0x2d8   :  { %7859 = vmatpush1.bf16.msra.mxu1 %v7858_v24  ;;  %v2812_v24 = vld [vmem:[#allocation2 + $0x1410] sm:$0xff]  ;;  %8021 = vmatprep.subr.bf16.mxu0 %v8020_v23 }
 0x2d9   :  { %7861 = vmatprep.subr.bf16.mxu1 %v7860_v17  ;;  %v2844_v17 = vld [vmem:[#allocation2 + $0x1510] sm:$0xff] }
 0x2da   :  { %v8022_v25 = vpack.c.bf16 %v2844_v17, %v2812_v24  ;;  %v3132_v23 = vld [vmem:[#allocation2 + $0x1e10] sm:$0xff]  ;;  %v3195_v17 = vld [vmem:[#allocation2 + $0x2008] sm:$0xff] }
 0x2dc   :  { %7863 = vmatpush1.bf16.msra.mxu1 %v7862_v29  ;;  %8023 = vmatpush1.bf16.msra.mxu0 %v8022_v25  ;;  %v7896_v29 = vpack.c.bf16 %v2907_v27, %v2875_v26  ;;  %v3227_v25 = vld [vmem:[#allocation2 + $0x2108] sm:$0xff]  ;;  %v3197_v26 = vld [vmem:[#allocation2 + $0x2018] sm:$0xff] }
 0x2dd   :  { %7865 = vmatprep.subr.bf16.mxu1 %v7864_v30  ;;  %v2909_v30 = vld [vmem:[#allocation2 + $0x1718] sm:$0xff]  ;;  %v7916_v27 = vpack.c.bf16 %v3227_v25, %v3195_v17 }
 0x2de   :  { %v8024_v33 = vpack.c.bf16 %v2909_v30, %v2877_v28  ;;  %v3229_v28 = vld [vmem:[#allocation2 + $0x2118] sm:$0xff]  ;;  %v1982_v30 = vsub.s32 0, %v10211_v0 }
 0x2df   :  { %v3421_v17 = vld [vmem:[#allocation2 + $0x2718] sm:$0xff] }
 0x2e0   :  { %7867 = vmatpush1.bf16.msra.mxu1 %v7866_v36  ;;  %v2876_v36 = vld [vmem:[#allocation2 + $0x1610] sm:$0xff]  ;;  %8025 = vmatprep.subr.bf16.mxu0 %v8024_v33  ;;  %v1983_v33 = vrot.slane %v11835_v31, %v1982_v30 }
 0x2e1   :  { %7869 = vmatprep.subr.bf16.mxu1 %v7868_v37  ;;  %v2908_v37 = vld [vmem:[#allocation2 + $0x1710] sm:$0xff] }
 0x2e2   :  { %v8026_v44 = vpack.c.bf16 %v2908_v37, %v2876_v36 }
 0x2e4   :  { %7871 = vmatpush1.bf16.msra.mxu1 %v7870_v41  ;;  %8027 = vmatpush1.bf16.msra.mxu0 %v8026_v44  ;;  %v7900_v41 = vpack.c.bf16 %v2971_v38, %v2939_v39  ;;  %v1994_v38 = vsub.s32 3, %v10211_v0 }
 0x2e5   :  { %7873 = vmatprep.subr.bf16.mxu1 %v7872_v42  ;;  %v2973_v42 = vld [vmem:[#allocation2 + $0x1918] sm:$0xff] }
 0x2e6   :  { %v8028_v45 = vpack.c.bf16 %v2973_v42, %v2941_v40  ;;  %v1995_v42 = vrot.slane %v11835_v31, %v1994_v38 }
 0x2e8   :  { %7875 = vmatpush1.bf16.msra.mxu1 %v7874_v48  ;;  %v2940_v48 = vld [vmem:[#allocation2 + $0x1810] sm:$0xff]  ;;  %8029 = vmatprep.subr.bf16.mxu0 %v8028_v45 }
 0x2e9   :  { %7877 = vmatprep.subr.bf16.mxu1 %v7876_v49  ;;  %v2972_v49 = vld [vmem:[#allocation2 + $0x1910] sm:$0xff] }
 0x2ea   :  { %v8030_v50 = vpack.c.bf16 %v2972_v49, %v2940_v48 }
 0x2ec   :  { %7879 = vmatpush1.bf16.msra.mxu1 %v7878_v52  ;;  %8031 = vmatpush1.bf16.msra.mxu0 %v8030_v50  ;;  %v7904_v52 = vpack.c.bf16 %v3035_v60, %v3003_v51 }
 0x2ed   :  { %7881 = vmatprep.subr.bf16.mxu1 %v7880_v53  ;;  %v3037_v53 = vld [vmem:[#allocation2 + $0x1b18] sm:$0xff] }
 0x2ee   :  { %v8032_v56 = vpack.c.bf16 %v3037_v53, %v3005_v61  ;;  %v3194_v61 = vld [vmem:[#allocation2 + $0x2000] sm:$0xff] }
 0x2f0   :  { %7883 = vmatpush1.bf16.msra.mxu1 %v7882_v58  ;;  %v3004_v58 = vld [vmem:[#allocation2 + $0x1a10] sm:$0xff]  ;;  %8033 = vmatprep.subr.bf16.mxu0 %v8032_v56  ;;  %v3259_v56 = vld [vmem:[#allocation2 + $0x2208] sm:$0xff] }
 0x2f1   :  { %7885 = vmatprep.subr.bf16.mxu1 %v7884_v46  ;;  %v3036_v46 = vld [vmem:[#allocation2 + $0x1b10] sm:$0xff] }
 0x2f2   :  { %v8034_v59 = vpack.c.bf16 %v3036_v46, %v3004_v58  ;;  %v3261_v58 = vld [vmem:[#allocation2 + $0x2218] sm:$0xff] }
 0x2f3   :  { %v3293_v46 = vld [vmem:[#allocation2 + $0x2318] sm:$0xff] }
 0x2f4   :  { %7887 = vmatpush1.bf16.msra.mxu1 %v7886_v63  ;;  %v3099_v63 = vld [vmem:[#allocation2 + $0x1d08] sm:$0xff]  ;;  %8035 = vmatpush1.bf16.msra.mxu0 %v8034_v59 }
 0x2f5   :  { %7889 = vmatprep.subr.bf16.mxu1 %v7888_v4  ;;  %v7908_v2 = vpack.c.bf16 %v3099_v63, %v3067_v62  ;;  %v3066_v4 = vld [vmem:[#allocation2 + $0x1c00] sm:$0xff]  ;;  %8037 = vmatprep.subr.bf16.mxu0 %v8036_v6  ;;  %v8046_v62 = vpack.c.bf16 %v3228_v34, %v3196_v55  ;;  %v3292_v6 = vld [vmem:[#allocation2 + $0x2310] sm:$0xff] }
 0x2f6   :  { %v7910_v7 = vpack.c.bf16 %v3098_v5, %v3066_v4  ;;  %v3258_v63 = vld [vmem:[#allocation2 + $0x2200] sm:$0xff]  ;;  %v8048_v4 = vpack.c.bf16 %v3293_v46, %v3261_v58  ;;  %v3260_v5 = vld [vmem:[#allocation2 + $0x2210] sm:$0xff]  ;;  %v3579_v46 = vld [vmem:[#allocation2 + $0x2c08] sm:$0xff] }
 0x2f7   :  { %v7922_v12 = vpack.c.bf16 %v3290_v1, %v3258_v63  ;;  %v8050_v14 = vpack.c.bf16 %v3292_v6, %v3260_v5  ;;  %v3546_v55 = vld [vmem:[#allocation2 + $0x2b00] sm:$0xff]  ;;  %v3548_v58 = vld [vmem:[#allocation2 + $0x2b10] sm:$0xff]  ;;  %v3613_v63 = vld [vmem:[#allocation2 + $0x2d18] sm:$0xff] }
 0x2f8   :  { %7891 = vmatpush1.bf16.msra.mxu1 %v7890_v9  ;;  %v3100_v9 = vld [vmem:[#allocation2 + $0x1d10] sm:$0xff]  ;;  %v3610_v5 = vld [vmem:[#allocation2 + $0x2d00] sm:$0xff] }
 0x2f9   :  { %7893 = vmatprep.subr.bf16.mxu1 %v7892_v20  ;;  %v8038_v10 = vpack.c.bf16 %v3100_v9, %v3068_v8  ;;  %v3130_v20 = vld [vmem:[#allocation2 + $0x1e00] sm:$0xff]  ;;  %v3355_v9 = vld [vmem:[#allocation2 + $0x2508] sm:$0xff] }
 0x2fa   :  { %v7914_v22 = vpack.c.bf16 %v3162_v18, %v3130_v20 }
 0x2fb   :  { %8039 = vmatpush1.bf16.msra.mxu0 %v8038_v10  ;;  %v3325_v10 = vld [vmem:[#allocation2 + $0x2418] sm:$0xff] }
 0x2fc   :  { %7895 = vmatpush1.bf16.msra.mxu1 %v7894_v19  ;;  %v3164_v19 = vld [vmem:[#allocation2 + $0x1f10] sm:$0xff]  ;;  %8041 = vmatprep.subr.bf16.mxu0 %v8040_v21  ;;  %v8052_v18 = vpack.c.bf16 %v3357_v11, %v3325_v10  ;;  %v3643_v11 = vld [vmem:[#allocation2 + $0x2e08] sm:$0xff] }
 0x2fd   :  { %7897 = vmatprep.subr.bf16.mxu1 %v7896_v29  ;;  %v8042_v24 = vpack.c.bf16 %v3164_v19, %v3132_v23  ;;  %v8044_v29 = vpack.c.bf16 %v3229_v28, %v3197_v26  ;;  %v3324_v21 = vld [vmem:[#allocation2 + $0x2410] sm:$0xff]  ;;  %v3387_v23 = vld [vmem:[#allocation2 + $0x2608] sm:$0xff]  ;;  %v3418_v28 = vld [vmem:[#allocation2 + $0x2700] sm:$0xff] }
 0x2fe   :  { %v3419_v19 = vld [vmem:[#allocation2 + $0x2708] sm:$0xff]  ;;  %v3612_v10 = vld [vmem:[#allocation2 + $0x2d10] sm:$0xff] }
 0x2ff   :  { %8043 = vmatpush1.bf16.msra.mxu0 %v8042_v24  ;;  %v3389_v24 = vld [vmem:[#allocation2 + $0x2618] sm:$0xff]  ;;  %v7928_v30 = vpack.c.bf16 %v3419_v19, %v3387_v23 }
 0x300   :  { %7899 = vmatpush1.bf16.msra.mxu1 %v7898_v35  ;;  %8045 = vmatprep.subr.bf16.mxu0 %v8044_v29  ;;  %v1987_v35 = vrot.slane %v11835_v31, %v1986_v32  ;;  %v8056_v32 = vpack.c.bf16 %v3421_v17, %v3389_v24  ;;  %v3644_v24 = vld [vmem:[#allocation2 + $0x2e10] sm:$0xff] }
 0x301   :  { %7901 = vmatprep.subr.bf16.mxu1 %v7900_v41  ;;  %v3676_v17 = vld [vmem:[#allocation2 + $0x2f10] sm:$0xff] }
 0x304   :  { %7903 = vmatpush1.bf16.msra.mxu1 %v7902_v47 }
 0x305   :  { %7905 = vmatprep.subr.bf16.mxu1 %v7904_v52  ;;  %v3226_v52 = vld [vmem:[#allocation2 + $0x2100] sm:$0xff] }
 0x306   :  { %v7918_v59 = vpack.c.bf16 %v3226_v52, %v3194_v61 }
 0x308   :  { %7907 = vmatpush1.bf16.msra.mxu1 %v7906_v57  ;;  %v3291_v57 = vld [vmem:[#allocation2 + $0x2308] sm:$0xff] }
 0x309   :  { %7909 = vmatprep.subr.bf16.mxu1 %v7908_v2  ;;  %v7920_v3 = vpack.c.bf16 %v3291_v57, %v3259_v56  ;;  %v3516_v57 = vld [vmem:[#allocation2 + $0x2a10] sm:$0xff] }
 0x30c   :  { %7911 = vmatpush1.bf16.msra.mxu1 %v7910_v7  ;;  %v3323_v7 = vld [vmem:[#allocation2 + $0x2408] sm:$0xff] }
 0x30d   :  { %7913 = vmatprep.subr.bf16.mxu1 %v7912_v15  ;;  %v3322_v15 = vld [vmem:[#allocation2 + $0x2400] sm:$0xff]  ;;  %v7924_v20 = vpack.c.bf16 %v3355_v9, %v3323_v7  ;;  %v3580_v9 = vld [vmem:[#allocation2 + $0x2c10] sm:$0xff] }
 0x30e   :  { %v7926_v25 = vpack.c.bf16 %v3354_v16, %v3322_v15  ;;  %v3677_v15 = vld [vmem:[#allocation2 + $0x2f18] sm:$0xff]  ;;  %v1990_v16 = vsub.s32 2, %v10211_v0 }
 0x310   :  { %7915 = vmatpush1.bf16.msra.mxu1 %v7914_v22  ;;  %v3356_v22 = vld [vmem:[#allocation2 + $0x2510] sm:$0xff] }
 0x311   :  { %7917 = vmatprep.subr.bf16.mxu1 %v7916_v27  ;;  %v8054_v26 = vpack.c.bf16 %v3356_v22, %v3324_v21  ;;  %v3386_v27 = vld [vmem:[#allocation2 + $0x2600] sm:$0xff] }
 0x312   :  { %v7930_v38 = vpack.c.bf16 %v3418_v28, %v3386_v27  ;;  %v3642_v21 = vld [vmem:[#allocation2 + $0x2e00] sm:$0xff]  ;;  %v3709_v27 = vld [vmem:[#allocation2 + $0x3018] sm:$0xff] }
 0x313   :  { %v3674_v22 = vld [vmem:[#allocation2 + $0x2f00] sm:$0xff]  ;;  %v3741_v28 = vld [vmem:[#allocation2 + $0x3118] sm:$0xff] }
 0x314   :  { %v7946_v0 = vpack.c.bf16 %v3674_v22, %v3642_v21  ;;  %v3997_v21 = vld [vmem:[#allocation2 + $0x3918] sm:$0xff] }
 0x39e   :  { %v2070_v36 = vpop.f32.mrb[16].mxu1 }
 0x39f   :  { %v2071_v37 = vadd.f32 %v2070_v36, %v1983_v33  ;;  %v2072_v44 = vpop.f32.mrb[17].mxu1  ;;  %v3388_v33 = vld [vmem:[#allocation2 + $0x2610] sm:$0xff]  ;;  %v3451_v36 = vld [vmem:[#allocation2 + $0x2808] sm:$0xff] }
 0x3a0   :  { %v2073_v39 = vadd.f32 %v2072_v44, %v1987_v35  ;;  %v3420_v35 = vld [vmem:[#allocation2 + $0x2710] sm:$0xff]  ;;  %v3453_v44 = vld [vmem:[#allocation2 + $0x2818] sm:$0xff] }
 0x3a1   :  { %v6702_v40 = vmul.f32 -1.442695, %v2071_v37  ;;  %v3483_v37 = vld [vmem:[#allocation2 + $0x2908] sm:$0xff] }
 0x3a2   :  { %v6703_v41 = vmul.f32 -1.442695, %v2073_v39  ;;  %v3485_v39 = vld [vmem:[#allocation2 + $0x2918] sm:$0xff] }
 0x3a3   :  { %9948 = vpow2.f32 %v6702_v40  ;;  %v8058_v40 = vpack.c.bf16 %v3420_v35, %v3388_v33  ;;  %v3706_v33 = vld [vmem:[#allocation2 + $0x3000] sm:$0xff] }
 0x3a4   :  { %9950 = vpow2.f32 %v6703_v41  ;;  %v3450_v41 = vld [vmem:[#allocation2 + $0x2800] sm:$0xff] }
 0x3a5   :  { %v3738_v35 = vld [vmem:[#allocation2 + $0x3100] sm:$0xff] }
 0x3a6   :  { %v11842_v54 = vpop.f32.mrb[18].mxu1 }
 0x3a7   :  { %v2143_v43 = vpop.f32.mrb[19].mxu1 }
 0x3a8   :  { %v2144_v45 = vadd.f32 %v2143_v43, %v1995_v42  ;;  %v3482_v42 = vld [vmem:[#allocation2 + $0x2900] sm:$0xff]  ;;  %v7932_v43 = vpack.c.bf16 %v3483_v37, %v3451_v36  ;;  %v8076_v37 = vpack.c.bf16 %v3741_v28, %v3709_v27  ;;  %v3996_v27 = vld [vmem:[#allocation2 + $0x3910] sm:$0xff]  ;;  %v4027_v28 = vld [vmem:[#allocation2 + $0x3a08] sm:$0xff] }
 0x3a9   :  { %v7934_v61 = vpack.c.bf16 %v3482_v42, %v3450_v41  ;;  %v3773_v41 = vld [vmem:[#allocation2 + $0x3218] sm:$0xff] }
 0x3aa   :  { %v6705_v47 = vmul.f32 -1.442695, %v2144_v45  ;;  %v8060_v45 = vpack.c.bf16 %v3485_v39, %v3453_v44  ;;  %v3708_v44 = vld [vmem:[#allocation2 + $0x3010] sm:$0xff]  ;;  %v3805_v42 = vld [vmem:[#allocation2 + $0x3318] sm:$0xff] }
 0x3ab   :  { %v3740_v39 = vld [vmem:[#allocation2 + $0x3110] sm:$0xff] }
 0x3ac   :  { %9952 = vpow2.f32 %v6705_v47  ;;  %v3452_v47 = vld [vmem:[#allocation2 + $0x2810] sm:$0xff] }
 0x3ad   :  { %v9949_v48 = vpop.eup %9948 }
 0x3ae   :  { %v9951_v49 = vpop.eup %9950  ;;  %v2158_v50 = vadd.f32 1.0, %v9949_v48  ;;  %v3484_v48 = vld [vmem:[#allocation2 + $0x2910] sm:$0xff] }
 0x3af   :  { %v2159_v51 = vadd.f32 1.0, %v9951_v49  ;;  %v3515_v49 = vld [vmem:[#allocation2 + $0x2a08] sm:$0xff]  ;;  %v8062_v52 = vpack.c.bf16 %v3484_v48, %v3452_v47  ;;  %v3770_v47 = vld [vmem:[#allocation2 + $0x3200] sm:$0xff] }
 0x3b0   :  { %v3802_v48 = vld [vmem:[#allocation2 + $0x3300] sm:$0xff] }
 0x3b1   :  { %9954 = vrcp.f32 %v2159_v51  ;;  %v3517_v51 = vld [vmem:[#allocation2 + $0x2a18] sm:$0xff] }
 0x3b2   :  { %9956 = vrcp.f32 %v2158_v50  ;;  %v3547_v50 = vld [vmem:[#allocation2 + $0x2b08] sm:$0xff] }
 0x3b3   :  { %v7936_v34 = vpack.c.bf16 %v3547_v50, %v3515_v49  ;;  %v8080_v50 = vpack.c.bf16 %v3805_v42, %v3773_v41  ;;  %v4060_v41 = vld [vmem:[#allocation2 + $0x3b10] sm:$0xff]  ;;  %v4091_v42 = vld [vmem:[#allocation2 + $0x3c08] sm:$0xff] }
 0x3b6   :  { %v9953_v60 = vpop.eup %9952 }
 0x3b7   :  { %v2161_v53 = vadd.f32 1.0, %v9953_v60  ;;  %v3549_v60 = vld [vmem:[#allocation2 + $0x2b18] sm:$0xff] }
 0x3b8   :  { %v8064_v56 = vpack.c.bf16 %v3549_v60, %v3517_v51  ;;  %v3772_v51 = vld [vmem:[#allocation2 + $0x3210] sm:$0xff] }
 0x3b9   :  { %9958 = vrcp.f32 %v2161_v53  ;;  %v3514_v53 = vld [vmem:[#allocation2 + $0x2a00] sm:$0xff]  ;;  %v3804_v60 = vld [vmem:[#allocation2 + $0x3310] sm:$0xff] }
 0x3ba   :  { %v7938_v1 = vpack.c.bf16 %v3546_v55, %v3514_v53  ;;  %v3837_v53 = vld [vmem:[#allocation2 + $0x3418] sm:$0xff] }
 0x3bb   :  { %v11844_v2 = vpop.eup %9954  ;;  %v3869_v55 = vld [vmem:[#allocation2 + $0x3518] sm:$0xff] }
 0x3bc   :  { %v11846_v8 = vpop.eup %9956  ;;  %4282 = vmatprep.mubr.f32.mxu1 %v11844_v2  ;;  %4424 = vmatprep.mubr.f32.mxu0 %v11844_v2 }
 0x3bd   :  { %4283 = vmatmul.mubr.f32.vlgmr.msra.gmra.mrb[20].mxu1 %v11846_v8  ;;  %4425 = vmatmul.mubr.f32.vlgmr.msra.gmra.mrb[18].mxu0 %v11846_v8 }
 0x3be   :  { %7919 = vmatpush1.bf16.msra.mxu1 %v7918_v59  ;;  %8047 = vmatpush1.bf16.msra.mxu0 %v8046_v62  ;;  %v3611_v59 = vld [vmem:[#allocation2 + $0x2d08] sm:$0xff]  ;;  %v3581_v62 = vld [vmem:[#allocation2 + $0x2c18] sm:$0xff] }
 0x3bf   :  { %7921 = vmatprep.subr.bf16.mxu1 %v7920_v3  ;;  %8049 = vmatprep.subr.bf16.mxu0 %v8048_v4  ;;  %v8066_v3 = vpack.c.bf16 %v3548_v58, %v3516_v57  ;;  %v3578_v4 = vld [vmem:[#allocation2 + $0x2c00] sm:$0xff]  ;;  %v7940_v6 = vpack.c.bf16 %v3611_v59, %v3579_v46  ;;  %v8068_v7 = vpack.c.bf16 %v3613_v63, %v3581_v62  ;;  %v3836_v62 = vld [vmem:[#allocation2 + $0x3410] sm:$0xff] }
 0x3c0   :  { %v3834_v57 = vld [vmem:[#allocation2 + $0x3400] sm:$0xff]  ;;  %v8084_v59 = vpack.c.bf16 %v3869_v55, %v3837_v53  ;;  %v3868_v63 = vld [vmem:[#allocation2 + $0x3510] sm:$0xff]  ;;  %v4155_v55 = vld [vmem:[#allocation2 + $0x3e08] sm:$0xff] }
 0x3c1   :  { %v3866_v58 = vld [vmem:[#allocation2 + $0x3500] sm:$0xff]  ;;  %v4124_v53 = vld [vmem:[#allocation2 + $0x3d10] sm:$0xff] }
 0x3c2   :  { %7923 = vmatpush1.bf16.msra.mxu1 %v7922_v12  ;;  %8051 = vmatpush1.bf16.msra.mxu0 %v8050_v14  ;;  %v3675_v12 = vld [vmem:[#allocation2 + $0x2f08] sm:$0xff]  ;;  %v3645_v14 = vld [vmem:[#allocation2 + $0x2e18] sm:$0xff] }
 0x3c3   :  { %v11852_v29 = vpop.eup %9958  ;;  %7925 = vmatprep.subr.bf16.mxu1 %v7924_v20  ;;  %8053 = vmatprep.subr.bf16.mxu0 %v8052_v18  ;;  %v7942_v20 = vpack.c.bf16 %v3610_v5, %v3578_v4  ;;  %v8070_v18 = vpack.c.bf16 %v3612_v10, %v3580_v9  ;;  %v7944_v23 = vpack.c.bf16 %v3675_v12, %v3643_v11  ;;  %v3901_v4 = vld [vmem:[#allocation2 + $0x3618] sm:$0xff]  ;;  %v3898_v9 = vld [vmem:[#allocation2 + $0x3600] sm:$0xff] }
 0x3c4   :  { %4353 = vmatprep.mubr.f32.mxu1 %v11852_v29  ;;  %4495 = vmatprep.mubr.f32.mxu0 %v11852_v29  ;;  %v8072_v19 = vpack.c.bf16 %v3677_v15, %v3645_v14  ;;  %v3933_v5 = vld [vmem:[#allocation2 + $0x3718] sm:$0xff]  ;;  %v3930_v10 = vld [vmem:[#allocation2 + $0x3700] sm:$0xff]  ;;  %v3900_v14 = vld [vmem:[#allocation2 + $0x3610] sm:$0xff] }
 0x3c5   :  { %v8088_v12 = vpack.c.bf16 %v3933_v5, %v3901_v4  ;;  %v3932_v15 = vld [vmem:[#allocation2 + $0x3710] sm:$0xff]  ;;  %v7962_v22 = vpack.c.bf16 %v3930_v10, %v3898_v9  ;;  %v2175_v4 = vld [vmem:[#allocation2 + $0x28] sm:$0xff] }
 0x3c6   :  { %7927 = vmatpush1.bf16.msra.mxu1 %v7926_v25  ;;  %8055 = vmatpush1.bf16.msra.mxu0 %v8054_v26  ;;  %v3707_v25 = vld [vmem:[#allocation2 + $0x3008] sm:$0xff] }
 0x3c7   :  { %7929 = vmatprep.subr.bf16.mxu1 %v7928_v30  ;;  %8057 = vmatprep.subr.bf16.mxu0 %v8056_v32  ;;  %v3739_v26 = vld [vmem:[#allocation2 + $0x3108] sm:$0xff]  ;;  %v1991_v30 = vrot.slane %v11835_v31, %v1990_v16  ;;  %v8074_v32 = vpack.c.bf16 %v3676_v17, %v3644_v24  ;;  %v7950_v31 = vpack.c.bf16 %v3738_v35, %v3706_v33  ;;  %v3994_v24 = vld [vmem:[#allocation2 + $0x3900] sm:$0xff] }
 0x3c8   :  { %v7948_v36 = vpack.c.bf16 %v3739_v26, %v3707_v25  ;;  %v3963_v16 = vld [vmem:[#allocation2 + $0x3808] sm:$0xff]  ;;  %v3964_v26 = vld [vmem:[#allocation2 + $0x3810] sm:$0xff] }
 0x3c9   :  { %v8094_v35 = vpack.c.bf16 %v3996_v27, %v3964_v26  ;;  %v2207_v5 = vld [vmem:[#allocation2 + $0x128] sm:$0xff]  ;;  %v2240_v26 = vld [vmem:[#allocation2 + $0x230] sm:$0xff] }
 0x3ca   :  { %7931 = vmatpush1.bf16.msra.mxu1 %v7930_v38  ;;  %8059 = vmatpush1.bf16.msra.mxu0 %v8058_v40  ;;  %v3771_v38 = vld [vmem:[#allocation2 + $0x3208] sm:$0xff] }
 0x3cb   :  { %7933 = vmatprep.subr.bf16.mxu1 %v7932_v43  ;;  %8061 = vmatprep.subr.bf16.mxu0 %v8060_v45  ;;  %v3803_v40 = vld [vmem:[#allocation2 + $0x3308] sm:$0xff]  ;;  %v2142_v43 = vadd.f32 %v11842_v54, %v1991_v30  ;;  %v8078_v45 = vpack.c.bf16 %v3740_v39, %v3708_v44  ;;  %v7954_v54 = vpack.c.bf16 %v3802_v48, %v3770_v47 }
 0x3cc   :  { %v7952_v49 = vpack.c.bf16 %v3803_v40, %v3771_v38  ;;  %v4059_v30 = vld [vmem:[#allocation2 + $0x3b08] sm:$0xff]  ;;  %v4028_v40 = vld [vmem:[#allocation2 + $0x3a10] sm:$0xff] }
 0x3cd   :  { %v7968_v39 = vpack.c.bf16 %v4059_v30, %v4027_v28 }
 0x3ce   :  { %7935 = vmatpush1.bf16.msra.mxu1 %v7934_v61  ;;  %8063 = vmatpush1.bf16.msra.mxu0 %v8062_v52  ;;  %v3835_v61 = vld [vmem:[#allocation2 + $0x3408] sm:$0xff] }
 0x3cf   :  { %7937 = vmatprep.subr.bf16.mxu1 %v7936_v34  ;;  %8065 = vmatprep.subr.bf16.mxu0 %v8064_v56  ;;  %v3867_v52 = vld [vmem:[#allocation2 + $0x3508] sm:$0xff]  ;;  %v6704_v34 = vmul.f32 -1.442695, %v2142_v43  ;;  %v8082_v56 = vpack.c.bf16 %v3804_v60, %v3772_v51  ;;  %v4122_v51 = vld [vmem:[#allocation2 + $0x3d00] sm:$0xff] }
 0x3d0   :  { %v7956_v46 = vpack.c.bf16 %v3867_v52, %v3835_v61  ;;  %v4123_v43 = vld [vmem:[#allocation2 + $0x3d08] sm:$0xff]  ;;  %v4092_v52 = vld [vmem:[#allocation2 + $0x3c10] sm:$0xff] }
 0x3d1   :  { %9960 = vpow2.f32 %v6704_v34  ;;  %v7972_v60 = vpack.c.bf16 %v4123_v43, %v4091_v42  ;;  %v4187_v34 = vld [vmem:[#allocation2 + $0x3f08] sm:$0xff]  ;;  %v2336_v43 = vld [vmem:[#allocation2 + $0x530] sm:$0xff] }
 0x3d2   :  { %7939 = vmatpush1.bf16.msra.mxu1 %v7938_v1  ;;  %8067 = vmatpush1.bf16.msra.mxu0 %v8066_v3  ;;  %v3899_v1 = vld [vmem:[#allocation2 + $0x3608] sm:$0xff] }
 0x3d3   :  { %7941 = vmatprep.subr.bf16.mxu1 %v7940_v6  ;;  %8069 = vmatprep.subr.bf16.mxu0 %v8068_v7  ;;  %v3931_v3 = vld [vmem:[#allocation2 + $0x3708] sm:$0xff]  ;;  %v7958_v6 = vpack.c.bf16 %v3866_v58, %v3834_v57  ;;  %v8086_v7 = vpack.c.bf16 %v3868_v63, %v3836_v62  ;;  %v8102_v58 = vpack.c.bf16 %v4124_v53, %v4092_v52  ;;  %v2368_v52 = vld [vmem:[#allocation2 + $0x630] sm:$0xff] }
 0x3d4   :  { %v7960_v11 = vpack.c.bf16 %v3931_v3, %v3899_v1  ;;  %v7976_v62 = vpack.c.bf16 %v4187_v34, %v4155_v55  ;;  %v4156_v1 = vld [vmem:[#allocation2 + $0x3e10] sm:$0xff]  ;;  %v2431_v34 = vld [vmem:[#allocation2 + $0x828] sm:$0xff] }
 0x3d5   :  { %v4188_v3 = vld [vmem:[#allocation2 + $0x3f10] sm:$0xff] }
 0x3d6   :  { %7943 = vmatpush1.bf16.msra.mxu1 %v7942_v20  ;;  %8071 = vmatpush1.bf16.msra.mxu0 %v8070_v18  ;;  %v3995_v20 = vld [vmem:[#allocation2 + $0x3908] sm:$0xff]  ;;  %v3965_v18 = vld [vmem:[#allocation2 + $0x3818] sm:$0xff]  ;;  %v8106_v10 = vpack.c.bf16 %v4188_v3, %v4156_v1  ;;  %v2400_v55 = vld [vmem:[#allocation2 + $0x730] sm:$0xff] }
 0x3d7   :  { %7945 = vmatprep.subr.bf16.mxu1 %v7944_v23  ;;  %8073 = vmatprep.subr.bf16.mxu0 %v8072_v19  ;;  %v8090_v23 = vpack.c.bf16 %v3932_v15, %v3900_v14  ;;  %v3962_v19 = vld [vmem:[#allocation2 + $0x3800] sm:$0xff]  ;;  %v7964_v17 = vpack.c.bf16 %v3995_v20, %v3963_v16  ;;  %v8092_v25 = vpack.c.bf16 %v3997_v21, %v3965_v18  ;;  %v2176_v16 = vld [vmem:[#allocation2 + $0x30] sm:$0xff]  ;;  %v2239_v18 = vld [vmem:[#allocation2 + $0x228] sm:$0xff] }
 0x3d8   :  { %v7966_v33 = vpack.c.bf16 %v3994_v24, %v3962_v19  ;;  %v2174_v14 = vld [vmem:[#allocation2 + $0x20] sm:$0xff]  ;;  %v2208_v20 = vld [vmem:[#allocation2 + $0x130] sm:$0xff]  ;;  %v2271_v21 = vld [vmem:[#allocation2 + $0x328] sm:$0xff] }
 0x3d9   :  { %v2206_v15 = vld [vmem:[#allocation2 + $0x120] sm:$0xff]  ;;  %v8238_v24 = vpack.c.bf16 %v2208_v20, %v2176_v16  ;;  %v8112_v28 = vpack.c.bf16 %v2271_v21, %v2239_v18  ;;  %v2432_v1 = vld [vmem:[#allocation2 + $0x830] sm:$0xff]  ;;  %v2559_v21 = vld [vmem:[#allocation2 + $0xc28] sm:$0xff] }
 0x3da   :  { %7947 = vmatpush1.bf16.msra.mxu1 %v7946_v0  ;;  %8075 = vmatpush1.bf16.msra.mxu0 %v8074_v32  ;;  %v4029_v0 = vld [vmem:[#allocation2 + $0x3a18] sm:$0xff]  ;;  %v8110_v19 = vpack.c.bf16 %v2206_v15, %v2174_v14  ;;  %v2494_v14 = vld [vmem:[#allocation2 + $0xa20] sm:$0xff]  ;;  %v2496_v16 = vld [vmem:[#allocation2 + $0xa30] sm:$0xff] }
 0x3db   :  { %7949 = vmatprep.subr.bf16.mxu1 %v7948_v36  ;;  %8077 = vmatprep.subr.bf16.mxu0 %v8076_v37  ;;  %v4061_v32 = vld [vmem:[#allocation2 + $0x3b18] sm:$0xff]  ;;  %v4026_v36 = vld [vmem:[#allocation2 + $0x3a00] sm:$0xff]  ;;  %v9961_v44 = vpop.eup %9960  ;;  %v2528_v18 = vld [vmem:[#allocation2 + $0xb30] sm:$0xff] }
 0x3dc   :  { %v4058_v37 = vld [vmem:[#allocation2 + $0x3b00] sm:$0xff]  ;;  %v8096_v38 = vpack.c.bf16 %v4061_v32, %v4029_v0  ;;  %v2160_v47 = vadd.f32 1.0, %v9961_v44  ;;  %v2272_v0 = vld [vmem:[#allocation2 + $0x330] sm:$0xff]  ;;  %v2303_v32 = vld [vmem:[#allocation2 + $0x428] sm:$0xff] }
 0x3dd   :  { %v7970_v48 = vpack.c.bf16 %v4058_v37, %v4026_v36  ;;  %v2337_v36 = vld [vmem:[#allocation2 + $0x538] sm:$0xff]  ;;  %v8242_v44 = vpack.c.bf16 %v2272_v0, %v2240_v26  ;;  %v2526_v15 = vld [vmem:[#allocation2 + $0xb20] sm:$0xff] }
 0x3de   :  { %7951 = vmatpush1.bf16.msra.mxu1 %v7950_v31  ;;  %8079 = vmatpush1.bf16.msra.mxu0 %v8078_v45  ;;  %v4093_v31 = vld [vmem:[#allocation2 + $0x3c18] sm:$0xff]  ;;  %9962 = vrcp.f32 %v2160_v47  ;;  %v2558_v26 = vld [vmem:[#allocation2 + $0xc20] sm:$0xff] }
 0x3df   :  { %7953 = vmatprep.subr.bf16.mxu1 %v7952_v49  ;;  %8081 = vmatprep.subr.bf16.mxu0 %v8080_v50  ;;  %v4125_v45 = vld [vmem:[#allocation2 + $0x3d18] sm:$0xff]  ;;  %v8098_v49 = vpack.c.bf16 %v4060_v41, %v4028_v40  ;;  %v4090_v50 = vld [vmem:[#allocation2 + $0x3c00] sm:$0xff]  ;;  %v2304_v41 = vld [vmem:[#allocation2 + $0x430] sm:$0xff] }
 0x3e0   :  { %v8100_v61 = vpack.c.bf16 %v4125_v45, %v4093_v31  ;;  %v7974_v57 = vpack.c.bf16 %v4122_v51, %v4090_v50  ;;  %v2334_v40 = vld [vmem:[#allocation2 + $0x520] sm:$0xff]  ;;  %v2367_v31 = vld [vmem:[#allocation2 + $0x628] sm:$0xff]  ;;  %v2369_v47 = vld [vmem:[#allocation2 + $0x638] sm:$0xff]  ;;  %v8246_v50 = vpack.c.bf16 %v2336_v43, %v2304_v41 }
 0x3e1   :  { %v2399_v45 = vld [vmem:[#allocation2 + $0x728] sm:$0xff]  ;;  %v2654_v41 = vld [vmem:[#allocation2 + $0xf20] sm:$0xff] }
 0x3e2   :  { %7955 = vmatpush1.bf16.msra.mxu1 %v7954_v54  ;;  %8083 = vmatpush1.bf16.msra.mxu0 %v8082_v56  ;;  %v4157_v54 = vld [vmem:[#allocation2 + $0x3e18] sm:$0xff]  ;;  %v8120_v51 = vpack.c.bf16 %v2399_v45, %v2367_v31  ;;  %v2656_v31 = vld [vmem:[#allocation2 + $0xf30] sm:$0xff]  ;;  %v2687_v45 = vld [vmem:[#allocation2 + $0x1028] sm:$0xff] }
 0x3e3   :  { %7957 = vmatprep.subr.bf16.mxu1 %v7956_v46  ;;  %8085 = vmatprep.subr.bf16.mxu0 %v8084_v59  ;;  %v4189_v56 = vld [vmem:[#allocation2 + $0x3f18] sm:$0xff]  ;;  %v4154_v46 = vld [vmem:[#allocation2 + $0x3e00] sm:$0xff] }
 0x3e4   :  { %v4186_v59 = vld [vmem:[#allocation2 + $0x3f00] sm:$0xff]  ;;  %v8104_v63 = vpack.c.bf16 %v4189_v56, %v4157_v54  ;;  %v2463_v54 = vld [vmem:[#allocation2 + $0x928] sm:$0xff]  ;;  %v2433_v56 = vld [vmem:[#allocation2 + $0x838] sm:$0xff] }
 0x3e5   :  { %v7978_v9 = vpack.c.bf16 %v4186_v59, %v4154_v46  ;;  %v8250_v46 = vpack.c.bf16 %v2400_v55, %v2368_v52  ;;  %v8124_v59 = vpack.c.bf16 %v2463_v54, %v2431_v34  ;;  %v2718_v52 = vld [vmem:[#allocation2 + $0x1120] sm:$0xff]  ;;  %v2720_v34 = vld [vmem:[#allocation2 + $0x1130] sm:$0xff]  ;;  %v2751_v54 = vld [vmem:[#allocation2 + $0x1228] sm:$0xff] }
 0x3e6   :  { %7959 = vmatpush1.bf16.msra.mxu1 %v7958_v6  ;;  %8087 = vmatpush1.bf16.msra.mxu0 %v8086_v7  ;;  %v2177_v6 = vld [vmem:[#allocation2 + $0x38] sm:$0xff] }
 0x3e7   :  { %7961 = vmatprep.subr.bf16.mxu1 %v7960_v11  ;;  %8089 = vmatprep.subr.bf16.mxu0 %v8088_v12  ;;  %v2209_v7 = vld [vmem:[#allocation2 + $0x138] sm:$0xff]  ;;  %v8108_v11 = vpack.c.bf16 %v2207_v5, %v2175_v4  ;;  %v2464_v4 = vld [vmem:[#allocation2 + $0x930] sm:$0xff]  ;;  %v2495_v5 = vld [vmem:[#allocation2 + $0xa28] sm:$0xff] }
 0x3e8   :  { %v8236_v12 = vpack.c.bf16 %v2209_v7, %v2177_v6  ;;  %v11859_v27 = vpop.eup %9962  ;;  %v2527_v6 = vld [vmem:[#allocation2 + $0xb28] sm:$0xff]  ;;  %v2497_v7 = vld [vmem:[#allocation2 + $0xa38] sm:$0xff] }
 0x3ea   :  { %7963 = vmatpush1.bf16.msra.mxu1 %v7962_v22  ;;  %8091 = vmatpush1.bf16.msra.mxu0 %v8090_v23  ;;  %v2241_v22 = vld [vmem:[#allocation2 + $0x238] sm:$0xff] }
 0x3eb   :  { %7965 = vmatprep.subr.bf16.mxu1 %v7964_v17  ;;  %8093 = vmatprep.subr.bf16.mxu0 %v8092_v25  ;;  %v2273_v23 = vld [vmem:[#allocation2 + $0x338] sm:$0xff]  ;;  %v2238_v17 = vld [vmem:[#allocation2 + $0x220] sm:$0xff] }
 0x3ec   :  { %v2270_v25 = vld [vmem:[#allocation2 + $0x320] sm:$0xff]  ;;  %v8240_v30 = vpack.c.bf16 %v2273_v23, %v2241_v22  ;;  %v2591_v22 = vld [vmem:[#allocation2 + $0xd28] sm:$0xff]  ;;  %v2561_v23 = vld [vmem:[#allocation2 + $0xc38] sm:$0xff] }
 0x3ed   :  { %v8114_v37 = vpack.c.bf16 %v2270_v25, %v2238_v17  ;;  %v8258_v17 = vpack.c.bf16 %v2528_v18, %v2496_v16  ;;  %v8132_v25 = vpack.c.bf16 %v2591_v22, %v2559_v21  ;;  %v2846_v16 = vld [vmem:[#allocation2 + $0x1520] sm:$0xff]  ;;  %v2848_v21 = vld [vmem:[#allocation2 + $0x1530] sm:$0xff]  ;;  %v2879_v22 = vld [vmem:[#allocation2 + $0x1628] sm:$0xff] }
 0x3ee   :  { %7967 = vmatpush1.bf16.msra.mxu1 %v7966_v33  ;;  %8095 = vmatpush1.bf16.msra.mxu0 %v8094_v35  ;;  %v2335_v33 = vld [vmem:[#allocation2 + $0x528] sm:$0xff]  ;;  %v2305_v35 = vld [vmem:[#allocation2 + $0x438] sm:$0xff] }
 0x3ef   :  { %7969 = vmatprep.subr.bf16.mxu1 %v7968_v39  ;;  %8097 = vmatprep.subr.bf16.mxu0 %v8096_v38  ;;  %v8116_v39 = vpack.c.bf16 %v2335_v33, %v2303_v32  ;;  %v2302_v38 = vld [vmem:[#allocation2 + $0x420] sm:$0xff]  ;;  %v8244_v42 = vpack.c.bf16 %v2337_v36, %v2305_v35  ;;  %v2592_v32 = vld [vmem:[#allocation2 + $0xd30] sm:$0xff]  ;;  %v2623_v33 = vld [vmem:[#allocation2 + $0xe28] sm:$0xff] }
 0x3f0   :  { %v2655_v35 = vld [vmem:[#allocation2 + $0xf28] sm:$0xff]  ;;  %v2625_v36 = vld [vmem:[#allocation2 + $0xe38] sm:$0xff] }
 0x3f2   :  { %7971 = vmatpush1.bf16.msra.mxu1 %v7970_v48  ;;  %8099 = vmatpush1.bf16.msra.mxu0 %v8098_v49  ;;  %v2401_v48 = vld [vmem:[#allocation2 + $0x738] sm:$0xff]  ;;  %v8118_v49 = vpack.c.bf16 %v2334_v40, %v2302_v38  ;;  %v8136_v38 = vpack.c.bf16 %v2655_v35, %v2623_v33  ;;  %v2622_v40 = vld [vmem:[#allocation2 + $0xe20] sm:$0xff]  ;;  %v2912_v33 = vld [vmem:[#allocation2 + $0x1730] sm:$0xff] }
 0x3f3   :  { %7973 = vmatprep.subr.bf16.mxu1 %v7972_v60  ;;  %8101 = vmatprep.subr.bf16.mxu0 %v8100_v61  ;;  %v2366_v60 = vld [vmem:[#allocation2 + $0x620] sm:$0xff]  ;;  %v8248_v53 = vpack.c.bf16 %v2401_v48, %v2369_v47  ;;  %v2719_v47 = vld [vmem:[#allocation2 + $0x1128] sm:$0xff]  ;;  %v2689_v48 = vld [vmem:[#allocation2 + $0x1038] sm:$0xff] }
 0x3f4   :  { %v2398_v61 = vld [vmem:[#allocation2 + $0x720] sm:$0xff]  ;;  %v2943_v35 = vld [vmem:[#allocation2 + $0x1828] sm:$0xff] }
 0x3f6   :  { %7975 = vmatpush1.bf16.msra.mxu1 %v7974_v57  ;;  %8103 = vmatpush1.bf16.msra.mxu0 %v8102_v58  ;;  %v2465_v57 = vld [vmem:[#allocation2 + $0x938] sm:$0xff]  ;;  %v8122_v58 = vpack.c.bf16 %v2398_v61, %v2366_v60  ;;  %v8140_v60 = vpack.c.bf16 %v2719_v47, %v2687_v45  ;;  %v2686_v61 = vld [vmem:[#allocation2 + $0x1020] sm:$0xff]  ;;  %v2976_v45 = vld [vmem:[#allocation2 + $0x1930] sm:$0xff] }
 0x3f7   :  { %7977 = vmatprep.subr.bf16.mxu1 %v7976_v62  ;;  %8105 = vmatprep.subr.bf16.mxu0 %v8104_v63  ;;  %v2430_v62 = vld [vmem:[#allocation2 + $0x820] sm:$0xff]  ;;  %v8252_v3 = vpack.c.bf16 %v2465_v57, %v2433_v56  ;;  %v2783_v56 = vld [vmem:[#allocation2 + $0x1328] sm:$0xff]  ;;  %v2753_v57 = vld [vmem:[#allocation2 + $0x1238] sm:$0xff] }
 0x3f8   :  { %v2462_v63 = vld [vmem:[#allocation2 + $0x920] sm:$0xff]  ;;  %v3007_v47 = vld [vmem:[#allocation2 + $0x1a28] sm:$0xff] }
 0x3fa   :  { %7979 = vmatpush1.bf16.msra.mxu1 %v7978_v9  ;;  %8107 = vmatpush1.bf16.msra.mxu0 %v8106_v10  ;;  %v2529_v9 = vld [vmem:[#allocation2 + $0xb38] sm:$0xff]  ;;  %v8126_v10 = vpack.c.bf16 %v2462_v63, %v2430_v62  ;;  %v8144_v62 = vpack.c.bf16 %v2783_v56, %v2751_v54  ;;  %v2750_v63 = vld [vmem:[#allocation2 + $0x1220] sm:$0xff]  ;;  %v3040_v54 = vld [vmem:[#allocation2 + $0x1b30] sm:$0xff] }
 0x3fb   :  { %8109 = vmatprep.subr.bf16.mxu1 %v8108_v11  ;;  %8237 = vmatprep.subr.bf16.mxu0 %v8236_v12  ;;  %v8254_v11 = vpack.c.bf16 %v2464_v4, %v2432_v1  ;;  %v8128_v12 = vpack.c.bf16 %v2527_v6, %v2495_v5  ;;  %v8256_v20 = vpack.c.bf16 %v2529_v9, %v2497_v7  ;;  %v2782_v1 = vld [vmem:[#allocation2 + $0x1320] sm:$0xff]  ;;  %v2784_v5 = vld [vmem:[#allocation2 + $0x1330] sm:$0xff]  ;;  %v2815_v6 = vld [vmem:[#allocation2 + $0x1428] sm:$0xff] }
 0x3fc   :  { %v2847_v7 = vld [vmem:[#allocation2 + $0x1528] sm:$0xff]  ;;  %v2817_v9 = vld [vmem:[#allocation2 + $0x1438] sm:$0xff] }
 0x3fd   :  { %4354 = vmatmul.mubr.f32.vlgmr.msra.gmra.mrb[20].mxu1 %v11859_v27  ;;  %4496 = vmatmul.mubr.f32.vlgmr.msra.gmra.mrb[18].mxu0 %v11859_v27  ;;  %v3071_v56 = vld [vmem:[#allocation2 + $0x1c28] sm:$0xff] }
 0x3fe   :  { %8111 = vmatpush1.bf16.msra.mxu1 %v8110_v19  ;;  %4566 = vmatprep.mubr.f32.mxu1 %v11844_v2  ;;  %v2593_v19 = vld [vmem:[#allocation2 + $0xd38] sm:$0xff] }
 0x3ff   :  { %8239 = vmatpush1.bf16.msra.mxu0 %v8238_v24  ;;  %4708 = vmatprep.mubr.f32.mxu0 %v11844_v2  ;;  %v8130_v24 = vpack.c.bf16 %v2526_v15, %v2494_v14  ;;  %v8260_v0 = vpack.c.bf16 %v2593_v19, %v2561_v23  ;;  %v8148_v14 = vpack.c.bf16 %v2847_v7, %v2815_v6  ;;  %v2814_v15 = vld [vmem:[#allocation2 + $0x1420] sm:$0xff]  ;;  %v2911_v23 = vld [vmem:[#allocation2 + $0x1728] sm:$0xff]  ;;  %v2881_v19 = vld [vmem:[#allocation2 + $0x1638] sm:$0xff] }
 0x400   :  { %8113 = vmatprep.subr.bf16.mxu1 %v8112_v28  ;;  %8241 = vmatprep.subr.bf16.mxu0 %v8240_v30  ;;  %v2590_v28 = vld [vmem:[#allocation2 + $0xd20] sm:$0xff]  ;;  %v2560_v30 = vld [vmem:[#allocation2 + $0xc30] sm:$0xff]  ;;  %v3135_v7 = vld [vmem:[#allocation2 + $0x1e28] sm:$0xff] }
 0x401   :  { %v3104_v6 = vld [vmem:[#allocation2 + $0x1d30] sm:$0xff] }
 0x402   :  { %8115 = vmatpush1.bf16.msra.mxu1 %v8114_v37  ;;  %v2657_v37 = vld [vmem:[#allocation2 + $0xf38] sm:$0xff] }
 0x403   :  { %8243 = vmatpush1.bf16.msra.mxu0 %v8242_v44  ;;  %8117 = vmatprep.subr.bf16.mxu1 %v8116_v39  ;;  %v8134_v44 = vpack.c.bf16 %v2590_v28, %v2558_v26  ;;  %v8262_v39 = vpack.c.bf16 %v2592_v32, %v2560_v30  ;;  %v8264_v43 = vpack.c.bf16 %v2657_v37, %v2625_v36  ;;  %v2878_v28 = vld [vmem:[#allocation2 + $0x1620] sm:$0xff]  ;;  %v2975_v36 = vld [vmem:[#allocation2 + $0x1928] sm:$0xff]  ;;  %v2945_v37 = vld [vmem:[#allocation2 + $0x1838] sm:$0xff] }
 0x404   :  { %8245 = vmatprep.subr.bf16.mxu0 %v8244_v42  ;;  %v2624_v42 = vld [vmem:[#allocation2 + $0xe30] sm:$0xff]  ;;  %v8152_v26 = vpack.c.bf16 %v2911_v23, %v2879_v22  ;;  %v2910_v30 = vld [vmem:[#allocation2 + $0x1720] sm:$0xff]  ;;  %v3199_v23 = vld [vmem:[#allocation2 + $0x2028] sm:$0xff] }
 0x405   :  { %v3168_v22 = vld [vmem:[#allocation2 + $0x1f30] sm:$0xff] }
 0x406   :  { %8119 = vmatpush1.bf16.msra.mxu1 %v8118_v49  ;;  %v2721_v49 = vld [vmem:[#allocation2 + $0x1138] sm:$0xff] }
 0x407   :  { %8247 = vmatpush1.bf16.msra.mxu0 %v8246_v50  ;;  %8121 = vmatprep.subr.bf16.mxu1 %v8120_v51  ;;  %v8138_v50 = vpack.c.bf16 %v2654_v41, %v2622_v40  ;;  %v8266_v51 = vpack.c.bf16 %v2656_v31, %v2624_v42  ;;  %v8268_v55 = vpack.c.bf16 %v2721_v49, %v2689_v48  ;;  %v2942_v41 = vld [vmem:[#allocation2 + $0x1820] sm:$0xff]  ;;  %v3039_v48 = vld [vmem:[#allocation2 + $0x1b28] sm:$0xff]  ;;  %v3009_v49 = vld [vmem:[#allocation2 + $0x1a38] sm:$0xff] }
 0x408   :  { %8249 = vmatprep.subr.bf16.mxu0 %v8248_v53  ;;  %v2688_v53 = vld [vmem:[#allocation2 + $0x1030] sm:$0xff]  ;;  %v8156_v40 = vpack.c.bf16 %v2975_v36, %v2943_v35  ;;  %v2974_v42 = vld [vmem:[#allocation2 + $0x1920] sm:$0xff]  ;;  %v3263_v36 = vld [vmem:[#allocation2 + $0x2228] sm:$0xff] }
 0x409   :  { %v3232_v35 = vld [vmem:[#allocation2 + $0x2130] sm:$0xff] }
 0x40a   :  { %8123 = vmatpush1.bf16.msra.mxu1 %v8122_v58  ;;  %v2785_v58 = vld [vmem:[#allocation2 + $0x1338] sm:$0xff] }
 0x40b   :  { %8251 = vmatpush1.bf16.msra.mxu0 %v8250_v46  ;;  %8125 = vmatprep.subr.bf16.mxu1 %v8124_v59  ;;  %v8142_v46 = vpack.c.bf16 %v2718_v52, %v2686_v61  ;;  %v8270_v59 = vpack.c.bf16 %v2720_v34, %v2688_v53  ;;  %v8272_v4 = vpack.c.bf16 %v2785_v58, %v2753_v57  ;;  %v3006_v52 = vld [vmem:[#allocation2 + $0x1a20] sm:$0xff]  ;;  %v3103_v57 = vld [vmem:[#allocation2 + $0x1d28] sm:$0xff]  ;;  %v3073_v58 = vld [vmem:[#allocation2 + $0x1c38] sm:$0xff] }
 0x40c   :  { %8253 = vmatprep.subr.bf16.mxu0 %v8252_v3  ;;  %v2752_v3 = vld [vmem:[#allocation2 + $0x1230] sm:$0xff]  ;;  %v8160_v61 = vpack.c.bf16 %v3039_v48, %v3007_v47  ;;  %v3038_v53 = vld [vmem:[#allocation2 + $0x1b20] sm:$0xff]  ;;  %v3327_v47 = vld [vmem:[#allocation2 + $0x2428] sm:$0xff] }
 0x40d   :  { %v3359_v48 = vld [vmem:[#allocation2 + $0x2528] sm:$0xff] }
 0x40e   :  { %8127 = vmatpush1.bf16.msra.mxu1 %v8126_v10  ;;  %v2849_v10 = vld [vmem:[#allocation2 + $0x1538] sm:$0xff] }
 0x40f   :  { %8255 = vmatpush1.bf16.msra.mxu0 %v8254_v11  ;;  %8129 = vmatprep.subr.bf16.mxu1 %v8128_v12  ;;  %v8146_v11 = vpack.c.bf16 %v2782_v1, %v2750_v63  ;;  %v8274_v12 = vpack.c.bf16 %v2784_v5, %v2752_v3  ;;  %v8276_v18 = vpack.c.bf16 %v2849_v10, %v2817_v9  ;;  %v3070_v1 = vld [vmem:[#allocation2 + $0x1c20] sm:$0xff]  ;;  %v3167_v9 = vld [vmem:[#allocation2 + $0x1f28] sm:$0xff]  ;;  %v3137_v10 = vld [vmem:[#allocation2 + $0x1e38] sm:$0xff] }
 0x410   :  { %8257 = vmatprep.subr.bf16.mxu0 %v8256_v20  ;;  %v2816_v20 = vld [vmem:[#allocation2 + $0x1430] sm:$0xff]  ;;  %v8164_v63 = vpack.c.bf16 %v3103_v57, %v3071_v56  ;;  %v3102_v3 = vld [vmem:[#allocation2 + $0x1d20] sm:$0xff]  ;;  %v3391_v57 = vld [vmem:[#allocation2 + $0x2628] sm:$0xff] }
 0x411   :  { %v3360_v56 = vld [vmem:[#allocation2 + $0x2530] sm:$0xff] }
 0x412   :  { %8131 = vmatpush1.bf16.msra.mxu1 %v8130_v24  ;;  %v2913_v24 = vld [vmem:[#allocation2 + $0x1738] sm:$0xff] }
 0x413   :  { %8259 = vmatpush1.bf16.msra.mxu0 %v8258_v17  ;;  %8133 = vmatprep.subr.bf16.mxu1 %v8132_v25  ;;  %v8150_v17 = vpack.c.bf16 %v2846_v16, %v2814_v15  ;;  %v8278_v25 = vpack.c.bf16 %v2848_v21, %v2816_v20  ;;  %v8280_v32 = vpack.c.bf16 %v2913_v24, %v2881_v19  ;;  %v3134_v16 = vld [vmem:[#allocation2 + $0x1e20] sm:$0xff]  ;;  %v3231_v19 = vld [vmem:[#allocation2 + $0x2128] sm:$0xff]  ;;  %v3201_v24 = vld [vmem:[#allocation2 + $0x2038] sm:$0xff] }
 0x414   :  { %8261 = vmatprep.subr.bf16.mxu0 %v8260_v0  ;;  %v2880_v0 = vld [vmem:[#allocation2 + $0x1630] sm:$0xff]  ;;  %v8168_v15 = vpack.c.bf16 %v3167_v9, %v3135_v7  ;;  %v3166_v20 = vld [vmem:[#allocation2 + $0x1f20] sm:$0xff]  ;;  %v3455_v9 = vld [vmem:[#allocation2 + $0x2828] sm:$0xff] }
 0x415   :  { %v3424_v7 = vld [vmem:[#allocation2 + $0x2730] sm:$0xff] }
 0x416   :  { %8135 = vmatpush1.bf16.msra.mxu1 %v8134_v44  ;;  %v2977_v44 = vld [vmem:[#allocation2 + $0x1938] sm:$0xff] }
 0x417   :  { %8263 = vmatpush1.bf16.msra.mxu0 %v8262_v39  ;;  %8137 = vmatprep.subr.bf16.mxu1 %v8136_v38  ;;  %v8154_v39 = vpack.c.bf16 %v2910_v30, %v2878_v28  ;;  %v8282_v38 = vpack.c.bf16 %v2912_v33, %v2880_v0  ;;  %v8284_v31 = vpack.c.bf16 %v2977_v44, %v2945_v37  ;;  %v3198_v30 = vld [vmem:[#allocation2 + $0x2020] sm:$0xff]  ;;  %v3200_v33 = vld [vmem:[#allocation2 + $0x2030] sm:$0xff]  ;;  %v3295_v37 = vld [vmem:[#allocation2 + $0x2328] sm:$0xff] }
 0x418   :  { %8265 = vmatprep.subr.bf16.mxu0 %v8264_v43  ;;  %v2944_v43 = vld [vmem:[#allocation2 + $0x1830] sm:$0xff]  ;;  %v8172_v28 = vpack.c.bf16 %v3231_v19, %v3199_v23  ;;  %v3230_v0 = vld [vmem:[#allocation2 + $0x2120] sm:$0xff]  ;;  %v3519_v19 = vld [vmem:[#allocation2 + $0x2a28] sm:$0xff] }
 0x419   :  { %v8174_v44 = vpack.c.bf16 %v3230_v0, %v3198_v30  ;;  %v3488_v23 = vld [vmem:[#allocation2 + $0x2930] sm:$0xff]  ;;  %v3518_v0 = vld [vmem:[#allocation2 + $0x2a20] sm:$0xff] }
 0x41a   :  { %8139 = vmatpush1.bf16.msra.mxu1 %v8138_v50  ;;  %v3041_v50 = vld [vmem:[#allocation2 + $0x1b38] sm:$0xff] }
 0x41b   :  { %8267 = vmatpush1.bf16.msra.mxu0 %v8266_v51  ;;  %8141 = vmatprep.subr.bf16.mxu1 %v8140_v60  ;;  %v8158_v51 = vpack.c.bf16 %v2974_v42, %v2942_v41  ;;  %v8286_v60 = vpack.c.bf16 %v2976_v45, %v2944_v43  ;;  %v8288_v34 = vpack.c.bf16 %v3041_v50, %v3009_v49  ;;  %v3262_v41 = vld [vmem:[#allocation2 + $0x2220] sm:$0xff]  ;;  %v3264_v43 = vld [vmem:[#allocation2 + $0x2230] sm:$0xff]  ;;  %v3329_v50 = vld [vmem:[#allocation2 + $0x2438] sm:$0xff] }
 0x41c   :  { %8269 = vmatprep.subr.bf16.mxu0 %v8268_v55  ;;  %v3008_v55 = vld [vmem:[#allocation2 + $0x1a30] sm:$0xff]  ;;  %v3294_v42 = vld [vmem:[#allocation2 + $0x2320] sm:$0xff] }
 0x41d   :  { %v3296_v45 = vld [vmem:[#allocation2 + $0x2330] sm:$0xff] }
 0x41e   :  { %8143 = vmatpush1.bf16.msra.mxu1 %v8142_v46  ;;  %v3105_v46 = vld [vmem:[#allocation2 + $0x1d38] sm:$0xff] }
 0x41f   :  { %8271 = vmatpush1.bf16.msra.mxu0 %v8270_v59  ;;  %8145 = vmatprep.subr.bf16.mxu1 %v8144_v62  ;;  %v8162_v59 = vpack.c.bf16 %v3038_v53, %v3006_v52  ;;  %v8290_v62 = vpack.c.bf16 %v3040_v54, %v3008_v55  ;;  %v8292_v5 = vpack.c.bf16 %v3105_v46, %v3073_v58  ;;  %v3326_v53 = vld [vmem:[#allocation2 + $0x2420] sm:$0xff]  ;;  %v3423_v58 = vld [vmem:[#allocation2 + $0x2728] sm:$0xff]  ;;  %v3393_v46 = vld [vmem:[#allocation2 + $0x2638] sm:$0xff] }
 0x420   :  { %8273 = vmatprep.subr.bf16.mxu0 %v8272_v4  ;;  %v3072_v4 = vld [vmem:[#allocation2 + $0x1c30] sm:$0xff]  ;;  %v8180_v52 = vpack.c.bf16 %v3359_v48, %v3327_v47  ;;  %v3358_v55 = vld [vmem:[#allocation2 + $0x2520] sm:$0xff] }
 0x421   :  { %v3616_v48 = vld [vmem:[#allocation2 + $0x2d30] sm:$0xff] }
 0x422   :  { %8147 = vmatpush1.bf16.msra.mxu1 %v8146_v11  ;;  %v3169_v11 = vld [vmem:[#allocation2 + $0x1f38] sm:$0xff] }
 0x423   :  { %8275 = vmatpush1.bf16.msra.mxu0 %v8274_v12  ;;  %8149 = vmatprep.subr.bf16.mxu1 %v8148_v14  ;;  %v8166_v12 = vpack.c.bf16 %v3102_v3, %v3070_v1  ;;  %v8294_v14 = vpack.c.bf16 %v3104_v6, %v3072_v4  ;;  %v8296_v21 = vpack.c.bf16 %v3169_v11, %v3137_v10  ;;  %v3390_v3 = vld [vmem:[#allocation2 + $0x2620] sm:$0xff]  ;;  %v3487_v10 = vld [vmem:[#allocation2 + $0x2928] sm:$0xff]  ;;  %v3457_v11 = vld [vmem:[#allocation2 + $0x2838] sm:$0xff] }
 0x424   :  { %8277 = vmatprep.subr.bf16.mxu0 %v8276_v18  ;;  %v3136_v18 = vld [vmem:[#allocation2 + $0x1e30] sm:$0xff]  ;;  %v8184_v1 = vpack.c.bf16 %v3423_v58, %v3391_v57  ;;  %v3422_v4 = vld [vmem:[#allocation2 + $0x2720] sm:$0xff]  ;;  %v3711_v58 = vld [vmem:[#allocation2 + $0x3028] sm:$0xff] }
 0x425   :  { %v3680_v57 = vld [vmem:[#allocation2 + $0x2f30] sm:$0xff] }
 0x426   :  { %8151 = vmatpush1.bf16.msra.mxu1 %v8150_v17  ;;  %v3233_v17 = vld [vmem:[#allocation2 + $0x2138] sm:$0xff] }
 0x427   :  { %8279 = vmatpush1.bf16.msra.mxu0 %v8278_v25  ;;  %8153 = vmatprep.subr.bf16.mxu1 %v8152_v26  ;;  %v8170_v25 = vpack.c.bf16 %v3166_v20, %v3134_v16  ;;  %v8298_v26 = vpack.c.bf16 %v3168_v22, %v3136_v18  ;;  %v8188_v16 = vpack.c.bf16 %v3487_v10, %v3455_v9  ;;  %v3454_v20 = vld [vmem:[#allocation2 + $0x2820] sm:$0xff]  ;;  %v3744_v9 = vld [vmem:[#allocation2 + $0x3130] sm:$0xff]  ;;  %v3775_v10 = vld [vmem:[#allocation2 + $0x3228] sm:$0xff] }
 0x428   :  { %8281 = vmatprep.subr.bf16.mxu0 %v8280_v32  ;;  %v8300_v32 = vpack.c.bf16 %v3233_v17, %v3201_v24  ;;  %v3486_v18 = vld [vmem:[#allocation2 + $0x2920] sm:$0xff]  ;;  %v3551_v24 = vld [vmem:[#allocation2 + $0x2b28] sm:$0xff]  ;;  %v3521_v17 = vld [vmem:[#allocation2 + $0x2a38] sm:$0xff] }
 0x429   :  { %v8192_v30 = vpack.c.bf16 %v3551_v24, %v3519_v19  ;;  %v3808_v19 = vld [vmem:[#allocation2 + $0x3330] sm:$0xff]  ;;  %v3839_v24 = vld [vmem:[#allocation2 + $0x3428] sm:$0xff] }
 0x42a   :  { %8155 = vmatpush1.bf16.msra.mxu1 %v8154_v39  ;;  %v3265_v39 = vld [vmem:[#allocation2 + $0x2238] sm:$0xff] }
 0x42b   :  { %8283 = vmatpush1.bf16.msra.mxu0 %v8282_v38  ;;  %8157 = vmatprep.subr.bf16.mxu1 %v8156_v40  ;;  %v3297_v38 = vld [vmem:[#allocation2 + $0x2338] sm:$0xff]  ;;  %v8302_v40 = vpack.c.bf16 %v3232_v35, %v3200_v33  ;;  %v3520_v33 = vld [vmem:[#allocation2 + $0x2a30] sm:$0xff] }
 0x42c   :  { %8285 = vmatprep.subr.bf16.mxu0 %v8284_v31  ;;  %v8176_v31 = vpack.c.bf16 %v3295_v37, %v3263_v36  ;;  %v8304_v49 = vpack.c.bf16 %v3297_v38, %v3265_v39  ;;  %v3552_v36 = vld [vmem:[#allocation2 + $0x2b30] sm:$0xff]  ;;  %v3583_v37 = vld [vmem:[#allocation2 + $0x2c28] sm:$0xff]  ;;  %v3585_v39 = vld [vmem:[#allocation2 + $0x2c38] sm:$0xff] }
 0x42d   :  { %v3617_v38 = vld [vmem:[#allocation2 + $0x2d38] sm:$0xff] }
 0x42e   :  { %8159 = vmatpush1.bf16.msra.mxu1 %v8158_v51  ;;  %v3361_v51 = vld [vmem:[#allocation2 + $0x2538] sm:$0xff]  ;;  %v8324_v47 = vpack.c.bf16 %v3617_v38, %v3585_v39  ;;  %v3935_v39 = vld [vmem:[#allocation2 + $0x3728] sm:$0xff] }
 0x42f   :  { %8287 = vmatpush1.bf16.msra.mxu0 %v8286_v60  ;;  %8161 = vmatprep.subr.bf16.mxu1 %v8160_v61  ;;  %v8178_v60 = vpack.c.bf16 %v3294_v42, %v3262_v41  ;;  %v8306_v61 = vpack.c.bf16 %v3296_v45, %v3264_v43  ;;  %v8308_v54 = vpack.c.bf16 %v3361_v51, %v3329_v50  ;;  %v3582_v43 = vld [vmem:[#allocation2 + $0x2c20] sm:$0xff]  ;;  %v3584_v45 = vld [vmem:[#allocation2 + $0x2c30] sm:$0xff]  ;;  %v3679_v50 = vld [vmem:[#allocation2 + $0x2f28] sm:$0xff] }
 0x430   :  { %8289 = vmatprep.subr.bf16.mxu0 %v8288_v34  ;;  %v3328_v34 = vld [vmem:[#allocation2 + $0x2430] sm:$0xff]  ;;  %v8322_v41 = vpack.c.bf16 %v3552_v36, %v3520_v33  ;;  %v3649_v51 = vld [vmem:[#allocation2 + $0x2e38] sm:$0xff]  ;;  %v3870_v33 = vld [vmem:[#allocation2 + $0x3520] sm:$0xff] }
 0x431   :  { %v3905_v38 = vld [vmem:[#allocation2 + $0x3638] sm:$0xff] }
 0x432   :  { %8163 = vmatpush1.bf16.msra.mxu1 %v8162_v59  ;;  %v3425_v59 = vld [vmem:[#allocation2 + $0x2738] sm:$0xff] }
 0x433   :  { %8291 = vmatpush1.bf16.msra.mxu0 %v8290_v62  ;;  %8165 = vmatprep.subr.bf16.mxu1 %v8164_v63  ;;  %v8182_v62 = vpack.c.bf16 %v3358_v55, %v3326_v53  ;;  %v8310_v63 = vpack.c.bf16 %v3360_v56, %v3328_v34  ;;  %v8312_v6 = vpack.c.bf16 %v3425_v59, %v3393_v46  ;;  %v3646_v55 = vld [vmem:[#allocation2 + $0x2e20] sm:$0xff]  ;;  %v3743_v46 = vld [vmem:[#allocation2 + $0x3128] sm:$0xff]  ;;  %v3713_v59 = vld [vmem:[#allocation2 + $0x3038] sm:$0xff] }
 0x434   :  { %8293 = vmatprep.subr.bf16.mxu0 %v8292_v5  ;;  %v3392_v5 = vld [vmem:[#allocation2 + $0x2630] sm:$0xff]  ;;  %v3678_v34 = vld [vmem:[#allocation2 + $0x2f20] sm:$0xff] }
 0x436   :  { %8167 = vmatpush1.bf16.msra.mxu1 %v8166_v12  ;;  %v3489_v12 = vld [vmem:[#allocation2 + $0x2938] sm:$0xff] }
 0x437   :  { %8295 = vmatpush1.bf16.msra.mxu0 %v8294_v14  ;;  %8169 = vmatprep.subr.bf16.mxu1 %v8168_v15  ;;  %v8186_v14 = vpack.c.bf16 %v3422_v4, %v3390_v3  ;;  %v8314_v15 = vpack.c.bf16 %v3424_v7, %v3392_v5  ;;  %v8316_v22 = vpack.c.bf16 %v3489_v12, %v3457_v11  ;;  %v3710_v4 = vld [vmem:[#allocation2 + $0x3020] sm:$0xff]  ;;  %v3807_v11 = vld [vmem:[#allocation2 + $0x3328] sm:$0xff]  ;;  %v3777_v12 = vld [vmem:[#allocation2 + $0x3238] sm:$0xff] }
 0x438   :  { %8297 = vmatprep.subr.bf16.mxu0 %v8296_v21  ;;  %v3456_v21 = vld [vmem:[#allocation2 + $0x2830] sm:$0xff]  ;;  %v8204_v3 = vpack.c.bf16 %v3743_v46, %v3711_v58  ;;  %v3742_v5 = vld [vmem:[#allocation2 + $0x3120] sm:$0xff]  ;;  %v4031_v46 = vld [vmem:[#allocation2 + $0x3a28] sm:$0xff] }
 0x439   :  { %v4000_v58 = vld [vmem:[#allocation2 + $0x3930] sm:$0xff] }
 0x43a   :  { %8171 = vmatpush1.bf16.msra.mxu1 %v8170_v25  ;;  %v3553_v25 = vld [vmem:[#allocation2 + $0x2b38] sm:$0xff] }
 0x43b   :  { %8299 = vmatpush1.bf16.msra.mxu0 %v8298_v26  ;;  %8173 = vmatprep.subr.bf16.mxu1 %v8172_v28  ;;  %v8190_v26 = vpack.c.bf16 %v3486_v18, %v3454_v20  ;;  %v8318_v28 = vpack.c.bf16 %v3488_v23, %v3456_v21  ;;  %v8320_v35 = vpack.c.bf16 %v3553_v25, %v3521_v17  ;;  %v3774_v18 = vld [vmem:[#allocation2 + $0x3220] sm:$0xff]  ;;  %v3871_v17 = vld [vmem:[#allocation2 + $0x3528] sm:$0xff]  ;;  %v3841_v25 = vld [vmem:[#allocation2 + $0x3438] sm:$0xff] }
 0x43c   :  { %8301 = vmatprep.subr.bf16.mxu0 %v8300_v32  ;;  %v3550_v32 = vld [vmem:[#allocation2 + $0x2b20] sm:$0xff]  ;;  %v8208_v20 = vpack.c.bf16 %v3807_v11, %v3775_v10  ;;  %v4064_v10 = vld [vmem:[#allocation2 + $0x3b30] sm:$0xff]  ;;  %v4095_v11 = vld [vmem:[#allocation2 + $0x3c28] sm:$0xff] }
 0x43d   :  { %4567 = vmatmul.mubr.f32.vlgmr.msra.gmra.mrb[22].mxu1 %v11846_v8  ;;  %v3806_v21 = vld [vmem:[#allocation2 + $0x3320] sm:$0xff] }
 0x43e   :  { %4709 = vmatmul.mubr.f32.vlgmr.msra.gmra.mrb[20].mxu0 %v11846_v8  ;;  %8175 = vmatpush1.bf16.msra.mxu1 %v8174_v44  ;;  %v3615_v44 = vld [vmem:[#allocation2 + $0x2d28] sm:$0xff] }
 0x43f   :  { %4637 = vmatprep.mubr.f32.mxu1 %v11852_v29  ;;  %8303 = vmatpush1.bf16.msra.mxu0 %v8302_v40  ;;  %v8194_v40 = vpack.c.bf16 %v3550_v32, %v3518_v0  ;;  %v8196_v42 = vpack.c.bf16 %v3615_v44, %v3583_v37  ;;  %v8212_v0 = vpack.c.bf16 %v3871_v17, %v3839_v24  ;;  %v3838_v32 = vld [vmem:[#allocation2 + $0x3420] sm:$0xff]  ;;  %v3872_v37 = vld [vmem:[#allocation2 + $0x3530] sm:$0xff]  ;;  %v3903_v44 = vld [vmem:[#allocation2 + $0x3628] sm:$0xff] }
 0x440   :  { %4779 = vmatprep.mubr.f32.mxu0 %v11852_v29  ;;  %8177 = vmatprep.subr.bf16.mxu1 %v8176_v31  ;;  %v3614_v31 = vld [vmem:[#allocation2 + $0x2d20] sm:$0xff]  ;;  %v4128_v24 = vld [vmem:[#allocation2 + $0x3d30] sm:$0xff]  ;;  %v4159_v17 = vld [vmem:[#allocation2 + $0x3e28] sm:$0xff] }
 0x441   :  { %8305 = vmatprep.subr.bf16.mxu0 %v8304_v49  ;;  %v3647_v49 = vld [vmem:[#allocation2 + $0x2e28] sm:$0xff] }
 0x442   :  { %8179 = vmatpush1.bf16.msra.mxu1 %v8178_v60  ;;  %v3681_v60 = vld [vmem:[#allocation2 + $0x2f38] sm:$0xff]  ;;  %v8200_v53 = vpack.c.bf16 %v3679_v50, %v3647_v49  ;;  %v3936_v49 = vld [vmem:[#allocation2 + $0x3730] sm:$0xff]  ;;  %v3967_v50 = vld [vmem:[#allocation2 + $0x3828] sm:$0xff] }
 0x443   :  { %8307 = vmatpush1.bf16.msra.mxu0 %v8306_v61  ;;  %8181 = vmatprep.subr.bf16.mxu1 %v8180_v52  ;;  %v8198_v61 = vpack.c.bf16 %v3614_v31, %v3582_v43  ;;  %v8326_v52 = vpack.c.bf16 %v3616_v48, %v3584_v45  ;;  %v8328_v56 = vpack.c.bf16 %v3681_v60, %v3649_v51  ;;  %v3902_v31 = vld [vmem:[#allocation2 + $0x3620] sm:$0xff]  ;;  %v3999_v51 = vld [vmem:[#allocation2 + $0x3928] sm:$0xff]  ;;  %v3969_v60 = vld [vmem:[#allocation2 + $0x3838] sm:$0xff] }
 0x444   :  { %8309 = vmatprep.subr.bf16.mxu0 %v8308_v54  ;;  %v3648_v54 = vld [vmem:[#allocation2 + $0x2e30] sm:$0xff]  ;;  %v8216_v43 = vpack.c.bf16 %v3935_v39, %v3903_v44  ;;  %v3934_v45 = vld [vmem:[#allocation2 + $0x3720] sm:$0xff]  ;;  %v2179_v39 = vld [vmem:[#allocation2 + $0x48] sm:$0xff] }
 0x445   :  { %v4192_v44 = vld [vmem:[#allocation2 + $0x3f30] sm:$0xff] }
 0x446   :  { %8183 = vmatpush1.bf16.msra.mxu1 %v8182_v62  ;;  %v3745_v62 = vld [vmem:[#allocation2 + $0x3138] sm:$0xff] }
 0x447   :  { %8311 = vmatpush1.bf16.msra.mxu0 %v8310_v63  ;;  %8185 = vmatprep.subr.bf16.mxu1 %v8184_v1  ;;  %v8202_v63 = vpack.c.bf16 %v3678_v34, %v3646_v55  ;;  %v8330_v1 = vpack.c.bf16 %v3680_v57, %v3648_v54  ;;  %v8332_v7 = vpack.c.bf16 %v3745_v62, %v3713_v59  ;;  %v3966_v34 = vld [vmem:[#allocation2 + $0x3820] sm:$0xff]  ;;  %v4063_v59 = vld [vmem:[#allocation2 + $0x3b28] sm:$0xff]  ;;  %v4033_v62 = vld [vmem:[#allocation2 + $0x3a38] sm:$0xff] }
 0x448   :  { %8313 = vmatprep.subr.bf16.mxu0 %v8312_v6  ;;  %v3712_v6 = vld [vmem:[#allocation2 + $0x3030] sm:$0xff]  ;;  %v8220_v55 = vpack.c.bf16 %v3999_v51, %v3967_v50  ;;  %v3998_v54 = vld [vmem:[#allocation2 + $0x3920] sm:$0xff]  ;;  %v2243_v51 = vld [vmem:[#allocation2 + $0x248] sm:$0xff] }
 0x449   :  { %v2212_v50 = vld [vmem:[#allocation2 + $0x150] sm:$0xff] }
 0x44a   :  { %8187 = vmatpush1.bf16.msra.mxu1 %v8186_v14  ;;  %v3809_v14 = vld [vmem:[#allocation2 + $0x3338] sm:$0xff] }
 0x44b   :  { %8315 = vmatpush1.bf16.msra.mxu0 %v8314_v15  ;;  %8189 = vmatprep.subr.bf16.mxu1 %v8188_v16  ;;  %v8206_v15 = vpack.c.bf16 %v3742_v5, %v3710_v4  ;;  %v8334_v16 = vpack.c.bf16 %v3744_v9, %v3712_v6  ;;  %v8336_v23 = vpack.c.bf16 %v3809_v14, %v3777_v12  ;;  %v4030_v5 = vld [vmem:[#allocation2 + $0x3a20] sm:$0xff]  ;;  %v4127_v12 = vld [vmem:[#allocation2 + $0x3d28] sm:$0xff]  ;;  %v4097_v14 = vld [vmem:[#allocation2 + $0x3c38] sm:$0xff] }
 0x44c   :  { %8317 = vmatprep.subr.bf16.mxu0 %v8316_v22  ;;  %v3776_v22 = vld [vmem:[#allocation2 + $0x3230] sm:$0xff]  ;;  %v8224_v4 = vpack.c.bf16 %v4063_v59, %v4031_v46  ;;  %v4062_v6 = vld [vmem:[#allocation2 + $0x3b20] sm:$0xff]  ;;  %v2307_v46 = vld [vmem:[#allocation2 + $0x448] sm:$0xff] }
 0x44d   :  { %v2339_v59 = vld [vmem:[#allocation2 + $0x548] sm:$0xff] }
 0x44e   :  { %8191 = vmatpush1.bf16.msra.mxu1 %v8190_v26  ;;  %v3873_v26 = vld [vmem:[#allocation2 + $0x3538] sm:$0xff] }
 0x44f   :  { %8319 = vmatpush1.bf16.msra.mxu0 %v8318_v28  ;;  %8193 = vmatprep.subr.bf16.mxu1 %v8192_v30  ;;  %v8210_v28 = vpack.c.bf16 %v3806_v21, %v3774_v18  ;;  %v8338_v30 = vpack.c.bf16 %v3808_v19, %v3776_v22  ;;  %v8340_v36 = vpack.c.bf16 %v3873_v26, %v3841_v25  ;;  %v4094_v21 = vld [vmem:[#allocation2 + $0x3c20] sm:$0xff]  ;;  %v4191_v25 = vld [vmem:[#allocation2 + $0x3f28] sm:$0xff]  ;;  %v4161_v26 = vld [vmem:[#allocation2 + $0x3e38] sm:$0xff] }
 0x450   :  { %8321 = vmatprep.subr.bf16.mxu0 %v8320_v35  ;;  %v3840_v35 = vld [vmem:[#allocation2 + $0x3430] sm:$0xff]  ;;  %v8228_v18 = vpack.c.bf16 %v4127_v12, %v4095_v11  ;;  %v4126_v22 = vld [vmem:[#allocation2 + $0x3d20] sm:$0xff]  ;;  %v2371_v12 = vld [vmem:[#allocation2 + $0x648] sm:$0xff] }
 0x451   :  { %v2340_v11 = vld [vmem:[#allocation2 + $0x550] sm:$0xff] }
 0x452   :  { %8195 = vmatpush1.bf16.msra.mxu1 %v8194_v40  ;;  %v3937_v40 = vld [vmem:[#allocation2 + $0x3738] sm:$0xff] }
 0x453   :  { %8323 = vmatpush1.bf16.msra.mxu0 %v8322_v41  ;;  %8197 = vmatprep.subr.bf16.mxu1 %v8196_v42  ;;  %v8214_v41 = vpack.c.bf16 %v3870_v33, %v3838_v32  ;;  %v8342_v42 = vpack.c.bf16 %v3872_v37, %v3840_v35  ;;  %v8344_v48 = vpack.c.bf16 %v3937_v40, %v3905_v38  ;;  %v4158_v33 = vld [vmem:[#allocation2 + $0x3e20] sm:$0xff]  ;;  %v2211_v38 = vld [vmem:[#allocation2 + $0x148] sm:$0xff]  ;;  %v2181_v40 = vld [vmem:[#allocation2 + $0x58] sm:$0xff] }
 0x454   :  { %8325 = vmatprep.subr.bf16.mxu0 %v8324_v47  ;;  %v3904_v47 = vld [vmem:[#allocation2 + $0x3630] sm:$0xff]  ;;  %v8232_v32 = vpack.c.bf16 %v4191_v25, %v4159_v17  ;;  %v4190_v35 = vld [vmem:[#allocation2 + $0x3f20] sm:$0xff]  ;;  %v2435_v25 = vld [vmem:[#allocation2 + $0x848] sm:$0xff] }
 0x455   :  { %v2404_v17 = vld [vmem:[#allocation2 + $0x750] sm:$0xff] }
 0x456   :  { %8199 = vmatpush1.bf16.msra.mxu1 %v8198_v61  ;;  %v4001_v61 = vld [vmem:[#allocation2 + $0x3938] sm:$0xff] }
 0x457   :  { %8327 = vmatpush1.bf16.msra.mxu0 %v8326_v52  ;;  %8201 = vmatprep.subr.bf16.mxu1 %v8200_v53  ;;  %v8218_v52 = vpack.c.bf16 %v3934_v45, %v3902_v31  ;;  %v8346_v53 = vpack.c.bf16 %v3936_v49, %v3904_v47  ;;  %v8348_v57 = vpack.c.bf16 %v4001_v61, %v3969_v60  ;;  %v2178_v45 = vld [vmem:[#allocation2 + $0x40] sm:$0xff]  ;;  %v2180_v49 = vld [vmem:[#allocation2 + $0x50] sm:$0xff]  ;;  %v2275_v60 = vld [vmem:[#allocation2 + $0x348] sm:$0xff] }
 0x458   :  { %8329 = vmatprep.subr.bf16.mxu0 %v8328_v56  ;;  %v3968_v56 = vld [vmem:[#allocation2 + $0x3830] sm:$0xff]  ;;  %v8364_v31 = vpack.c.bf16 %v2211_v38, %v2179_v39  ;;  %v2210_v47 = vld [vmem:[#allocation2 + $0x140] sm:$0xff]  ;;  %v2499_v38 = vld [vmem:[#allocation2 + $0xa48] sm:$0xff] }
 0x459   :  { %v8366_v61 = vpack.c.bf16 %v2210_v47, %v2178_v45  ;;  %v2468_v39 = vld [vmem:[#allocation2 + $0x950] sm:$0xff]  ;;  %v2498_v47 = vld [vmem:[#allocation2 + $0xa40] sm:$0xff] }
 0x45a   :  { %8203 = vmatpush1.bf16.msra.mxu1 %v8202_v63  ;;  %v4065_v63 = vld [vmem:[#allocation2 + $0x3b38] sm:$0xff] }
 0x45b   :  { %8331 = vmatpush1.bf16.msra.mxu0 %v8330_v1  ;;  %8205 = vmatprep.subr.bf16.mxu1 %v8204_v3  ;;  %v8222_v1 = vpack.c.bf16 %v3998_v54, %v3966_v34  ;;  %v8350_v3 = vpack.c.bf16 %v4000_v58, %v3968_v56  ;;  %v8352_v9 = vpack.c.bf16 %v4065_v63, %v4033_v62  ;;  %v2242_v34 = vld [vmem:[#allocation2 + $0x240] sm:$0xff]  ;;  %v2244_v56 = vld [vmem:[#allocation2 + $0x250] sm:$0xff]  ;;  %v2309_v63 = vld [vmem:[#allocation2 + $0x458] sm:$0xff] }
 0x45c   :  { %8333 = vmatprep.subr.bf16.mxu0 %v8332_v7  ;;  %v4032_v7 = vld [vmem:[#allocation2 + $0x3a30] sm:$0xff]  ;;  %v2274_v54 = vld [vmem:[#allocation2 + $0x340] sm:$0xff] }
 0x45d   :  { %v2276_v58 = vld [vmem:[#allocation2 + $0x350] sm:$0xff] }
 0x45e   :  { %8207 = vmatpush1.bf16.msra.mxu1 %v8206_v15  ;;  %v4129_v15 = vld [vmem:[#allocation2 + $0x3d38] sm:$0xff] }
 0x45f   :  { %8335 = vmatpush1.bf16.msra.mxu0 %v8334_v16  ;;  %8209 = vmatprep.subr.bf16.mxu1 %v8208_v20  ;;  %v8226_v16 = vpack.c.bf16 %v4062_v6, %v4030_v5  ;;  %v8354_v20 = vpack.c.bf16 %v4064_v10, %v4032_v7  ;;  %v8356_v19 = vpack.c.bf16 %v4129_v15, %v4097_v14  ;;  %v2306_v6 = vld [vmem:[#allocation2 + $0x440] sm:$0xff]  ;;  %v2403_v14 = vld [vmem:[#allocation2 + $0x748] sm:$0xff]  ;;  %v2373_v15 = vld [vmem:[#allocation2 + $0x658] sm:$0xff] }
 0x460   :  { %8337 = vmatprep.subr.bf16.mxu0 %v8336_v23  ;;  %v4096_v23 = vld [vmem:[#allocation2 + $0x3c30] sm:$0xff]  ;;  %v8372_v5 = vpack.c.bf16 %v2339_v59, %v2307_v46  ;;  %v2338_v7 = vld [vmem:[#allocation2 + $0x540] sm:$0xff] }
 0x461   :  { %v2596_v59 = vld [vmem:[#allocation2 + $0xd50] sm:$0xff] }
 0x462   :  { %8211 = vmatpush1.bf16.msra.mxu1 %v8210_v28  ;;  %v4193_v28 = vld [vmem:[#allocation2 + $0x3f38] sm:$0xff] }
 0x463   :  { %8339 = vmatpush1.bf16.msra.mxu0 %v8338_v30  ;;  %8213 = vmatprep.subr.bf16.mxu1 %v8212_v0  ;;  %v8230_v30 = vpack.c.bf16 %v4126_v22, %v4094_v21  ;;  %v8358_v0 = vpack.c.bf16 %v4128_v24, %v4096_v23  ;;  %v8360_v37 = vpack.c.bf16 %v4193_v28, %v4161_v26  ;;  %v2370_v22 = vld [vmem:[#allocation2 + $0x640] sm:$0xff]  ;;  %v2467_v26 = vld [vmem:[#allocation2 + $0x948] sm:$0xff]  ;;  %v2437_v28 = vld [vmem:[#allocation2 + $0x858] sm:$0xff] }
 0x464   :  { %8341 = vmatprep.subr.bf16.mxu0 %v8340_v36  ;;  %v4160_v36 = vld [vmem:[#allocation2 + $0x3e30] sm:$0xff]  ;;  %v8376_v21 = vpack.c.bf16 %v2403_v14, %v2371_v12  ;;  %v2402_v23 = vld [vmem:[#allocation2 + $0x740] sm:$0xff]  ;;  %v2691_v14 = vld [vmem:[#allocation2 + $0x1048] sm:$0xff] }
 0x465   :  { %v2660_v12 = vld [vmem:[#allocation2 + $0xf50] sm:$0xff] }
 0x466   :  { %8215 = vmatpush1.bf16.msra.mxu1 %v8214_v41  ;;  %v2213_v41 = vld [vmem:[#allocation2 + $0x158] sm:$0xff] }
 0x467   :  { %8343 = vmatpush1.bf16.msra.mxu0 %v8342_v42  ;;  %8217 = vmatprep.subr.bf16.mxu1 %v8216_v43  ;;  %v8234_v42 = vpack.c.bf16 %v4190_v35, %v4158_v33  ;;  %v8362_v43 = vpack.c.bf16 %v4192_v44, %v4160_v36  ;;  %v8380_v33 = vpack.c.bf16 %v2467_v26, %v2435_v25  ;;  %v2434_v35 = vld [vmem:[#allocation2 + $0x840] sm:$0xff]  ;;  %v2724_v25 = vld [vmem:[#allocation2 + $0x1150] sm:$0xff]  ;;  %v2755_v26 = vld [vmem:[#allocation2 + $0x1248] sm:$0xff] }
 0x468   :  { %8345 = vmatprep.subr.bf16.mxu0 %v8344_v48  ;;  %v8492_v48 = vpack.c.bf16 %v2213_v41, %v2181_v40  ;;  %v2466_v36 = vld [vmem:[#allocation2 + $0x940] sm:$0xff]  ;;  %v2531_v40 = vld [vmem:[#allocation2 + $0xb48] sm:$0xff]  ;;  %v2501_v41 = vld [vmem:[#allocation2 + $0xa58] sm:$0xff] }
 0x469   :  { %v8384_v45 = vpack.c.bf16 %v2531_v40, %v2499_v38  ;;  %v2788_v38 = vld [vmem:[#allocation2 + $0x1350] sm:$0xff]  ;;  %v2819_v40 = vld [vmem:[#allocation2 + $0x1448] sm:$0xff] }
 0x46a   :  { %8219 = vmatpush1.bf16.msra.mxu1 %v8218_v52  ;;  %v2245_v52 = vld [vmem:[#allocation2 + $0x258] sm:$0xff] }
 0x46b   :  { %8347 = vmatpush1.bf16.msra.mxu0 %v8346_v53  ;;  %8221 = vmatprep.subr.bf16.mxu1 %v8220_v55  ;;  %v2277_v53 = vld [vmem:[#allocation2 + $0x358] sm:$0xff]  ;;  %v8494_v55 = vpack.c.bf16 %v2212_v50, %v2180_v49  ;;  %v2500_v49 = vld [vmem:[#allocation2 + $0xa50] sm:$0xff] }
 0x46c   :  { %8349 = vmatprep.subr.bf16.mxu0 %v8348_v57  ;;  %v8368_v57 = vpack.c.bf16 %v2275_v60, %v2243_v51  ;;  %v8496_v62 = vpack.c.bf16 %v2277_v53, %v2245_v52  ;;  %v2532_v51 = vld [vmem:[#allocation2 + $0xb50] sm:$0xff]  ;;  %v2563_v60 = vld [vmem:[#allocation2 + $0xc48] sm:$0xff]  ;;  %v2565_v52 = vld [vmem:[#allocation2 + $0xc58] sm:$0xff] }
 0x46d   :  { %v2597_v53 = vld [vmem:[#allocation2 + $0xd58] sm:$0xff] }
 0x46e   :  { %8223 = vmatpush1.bf16.msra.mxu1 %v8222_v1  ;;  %v2341_v1 = vld [vmem:[#allocation2 + $0x558] sm:$0xff]  ;;  %v8516_v46 = vpack.c.bf16 %v2597_v53, %v2565_v52  ;;  %v2915_v52 = vld [vmem:[#allocation2 + $0x1748] sm:$0xff] }
 0x46f   :  { %8351 = vmatpush1.bf16.msra.mxu0 %v8350_v3  ;;  %8225 = vmatprep.subr.bf16.mxu1 %v8224_v4  ;;  %v8370_v3 = vpack.c.bf16 %v2274_v54, %v2242_v34  ;;  %v8498_v4 = vpack.c.bf16 %v2276_v58, %v2244_v56  ;;  %v8500_v10 = vpack.c.bf16 %v2341_v1, %v2309_v63  ;;  %v2562_v56 = vld [vmem:[#allocation2 + $0xc40] sm:$0xff]  ;;  %v2564_v58 = vld [vmem:[#allocation2 + $0xc50] sm:$0xff]  ;;  %v2659_v63 = vld [vmem:[#allocation2 + $0xf48] sm:$0xff] }
 0x470   :  { %8353 = vmatprep.subr.bf16.mxu0 %v8352_v9  ;;  %v2308_v9 = vld [vmem:[#allocation2 + $0x450] sm:$0xff]  ;;  %v8514_v34 = vpack.c.bf16 %v2532_v51, %v2500_v49  ;;  %v2629_v1 = vld [vmem:[#allocation2 + $0xe58] sm:$0xff]  ;;  %v2850_v49 = vld [vmem:[#allocation2 + $0x1540] sm:$0xff] }
 0x471   :  { %v2885_v53 = vld [vmem:[#allocation2 + $0x1658] sm:$0xff] }
 0x472   :  { %8227 = vmatpush1.bf16.msra.mxu1 %v8226_v16  ;;  %v2405_v16 = vld [vmem:[#allocation2 + $0x758] sm:$0xff] }
 0x473   :  { %8355 = vmatpush1.bf16.msra.mxu0 %v8354_v20  ;;  %8229 = vmatprep.subr.bf16.mxu1 %v8228_v18  ;;  %v8374_v20 = vpack.c.bf16 %v2338_v7, %v2306_v6  ;;  %v8502_v18 = vpack.c.bf16 %v2340_v11, %v2308_v9  ;;  %v8504_v24 = vpack.c.bf16 %v2405_v16, %v2373_v15  ;;  %v2626_v7 = vld [vmem:[#allocation2 + $0xe40] sm:$0xff]  ;;  %v2723_v15 = vld [vmem:[#allocation2 + $0x1148] sm:$0xff]  ;;  %v2693_v16 = vld [vmem:[#allocation2 + $0x1058] sm:$0xff] }
 0x474   :  { %8357 = vmatprep.subr.bf16.mxu0 %v8356_v19  ;;  %v2372_v19 = vld [vmem:[#allocation2 + $0x650] sm:$0xff]  ;;  %v2658_v9 = vld [vmem:[#allocation2 + $0xf40] sm:$0xff] }
 0x476   :  { %8231 = vmatpush1.bf16.msra.mxu1 %v8230_v30  ;;  %v2469_v30 = vld [vmem:[#allocation2 + $0x958] sm:$0xff] }
 0x477   :  { %8359 = vmatpush1.bf16.msra.mxu0 %v8358_v0  ;;  %8233 = vmatprep.subr.bf16.mxu1 %v8232_v32  ;;  %v8378_v0 = vpack.c.bf16 %v2402_v23, %v2370_v22  ;;  %v8506_v32 = vpack.c.bf16 %v2404_v17, %v2372_v19  ;;  %v8508_v44 = vpack.c.bf16 %v2469_v30, %v2437_v28  ;;  %v2690_v23 = vld [vmem:[#allocation2 + $0x1040] sm:$0xff]  ;;  %v2787_v28 = vld [vmem:[#allocation2 + $0x1348] sm:$0xff]  ;;  %v2757_v30 = vld [vmem:[#allocation2 + $0x1258] sm:$0xff] }
 0x478   :  { %8361 = vmatprep.subr.bf16.mxu0 %v8360_v37  ;;  %v2436_v37 = vld [vmem:[#allocation2 + $0x850] sm:$0xff]  ;;  %v8396_v22 = vpack.c.bf16 %v2723_v15, %v2691_v14  ;;  %v2722_v19 = vld [vmem:[#allocation2 + $0x1140] sm:$0xff]  ;;  %v3011_v15 = vld [vmem:[#allocation2 + $0x1a48] sm:$0xff] }
 0x479   :  { %v2980_v14 = vld [vmem:[#allocation2 + $0x1950] sm:$0xff] }
 0x47a   :  { %8235 = vmatpush1.bf16.msra.mxu1 %v8234_v42  ;;  %v2533_v42 = vld [vmem:[#allocation2 + $0xb58] sm:$0xff] }
 0x47b   :  { %8363 = vmatpush1.bf16.msra.mxu0 %v8362_v43  ;;  %8365 = vmatprep.subr.bf16.mxu1 %v8364_v31  ;;  %v8382_v43 = vpack.c.bf16 %v2466_v36, %v2434_v35  ;;  %v8510_v31 = vpack.c.bf16 %v2468_v39, %v2436_v37  ;;  %v8512_v50 = vpack.c.bf16 %v2533_v42, %v2501_v41  ;;  %v2754_v36 = vld [vmem:[#allocation2 + $0x1240] sm:$0xff]  ;;  %v2851_v41 = vld [vmem:[#allocation2 + $0x1548] sm:$0xff]  ;;  %v2821_v42 = vld [vmem:[#allocation2 + $0x1458] sm:$0xff] }
 0x47c   :  { %8493 = vmatprep.subr.bf16.mxu0 %v8492_v48  ;;  %v2530_v48 = vld [vmem:[#allocation2 + $0xb40] sm:$0xff]  ;;  %v8400_v35 = vpack.c.bf16 %v2787_v28, %v2755_v26  ;;  %v3044_v26 = vld [vmem:[#allocation2 + $0x1b50] sm:$0xff]  ;;  %v3075_v28 = vld [vmem:[#allocation2 + $0x1c48] sm:$0xff] }
 0x47d   :  { %4638 = vmatmul.mubr.f32.vlgmr.msra.gmra.mrb[22].mxu1 %v11859_v27  ;;  %v2786_v37 = vld [vmem:[#allocation2 + $0x1340] sm:$0xff] }
 0x47e   :  { %4780 = vmatmul.mubr.f32.vlgmr.msra.gmra.mrb[20].mxu0 %v11859_v27  ;;  %8367 = vmatpush1.bf16.msra.mxu1 %v8366_v61  ;;  %v2595_v61 = vld [vmem:[#allocation2 + $0xd48] sm:$0xff] }
 0x47f   :  { %4850 = vmatprep.mubr.f32.mxu1 %v11844_v2  ;;  %8495 = vmatpush1.bf16.msra.mxu0 %v8494_v55  ;;  %v8386_v55 = vpack.c.bf16 %v2530_v48, %v2498_v47  ;;  %v8388_v54 = vpack.c.bf16 %v2595_v61, %v2563_v60  ;;  %v8404_v47 = vpack.c.bf16 %v2851_v41, %v2819_v40  ;;  %v2818_v48 = vld [vmem:[#allocation2 + $0x1440] sm:$0xff]  ;;  %v2852_v60 = vld [vmem:[#allocation2 + $0x1550] sm:$0xff]  ;;  %v2883_v61 = vld [vmem:[#allocation2 + $0x1648] sm:$0xff] }
 0x480   :  { %4992 = vmatprep.mubr.f32.mxu0 %v11844_v2  ;;  %8369 = vmatprep.subr.bf16.mxu1 %v8368_v57  ;;  %v2594_v57 = vld [vmem:[#allocation2 + $0xd40] sm:$0xff]  ;;  %v3108_v40 = vld [vmem:[#allocation2 + $0x1d50] sm:$0xff]  ;;  %v3139_v41 = vld [vmem:[#allocation2 + $0x1e48] sm:$0xff] }
 0x481   :  { %8497 = vmatprep.subr.bf16.mxu0 %v8496_v62  ;;  %v2627_v62 = vld [vmem:[#allocation2 + $0xe48] sm:$0xff] }
 0x482   :  { %8371 = vmatpush1.bf16.msra.mxu1 %v8370_v3  ;;  %v2661_v3 = vld [vmem:[#allocation2 + $0xf58] sm:$0xff]  ;;  %v8392_v6 = vpack.c.bf16 %v2659_v63, %v2627_v62  ;;  %v2916_v62 = vld [vmem:[#allocation2 + $0x1750] sm:$0xff]  ;;  %v2947_v63 = vld [vmem:[#allocation2 + $0x1848] sm:$0xff] }
 0x483   :  { %8499 = vmatpush1.bf16.msra.mxu0 %v8498_v4  ;;  %8373 = vmatprep.subr.bf16.mxu1 %v8372_v5  ;;  %v8390_v4 = vpack.c.bf16 %v2594_v57, %v2562_v56  ;;  %v8518_v5 = vpack.c.bf16 %v2596_v59, %v2564_v58  ;;  %v8520_v11 = vpack.c.bf16 %v2661_v3, %v2629_v1  ;;  %v2882_v57 = vld [vmem:[#allocation2 + $0x1640] sm:$0xff]  ;;  %v2979_v1 = vld [vmem:[#allocation2 + $0x1948] sm:$0xff]  ;;  %v2949_v3 = vld [vmem:[#allocation2 + $0x1858] sm:$0xff] }
 0x484   :  { %8501 = vmatprep.subr.bf16.mxu0 %v8500_v10  ;;  %v2628_v10 = vld [vmem:[#allocation2 + $0xe50] sm:$0xff]  ;;  %v8408_v56 = vpack.c.bf16 %v2915_v52, %v2883_v61  ;;  %v2914_v58 = vld [vmem:[#allocation2 + $0x1740] sm:$0xff]  ;;  %v3203_v52 = vld [vmem:[#allocation2 + $0x2048] sm:$0xff] }
 0x485   :  { %v3172_v61 = vld [vmem:[#allocation2 + $0x1f50] sm:$0xff] }
 0x486   :  { %8375 = vmatpush1.bf16.msra.mxu1 %v8374_v20  ;;  %v2725_v20 = vld [vmem:[#allocation2 + $0x1158] sm:$0xff] }
 0x487   :  { %8503 = vmatpush1.bf16.msra.mxu0 %v8502_v18  ;;  %8377 = vmatprep.subr.bf16.mxu1 %v8376_v21  ;;  %v8394_v18 = vpack.c.bf16 %v2658_v9, %v2626_v7  ;;  %v8522_v21 = vpack.c.bf16 %v2660_v12, %v2628_v10  ;;  %v8524_v17 = vpack.c.bf16 %v2725_v20, %v2693_v16  ;;  %v2946_v9 = vld [vmem:[#allocation2 + $0x1840] sm:$0xff]  ;;  %v3043_v16 = vld [vmem:[#allocation2 + $0x1b48] sm:$0xff]  ;;  %v3013_v20 = vld [vmem:[#allocation2 + $0x1a58] sm:$0xff] }
 0x488   :  { %8505 = vmatprep.subr.bf16.mxu0 %v8504_v24  ;;  %v2692_v24 = vld [vmem:[#allocation2 + $0x1050] sm:$0xff]  ;;  %v8412_v7 = vpack.c.bf16 %v2979_v1, %v2947_v63  ;;  %v2978_v10 = vld [vmem:[#allocation2 + $0x1940] sm:$0xff]  ;;  %v3267_v1 = vld [vmem:[#allocation2 + $0x2248] sm:$0xff] }
 0x489   :  { %v3236_v63 = vld [vmem:[#allocation2 + $0x2150] sm:$0xff] }
 0x48a   :  { %8379 = vmatpush1.bf16.msra.mxu1 %v8378_v0  ;;  %v2789_v0 = vld [vmem:[#allocation2 + $0x1358] sm:$0xff] }
 0x48b   :  { %8507 = vmatpush1.bf16.msra.mxu0 %v8506_v32  ;;  %8381 = vmatprep.subr.bf16.mxu1 %v8380_v33  ;;  %v8398_v32 = vpack.c.bf16 %v2722_v19, %v2690_v23  ;;  %v8526_v33 = vpack.c.bf16 %v2724_v25, %v2692_v24  ;;  %v8528_v39 = vpack.c.bf16 %v2789_v0, %v2757_v30  ;;  %v3010_v19 = vld [vmem:[#allocation2 + $0x1a40] sm:$0xff]  ;;  %v3107_v30 = vld [vmem:[#allocation2 + $0x1d48] sm:$0xff]  ;;  %v3077_v0 = vld [vmem:[#allocation2 + $0x1c58] sm:$0xff] }
 0x48c   :  { %8509 = vmatprep.subr.bf16.mxu0 %v8508_v44  ;;  %v2756_v44 = vld [vmem:[#allocation2 + $0x1250] sm:$0xff]  ;;  %v8416_v23 = vpack.c.bf16 %v3043_v16, %v3011_v15  ;;  %v3042_v24 = vld [vmem:[#allocation2 + $0x1b40] sm:$0xff]  ;;  %v3331_v15 = vld [vmem:[#allocation2 + $0x2448] sm:$0xff] }
 0x48d   :  { %v3363_v16 = vld [vmem:[#allocation2 + $0x2548] sm:$0xff] }
 0x48e   :  { %8383 = vmatpush1.bf16.msra.mxu1 %v8382_v43  ;;  %v2853_v43 = vld [vmem:[#allocation2 + $0x1558] sm:$0xff] }
 0x48f   :  { %8511 = vmatpush1.bf16.msra.mxu0 %v8510_v31  ;;  %8385 = vmatprep.subr.bf16.mxu1 %v8384_v45  ;;  %v8402_v31 = vpack.c.bf16 %v2786_v37, %v2754_v36  ;;  %v8530_v45 = vpack.c.bf16 %v2788_v38, %v2756_v44  ;;  %v8532_v51 = vpack.c.bf16 %v2853_v43, %v2821_v42  ;;  %v3074_v37 = vld [vmem:[#allocation2 + $0x1c40] sm:$0xff]  ;;  %v3171_v42 = vld [vmem:[#allocation2 + $0x1f48] sm:$0xff]  ;;  %v3141_v43 = vld [vmem:[#allocation2 + $0x1e58] sm:$0xff] }
 0x490   :  { %8513 = vmatprep.subr.bf16.mxu0 %v8512_v50  ;;  %v2820_v50 = vld [vmem:[#allocation2 + $0x1450] sm:$0xff]  ;;  %v8420_v36 = vpack.c.bf16 %v3107_v30, %v3075_v28  ;;  %v3106_v44 = vld [vmem:[#allocation2 + $0x1d40] sm:$0xff]  ;;  %v3395_v30 = vld [vmem:[#allocation2 + $0x2648] sm:$0xff] }
 0x491   :  { %v3364_v28 = vld [vmem:[#allocation2 + $0x2550] sm:$0xff] }
 0x492   :  { %8387 = vmatpush1.bf16.msra.mxu1 %v8386_v55  ;;  %v2917_v55 = vld [vmem:[#allocation2 + $0x1758] sm:$0xff] }
 0x493   :  { %8515 = vmatpush1.bf16.msra.mxu0 %v8514_v34  ;;  %8389 = vmatprep.subr.bf16.mxu1 %v8388_v54  ;;  %v8406_v34 = vpack.c.bf16 %v2850_v49, %v2818_v48  ;;  %v8534_v54 = vpack.c.bf16 %v2852_v60, %v2820_v50  ;;  %v8536_v59 = vpack.c.bf16 %v2917_v55, %v2885_v53  ;;  %v3138_v49 = vld [vmem:[#allocation2 + $0x1e40] sm:$0xff]  ;;  %v3235_v53 = vld [vmem:[#allocation2 + $0x2148] sm:$0xff]  ;;  %v3205_v55 = vld [vmem:[#allocation2 + $0x2058] sm:$0xff] }
 0x494   :  { %8517 = vmatprep.subr.bf16.mxu0 %v8516_v46  ;;  %v2884_v46 = vld [vmem:[#allocation2 + $0x1650] sm:$0xff]  ;;  %v8424_v48 = vpack.c.bf16 %v3171_v42, %v3139_v41  ;;  %v3170_v50 = vld [vmem:[#allocation2 + $0x1f40] sm:$0xff]  ;;  %v3459_v42 = vld [vmem:[#allocation2 + $0x2848] sm:$0xff] }
 0x495   :  { %v3428_v41 = vld [vmem:[#allocation2 + $0x2750] sm:$0xff] }
 0x496   :  { %8391 = vmatpush1.bf16.msra.mxu1 %v8390_v4  ;;  %v2981_v4 = vld [vmem:[#allocation2 + $0x1958] sm:$0xff] }
 0x497   :  { %8519 = vmatpush1.bf16.msra.mxu0 %v8518_v5  ;;  %8393 = vmatprep.subr.bf16.mxu1 %v8392_v6  ;;  %v8410_v5 = vpack.c.bf16 %v2914_v58, %v2882_v57  ;;  %v8538_v6 = vpack.c.bf16 %v2916_v62, %v2884_v46  ;;  %v8540_v12 = vpack.c.bf16 %v2981_v4, %v2949_v3  ;;  %v3202_v58 = vld [vmem:[#allocation2 + $0x2040] sm:$0xff]  ;;  %v3204_v62 = vld [vmem:[#allocation2 + $0x2050] sm:$0xff]  ;;  %v3299_v3 = vld [vmem:[#allocation2 + $0x2348] sm:$0xff] }
 0x498   :  { %8521 = vmatprep.subr.bf16.mxu0 %v8520_v11  ;;  %v2948_v11 = vld [vmem:[#allocation2 + $0x1850] sm:$0xff]  ;;  %v8428_v57 = vpack.c.bf16 %v3235_v53, %v3203_v52  ;;  %v3234_v46 = vld [vmem:[#allocation2 + $0x2140] sm:$0xff]  ;;  %v3523_v53 = vld [vmem:[#allocation2 + $0x2a48] sm:$0xff] }
 0x499   :  { %v8430_v4 = vpack.c.bf16 %v3234_v46, %v3202_v58  ;;  %v3492_v52 = vld [vmem:[#allocation2 + $0x2950] sm:$0xff]  ;;  %v3522_v46 = vld [vmem:[#allocation2 + $0x2a40] sm:$0xff] }
 0x49a   :  { %8395 = vmatpush1.bf16.msra.mxu1 %v8394_v18  ;;  %v3045_v18 = vld [vmem:[#allocation2 + $0x1b58] sm:$0xff] }
 0x49b   :  { %8523 = vmatpush1.bf16.msra.mxu0 %v8522_v21  ;;  %8397 = vmatprep.subr.bf16.mxu1 %v8396_v22  ;;  %v8414_v21 = vpack.c.bf16 %v2978_v10, %v2946_v9  ;;  %v8542_v22 = vpack.c.bf16 %v2980_v14, %v2948_v11  ;;  %v8544_v25 = vpack.c.bf16 %v3045_v18, %v3013_v20  ;;  %v3266_v9 = vld [vmem:[#allocation2 + $0x2240] sm:$0xff]  ;;  %v3268_v11 = vld [vmem:[#allocation2 + $0x2250] sm:$0xff]  ;;  %v3333_v18 = vld [vmem:[#allocation2 + $0x2458] sm:$0xff] }
 0x49c   :  { %8525 = vmatprep.subr.bf16.mxu0 %v8524_v17  ;;  %v3012_v17 = vld [vmem:[#allocation2 + $0x1a50] sm:$0xff]  ;;  %v3298_v10 = vld [vmem:[#allocation2 + $0x2340] sm:$0xff] }
 0x49d   :  { %v3300_v14 = vld [vmem:[#allocation2 + $0x2350] sm:$0xff] }
 0x49e   :  { %8399 = vmatpush1.bf16.msra.mxu1 %v8398_v32  ;;  %v3109_v32 = vld [vmem:[#allocation2 + $0x1d58] sm:$0xff] }
 0x49f   :  { %8527 = vmatpush1.bf16.msra.mxu0 %v8526_v33  ;;  %8401 = vmatprep.subr.bf16.mxu1 %v8400_v35  ;;  %v8418_v33 = vpack.c.bf16 %v3042_v24, %v3010_v19  ;;  %v8546_v35 = vpack.c.bf16 %v3044_v26, %v3012_v17  ;;  %v8548_v38 = vpack.c.bf16 %v3109_v32, %v3077_v0  ;;  %v3330_v24 = vld [vmem:[#allocation2 + $0x2440] sm:$0xff]  ;;  %v3427_v0 = vld [vmem:[#allocation2 + $0x2748] sm:$0xff]  ;;  %v3397_v32 = vld [vmem:[#allocation2 + $0x2658] sm:$0xff] }
 0x4a0   :  { %8529 = vmatprep.subr.bf16.mxu0 %v8528_v39  ;;  %v3076_v39 = vld [vmem:[#allocation2 + $0x1c50] sm:$0xff]  ;;  %v8436_v19 = vpack.c.bf16 %v3363_v16, %v3331_v15  ;;  %v3362_v17 = vld [vmem:[#allocation2 + $0x2540] sm:$0xff] }
 0x4a2   :  { %8403 = vmatpush1.bf16.msra.mxu1 %v8402_v31  ;;  %v3173_v31 = vld [vmem:[#allocation2 + $0x1f58] sm:$0xff] }
 0x4a3   :  { %8531 = vmatpush1.bf16.msra.mxu0 %v8530_v45  ;;  %8405 = vmatprep.subr.bf16.mxu1 %v8404_v47  ;;  %v8422_v45 = vpack.c.bf16 %v3106_v44, %v3074_v37  ;;  %v8550_v47 = vpack.c.bf16 %v3108_v40, %v3076_v39  ;;  %v8552_v60 = vpack.c.bf16 %v3173_v31, %v3141_v43  ;;  %v3394_v44 = vld [vmem:[#allocation2 + $0x2640] sm:$0xff]  ;;  %v3491_v43 = vld [vmem:[#allocation2 + $0x2948] sm:$0xff]  ;;  %v3461_v31 = vld [vmem:[#allocation2 + $0x2858] sm:$0xff] }
 0x4a4   :  { %8533 = vmatprep.subr.bf16.mxu0 %v8532_v51  ;;  %v3140_v51 = vld [vmem:[#allocation2 + $0x1e50] sm:$0xff]  ;;  %v8440_v37 = vpack.c.bf16 %v3427_v0, %v3395_v30  ;;  %v3426_v39 = vld [vmem:[#allocation2 + $0x2740] sm:$0xff] }
 0x4a6   :  { %8407 = vmatpush1.bf16.msra.mxu1 %v8406_v34  ;;  %v3237_v34 = vld [vmem:[#allocation2 + $0x2158] sm:$0xff] }
 0x4a7   :  { %8535 = vmatpush1.bf16.msra.mxu0 %v8534_v54  ;;  %8409 = vmatprep.subr.bf16.mxu1 %v8408_v56  ;;  %v8426_v54 = vpack.c.bf16 %v3170_v50, %v3138_v49  ;;  %v8554_v56 = vpack.c.bf16 %v3172_v61, %v3140_v51  ;;  %v8444_v49 = vpack.c.bf16 %v3491_v43, %v3459_v42  ;;  %v3458_v50 = vld [vmem:[#allocation2 + $0x2840] sm:$0xff]  ;;  %v3749_v42 = vld [vmem:[#allocation2 + $0x3158] sm:$0xff] }
 0x4a8   :  { %8537 = vmatprep.subr.bf16.mxu0 %v8536_v59  ;;  %v8556_v59 = vpack.c.bf16 %v3237_v34, %v3205_v55  ;;  %v3490_v51 = vld [vmem:[#allocation2 + $0x2940] sm:$0xff]  ;;  %v3555_v55 = vld [vmem:[#allocation2 + $0x2b48] sm:$0xff]  ;;  %v3525_v34 = vld [vmem:[#allocation2 + $0x2a58] sm:$0xff] }
 0x4a9   :  { %v8448_v58 = vpack.c.bf16 %v3555_v55, %v3523_v53  ;;  %v3779_v53 = vld [vmem:[#allocation2 + $0x3248] sm:$0xff] }
 0x4aa   :  { %8411 = vmatpush1.bf16.msra.mxu1 %v8410_v5  ;;  %v3269_v5 = vld [vmem:[#allocation2 + $0x2258] sm:$0xff]  ;;  %v3811_v55 = vld [vmem:[#allocation2 + $0x3348] sm:$0xff] }
 0x4ab   :  { %8539 = vmatpush1.bf16.msra.mxu0 %v8538_v6  ;;  %8413 = vmatprep.subr.bf16.mxu1 %v8412_v7  ;;  %v3301_v6 = vld [vmem:[#allocation2 + $0x2358] sm:$0xff]  ;;  %v8558_v7 = vpack.c.bf16 %v3236_v63, %v3204_v62  ;;  %v3524_v62 = vld [vmem:[#allocation2 + $0x2a50] sm:$0xff] }
 0x4ac   :  { %8541 = vmatprep.subr.bf16.mxu0 %v8540_v12  ;;  %v8432_v12 = vpack.c.bf16 %v3299_v3, %v3267_v1  ;;  %v8560_v20 = vpack.c.bf16 %v3301_v6, %v3269_v5  ;;  %v3556_v1 = vld [vmem:[#allocation2 + $0x2b50] sm:$0xff]  ;;  %v3587_v3 = vld [vmem:[#allocation2 + $0x2c48] sm:$0xff]  ;;  %v3589_v5 = vld [vmem:[#allocation2 + $0x2c58] sm:$0xff] }
 0x4ad   :  { %v3621_v6 = vld [vmem:[#allocation2 + $0x2d58] sm:$0xff] }
 0x4ae   :  { %8415 = vmatpush1.bf16.msra.mxu1 %v8414_v21  ;;  %v3365_v21 = vld [vmem:[#allocation2 + $0x2558] sm:$0xff] }
 0x4af   :  { %8543 = vmatpush1.bf16.msra.mxu0 %v8542_v22  ;;  %8417 = vmatprep.subr.bf16.mxu1 %v8416_v23  ;;  %v8434_v22 = vpack.c.bf16 %v3298_v10, %v3266_v9  ;;  %v8562_v23 = vpack.c.bf16 %v3300_v14, %v3268_v11  ;;  %v8564_v26 = vpack.c.bf16 %v3365_v21, %v3333_v18  ;;  %v3586_v11 = vld [vmem:[#allocation2 + $0x2c40] sm:$0xff]  ;;  %v3588_v14 = vld [vmem:[#allocation2 + $0x2c50] sm:$0xff]  ;;  %v3651_v21 = vld [vmem:[#allocation2 + $0x2e48] sm:$0xff] }
 0x4b0   :  { %8545 = vmatprep.subr.bf16.mxu0 %v8544_v25  ;;  %v3332_v25 = vld [vmem:[#allocation2 + $0x2450] sm:$0xff]  ;;  %v8578_v9 = vpack.c.bf16 %v3556_v1, %v3524_v62 }
 0x4b1   :  { %v3620_v18 = vld [vmem:[#allocation2 + $0x2d50] sm:$0xff] }
 0x4b2   :  { %8419 = vmatpush1.bf16.msra.mxu1 %v8418_v33  ;;  %v3429_v33 = vld [vmem:[#allocation2 + $0x2758] sm:$0xff]  ;;  %v8582_v30 = vpack.c.bf16 %v3620_v18, %v3588_v14  ;;  %v3780_v62 = vld [vmem:[#allocation2 + $0x3250] sm:$0xff]  ;;  %v3939_v18 = vld [vmem:[#allocation2 + $0x3748] sm:$0xff] }
 0x4b3   :  { %8547 = vmatpush1.bf16.msra.mxu0 %v8546_v35  ;;  %8421 = vmatprep.subr.bf16.mxu1 %v8420_v36  ;;  %v8438_v35 = vpack.c.bf16 %v3362_v17, %v3330_v24  ;;  %v8566_v36 = vpack.c.bf16 %v3364_v28, %v3332_v25  ;;  %v8568_v40 = vpack.c.bf16 %v3429_v33, %v3397_v32  ;;  %v3653_v24 = vld [vmem:[#allocation2 + $0x2e58] sm:$0xff]  ;;  %v3650_v32 = vld [vmem:[#allocation2 + $0x2e40] sm:$0xff]  ;;  %v3812_v1 = vld [vmem:[#allocation2 + $0x3350] sm:$0xff] }
 0x4b4   :  { %8549 = vmatprep.subr.bf16.mxu0 %v8548_v38  ;;  %v3396_v38 = vld [vmem:[#allocation2 + $0x2650] sm:$0xff]  ;;  %v3685_v17 = vld [vmem:[#allocation2 + $0x2f58] sm:$0xff]  ;;  %v3682_v33 = vld [vmem:[#allocation2 + $0x2f40] sm:$0xff] }
 0x4b5   :  { %v3844_v14 = vld [vmem:[#allocation2 + $0x3450] sm:$0xff] }
 0x4b6   :  { %8423 = vmatpush1.bf16.msra.mxu1 %v8422_v45  ;;  %v3493_v45 = vld [vmem:[#allocation2 + $0x2958] sm:$0xff] }
 0x4b7   :  { %8551 = vmatpush1.bf16.msra.mxu0 %v8550_v47  ;;  %8425 = vmatprep.subr.bf16.mxu1 %v8424_v48  ;;  %v8442_v47 = vpack.c.bf16 %v3426_v39, %v3394_v44  ;;  %v8570_v48 = vpack.c.bf16 %v3428_v41, %v3396_v38  ;;  %v8572_v61 = vpack.c.bf16 %v3493_v45, %v3461_v31  ;;  %v3684_v39 = vld [vmem:[#allocation2 + $0x2f50] sm:$0xff]  ;;  %v3715_v38 = vld [vmem:[#allocation2 + $0x3048] sm:$0xff]  ;;  %v3717_v41 = vld [vmem:[#allocation2 + $0x3058] sm:$0xff] }
 0x4b8   :  { %8553 = vmatprep.subr.bf16.mxu0 %v8552_v60  ;;  %v3460_v60 = vld [vmem:[#allocation2 + $0x2850] sm:$0xff]  ;;  %v8584_v44 = vpack.c.bf16 %v3685_v17, %v3653_v24  ;;  %v8458_v31 = vpack.c.bf16 %v3682_v33, %v3650_v32  ;;  %v3906_v17 = vld [vmem:[#allocation2 + $0x3640] sm:$0xff]  ;;  %v4003_v32 = vld [vmem:[#allocation2 + $0x3948] sm:$0xff] }
 0x4b9   :  { %v3973_v33 = vld [vmem:[#allocation2 + $0x3858] sm:$0xff] }
 0x4ba   :  { %8427 = vmatpush1.bf16.msra.mxu1 %v8426_v54  ;;  %v3557_v54 = vld [vmem:[#allocation2 + $0x2b58] sm:$0xff] }
 0x4bb   :  { %8555 = vmatpush1.bf16.msra.mxu0 %v8554_v56  ;;  %8429 = vmatprep.subr.bf16.mxu1 %v8428_v57  ;;  %v8446_v56 = vpack.c.bf16 %v3490_v51, %v3458_v50  ;;  %v8574_v57 = vpack.c.bf16 %v3492_v52, %v3460_v60  ;;  %v8576_v63 = vpack.c.bf16 %v3557_v54, %v3525_v34  ;;  %v3716_v50 = vld [vmem:[#allocation2 + $0x3050] sm:$0xff]  ;;  %v9964_v51 = vld [vmem:[%s11971_s0] sm:$0xff]  ;;  %v3781_v34 = vld [vmem:[#allocation2 + $0x3258] sm:$0xff] }
 0x4bc   :  { %8557 = vmatprep.subr.bf16.mxu0 %v8556_v59  ;;  %v3554_v59 = vld [vmem:[#allocation2 + $0x2b40] sm:$0xff]  ;;  %v3748_v52 = vld [vmem:[#allocation2 + $0x3150] sm:$0xff]  ;;  %v3813_v54 = vld [vmem:[#allocation2 + $0x3358] sm:$0xff] }
 0x4bd   :  { %4851 = vmatmul.mubr.f32.vlgmr.msra.gmra.mrb[24].mxu1 %v11846_v8 }
 0x4be   :  { %4993 = vmatmul.mubr.f32.vlgmr.msra.gmra.mrb[22].mxu0 %v11846_v8  ;;  %8431 = vmatpush1.bf16.msra.mxu1 %v8430_v4  ;;  %v3619_v4 = vld [vmem:[#allocation2 + $0x2d48] sm:$0xff] }
 0x4bf   :  { %4921 = vmatprep.mubr.f32.mxu1 %v11852_v29  ;;  %8559 = vmatpush1.bf16.msra.mxu0 %v8558_v7  ;;  %v8450_v7 = vpack.c.bf16 %v3554_v59, %v3522_v46  ;;  %v8452_v10 = vpack.c.bf16 %v3619_v4, %v3587_v3  ;;  %v3778_v46 = vld [vmem:[#allocation2 + $0x3240] sm:$0xff]  ;;  %v3843_v3 = vld [vmem:[#allocation2 + $0x3448] sm:$0xff] }
 0x4c0   :  { %5063 = vmatprep.mubr.f32.mxu0 %v11852_v29  ;;  %8433 = vmatprep.subr.bf16.mxu1 %v8432_v12  ;;  %v3618_v12 = vld [vmem:[#allocation2 + $0x2d40] sm:$0xff]  ;;  %v3875_v4 = vld [vmem:[#allocation2 + $0x3548] sm:$0xff] }
 0x4c1   :  { %8561 = vmatprep.subr.bf16.mxu0 %v8560_v20  ;;  %v8580_v20 = vpack.c.bf16 %v3621_v6, %v3589_v5  ;;  %v8454_v28 = vpack.c.bf16 %v3618_v12, %v3586_v11  ;;  %v3810_v59 = vld [vmem:[#allocation2 + $0x3340] sm:$0xff]  ;;  %v3845_v5 = vld [vmem:[#allocation2 + $0x3458] sm:$0xff] }
 0x4c2   :  { %8435 = vmatpush1.bf16.msra.mxu1 %v8434_v22  ;;  %v3683_v22 = vld [vmem:[#allocation2 + $0x2f48] sm:$0xff]  ;;  %v3877_v6 = vld [vmem:[#allocation2 + $0x3558] sm:$0xff]  ;;  %v3842_v11 = vld [vmem:[#allocation2 + $0x3440] sm:$0xff] }
 0x4c3   :  { %8563 = vmatpush1.bf16.msra.mxu0 %v8562_v23  ;;  %8437 = vmatprep.subr.bf16.mxu1 %v8436_v19  ;;  %v8456_v0 = vpack.c.bf16 %v3683_v22, %v3651_v21  ;;  %v3874_v12 = vld [vmem:[#allocation2 + $0x3540] sm:$0xff]  ;;  %v3909_v21 = vld [vmem:[#allocation2 + $0x3658] sm:$0xff] }
 0x4c4   :  { %8565 = vmatprep.subr.bf16.mxu0 %v8564_v26  ;;  %v3941_v22 = vld [vmem:[#allocation2 + $0x3758] sm:$0xff] }
 0x4c6   :  { %8439 = vmatpush1.bf16.msra.mxu1 %v8438_v35  ;;  %v3652_v35 = vld [vmem:[#allocation2 + $0x2e50] sm:$0xff] }
 0x4c7   :  { %8567 = vmatpush1.bf16.msra.mxu0 %v8566_v36  ;;  %8441 = vmatprep.subr.bf16.mxu1 %v8440_v37  ;;  %v8586_v45 = vpack.c.bf16 %v3684_v39, %v3652_v35  ;;  %v4005_v35 = vld [vmem:[#allocation2 + $0x3958] sm:$0xff]  ;;  %v3970_v39 = vld [vmem:[#allocation2 + $0x3840] sm:$0xff] }
 0x4c8   :  { %8569 = vmatprep.subr.bf16.mxu0 %v8568_v40  ;;  %v3747_v40 = vld [vmem:[#allocation2 + $0x3148] sm:$0xff] }
 0x4ca   :  { %8443 = vmatpush1.bf16.msra.mxu1 %v8442_v47  ;;  %v8460_v47 = vpack.c.bf16 %v3747_v40, %v3715_v38  ;;  %v4002_v38 = vld [vmem:[#allocation2 + $0x3940] sm:$0xff]  ;;  %v3972_v40 = vld [vmem:[#allocation2 + $0x3850] sm:$0xff] }
 0x4cb   :  { %8571 = vmatpush1.bf16.msra.mxu0 %v8570_v48  ;;  %8445 = vmatprep.subr.bf16.mxu1 %v8444_v49  ;;  %v3714_v48 = vld [vmem:[#allocation2 + $0x3040] sm:$0xff] }
 0x4cc   :  { %8573 = vmatprep.subr.bf16.mxu0 %v8572_v61  ;;  %v3746_v49 = vld [vmem:[#allocation2 + $0x3140] sm:$0xff]  ;;  %v8588_v61 = vpack.c.bf16 %v3749_v42, %v3717_v41  ;;  %v8604_v41 = vpack.c.bf16 %v4005_v35, %v3973_v33  ;;  %v4004_v42 = vld [vmem:[#allocation2 + $0x3950] sm:$0xff]  ;;  %v2279_v33 = vld [vmem:[#allocation2 + $0x368] sm:$0xff] }
 0x4ce   :  { %8447 = vmatpush1.bf16.msra.mxu1 %v8446_v56  ;;  %v8462_v56 = vpack.c.bf16 %v3746_v49, %v3714_v48  ;;  %v8478_v48 = vpack.c.bf16 %v4002_v38, %v3970_v39  ;;  %v8606_v49 = vpack.c.bf16 %v4004_v42, %v3972_v40  ;;  %v2246_v39 = vld [vmem:[#allocation2 + $0x260] sm:$0xff]  ;;  %v2248_v40 = vld [vmem:[#allocation2 + $0x270] sm:$0xff] }
 0x4cf   :  { %8575 = vmatpush1.bf16.msra.mxu0 %v8574_v57  ;;  %8449 = vmatprep.subr.bf16.mxu1 %v8448_v58  ;;  %v8590_v57 = vpack.c.bf16 %v3748_v52, %v3716_v50  ;;  %v8464_v58 = vpack.c.bf16 %v3811_v55, %v3779_v53  ;;  %v4068_v53 = vld [vmem:[#allocation2 + $0x3b50] sm:$0xff]  ;;  %v4099_v55 = vld [vmem:[#allocation2 + $0x3c48] sm:$0xff]  ;;  %v2278_v38 = vld [vmem:[#allocation2 + $0x360] sm:$0xff] }
 0x4d0   :  { %v4355_v15 = vpop.f32.mrb[20].mxu1  ;;  %v4497_v16 = vpop.f32.mrb[18].mxu0  ;;  %8577 = vmatprep.subr.bf16.mxu0 %v8576_v63  ;;  %v8592_v63 = vpack.c.bf16 %v3813_v54, %v3781_v34  ;;  %v4131_v34 = vld [vmem:[#allocation2 + $0x3d48] sm:$0xff]  ;;  %v4101_v54 = vld [vmem:[#allocation2 + $0x3c58] sm:$0xff]  ;;  %v2280_v42 = vld [vmem:[#allocation2 + $0x370] sm:$0xff] }
 0x4d1   :  { %v4357_v23 = vpop.f32.mrb[21].mxu1  ;;  %v4499_v19 = vpop.f32.mrb[19].mxu0 }
 0x4d2   :  { %v6522_v25 = vcombine.low %v4355_v15, %v4357_v23  ;;  %v6523_v26 = vcombine.low %v4497_v16, %v4499_v19  ;;  %8451 = vmatpush1.bf16.msra.mxu1 %v8450_v7  ;;  %v8466_v7 = vpack.c.bf16 %v3810_v59, %v3778_v46  ;;  %v8596_v15 = vpack.c.bf16 %v3877_v6, %v3845_v5  ;;  %v3876_v16 = vld [vmem:[#allocation2 + $0x3550] sm:$0xff]  ;;  %v4098_v59 = vld [vmem:[#allocation2 + $0x3c40] sm:$0xff]  ;;  %v4195_v5 = vld [vmem:[#allocation2 + $0x3f48] sm:$0xff] }
 0x4d3   :  { %8579 = vmatpush1.bf16.msra.mxu0 %v8578_v9  ;;  %8453 = vmatprep.subr.bf16.mxu1 %v8452_v10  ;;  %v8594_v9 = vpack.c.bf16 %v3812_v1, %v3780_v62  ;;  %v8468_v10 = vpack.c.bf16 %v3875_v4, %v3843_v3  ;;  %v8470_v23 = vpack.c.bf16 %v3874_v12, %v3842_v11  ;;  %v4130_v62 = vld [vmem:[#allocation2 + $0x3d40] sm:$0xff]  ;;  %v4132_v3 = vld [vmem:[#allocation2 + $0x3d50] sm:$0xff]  ;;  %v4163_v4 = vld [vmem:[#allocation2 + $0x3e48] sm:$0xff] }
 0x4d4   :  { %v6530_v36 = vrot.slane %v6522_v25, %v10238_v13  ;;  %v6537_v37 = vrot.slane %v6523_v26, %v10238_v13  ;;  %8581 = vmatprep.subr.bf16.mxu0 %v8580_v20  ;;  %v3907_v20 = vld [vmem:[#allocation2 + $0x3648] sm:$0xff]  ;;  %v8598_v19 = vpack.c.bf16 %v3876_v16, %v3844_v14  ;;  %v3938_v25 = vld [vmem:[#allocation2 + $0x3740] sm:$0xff]  ;;  %v3908_v26 = vld [vmem:[#allocation2 + $0x3650] sm:$0xff]  ;;  %v8484_v46 = vpack.c.bf16 %v4131_v34, %v4099_v55 }
 0x4d5   :  { %v8472_v24 = vpack.c.bf16 %v3939_v18, %v3907_v20  ;;  %v4165_v6 = vld [vmem:[#allocation2 + $0x3e58] sm:$0xff]  ;;  %v8488_v11 = vpack.c.bf16 %v4195_v5, %v4163_v4  ;;  %v4162_v12 = vld [vmem:[#allocation2 + $0x3e40] sm:$0xff]  ;;  %v4196_v20 = vld [vmem:[#allocation2 + $0x3f50] sm:$0xff] }
 0x4d6   :  { %v6538_v43 = vcombine.low %v6530_v36, %v6537_v37  ;;  %8455 = vmatpush1.bf16.msra.mxu1 %v8454_v28  ;;  %v8600_v28 = vpack.c.bf16 %v3941_v22, %v3909_v21  ;;  %v8474_v36 = vpack.c.bf16 %v3938_v25, %v3906_v17  ;;  %v4194_v14 = vld [vmem:[#allocation2 + $0x3f40] sm:$0xff]  ;;  %v2183_v18 = vld [vmem:[#allocation2 + $0x68] sm:$0xff]  ;;  %v2185_v22 = vld [vmem:[#allocation2 + $0x78] sm:$0xff] }
 0x4d7   :  { %8583 = vmatpush1.bf16.msra.mxu0 %v8582_v30  ;;  %8457 = vmatprep.subr.bf16.mxu1 %v8456_v0  ;;  %v3940_v30 = vld [vmem:[#allocation2 + $0x3750] sm:$0xff]  ;;  %v3971_v0 = vld [vmem:[#allocation2 + $0x3848] sm:$0xff]  ;;  %v2182_v25 = vld [vmem:[#allocation2 + $0x60] sm:$0xff] }
 0x4d8   :  { %v6666_v60 = vmul.f32 %v9964_v51, %v6538_v43  ;;  %8585 = vmatprep.subr.bf16.mxu0 %v8584_v44  ;;  %v8602_v37 = vpack.c.bf16 %v3940_v30, %v3908_v26  ;;  %v8476_v44 = vpack.c.bf16 %v4003_v32, %v3971_v0  ;;  %v4035_v43 = vld [vmem:[#allocation2 + $0x3a48] sm:$0xff]  ;;  %v4034_v51 = vld [vmem:[#allocation2 + $0x3a40] sm:$0xff]  ;;  %v2184_v30 = vld [vmem:[#allocation2 + $0x70] sm:$0xff] }
 0x4d9   :  { %v2215_v21 = vld [vmem:[#allocation2 + $0x168] sm:$0xff]  ;;  %v2214_v26 = vld [vmem:[#allocation2 + $0x160] sm:$0xff]  ;;  %v2216_v0 = vld [vmem:[#allocation2 + $0x170] sm:$0xff] }
 0x4da   :  { %6674 = vst [vmem:[#allocation5] sm:$0xff] %v6666_v60  ;;  %8459 = vmatpush1.bf16.msra.mxu1 %v8458_v31  ;;  %v4067_v31 = vld [vmem:[#allocation2 + $0x3b48] sm:$0xff]  ;;  %v4066_v60 = vld [vmem:[#allocation2 + $0x3b40] sm:$0xff]  ;;  %v8620_v17 = vpack.c.bf16 %v2215_v21, %v2183_v18  ;;  %v8622_v35 = vpack.c.bf16 %v2214_v26, %v2182_v25  ;;  %v2344_v55 = vld [vmem:[#allocation2 + $0x570] sm:$0xff] }
 0x4db   :  { %8587 = vmatpush1.bf16.msra.mxu0 %v8586_v45  ;;  %8461 = vmatprep.subr.bf16.mxu1 %v8460_v47  ;;  %v4037_v45 = vld [vmem:[#allocation2 + $0x3a58] sm:$0xff]  ;;  %v8480_v50 = vpack.c.bf16 %v4067_v31, %v4035_v43  ;;  %v2247_v32 = vld [vmem:[#allocation2 + $0x268] sm:$0xff]  ;;  %v2408_v4 = vld [vmem:[#allocation2 + $0x770] sm:$0xff] }
 0x4dc   :  { %8589 = vmatprep.subr.bf16.mxu0 %v8588_v61  ;;  %v4069_v47 = vld [vmem:[#allocation2 + $0x3b58] sm:$0xff]  ;;  %v4036_v61 = vld [vmem:[#allocation2 + $0x3a50] sm:$0xff]  ;;  %v2311_v43 = vld [vmem:[#allocation2 + $0x468] sm:$0xff] }
 0x4dd   :  { %v8608_v52 = vpack.c.bf16 %v4069_v47, %v4037_v45  ;;  %v2343_v31 = vld [vmem:[#allocation2 + $0x568] sm:$0xff]  ;;  %v2313_v47 = vld [vmem:[#allocation2 + $0x478] sm:$0xff]  ;;  %v2472_v18 = vld [vmem:[#allocation2 + $0x970] sm:$0xff] }
 0x4de   :  { %8463 = vmatpush1.bf16.msra.mxu1 %v8462_v56  ;;  %v4133_v56 = vld [vmem:[#allocation2 + $0x3d58] sm:$0xff]  ;;  %v2375_v34 = vld [vmem:[#allocation2 + $0x668] sm:$0xff]  ;;  %v2502_v26 = vld [vmem:[#allocation2 + $0xa60] sm:$0xff] }
 0x4df   :  { %8591 = vmatpush1.bf16.msra.mxu0 %v8590_v57  ;;  %8465 = vmatprep.subr.bf16.mxu1 %v8464_v58  ;;  %v8482_v57 = vpack.c.bf16 %v4066_v60, %v4034_v51  ;;  %v8610_v58 = vpack.c.bf16 %v4068_v53, %v4036_v61  ;;  %v8612_v1 = vpack.c.bf16 %v4133_v56, %v4101_v54  ;;  %v2310_v60 = vld [vmem:[#allocation2 + $0x460] sm:$0xff]  ;;  %v2407_v54 = vld [vmem:[#allocation2 + $0x768] sm:$0xff]  ;;  %v2377_v56 = vld [vmem:[#allocation2 + $0x678] sm:$0xff] }
 0x4e0   :  { %8593 = vmatprep.subr.bf16.mxu0 %v8592_v63  ;;  %v4100_v63 = vld [vmem:[#allocation2 + $0x3c50] sm:$0xff]  ;;  %v8628_v51 = vpack.c.bf16 %v2343_v31, %v2311_v43  ;;  %v2342_v61 = vld [vmem:[#allocation2 + $0x560] sm:$0xff]  ;;  %v2439_v5 = vld [vmem:[#allocation2 + $0x868] sm:$0xff] }
 0x4e1   :  { %v2503_v21 = vld [vmem:[#allocation2 + $0xa68] sm:$0xff]  ;;  %v2600_v31 = vld [vmem:[#allocation2 + $0xd70] sm:$0xff] }
 0x4e2   :  { %8467 = vmatpush1.bf16.msra.mxu1 %v8466_v7  ;;  %v4197_v7 = vld [vmem:[#allocation2 + $0x3f58] sm:$0xff] }
 0x4e3   :  { %8595 = vmatpush1.bf16.msra.mxu0 %v8594_v9  ;;  %8469 = vmatprep.subr.bf16.mxu1 %v8468_v10  ;;  %v8486_v9 = vpack.c.bf16 %v4130_v62, %v4098_v59  ;;  %v8614_v10 = vpack.c.bf16 %v4132_v3, %v4100_v63  ;;  %v8616_v16 = vpack.c.bf16 %v4197_v7, %v4165_v6  ;;  %v2374_v62 = vld [vmem:[#allocation2 + $0x660] sm:$0xff]  ;;  %v2471_v6 = vld [vmem:[#allocation2 + $0x968] sm:$0xff]  ;;  %v2441_v7 = vld [vmem:[#allocation2 + $0x878] sm:$0xff] }
 0x4e4   :  { %8597 = vmatprep.subr.bf16.mxu0 %v8596_v15  ;;  %v4164_v15 = vld [vmem:[#allocation2 + $0x3e50] sm:$0xff]  ;;  %v8632_v59 = vpack.c.bf16 %v2407_v54, %v2375_v34  ;;  %v2406_v63 = vld [vmem:[#allocation2 + $0x760] sm:$0xff]  ;;  %v2695_v54 = vld [vmem:[#allocation2 + $0x1068] sm:$0xff] }
 0x4e5   :  { %v2664_v34 = vld [vmem:[#allocation2 + $0xf70] sm:$0xff] }
 0x4e6   :  { %8471 = vmatpush1.bf16.msra.mxu1 %v8470_v23  ;;  %v2217_v23 = vld [vmem:[#allocation2 + $0x178] sm:$0xff] }
 0x4e7   :  { %8599 = vmatpush1.bf16.msra.mxu0 %v8598_v19  ;;  %8473 = vmatprep.subr.bf16.mxu1 %v8472_v24  ;;  %v8490_v19 = vpack.c.bf16 %v4194_v14, %v4162_v12  ;;  %v8618_v24 = vpack.c.bf16 %v4196_v20, %v4164_v15  ;;  %v8636_v12 = vpack.c.bf16 %v2471_v6, %v2439_v5  ;;  %v2438_v14 = vld [vmem:[#allocation2 + $0x860] sm:$0xff]  ;;  %v2728_v5 = vld [vmem:[#allocation2 + $0x1170] sm:$0xff]  ;;  %v2759_v6 = vld [vmem:[#allocation2 + $0x1268] sm:$0xff] }
 0x4e8   :  { %8601 = vmatprep.subr.bf16.mxu0 %v8600_v28  ;;  %v8748_v28 = vpack.c.bf16 %v2217_v23, %v2185_v22  ;;  %v2470_v15 = vld [vmem:[#allocation2 + $0x960] sm:$0xff]  ;;  %v2535_v22 = vld [vmem:[#allocation2 + $0xb68] sm:$0xff]  ;;  %v2505_v23 = vld [vmem:[#allocation2 + $0xa78] sm:$0xff] }
 0x4e9   :  { %v8640_v25 = vpack.c.bf16 %v2535_v22, %v2503_v21  ;;  %v2792_v21 = vld [vmem:[#allocation2 + $0x1370] sm:$0xff]  ;;  %v2823_v22 = vld [vmem:[#allocation2 + $0x1468] sm:$0xff] }
 0x4ea   :  { %8475 = vmatpush1.bf16.msra.mxu1 %v8474_v36  ;;  %v2249_v36 = vld [vmem:[#allocation2 + $0x278] sm:$0xff] }
 0x4eb   :  { %8603 = vmatpush1.bf16.msra.mxu0 %v8602_v37  ;;  %8477 = vmatprep.subr.bf16.mxu1 %v8476_v44  ;;  %v2281_v37 = vld [vmem:[#allocation2 + $0x378] sm:$0xff]  ;;  %v8750_v44 = vpack.c.bf16 %v2216_v0, %v2184_v30  ;;  %v2504_v30 = vld [vmem:[#allocation2 + $0xa70] sm:$0xff] }
 0x4ec   :  { %8605 = vmatprep.subr.bf16.mxu0 %v8604_v41  ;;  %v8624_v41 = vpack.c.bf16 %v2279_v33, %v2247_v32  ;;  %v8752_v45 = vpack.c.bf16 %v2281_v37, %v2249_v36  ;;  %v2536_v32 = vld [vmem:[#allocation2 + $0xb70] sm:$0xff]  ;;  %v2567_v33 = vld [vmem:[#allocation2 + $0xc68] sm:$0xff]  ;;  %v2569_v36 = vld [vmem:[#allocation2 + $0xc78] sm:$0xff] }
 0x4ed   :  { %v2601_v37 = vld [vmem:[#allocation2 + $0xd78] sm:$0xff] }
 0x4ee   :  { %8479 = vmatpush1.bf16.msra.mxu1 %v8478_v48  ;;  %v2345_v48 = vld [vmem:[#allocation2 + $0x578] sm:$0xff]  ;;  %v8772_v43 = vpack.c.bf16 %v2601_v37, %v2569_v36  ;;  %v2919_v36 = vld [vmem:[#allocation2 + $0x1768] sm:$0xff] }
 0x4ef   :  { %8607 = vmatpush1.bf16.msra.mxu0 %v8606_v49  ;;  %8481 = vmatprep.subr.bf16.mxu1 %v8480_v50  ;;  %v8626_v49 = vpack.c.bf16 %v2278_v38, %v2246_v39  ;;  %v8754_v50 = vpack.c.bf16 %v2280_v42, %v2248_v40  ;;  %v8756_v53 = vpack.c.bf16 %v2345_v48, %v2313_v47  ;;  %v2566_v40 = vld [vmem:[#allocation2 + $0xc60] sm:$0xff]  ;;  %v2568_v42 = vld [vmem:[#allocation2 + $0xc70] sm:$0xff]  ;;  %v2663_v47 = vld [vmem:[#allocation2 + $0xf68] sm:$0xff] }
 0x4f0   :  { %8609 = vmatprep.subr.bf16.mxu0 %v8608_v52  ;;  %v2312_v52 = vld [vmem:[#allocation2 + $0x470] sm:$0xff]  ;;  %v8770_v39 = vpack.c.bf16 %v2536_v32, %v2504_v30  ;;  %v2633_v48 = vld [vmem:[#allocation2 + $0xe78] sm:$0xff]  ;;  %v2854_v30 = vld [vmem:[#allocation2 + $0x1560] sm:$0xff] }
 0x4f1   :  { %v2889_v37 = vld [vmem:[#allocation2 + $0x1678] sm:$0xff] }
 0x4f2   :  { %8483 = vmatpush1.bf16.msra.mxu1 %v8482_v57  ;;  %v2409_v57 = vld [vmem:[#allocation2 + $0x778] sm:$0xff] }
 0x4f3   :  { %8611 = vmatpush1.bf16.msra.mxu0 %v8610_v58  ;;  %8485 = vmatprep.subr.bf16.mxu1 %v8484_v46  ;;  %v8630_v58 = vpack.c.bf16 %v2342_v61, %v2310_v60  ;;  %v8758_v46 = vpack.c.bf16 %v2344_v55, %v2312_v52  ;;  %v8760_v3 = vpack.c.bf16 %v2409_v57, %v2377_v56  ;;  %v2630_v61 = vld [vmem:[#allocation2 + $0xe60] sm:$0xff]  ;;  %v2727_v56 = vld [vmem:[#allocation2 + $0x1168] sm:$0xff]  ;;  %v2697_v57 = vld [vmem:[#allocation2 + $0x1078] sm:$0xff] }
 0x4f4   :  { %8613 = vmatprep.subr.bf16.mxu0 %v8612_v1  ;;  %v2376_v1 = vld [vmem:[#allocation2 + $0x670] sm:$0xff]  ;;  %v2662_v52 = vld [vmem:[#allocation2 + $0xf60] sm:$0xff] }
 0x4f6   :  { %8487 = vmatpush1.bf16.msra.mxu1 %v8486_v9  ;;  %v2473_v9 = vld [vmem:[#allocation2 + $0x978] sm:$0xff] }
 0x4f7   :  { %8615 = vmatpush1.bf16.msra.mxu0 %v8614_v10  ;;  %8489 = vmatprep.subr.bf16.mxu1 %v8488_v11  ;;  %v8634_v10 = vpack.c.bf16 %v2406_v63, %v2374_v62  ;;  %v8762_v11 = vpack.c.bf16 %v2408_v4, %v2376_v1  ;;  %v8764_v20 = vpack.c.bf16 %v2473_v9, %v2441_v7  ;;  %v2694_v63 = vld [vmem:[#allocation2 + $0x1060] sm:$0xff]  ;;  %v2791_v7 = vld [vmem:[#allocation2 + $0x1368] sm:$0xff]  ;;  %v2761_v9 = vld [vmem:[#allocation2 + $0x1278] sm:$0xff] }
 0x4f8   :  { %8617 = vmatprep.subr.bf16.mxu0 %v8616_v16  ;;  %v2440_v16 = vld [vmem:[#allocation2 + $0x870] sm:$0xff]  ;;  %v8652_v62 = vpack.c.bf16 %v2727_v56, %v2695_v54  ;;  %v2726_v1 = vld [vmem:[#allocation2 + $0x1160] sm:$0xff]  ;;  %v3015_v56 = vld [vmem:[#allocation2 + $0x1a68] sm:$0xff] }
 0x4f9   :  { %v2984_v54 = vld [vmem:[#allocation2 + $0x1970] sm:$0xff] }
 0x4fa   :  { %8491 = vmatpush1.bf16.msra.mxu1 %v8490_v19  ;;  %v2537_v19 = vld [vmem:[#allocation2 + $0xb78] sm:$0xff] }
 0x4fb   :  { %8619 = vmatpush1.bf16.msra.mxu0 %v8618_v24  ;;  %8621 = vmatprep.subr.bf16.mxu1 %v8620_v17  ;;  %v8638_v24 = vpack.c.bf16 %v2470_v15, %v2438_v14  ;;  %v8766_v17 = vpack.c.bf16 %v2472_v18, %v2440_v16  ;;  %v8768_v0 = vpack.c.bf16 %v2537_v19, %v2505_v23  ;;  %v2758_v15 = vld [vmem:[#allocation2 + $0x1260] sm:$0xff]  ;;  %v2855_v23 = vld [vmem:[#allocation2 + $0x1568] sm:$0xff]  ;;  %v2825_v19 = vld [vmem:[#allocation2 + $0x1478] sm:$0xff] }
 0x4fc   :  { %8749 = vmatprep.subr.bf16.mxu0 %v8748_v28  ;;  %v2534_v28 = vld [vmem:[#allocation2 + $0xb60] sm:$0xff]  ;;  %v8656_v14 = vpack.c.bf16 %v2791_v7, %v2759_v6  ;;  %v3048_v6 = vld [vmem:[#allocation2 + $0x1b70] sm:$0xff]  ;;  %v3079_v7 = vld [vmem:[#allocation2 + $0x1c68] sm:$0xff] }
 0x4fd   :  { %4922 = vmatmul.mubr.f32.vlgmr.msra.gmra.mrb[24].mxu1 %v11859_v27  ;;  %v2790_v16 = vld [vmem:[#allocation2 + $0x1360] sm:$0xff] }
 0x4fe   :  { %5064 = vmatmul.mubr.f32.vlgmr.msra.gmra.mrb[22].mxu0 %v11859_v27  ;;  %8623 = vmatpush1.bf16.msra.mxu1 %v8622_v35  ;;  %v2599_v35 = vld [vmem:[#allocation2 + $0xd68] sm:$0xff] }
 0x4ff   :  { %5134 = vmatprep.mubr.f32.mxu1 %v11844_v2  ;;  %8751 = vmatpush1.bf16.msra.mxu0 %v8750_v44  ;;  %v8642_v44 = vpack.c.bf16 %v2534_v28, %v2502_v26  ;;  %v8644_v38 = vpack.c.bf16 %v2599_v35, %v2567_v33  ;;  %v8660_v26 = vpack.c.bf16 %v2855_v23, %v2823_v22  ;;  %v2822_v28 = vld [vmem:[#allocation2 + $0x1460] sm:$0xff]  ;;  %v2856_v33 = vld [vmem:[#allocation2 + $0x1570] sm:$0xff]  ;;  %v2887_v35 = vld [vmem:[#allocation2 + $0x1668] sm:$0xff] }
 0x500   :  { %5276 = vmatprep.mubr.f32.mxu0 %v11844_v2  ;;  %8625 = vmatprep.subr.bf16.mxu1 %v8624_v41  ;;  %v2598_v41 = vld [vmem:[#allocation2 + $0xd60] sm:$0xff]  ;;  %v3112_v22 = vld [vmem:[#allocation2 + $0x1d70] sm:$0xff]  ;;  %v3143_v23 = vld [vmem:[#allocation2 + $0x1e68] sm:$0xff] }
 0x501   :  { %8753 = vmatprep.subr.bf16.mxu0 %v8752_v45  ;;  %v2631_v45 = vld [vmem:[#allocation2 + $0xe68] sm:$0xff] }
 0x502   :  { %8627 = vmatpush1.bf16.msra.mxu1 %v8626_v49  ;;  %v2665_v49 = vld [vmem:[#allocation2 + $0xf78] sm:$0xff]  ;;  %v8648_v60 = vpack.c.bf16 %v2663_v47, %v2631_v45  ;;  %v2920_v45 = vld [vmem:[#allocation2 + $0x1770] sm:$0xff]  ;;  %v2951_v47 = vld [vmem:[#allocation2 + $0x1868] sm:$0xff] }
 0x503   :  { %8755 = vmatpush1.bf16.msra.mxu0 %v8754_v50  ;;  %8629 = vmatprep.subr.bf16.mxu1 %v8628_v51  ;;  %v8646_v50 = vpack.c.bf16 %v2598_v41, %v2566_v40  ;;  %v8774_v51 = vpack.c.bf16 %v2600_v31, %v2568_v42  ;;  %v8776_v55 = vpack.c.bf16 %v2665_v49, %v2633_v48  ;;  %v2886_v41 = vld [vmem:[#allocation2 + $0x1660] sm:$0xff]  ;;  %v2983_v48 = vld [vmem:[#allocation2 + $0x1968] sm:$0xff]  ;;  %v2953_v49 = vld [vmem:[#allocation2 + $0x1878] sm:$0xff] }
 0x504   :  { %8757 = vmatprep.subr.bf16.mxu0 %v8756_v53  ;;  %v2632_v53 = vld [vmem:[#allocation2 + $0xe70] sm:$0xff]  ;;  %v8664_v40 = vpack.c.bf16 %v2919_v36, %v2887_v35  ;;  %v2918_v42 = vld [vmem:[#allocation2 + $0x1760] sm:$0xff]  ;;  %v3207_v36 = vld [vmem:[#allocation2 + $0x2068] sm:$0xff] }
 0x505   :  { %v3176_v35 = vld [vmem:[#allocation2 + $0x1f70] sm:$0xff] }
 0x506   :  { %8631 = vmatpush1.bf16.msra.mxu1 %v8630_v58  ;;  %v2729_v58 = vld [vmem:[#allocation2 + $0x1178] sm:$0xff] }
 0x507   :  { %8759 = vmatpush1.bf16.msra.mxu0 %v8758_v46  ;;  %8633 = vmatprep.subr.bf16.mxu1 %v8632_v59  ;;  %v8650_v46 = vpack.c.bf16 %v2662_v52, %v2630_v61  ;;  %v8778_v59 = vpack.c.bf16 %v2664_v34, %v2632_v53  ;;  %v8780_v4 = vpack.c.bf16 %v2729_v58, %v2697_v57  ;;  %v2950_v52 = vld [vmem:[#allocation2 + $0x1860] sm:$0xff]  ;;  %v3047_v57 = vld [vmem:[#allocation2 + $0x1b68] sm:$0xff]  ;;  %v3017_v58 = vld [vmem:[#allocation2 + $0x1a78] sm:$0xff] }
 0x508   :  { %8761 = vmatprep.subr.bf16.mxu0 %v8760_v3  ;;  %v2696_v3 = vld [vmem:[#allocation2 + $0x1070] sm:$0xff]  ;;  %v8668_v61 = vpack.c.bf16 %v2983_v48, %v2951_v47  ;;  %v2982_v53 = vld [vmem:[#allocation2 + $0x1960] sm:$0xff]  ;;  %v3271_v48 = vld [vmem:[#allocation2 + $0x2268] sm:$0xff] }
 0x509   :  { %v3240_v47 = vld [vmem:[#allocation2 + $0x2170] sm:$0xff] }
 0x50a   :  { %8635 = vmatpush1.bf16.msra.mxu1 %v8634_v10  ;;  %v2793_v10 = vld [vmem:[#allocation2 + $0x1378] sm:$0xff] }
 0x50b   :  { %8763 = vmatpush1.bf16.msra.mxu0 %v8762_v11  ;;  %8637 = vmatprep.subr.bf16.mxu1 %v8636_v12  ;;  %v8654_v11 = vpack.c.bf16 %v2726_v1, %v2694_v63  ;;  %v8782_v12 = vpack.c.bf16 %v2728_v5, %v2696_v3  ;;  %v8784_v18 = vpack.c.bf16 %v2793_v10, %v2761_v9  ;;  %v3014_v1 = vld [vmem:[#allocation2 + $0x1a60] sm:$0xff]  ;;  %v3111_v9 = vld [vmem:[#allocation2 + $0x1d68] sm:$0xff]  ;;  %v3081_v10 = vld [vmem:[#allocation2 + $0x1c78] sm:$0xff] }
 0x50c   :  { %8765 = vmatprep.subr.bf16.mxu0 %v8764_v20  ;;  %v2760_v20 = vld [vmem:[#allocation2 + $0x1270] sm:$0xff]  ;;  %v8672_v63 = vpack.c.bf16 %v3047_v57, %v3015_v56  ;;  %v3046_v3 = vld [vmem:[#allocation2 + $0x1b60] sm:$0xff]  ;;  %v3335_v56 = vld [vmem:[#allocation2 + $0x2468] sm:$0xff] }
 0x50d   :  { %v3367_v57 = vld [vmem:[#allocation2 + $0x2568] sm:$0xff] }
 0x50e   :  { %8639 = vmatpush1.bf16.msra.mxu1 %v8638_v24  ;;  %v2857_v24 = vld [vmem:[#allocation2 + $0x1578] sm:$0xff] }
 0x50f   :  { %8767 = vmatpush1.bf16.msra.mxu0 %v8766_v17  ;;  %8641 = vmatprep.subr.bf16.mxu1 %v8640_v25  ;;  %v8658_v17 = vpack.c.bf16 %v2790_v16, %v2758_v15  ;;  %v8786_v25 = vpack.c.bf16 %v2792_v21, %v2760_v20  ;;  %v8788_v32 = vpack.c.bf16 %v2857_v24, %v2825_v19  ;;  %v3078_v16 = vld [vmem:[#allocation2 + $0x1c60] sm:$0xff]  ;;  %v3175_v19 = vld [vmem:[#allocation2 + $0x1f68] sm:$0xff]  ;;  %v3145_v24 = vld [vmem:[#allocation2 + $0x1e78] sm:$0xff] }
 0x510   :  { %8769 = vmatprep.subr.bf16.mxu0 %v8768_v0  ;;  %v2824_v0 = vld [vmem:[#allocation2 + $0x1470] sm:$0xff]  ;;  %v8676_v15 = vpack.c.bf16 %v3111_v9, %v3079_v7  ;;  %v3110_v20 = vld [vmem:[#allocation2 + $0x1d60] sm:$0xff]  ;;  %v3399_v9 = vld [vmem:[#allocation2 + $0x2668] sm:$0xff] }
 0x511   :  { %v3368_v7 = vld [vmem:[#allocation2 + $0x2570] sm:$0xff] }
 0x512   :  { %8643 = vmatpush1.bf16.msra.mxu1 %v8642_v44  ;;  %v2921_v44 = vld [vmem:[#allocation2 + $0x1778] sm:$0xff] }
 0x513   :  { %8771 = vmatpush1.bf16.msra.mxu0 %v8770_v39  ;;  %8645 = vmatprep.subr.bf16.mxu1 %v8644_v38  ;;  %v8662_v39 = vpack.c.bf16 %v2854_v30, %v2822_v28  ;;  %v8790_v38 = vpack.c.bf16 %v2856_v33, %v2824_v0  ;;  %v8792_v31 = vpack.c.bf16 %v2921_v44, %v2889_v37  ;;  %v3142_v30 = vld [vmem:[#allocation2 + $0x1e60] sm:$0xff]  ;;  %v3239_v37 = vld [vmem:[#allocation2 + $0x2168] sm:$0xff]  ;;  %v3209_v44 = vld [vmem:[#allocation2 + $0x2078] sm:$0xff] }
 0x514   :  { %8773 = vmatprep.subr.bf16.mxu0 %v8772_v43  ;;  %v2888_v43 = vld [vmem:[#allocation2 + $0x1670] sm:$0xff]  ;;  %v8680_v28 = vpack.c.bf16 %v3175_v19, %v3143_v23  ;;  %v3174_v0 = vld [vmem:[#allocation2 + $0x1f60] sm:$0xff]  ;;  %v3463_v19 = vld [vmem:[#allocation2 + $0x2868] sm:$0xff] }
 0x515   :  { %v3432_v23 = vld [vmem:[#allocation2 + $0x2770] sm:$0xff] }
 0x516   :  { %8647 = vmatpush1.bf16.msra.mxu1 %v8646_v50  ;;  %v2985_v50 = vld [vmem:[#allocation2 + $0x1978] sm:$0xff] }
 0x517   :  { %8775 = vmatpush1.bf16.msra.mxu0 %v8774_v51  ;;  %8649 = vmatprep.subr.bf16.mxu1 %v8648_v60  ;;  %v8666_v51 = vpack.c.bf16 %v2918_v42, %v2886_v41  ;;  %v8794_v60 = vpack.c.bf16 %v2920_v45, %v2888_v43  ;;  %v8796_v34 = vpack.c.bf16 %v2985_v50, %v2953_v49  ;;  %v3206_v42 = vld [vmem:[#allocation2 + $0x2060] sm:$0xff]  ;;  %v3208_v45 = vld [vmem:[#allocation2 + $0x2070] sm:$0xff]  ;;  %v3303_v49 = vld [vmem:[#allocation2 + $0x2368] sm:$0xff] }
 0x518   :  { %8777 = vmatprep.subr.bf16.mxu0 %v8776_v55  ;;  %v2952_v55 = vld [vmem:[#allocation2 + $0x1870] sm:$0xff]  ;;  %v8684_v41 = vpack.c.bf16 %v3239_v37, %v3207_v36  ;;  %v3238_v43 = vld [vmem:[#allocation2 + $0x2160] sm:$0xff]  ;;  %v3527_v37 = vld [vmem:[#allocation2 + $0x2a68] sm:$0xff] }
 0x519   :  { %v8686_v50 = vpack.c.bf16 %v3238_v43, %v3206_v42  ;;  %v3496_v36 = vld [vmem:[#allocation2 + $0x2970] sm:$0xff]  ;;  %v3526_v43 = vld [vmem:[#allocation2 + $0x2a60] sm:$0xff] }
 0x51a   :  { %8651 = vmatpush1.bf16.msra.mxu1 %v8650_v46  ;;  %v3049_v46 = vld [vmem:[#allocation2 + $0x1b78] sm:$0xff] }
 0x51b   :  { %8779 = vmatpush1.bf16.msra.mxu0 %v8778_v59  ;;  %8653 = vmatprep.subr.bf16.mxu1 %v8652_v62  ;;  %v8670_v59 = vpack.c.bf16 %v2982_v53, %v2950_v52  ;;  %v8798_v62 = vpack.c.bf16 %v2984_v54, %v2952_v55  ;;  %v8800_v5 = vpack.c.bf16 %v3049_v46, %v3017_v58  ;;  %v3270_v52 = vld [vmem:[#allocation2 + $0x2260] sm:$0xff]  ;;  %v3272_v55 = vld [vmem:[#allocation2 + $0x2270] sm:$0xff]  ;;  %v3337_v46 = vld [vmem:[#allocation2 + $0x2478] sm:$0xff] }
 0x51c   :  { %8781 = vmatprep.subr.bf16.mxu0 %v8780_v4  ;;  %v3016_v4 = vld [vmem:[#allocation2 + $0x1a70] sm:$0xff]  ;;  %v3302_v53 = vld [vmem:[#allocation2 + $0x2360] sm:$0xff] }
 0x51d   :  { %v3304_v54 = vld [vmem:[#allocation2 + $0x2370] sm:$0xff] }
 0x51e   :  { %8655 = vmatpush1.bf16.msra.mxu1 %v8654_v11  ;;  %v3113_v11 = vld [vmem:[#allocation2 + $0x1d78] sm:$0xff] }
 0x51f   :  { %8783 = vmatpush1.bf16.msra.mxu0 %v8782_v12  ;;  %8657 = vmatprep.subr.bf16.mxu1 %v8656_v14  ;;  %v8674_v12 = vpack.c.bf16 %v3046_v3, %v3014_v1  ;;  %v8802_v14 = vpack.c.bf16 %v3048_v6, %v3016_v4  ;;  %v8804_v21 = vpack.c.bf16 %v3113_v11, %v3081_v10  ;;  %v3334_v3 = vld [vmem:[#allocation2 + $0x2460] sm:$0xff]  ;;  %v3431_v10 = vld [vmem:[#allocation2 + $0x2768] sm:$0xff]  ;;  %v3401_v11 = vld [vmem:[#allocation2 + $0x2678] sm:$0xff] }
 0x520   :  { %8785 = vmatprep.subr.bf16.mxu0 %v8784_v18  ;;  %v3080_v18 = vld [vmem:[#allocation2 + $0x1c70] sm:$0xff]  ;;  %v8692_v1 = vpack.c.bf16 %v3367_v57, %v3335_v56  ;;  %v3366_v4 = vld [vmem:[#allocation2 + $0x2560] sm:$0xff] }
 0x522   :  { %8659 = vmatpush1.bf16.msra.mxu1 %v8658_v17  ;;  %v3177_v17 = vld [vmem:[#allocation2 + $0x1f78] sm:$0xff] }
 0x523   :  { %8787 = vmatpush1.bf16.msra.mxu0 %v8786_v25  ;;  %8661 = vmatprep.subr.bf16.mxu1 %v8660_v26  ;;  %v8678_v25 = vpack.c.bf16 %v3110_v20, %v3078_v16  ;;  %v8806_v26 = vpack.c.bf16 %v3112_v22, %v3080_v18  ;;  %v8808_v33 = vpack.c.bf16 %v3177_v17, %v3145_v24  ;;  %v3398_v20 = vld [vmem:[#allocation2 + $0x2660] sm:$0xff]  ;;  %v3495_v24 = vld [vmem:[#allocation2 + $0x2968] sm:$0xff]  ;;  %v3465_v17 = vld [vmem:[#allocation2 + $0x2878] sm:$0xff] }
 0x524   :  { %8789 = vmatprep.subr.bf16.mxu0 %v8788_v32  ;;  %v3144_v32 = vld [vmem:[#allocation2 + $0x1e70] sm:$0xff]  ;;  %v8696_v16 = vpack.c.bf16 %v3431_v10, %v3399_v9  ;;  %v3430_v18 = vld [vmem:[#allocation2 + $0x2760] sm:$0xff] }
 0x526   :  { %8663 = vmatpush1.bf16.msra.mxu1 %v8662_v39  ;;  %v3241_v39 = vld [vmem:[#allocation2 + $0x2178] sm:$0xff] }
 0x527   :  { %8791 = vmatpush1.bf16.msra.mxu0 %v8790_v38  ;;  %8665 = vmatprep.subr.bf16.mxu1 %v8664_v40  ;;  %v8682_v38 = vpack.c.bf16 %v3174_v0, %v3142_v30  ;;  %v8810_v40 = vpack.c.bf16 %v3176_v35, %v3144_v32  ;;  %v8700_v30 = vpack.c.bf16 %v3495_v24, %v3463_v19  ;;  %v3462_v0 = vld [vmem:[#allocation2 + $0x2860] sm:$0xff]  ;;  %v3753_v19 = vld [vmem:[#allocation2 + $0x3178] sm:$0xff] }
 0x528   :  { %8793 = vmatprep.subr.bf16.mxu0 %v8792_v31  ;;  %v8812_v31 = vpack.c.bf16 %v3241_v39, %v3209_v44  ;;  %v3494_v32 = vld [vmem:[#allocation2 + $0x2960] sm:$0xff]  ;;  %v3559_v44 = vld [vmem:[#allocation2 + $0x2b68] sm:$0xff]  ;;  %v3529_v39 = vld [vmem:[#allocation2 + $0x2a78] sm:$0xff] }
 0x529   :  { %v8704_v42 = vpack.c.bf16 %v3559_v44, %v3527_v37  ;;  %v9965_v37 = vld [vmem:[%s11971_s0 + $0x8] sm:$0xff] }
 0x52a   :  { %8667 = vmatpush1.bf16.msra.mxu1 %v8666_v51  ;;  %v3273_v51 = vld [vmem:[#allocation2 + $0x2278] sm:$0xff] }
 0x52b   :  { %8795 = vmatpush1.bf16.msra.mxu0 %v8794_v60  ;;  %8669 = vmatprep.subr.bf16.mxu1 %v8668_v61  ;;  %v3305_v60 = vld [vmem:[#allocation2 + $0x2378] sm:$0xff]  ;;  %v8814_v61 = vpack.c.bf16 %v3240_v47, %v3208_v45  ;;  %v3528_v45 = vld [vmem:[#allocation2 + $0x2a70] sm:$0xff] }
 0x52c   :  { %8797 = vmatprep.subr.bf16.mxu0 %v8796_v34  ;;  %v8688_v34 = vpack.c.bf16 %v3303_v49, %v3271_v48  ;;  %v8816_v58 = vpack.c.bf16 %v3305_v60, %v3273_v51  ;;  %v3560_v48 = vld [vmem:[#allocation2 + $0x2b70] sm:$0xff]  ;;  %v3591_v49 = vld [vmem:[#allocation2 + $0x2c68] sm:$0xff]  ;;  %v3593_v51 = vld [vmem:[#allocation2 + $0x2c78] sm:$0xff] }
 0x52d   :  { %v3625_v60 = vld [vmem:[#allocation2 + $0x2d78] sm:$0xff] }
 0x52e   :  { %8671 = vmatpush1.bf16.msra.mxu1 %v8670_v59  ;;  %v3369_v59 = vld [vmem:[#allocation2 + $0x2578] sm:$0xff]  ;;  %v8836_v57 = vpack.c.bf16 %v3625_v60, %v3593_v51 }
 0x52f   :  { %8799 = vmatpush1.bf16.msra.mxu0 %v8798_v62  ;;  %8673 = vmatprep.subr.bf16.mxu1 %v8672_v63  ;;  %v8690_v62 = vpack.c.bf16 %v3302_v53, %v3270_v52  ;;  %v8818_v63 = vpack.c.bf16 %v3304_v54, %v3272_v55  ;;  %v8820_v6 = vpack.c.bf16 %v3369_v59, %v3337_v46  ;;  %v3590_v55 = vld [vmem:[#allocation2 + $0x2c60] sm:$0xff]  ;;  %v3592_v54 = vld [vmem:[#allocation2 + $0x2c70] sm:$0xff]  ;;  %v3655_v46 = vld [vmem:[#allocation2 + $0x2e68] sm:$0xff] }
 0x530   :  { %8801 = vmatprep.subr.bf16.mxu0 %v8800_v5  ;;  %v3336_v5 = vld [vmem:[#allocation2 + $0x2470] sm:$0xff]  ;;  %v8834_v52 = vpack.c.bf16 %v3560_v48, %v3528_v45  ;;  %v3687_v59 = vld [vmem:[#allocation2 + $0x2f68] sm:$0xff]  ;;  %v3849_v51 = vld [vmem:[#allocation2 + $0x3478] sm:$0xff] }
 0x531   :  { %v8712_v10 = vpack.c.bf16 %v3687_v59, %v3655_v46  ;;  %v3784_v45 = vld [vmem:[#allocation2 + $0x3270] sm:$0xff]  ;;  %v3881_v60 = vld [vmem:[#allocation2 + $0x3578] sm:$0xff]  ;;  %v3943_v46 = vld [vmem:[#allocation2 + $0x3768] sm:$0xff] }
 0x532   :  { %8675 = vmatpush1.bf16.msra.mxu1 %v8674_v12  ;;  %v3433_v12 = vld [vmem:[#allocation2 + $0x2778] sm:$0xff]  ;;  %v3816_v48 = vld [vmem:[#allocation2 + $0x3370] sm:$0xff] }
 0x533   :  { %8803 = vmatpush1.bf16.msra.mxu0 %v8802_v14  ;;  %8677 = vmatprep.subr.bf16.mxu1 %v8676_v15  ;;  %v8694_v14 = vpack.c.bf16 %v3366_v4, %v3334_v3  ;;  %v8822_v15 = vpack.c.bf16 %v3368_v7, %v3336_v5  ;;  %v8824_v22 = vpack.c.bf16 %v3433_v12, %v3401_v11  ;;  %v3689_v3 = vld [vmem:[#allocation2 + $0x2f78] sm:$0xff]  ;;  %v3654_v11 = vld [vmem:[#allocation2 + $0x2e60] sm:$0xff] }
 0x534   :  { %8805 = vmatprep.subr.bf16.mxu0 %v8804_v21  ;;  %v3400_v21 = vld [vmem:[#allocation2 + $0x2670] sm:$0xff]  ;;  %v3686_v12 = vld [vmem:[#allocation2 + $0x2f60] sm:$0xff]  ;;  %v3913_v59 = vld [vmem:[#allocation2 + $0x3678] sm:$0xff] }
 0x535   :  { %v8714_v24 = vpack.c.bf16 %v3686_v12, %v3654_v11  ;;  %v4007_v11 = vld [vmem:[#allocation2 + $0x3968] sm:$0xff]  ;;  %v3977_v12 = vld [vmem:[#allocation2 + $0x3878] sm:$0xff] }
 0x536   :  { %8679 = vmatpush1.bf16.msra.mxu1 %v8678_v25  ;;  %v3497_v25 = vld [vmem:[#allocation2 + $0x2978] sm:$0xff] }
 0x537   :  { %8807 = vmatpush1.bf16.msra.mxu0 %v8806_v26  ;;  %8681 = vmatprep.subr.bf16.mxu1 %v8680_v28  ;;  %v8698_v26 = vpack.c.bf16 %v3430_v18, %v3398_v20  ;;  %v8826_v28 = vpack.c.bf16 %v3432_v23, %v3400_v21  ;;  %v8828_v35 = vpack.c.bf16 %v3497_v25, %v3465_v17  ;;  %v3688_v20 = vld [vmem:[#allocation2 + $0x2f70] sm:$0xff]  ;;  %v3719_v18 = vld [vmem:[#allocation2 + $0x3068] sm:$0xff]  ;;  %v3721_v23 = vld [vmem:[#allocation2 + $0x3078] sm:$0xff] }
 0x538   :  { %8809 = vmatprep.subr.bf16.mxu0 %v8808_v33  ;;  %v3464_v33 = vld [vmem:[#allocation2 + $0x2870] sm:$0xff]  ;;  %v3751_v21 = vld [vmem:[#allocation2 + $0x3168] sm:$0xff] }
 0x53a   :  { %8683 = vmatpush1.bf16.msra.mxu1 %v8682_v38  ;;  %v3561_v38 = vld [vmem:[#allocation2 + $0x2b78] sm:$0xff] }
 0x53b   :  { %8811 = vmatpush1.bf16.msra.mxu0 %v8810_v40  ;;  %8685 = vmatprep.subr.bf16.mxu1 %v8684_v41  ;;  %v8702_v40 = vpack.c.bf16 %v3494_v32, %v3462_v0  ;;  %v8830_v41 = vpack.c.bf16 %v3496_v36, %v3464_v33  ;;  %v8832_v47 = vpack.c.bf16 %v3561_v38, %v3529_v39  ;;  %v3720_v0 = vld [vmem:[#allocation2 + $0x3070] sm:$0xff]  ;;  %v3815_v36 = vld [vmem:[#allocation2 + $0x3368] sm:$0xff]  ;;  %v3785_v39 = vld [vmem:[#allocation2 + $0x3278] sm:$0xff] }
 0x53c   :  { %8813 = vmatprep.subr.bf16.mxu0 %v8812_v31  ;;  %v3558_v31 = vld [vmem:[#allocation2 + $0x2b60] sm:$0xff]  ;;  %v8844_v32 = vpack.c.bf16 %v3753_v19, %v3721_v23  ;;  %v3752_v33 = vld [vmem:[#allocation2 + $0x3170] sm:$0xff]  ;;  %v3817_v38 = vld [vmem:[#allocation2 + $0x3378] sm:$0xff] }
 0x53d   :  { %5135 = vmatmul.mubr.f32.vlgmr.msra.gmra.mrb[26].mxu1 %v11846_v8  ;;  %v4008_v19 = vld [vmem:[#allocation2 + $0x3970] sm:$0xff] }
 0x53e   :  { %5277 = vmatmul.mubr.f32.vlgmr.msra.gmra.mrb[24].mxu0 %v11846_v8  ;;  %8687 = vmatpush1.bf16.msra.mxu1 %v8686_v50  ;;  %v3623_v50 = vld [vmem:[#allocation2 + $0x2d68] sm:$0xff] }
 0x53f   :  { %5205 = vmatprep.mubr.f32.mxu1 %v11852_v29  ;;  %8815 = vmatpush1.bf16.msra.mxu0 %v8814_v61  ;;  %v8706_v61 = vpack.c.bf16 %v3558_v31, %v3526_v43  ;;  %v8708_v53 = vpack.c.bf16 %v3623_v50, %v3591_v49  ;;  %v3782_v43 = vld [vmem:[#allocation2 + $0x3260] sm:$0xff]  ;;  %v3847_v49 = vld [vmem:[#allocation2 + $0x3468] sm:$0xff] }
 0x540   :  { %5347 = vmatprep.mubr.f32.mxu0 %v11852_v29  ;;  %8689 = vmatprep.subr.bf16.mxu1 %v8688_v34  ;;  %v3622_v34 = vld [vmem:[#allocation2 + $0x2d60] sm:$0xff]  ;;  %v3879_v50 = vld [vmem:[#allocation2 + $0x3568] sm:$0xff] }
 0x541   :  { %8817 = vmatprep.subr.bf16.mxu0 %v8816_v58  ;;  %v3624_v58 = vld [vmem:[#allocation2 + $0x2d70] sm:$0xff]  ;;  %v3814_v31 = vld [vmem:[#allocation2 + $0x3360] sm:$0xff] }
 0x542   :  { %8691 = vmatpush1.bf16.msra.mxu1 %v8690_v62  ;;  %v8838_v9 = vpack.c.bf16 %v3624_v58, %v3592_v54  ;;  %v3848_v54 = vld [vmem:[#allocation2 + $0x3470] sm:$0xff]  ;;  %v3911_v58 = vld [vmem:[#allocation2 + $0x3668] sm:$0xff] }
 0x543   :  { %8819 = vmatpush1.bf16.msra.mxu0 %v8818_v63  ;;  %8693 = vmatprep.subr.bf16.mxu1 %v8692_v1  ;;  %v3657_v1 = vld [vmem:[#allocation2 + $0x2e78] sm:$0xff] }
 0x544   :  { %8821 = vmatprep.subr.bf16.mxu0 %v8820_v6  ;;  %v8710_v6 = vpack.c.bf16 %v3622_v34, %v3590_v55  ;;  %v3846_v55 = vld [vmem:[#allocation2 + $0x3460] sm:$0xff] }
 0x545   :  { %v3878_v34 = vld [vmem:[#allocation2 + $0x3560] sm:$0xff] }
 0x546   :  { %8695 = vmatpush1.bf16.msra.mxu1 %v8694_v14  ;;  %v3656_v14 = vld [vmem:[#allocation2 + $0x2e70] sm:$0xff] }
 0x547   :  { %8823 = vmatpush1.bf16.msra.mxu0 %v8822_v15  ;;  %8697 = vmatprep.subr.bf16.mxu1 %v8696_v16  ;;  %v8840_v16 = vpack.c.bf16 %v3689_v3, %v3657_v1  ;;  %v8842_v25 = vpack.c.bf16 %v3688_v20, %v3656_v14  ;;  %v8728_v3 = vpack.c.bf16 %v3943_v46, %v3911_v58  ;;  %v4009_v14 = vld [vmem:[#allocation2 + $0x3978] sm:$0xff]  ;;  %v4200_v58 = vld [vmem:[#allocation2 + $0x3f70] sm:$0xff]  ;;  %v2187_v46 = vld [vmem:[#allocation2 + $0x88] sm:$0xff] }
 0x548   :  { %8825 = vmatprep.subr.bf16.mxu0 %v8824_v22  ;;  %v8860_v23 = vpack.c.bf16 %v4009_v14, %v3977_v12  ;;  %v2283_v12 = vld [vmem:[#allocation2 + $0x388] sm:$0xff] }
 0x54a   :  { %8699 = vmatpush1.bf16.msra.mxu1 %v8698_v26  ;;  %v8716_v26 = vpack.c.bf16 %v3751_v21, %v3719_v18  ;;  %v3974_v18 = vld [vmem:[#allocation2 + $0x3860] sm:$0xff] }
 0x54b   :  { %8827 = vmatpush1.bf16.msra.mxu0 %v8826_v28  ;;  %8701 = vmatprep.subr.bf16.mxu1 %v8700_v30  ;;  %v3718_v28 = vld [vmem:[#allocation2 + $0x3060] sm:$0xff] }
 0x54c   :  { %8829 = vmatprep.subr.bf16.mxu0 %v8828_v35  ;;  %v3750_v30 = vld [vmem:[#allocation2 + $0x3160] sm:$0xff]  ;;  %v3783_v35 = vld [vmem:[#allocation2 + $0x3268] sm:$0xff] }
 0x54d   :  { %v4006_v21 = vld [vmem:[#allocation2 + $0x3960] sm:$0xff] }
 0x54e   :  { %8703 = vmatpush1.bf16.msra.mxu1 %v8702_v40  ;;  %v8718_v40 = vpack.c.bf16 %v3750_v30, %v3718_v28  ;;  %v8734_v28 = vpack.c.bf16 %v4006_v21, %v3974_v18  ;;  %v2250_v18 = vld [vmem:[#allocation2 + $0x280] sm:$0xff] }
 0x54f   :  { %8831 = vmatpush1.bf16.msra.mxu0 %v8830_v41  ;;  %8705 = vmatprep.subr.bf16.mxu1 %v8704_v42  ;;  %v8846_v41 = vpack.c.bf16 %v3752_v33, %v3720_v0  ;;  %v8720_v42 = vpack.c.bf16 %v3815_v36, %v3783_v35  ;;  %v4070_v33 = vld [vmem:[#allocation2 + $0x3b60] sm:$0xff]  ;;  %v4040_v35 = vld [vmem:[#allocation2 + $0x3a70] sm:$0xff] }
 0x550   :  { %v4639_v56 = vpop.f32.mrb[22].mxu1  ;;  %8833 = vmatprep.subr.bf16.mxu0 %v8832_v47  ;;  %v8848_v47 = vpack.c.bf16 %v3817_v38, %v3785_v39  ;;  %v4135_v39 = vld [vmem:[#allocation2 + $0x3d68] sm:$0xff]  ;;  %v4105_v38 = vld [vmem:[#allocation2 + $0x3c78] sm:$0xff]  ;;  %v2282_v21 = vld [vmem:[#allocation2 + $0x380] sm:$0xff] }
 0x551   :  { %v4781_v62 = vpop.f32.mrb[20].mxu0  ;;  %v4641_v63 = vpop.f32.mrb[23].mxu1 }
 0x552   :  { %v6539_v4 = vcombine.low %v4639_v56, %v4641_v63  ;;  %v4783_v5 = vpop.f32.mrb[21].mxu0  ;;  %8707 = vmatpush1.bf16.msra.mxu1 %v8706_v61  ;;  %v8722_v61 = vpack.c.bf16 %v3814_v31, %v3782_v43  ;;  %v8852_v56 = vpack.c.bf16 %v3881_v60, %v3849_v51  ;;  %v8726_v63 = vpack.c.bf16 %v3878_v34, %v3846_v55  ;;  %v4102_v31 = vld [vmem:[#allocation2 + $0x3c60] sm:$0xff]  ;;  %v4199_v51 = vld [vmem:[#allocation2 + $0x3f68] sm:$0xff]  ;;  %v4169_v60 = vld [vmem:[#allocation2 + $0x3e78] sm:$0xff] }
 0x553   :  { %v6540_v7 = vcombine.low %v4781_v62, %v4783_v5  ;;  %8835 = vmatpush1.bf16.msra.mxu0 %v8834_v52  ;;  %8709 = vmatprep.subr.bf16.mxu1 %v8708_v53  ;;  %v8850_v52 = vpack.c.bf16 %v3816_v48, %v3784_v45  ;;  %v8724_v53 = vpack.c.bf16 %v3879_v50, %v3847_v49  ;;  %v3945_v62 = vld [vmem:[#allocation2 + $0x3778] sm:$0xff]  ;;  %v3942_v5 = vld [vmem:[#allocation2 + $0x3760] sm:$0xff]  ;;  %v4136_v49 = vld [vmem:[#allocation2 + $0x3d70] sm:$0xff] }
 0x554   :  { %v6547_v15 = vrot.slane %v6539_v4, %v10238_v13  ;;  %8837 = vmatprep.subr.bf16.mxu0 %v8836_v57  ;;  %v3880_v57 = vld [vmem:[#allocation2 + $0x3570] sm:$0xff]  ;;  %v3910_v4 = vld [vmem:[#allocation2 + $0x3660] sm:$0xff]  ;;  %v4167_v50 = vld [vmem:[#allocation2 + $0x3e68] sm:$0xff] }
 0x555   :  { %v6554_v22 = vrot.slane %v6540_v7, %v10238_v13  ;;  %v8854_v1 = vpack.c.bf16 %v3880_v57, %v3848_v54  ;;  %v8856_v7 = vpack.c.bf16 %v3945_v62, %v3913_v59  ;;  %v4134_v45 = vld [vmem:[#allocation2 + $0x3d60] sm:$0xff]  ;;  %v8744_v55 = vpack.c.bf16 %v4199_v51, %v4167_v50  ;;  %v2219_v59 = vld [vmem:[#allocation2 + $0x188] sm:$0xff]  ;;  %v2189_v62 = vld [vmem:[#allocation2 + $0x98] sm:$0xff] }
 0x556   :  { %8711 = vmatpush1.bf16.msra.mxu1 %v8710_v6  ;;  %v3912_v6 = vld [vmem:[#allocation2 + $0x3670] sm:$0xff]  ;;  %v4166_v34 = vld [vmem:[#allocation2 + $0x3e60] sm:$0xff]  ;;  %v2443_v51 = vld [vmem:[#allocation2 + $0x888] sm:$0xff] }
 0x557   :  { %v6555_v17 = vcombine.low %v6547_v15, %v6554_v22  ;;  %8839 = vmatpush1.bf16.msra.mxu0 %v8838_v9  ;;  %8713 = vmatprep.subr.bf16.mxu1 %v8712_v10  ;;  %v3944_v9 = vld [vmem:[#allocation2 + $0x3770] sm:$0xff]  ;;  %v3975_v10 = vld [vmem:[#allocation2 + $0x3868] sm:$0xff]  ;;  %v8730_v15 = vpack.c.bf16 %v3942_v5, %v3910_v4  ;;  %v4198_v54 = vld [vmem:[#allocation2 + $0x3f60] sm:$0xff]  ;;  %v8876_v4 = vpack.c.bf16 %v2219_v59, %v2187_v46 }
 0x558   :  { %8841 = vmatprep.subr.bf16.mxu0 %v8840_v16  ;;  %v8858_v16 = vpack.c.bf16 %v3944_v9, %v3912_v6  ;;  %v8732_v20 = vpack.c.bf16 %v4007_v11, %v3975_v10  ;;  %v3976_v22 = vld [vmem:[#allocation2 + $0x3870] sm:$0xff]  ;;  %v2186_v5 = vld [vmem:[#allocation2 + $0x80] sm:$0xff]  ;;  %v2251_v11 = vld [vmem:[#allocation2 + $0x288] sm:$0xff] }
 0x559   :  { %v6667_v44 = vmul.f32 %v9965_v37, %v6555_v17  ;;  %v4071_v17 = vld [vmem:[#allocation2 + $0x3b68] sm:$0xff]  ;;  %v8862_v30 = vpack.c.bf16 %v4008_v19, %v3976_v22  ;;  %v4072_v37 = vld [vmem:[#allocation2 + $0x3b70] sm:$0xff]  ;;  %v2218_v6 = vld [vmem:[#allocation2 + $0x180] sm:$0xff] }
 0x55a   :  { %8715 = vmatpush1.bf16.msra.mxu1 %v8714_v24  ;;  %v4039_v24 = vld [vmem:[#allocation2 + $0x3a68] sm:$0xff]  ;;  %v2188_v9 = vld [vmem:[#allocation2 + $0x90] sm:$0xff]  ;;  %v8878_v14 = vpack.c.bf16 %v2218_v6, %v2186_v5  ;;  %v2506_v6 = vld [vmem:[#allocation2 + $0xa80] sm:$0xff] }
 0x55b   :  { %6675 = vst [vmem:[#allocation5 + $0x8] sm:$0xff] %v6667_v44  ;;  %8843 = vmatpush1.bf16.msra.mxu0 %v8842_v25  ;;  %8717 = vmatprep.subr.bf16.mxu1 %v8716_v26  ;;  %v4041_v25 = vld [vmem:[#allocation2 + $0x3a78] sm:$0xff]  ;;  %v8736_v0 = vpack.c.bf16 %v4071_v17, %v4039_v24  ;;  %v4103_v44 = vld [vmem:[#allocation2 + $0x3c68] sm:$0xff]  ;;  %v2220_v10 = vld [vmem:[#allocation2 + $0x190] sm:$0xff] }
 0x55c   :  { %8845 = vmatprep.subr.bf16.mxu0 %v8844_v32  ;;  %v4073_v26 = vld [vmem:[#allocation2 + $0x3b78] sm:$0xff]  ;;  %v4038_v32 = vld [vmem:[#allocation2 + $0x3a60] sm:$0xff]  ;;  %v8740_v43 = vpack.c.bf16 %v4135_v39, %v4103_v44  ;;  %v2252_v22 = vld [vmem:[#allocation2 + $0x290] sm:$0xff] }
 0x55d   :  { %v8864_v36 = vpack.c.bf16 %v4073_v26, %v4041_v25  ;;  %v2284_v19 = vld [vmem:[#allocation2 + $0x390] sm:$0xff]  ;;  %v2315_v24 = vld [vmem:[#allocation2 + $0x488] sm:$0xff]  ;;  %v2317_v26 = vld [vmem:[#allocation2 + $0x498] sm:$0xff] }
 0x55e   :  { %8719 = vmatpush1.bf16.msra.mxu1 %v8718_v40  ;;  %v4137_v40 = vld [vmem:[#allocation2 + $0x3d78] sm:$0xff]  ;;  %v2347_v17 = vld [vmem:[#allocation2 + $0x588] sm:$0xff]  ;;  %v2348_v44 = vld [vmem:[#allocation2 + $0x590] sm:$0xff] }
 0x55f   :  { %8847 = vmatpush1.bf16.msra.mxu0 %v8846_v41  ;;  %8721 = vmatprep.subr.bf16.mxu1 %v8720_v42  ;;  %v8738_v41 = vpack.c.bf16 %v4070_v33, %v4038_v32  ;;  %v8866_v42 = vpack.c.bf16 %v4072_v37, %v4040_v35  ;;  %v8868_v48 = vpack.c.bf16 %v4137_v40, %v4105_v38  ;;  %v2314_v33 = vld [vmem:[#allocation2 + $0x480] sm:$0xff]  ;;  %v2379_v39 = vld [vmem:[#allocation2 + $0x688] sm:$0xff]  ;;  %v2381_v40 = vld [vmem:[#allocation2 + $0x698] sm:$0xff] }
 0x560   :  { %8849 = vmatprep.subr.bf16.mxu0 %v8848_v47  ;;  %v4104_v47 = vld [vmem:[#allocation2 + $0x3c70] sm:$0xff]  ;;  %v8884_v32 = vpack.c.bf16 %v2347_v17, %v2315_v24  ;;  %v2346_v35 = vld [vmem:[#allocation2 + $0x580] sm:$0xff]  ;;  %v2411_v38 = vld [vmem:[#allocation2 + $0x788] sm:$0xff] }
 0x561   :  { %v2412_v50 = vld [vmem:[#allocation2 + $0x790] sm:$0xff]  ;;  %v2507_v59 = vld [vmem:[#allocation2 + $0xa88] sm:$0xff] }
 0x562   :  { %8723 = vmatpush1.bf16.msra.mxu1 %v8722_v61  ;;  %v4201_v61 = vld [vmem:[#allocation2 + $0x3f78] sm:$0xff]  ;;  %v2476_v46 = vld [vmem:[#allocation2 + $0x990] sm:$0xff] }
 0x563   :  { %8851 = vmatpush1.bf16.msra.mxu0 %v8850_v52  ;;  %8725 = vmatprep.subr.bf16.mxu1 %v8724_v53  ;;  %v8742_v52 = vpack.c.bf16 %v4134_v45, %v4102_v31  ;;  %v8870_v53 = vpack.c.bf16 %v4136_v49, %v4104_v47  ;;  %v8872_v57 = vpack.c.bf16 %v4201_v61, %v4169_v60  ;;  %v2378_v45 = vld [vmem:[#allocation2 + $0x680] sm:$0xff]  ;;  %v2475_v60 = vld [vmem:[#allocation2 + $0x988] sm:$0xff]  ;;  %v2445_v61 = vld [vmem:[#allocation2 + $0x898] sm:$0xff] }
 0x564   :  { %8853 = vmatprep.subr.bf16.mxu0 %v8852_v56  ;;  %v4168_v56 = vld [vmem:[#allocation2 + $0x3e70] sm:$0xff]  ;;  %v8888_v31 = vpack.c.bf16 %v2411_v38, %v2379_v39  ;;  %v2410_v47 = vld [vmem:[#allocation2 + $0x780] sm:$0xff]  ;;  %v2699_v38 = vld [vmem:[#allocation2 + $0x1088] sm:$0xff] }
 0x565   :  { %v2604_v17 = vld [vmem:[#allocation2 + $0xd90] sm:$0xff] }
 0x566   :  { %8727 = vmatpush1.bf16.msra.mxu1 %v8726_v63  ;;  %v2221_v63 = vld [vmem:[#allocation2 + $0x198] sm:$0xff]  ;;  %v2668_v39 = vld [vmem:[#allocation2 + $0xf90] sm:$0xff] }
 0x567   :  { %8855 = vmatpush1.bf16.msra.mxu0 %v8854_v1  ;;  %8729 = vmatprep.subr.bf16.mxu1 %v8728_v3  ;;  %v8746_v1 = vpack.c.bf16 %v4198_v54, %v4166_v34  ;;  %v8874_v3 = vpack.c.bf16 %v4200_v58, %v4168_v56  ;;  %v8892_v34 = vpack.c.bf16 %v2475_v60, %v2443_v51  ;;  %v2442_v54 = vld [vmem:[#allocation2 + $0x880] sm:$0xff]  ;;  %v2732_v51 = vld [vmem:[#allocation2 + $0x1190] sm:$0xff]  ;;  %v2763_v60 = vld [vmem:[#allocation2 + $0x1288] sm:$0xff] }
 0x568   :  { %8857 = vmatprep.subr.bf16.mxu0 %v8856_v7  ;;  %v9004_v7 = vpack.c.bf16 %v2221_v63, %v2189_v62  ;;  %v2474_v56 = vld [vmem:[#allocation2 + $0x980] sm:$0xff]  ;;  %v2539_v62 = vld [vmem:[#allocation2 + $0xb88] sm:$0xff]  ;;  %v2509_v63 = vld [vmem:[#allocation2 + $0xa98] sm:$0xff] }
 0x569   :  { %v8896_v5 = vpack.c.bf16 %v2539_v62, %v2507_v59  ;;  %v2796_v59 = vld [vmem:[#allocation2 + $0x1390] sm:$0xff]  ;;  %v2827_v62 = vld [vmem:[#allocation2 + $0x1488] sm:$0xff] }
 0x56a   :  { %8731 = vmatpush1.bf16.msra.mxu1 %v8730_v15  ;;  %v2253_v15 = vld [vmem:[#allocation2 + $0x298] sm:$0xff] }
 0x56b   :  { %8859 = vmatpush1.bf16.msra.mxu0 %v8858_v16  ;;  %8733 = vmatprep.subr.bf16.mxu1 %v8732_v20  ;;  %v2285_v16 = vld [vmem:[#allocation2 + $0x398] sm:$0xff]  ;;  %v9006_v20 = vpack.c.bf16 %v2220_v10, %v2188_v9  ;;  %v2508_v9 = vld [vmem:[#allocation2 + $0xa90] sm:$0xff] }
 0x56c   :  { %8861 = vmatprep.subr.bf16.mxu0 %v8860_v23  ;;  %v8880_v23 = vpack.c.bf16 %v2283_v12, %v2251_v11  ;;  %v9008_v25 = vpack.c.bf16 %v2285_v16, %v2253_v15  ;;  %v2540_v11 = vld [vmem:[#allocation2 + $0xb90] sm:$0xff]  ;;  %v2571_v12 = vld [vmem:[#allocation2 + $0xc88] sm:$0xff]  ;;  %v2573_v15 = vld [vmem:[#allocation2 + $0xc98] sm:$0xff] }
 0x56d   :  { %v2605_v16 = vld [vmem:[#allocation2 + $0xd98] sm:$0xff] }
 0x56e   :  { %8735 = vmatpush1.bf16.msra.mxu1 %v8734_v28  ;;  %v2349_v28 = vld [vmem:[#allocation2 + $0x598] sm:$0xff]  ;;  %v9028_v24 = vpack.c.bf16 %v2605_v16, %v2573_v15  ;;  %v2923_v15 = vld [vmem:[#allocation2 + $0x1788] sm:$0xff] }
 0x56f   :  { %8863 = vmatpush1.bf16.msra.mxu0 %v8862_v30  ;;  %8737 = vmatprep.subr.bf16.mxu1 %v8736_v0  ;;  %v8882_v30 = vpack.c.bf16 %v2282_v21, %v2250_v18  ;;  %v9010_v0 = vpack.c.bf16 %v2284_v19, %v2252_v22  ;;  %v9012_v37 = vpack.c.bf16 %v2349_v28, %v2317_v26  ;;  %v2570_v22 = vld [vmem:[#allocation2 + $0xc80] sm:$0xff]  ;;  %v2572_v19 = vld [vmem:[#allocation2 + $0xc90] sm:$0xff]  ;;  %v2667_v26 = vld [vmem:[#allocation2 + $0xf88] sm:$0xff] }
 0x570   :  { %8865 = vmatprep.subr.bf16.mxu0 %v8864_v36  ;;  %v2316_v36 = vld [vmem:[#allocation2 + $0x490] sm:$0xff]  ;;  %v9026_v18 = vpack.c.bf16 %v2540_v11, %v2508_v9  ;;  %v2637_v28 = vld [vmem:[#allocation2 + $0xe98] sm:$0xff]  ;;  %v2858_v9 = vld [vmem:[#allocation2 + $0x1580] sm:$0xff] }
 0x571   :  { %v2893_v16 = vld [vmem:[#allocation2 + $0x1698] sm:$0xff] }
 0x572   :  { %8739 = vmatpush1.bf16.msra.mxu1 %v8738_v41  ;;  %v2413_v41 = vld [vmem:[#allocation2 + $0x798] sm:$0xff] }
 0x573   :  { %8867 = vmatpush1.bf16.msra.mxu0 %v8866_v42  ;;  %8741 = vmatprep.subr.bf16.mxu1 %v8740_v43  ;;  %v8886_v42 = vpack.c.bf16 %v2346_v35, %v2314_v33  ;;  %v9014_v43 = vpack.c.bf16 %v2348_v44, %v2316_v36  ;;  %v9016_v49 = vpack.c.bf16 %v2413_v41, %v2381_v40  ;;  %v2634_v35 = vld [vmem:[#allocation2 + $0xe80] sm:$0xff]  ;;  %v2731_v40 = vld [vmem:[#allocation2 + $0x1188] sm:$0xff]  ;;  %v2701_v41 = vld [vmem:[#allocation2 + $0x1098] sm:$0xff] }
 0x574   :  { %8869 = vmatprep.subr.bf16.mxu0 %v8868_v48  ;;  %v2380_v48 = vld [vmem:[#allocation2 + $0x690] sm:$0xff]  ;;  %v2666_v36 = vld [vmem:[#allocation2 + $0xf80] sm:$0xff] }
 0x576   :  { %8743 = vmatpush1.bf16.msra.mxu1 %v8742_v52  ;;  %v2477_v52 = vld [vmem:[#allocation2 + $0x998] sm:$0xff] }
 0x577   :  { %8871 = vmatpush1.bf16.msra.mxu0 %v8870_v53  ;;  %8745 = vmatprep.subr.bf16.mxu1 %v8744_v55  ;;  %v8890_v53 = vpack.c.bf16 %v2410_v47, %v2378_v45  ;;  %v9018_v55 = vpack.c.bf16 %v2412_v50, %v2380_v48  ;;  %v9020_v58 = vpack.c.bf16 %v2477_v52, %v2445_v61  ;;  %v2698_v47 = vld [vmem:[#allocation2 + $0x1080] sm:$0xff]  ;;  %v2795_v61 = vld [vmem:[#allocation2 + $0x1388] sm:$0xff]  ;;  %v2765_v52 = vld [vmem:[#allocation2 + $0x1298] sm:$0xff] }
 0x578   :  { %8873 = vmatprep.subr.bf16.mxu0 %v8872_v57  ;;  %v2444_v57 = vld [vmem:[#allocation2 + $0x890] sm:$0xff]  ;;  %v8908_v45 = vpack.c.bf16 %v2731_v40, %v2699_v38  ;;  %v2730_v48 = vld [vmem:[#allocation2 + $0x1180] sm:$0xff]  ;;  %v3019_v40 = vld [vmem:[#allocation2 + $0x1a88] sm:$0xff] }
 0x579   :  { %v2988_v38 = vld [vmem:[#allocation2 + $0x1990] sm:$0xff] }
 0x57a   :  { %8747 = vmatpush1.bf16.msra.mxu1 %v8746_v1  ;;  %v2541_v1 = vld [vmem:[#allocation2 + $0xb98] sm:$0xff] }
 0x57b   :  { %8875 = vmatpush1.bf16.msra.mxu0 %v8874_v3  ;;  %8877 = vmatprep.subr.bf16.mxu1 %v8876_v4  ;;  %v8894_v3 = vpack.c.bf16 %v2474_v56, %v2442_v54  ;;  %v9022_v4 = vpack.c.bf16 %v2476_v46, %v2444_v57  ;;  %v9024_v10 = vpack.c.bf16 %v2541_v1, %v2509_v63  ;;  %v2762_v56 = vld [vmem:[#allocation2 + $0x1280] sm:$0xff]  ;;  %v2859_v63 = vld [vmem:[#allocation2 + $0x1588] sm:$0xff]  ;;  %v2829_v1 = vld [vmem:[#allocation2 + $0x1498] sm:$0xff] }
 0x57c   :  { %9005 = vmatprep.subr.bf16.mxu0 %v9004_v7  ;;  %v2538_v7 = vld [vmem:[#allocation2 + $0xb80] sm:$0xff]  ;;  %v8912_v54 = vpack.c.bf16 %v2795_v61, %v2763_v60  ;;  %v3052_v60 = vld [vmem:[#allocation2 + $0x1b90] sm:$0xff]  ;;  %v3083_v61 = vld [vmem:[#allocation2 + $0x1c88] sm:$0xff] }
 0x57d   :  { %5206 = vmatmul.mubr.f32.vlgmr.msra.gmra.mrb[26].mxu1 %v11859_v27  ;;  %v2794_v57 = vld [vmem:[#allocation2 + $0x1380] sm:$0xff] }
 0x57e   :  { %5348 = vmatmul.mubr.f32.vlgmr.msra.gmra.mrb[24].mxu0 %v11859_v27  ;;  %8879 = vmatpush1.bf16.msra.mxu1 %v8878_v14  ;;  %v2603_v14 = vld [vmem:[#allocation2 + $0xd88] sm:$0xff] }
 0x57f   :  { %5418 = vmatprep.mubr.f32.mxu1 %v11844_v2  ;;  %9007 = vmatpush1.bf16.msra.mxu0 %v9006_v20  ;;  %v8898_v20 = vpack.c.bf16 %v2538_v7, %v2506_v6  ;;  %v8900_v21 = vpack.c.bf16 %v2603_v14, %v2571_v12  ;;  %v8916_v6 = vpack.c.bf16 %v2859_v63, %v2827_v62  ;;  %v2826_v7 = vld [vmem:[#allocation2 + $0x1480] sm:$0xff]  ;;  %v2860_v12 = vld [vmem:[#allocation2 + $0x1590] sm:$0xff]  ;;  %v2891_v14 = vld [vmem:[#allocation2 + $0x1688] sm:$0xff] }
 0x580   :  { %5560 = vmatprep.mubr.f32.mxu0 %v11844_v2  ;;  %8881 = vmatprep.subr.bf16.mxu1 %v8880_v23  ;;  %v2602_v23 = vld [vmem:[#allocation2 + $0xd80] sm:$0xff]  ;;  %v3116_v62 = vld [vmem:[#allocation2 + $0x1d90] sm:$0xff]  ;;  %v3147_v63 = vld [vmem:[#allocation2 + $0x1e88] sm:$0xff] }
 0x581   :  { %9009 = vmatprep.subr.bf16.mxu0 %v9008_v25  ;;  %v2635_v25 = vld [vmem:[#allocation2 + $0xe88] sm:$0xff] }
 0x582   :  { %8883 = vmatpush1.bf16.msra.mxu1 %v8882_v30  ;;  %v2669_v30 = vld [vmem:[#allocation2 + $0xf98] sm:$0xff]  ;;  %v8904_v33 = vpack.c.bf16 %v2667_v26, %v2635_v25  ;;  %v2924_v25 = vld [vmem:[#allocation2 + $0x1790] sm:$0xff]  ;;  %v2955_v26 = vld [vmem:[#allocation2 + $0x1888] sm:$0xff] }
 0x583   :  { %9011 = vmatpush1.bf16.msra.mxu0 %v9010_v0  ;;  %8885 = vmatprep.subr.bf16.mxu1 %v8884_v32  ;;  %v8902_v0 = vpack.c.bf16 %v2602_v23, %v2570_v22  ;;  %v9030_v32 = vpack.c.bf16 %v2604_v17, %v2572_v19  ;;  %v9032_v44 = vpack.c.bf16 %v2669_v30, %v2637_v28  ;;  %v2890_v23 = vld [vmem:[#allocation2 + $0x1680] sm:$0xff]  ;;  %v2987_v28 = vld [vmem:[#allocation2 + $0x1988] sm:$0xff]  ;;  %v2957_v30 = vld [vmem:[#allocation2 + $0x1898] sm:$0xff] }
 0x584   :  { %9013 = vmatprep.subr.bf16.mxu0 %v9012_v37  ;;  %v2636_v37 = vld [vmem:[#allocation2 + $0xe90] sm:$0xff]  ;;  %v8920_v22 = vpack.c.bf16 %v2923_v15, %v2891_v14  ;;  %v2922_v19 = vld [vmem:[#allocation2 + $0x1780] sm:$0xff]  ;;  %v3211_v15 = vld [vmem:[#allocation2 + $0x2088] sm:$0xff] }
 0x585   :  { %v3180_v14 = vld [vmem:[#allocation2 + $0x1f90] sm:$0xff] }
 0x586   :  { %8887 = vmatpush1.bf16.msra.mxu1 %v8886_v42  ;;  %v2733_v42 = vld [vmem:[#allocation2 + $0x1198] sm:$0xff] }
 0x587   :  { %9015 = vmatpush1.bf16.msra.mxu0 %v9014_v43  ;;  %8889 = vmatprep.subr.bf16.mxu1 %v8888_v31  ;;  %v8906_v43 = vpack.c.bf16 %v2666_v36, %v2634_v35  ;;  %v9034_v31 = vpack.c.bf16 %v2668_v39, %v2636_v37  ;;  %v9036_v50 = vpack.c.bf16 %v2733_v42, %v2701_v41  ;;  %v2954_v36 = vld [vmem:[#allocation2 + $0x1880] sm:$0xff]  ;;  %v3051_v41 = vld [vmem:[#allocation2 + $0x1b88] sm:$0xff]  ;;  %v3021_v42 = vld [vmem:[#allocation2 + $0x1a98] sm:$0xff] }
 0x588   :  { %9017 = vmatprep.subr.bf16.mxu0 %v9016_v49  ;;  %v2700_v49 = vld [vmem:[#allocation2 + $0x1090] sm:$0xff]  ;;  %v8924_v35 = vpack.c.bf16 %v2987_v28, %v2955_v26  ;;  %v2986_v37 = vld [vmem:[#allocation2 + $0x1980] sm:$0xff]  ;;  %v3275_v28 = vld [vmem:[#allocation2 + $0x2288] sm:$0xff] }
 0x589   :  { %v3244_v26 = vld [vmem:[#allocation2 + $0x2190] sm:$0xff] }
 0x58a   :  { %8891 = vmatpush1.bf16.msra.mxu1 %v8890_v53  ;;  %v2797_v53 = vld [vmem:[#allocation2 + $0x1398] sm:$0xff] }
 0x58b   :  { %9019 = vmatpush1.bf16.msra.mxu0 %v9018_v55  ;;  %8893 = vmatprep.subr.bf16.mxu1 %v8892_v34  ;;  %v8910_v55 = vpack.c.bf16 %v2730_v48, %v2698_v47  ;;  %v9038_v34 = vpack.c.bf16 %v2732_v51, %v2700_v49  ;;  %v9040_v46 = vpack.c.bf16 %v2797_v53, %v2765_v52  ;;  %v3018_v48 = vld [vmem:[#allocation2 + $0x1a80] sm:$0xff]  ;;  %v3115_v52 = vld [vmem:[#allocation2 + $0x1d88] sm:$0xff]  ;;  %v3085_v53 = vld [vmem:[#allocation2 + $0x1c98] sm:$0xff] }
 0x58c   :  { %9021 = vmatprep.subr.bf16.mxu0 %v9020_v58  ;;  %v2764_v58 = vld [vmem:[#allocation2 + $0x1290] sm:$0xff]  ;;  %v8928_v47 = vpack.c.bf16 %v3051_v41, %v3019_v40  ;;  %v3050_v49 = vld [vmem:[#allocation2 + $0x1b80] sm:$0xff]  ;;  %v3339_v40 = vld [vmem:[#allocation2 + $0x2488] sm:$0xff] }
 0x58d   :  { %v3371_v41 = vld [vmem:[#allocation2 + $0x2588] sm:$0xff] }
 0x58e   :  { %8895 = vmatpush1.bf16.msra.mxu1 %v8894_v3  ;;  %v2861_v3 = vld [vmem:[#allocation2 + $0x1598] sm:$0xff] }
 0x58f   :  { %9023 = vmatpush1.bf16.msra.mxu0 %v9022_v4  ;;  %8897 = vmatprep.subr.bf16.mxu1 %v8896_v5  ;;  %v8914_v4 = vpack.c.bf16 %v2794_v57, %v2762_v56  ;;  %v9042_v5 = vpack.c.bf16 %v2796_v59, %v2764_v58  ;;  %v9044_v11 = vpack.c.bf16 %v2861_v3, %v2829_v1  ;;  %v3082_v57 = vld [vmem:[#allocation2 + $0x1c80] sm:$0xff]  ;;  %v3179_v1 = vld [vmem:[#allocation2 + $0x1f88] sm:$0xff]  ;;  %v3149_v3 = vld [vmem:[#allocation2 + $0x1e98] sm:$0xff] }
 0x590   :  { %9025 = vmatprep.subr.bf16.mxu0 %v9024_v10  ;;  %v2828_v10 = vld [vmem:[#allocation2 + $0x1490] sm:$0xff]  ;;  %v8932_v56 = vpack.c.bf16 %v3115_v52, %v3083_v61  ;;  %v3114_v58 = vld [vmem:[#allocation2 + $0x1d80] sm:$0xff]  ;;  %v3403_v52 = vld [vmem:[#allocation2 + $0x2688] sm:$0xff] }
 0x591   :  { %v3372_v61 = vld [vmem:[#allocation2 + $0x2590] sm:$0xff] }
 0x592   :  { %8899 = vmatpush1.bf16.msra.mxu1 %v8898_v20  ;;  %v2925_v20 = vld [vmem:[#allocation2 + $0x1798] sm:$0xff] }
 0x593   :  { %9027 = vmatpush1.bf16.msra.mxu0 %v9026_v18  ;;  %8901 = vmatprep.subr.bf16.mxu1 %v8900_v21  ;;  %v8918_v18 = vpack.c.bf16 %v2858_v9, %v2826_v7  ;;  %v9046_v21 = vpack.c.bf16 %v2860_v12, %v2828_v10  ;;  %v9048_v17 = vpack.c.bf16 %v2925_v20, %v2893_v16  ;;  %v3146_v9 = vld [vmem:[#allocation2 + $0x1e80] sm:$0xff]  ;;  %v3243_v16 = vld [vmem:[#allocation2 + $0x2188] sm:$0xff]  ;;  %v3213_v20 = vld [vmem:[#allocation2 + $0x2098] sm:$0xff] }
 0x594   :  { %9029 = vmatprep.subr.bf16.mxu0 %v9028_v24  ;;  %v2892_v24 = vld [vmem:[#allocation2 + $0x1690] sm:$0xff]  ;;  %v8936_v7 = vpack.c.bf16 %v3179_v1, %v3147_v63  ;;  %v3178_v10 = vld [vmem:[#allocation2 + $0x1f80] sm:$0xff]  ;;  %v3467_v1 = vld [vmem:[#allocation2 + $0x2888] sm:$0xff] }
 0x595   :  { %v3436_v63 = vld [vmem:[#allocation2 + $0x2790] sm:$0xff] }
 0x596   :  { %8903 = vmatpush1.bf16.msra.mxu1 %v8902_v0  ;;  %v2989_v0 = vld [vmem:[#allocation2 + $0x1998] sm:$0xff] }
 0x597   :  { %9031 = vmatpush1.bf16.msra.mxu0 %v9030_v32  ;;  %8905 = vmatprep.subr.bf16.mxu1 %v8904_v33  ;;  %v8922_v32 = vpack.c.bf16 %v2922_v19, %v2890_v23  ;;  %v9050_v33 = vpack.c.bf16 %v2924_v25, %v2892_v24  ;;  %v9052_v39 = vpack.c.bf16 %v2989_v0, %v2957_v30  ;;  %v3210_v19 = vld [vmem:[#allocation2 + $0x2080] sm:$0xff]  ;;  %v3212_v25 = vld [vmem:[#allocation2 + $0x2090] sm:$0xff]  ;;  %v3307_v30 = vld [vmem:[#allocation2 + $0x2388] sm:$0xff] }
 0x598   :  { %9033 = vmatprep.subr.bf16.mxu0 %v9032_v44  ;;  %v2956_v44 = vld [vmem:[#allocation2 + $0x1890] sm:$0xff]  ;;  %v8940_v23 = vpack.c.bf16 %v3243_v16, %v3211_v15  ;;  %v3242_v24 = vld [vmem:[#allocation2 + $0x2180] sm:$0xff]  ;;  %v3531_v16 = vld [vmem:[#allocation2 + $0x2a88] sm:$0xff] }
 0x599   :  { %v8942_v0 = vpack.c.bf16 %v3242_v24, %v3210_v19  ;;  %v3500_v15 = vld [vmem:[#allocation2 + $0x2990] sm:$0xff]  ;;  %v3530_v24 = vld [vmem:[#allocation2 + $0x2a80] sm:$0xff] }
 0x59a   :  { %8907 = vmatpush1.bf16.msra.mxu1 %v8906_v43  ;;  %v3053_v43 = vld [vmem:[#allocation2 + $0x1b98] sm:$0xff] }
 0x59b   :  { %9035 = vmatpush1.bf16.msra.mxu0 %v9034_v31  ;;  %8909 = vmatprep.subr.bf16.mxu1 %v8908_v45  ;;  %v8926_v31 = vpack.c.bf16 %v2986_v37, %v2954_v36  ;;  %v9054_v45 = vpack.c.bf16 %v2988_v38, %v2956_v44  ;;  %v9056_v51 = vpack.c.bf16 %v3053_v43, %v3021_v42  ;;  %v3274_v36 = vld [vmem:[#allocation2 + $0x2280] sm:$0xff]  ;;  %v3276_v44 = vld [vmem:[#allocation2 + $0x2290] sm:$0xff]  ;;  %v3341_v43 = vld [vmem:[#allocation2 + $0x2498] sm:$0xff] }
 0x59c   :  { %9037 = vmatprep.subr.bf16.mxu0 %v9036_v50  ;;  %v3020_v50 = vld [vmem:[#allocation2 + $0x1a90] sm:$0xff]  ;;  %v3306_v37 = vld [vmem:[#allocation2 + $0x2380] sm:$0xff] }
 0x59d   :  { %v3308_v38 = vld [vmem:[#allocation2 + $0x2390] sm:$0xff] }
 0x59e   :  { %8911 = vmatpush1.bf16.msra.mxu1 %v8910_v55  ;;  %v3117_v55 = vld [vmem:[#allocation2 + $0x1d98] sm:$0xff] }
 0x59f   :  { %9039 = vmatpush1.bf16.msra.mxu0 %v9038_v34  ;;  %8913 = vmatprep.subr.bf16.mxu1 %v8912_v54  ;;  %v8930_v34 = vpack.c.bf16 %v3050_v49, %v3018_v48  ;;  %v9058_v54 = vpack.c.bf16 %v3052_v60, %v3020_v50  ;;  %v9060_v59 = vpack.c.bf16 %v3117_v55, %v3085_v53  ;;  %v3338_v49 = vld [vmem:[#allocation2 + $0x2480] sm:$0xff]  ;;  %v3435_v53 = vld [vmem:[#allocation2 + $0x2788] sm:$0xff]  ;;  %v3405_v55 = vld [vmem:[#allocation2 + $0x2698] sm:$0xff] }
 0x5a0   :  { %9041 = vmatprep.subr.bf16.mxu0 %v9040_v46  ;;  %v3084_v46 = vld [vmem:[#allocation2 + $0x1c90] sm:$0xff]  ;;  %v8948_v48 = vpack.c.bf16 %v3371_v41, %v3339_v40  ;;  %v3370_v50 = vld [vmem:[#allocation2 + $0x2580] sm:$0xff] }
 0x5a2   :  { %8915 = vmatpush1.bf16.msra.mxu1 %v8914_v4  ;;  %v3181_v4 = vld [vmem:[#allocation2 + $0x1f98] sm:$0xff] }
 0x5a3   :  { %9043 = vmatpush1.bf16.msra.mxu0 %v9042_v5  ;;  %8917 = vmatprep.subr.bf16.mxu1 %v8916_v6  ;;  %v8934_v5 = vpack.c.bf16 %v3114_v58, %v3082_v57  ;;  %v9062_v6 = vpack.c.bf16 %v3116_v62, %v3084_v46  ;;  %v9064_v12 = vpack.c.bf16 %v3181_v4, %v3149_v3  ;;  %v3402_v58 = vld [vmem:[#allocation2 + $0x2680] sm:$0xff]  ;;  %v3499_v3 = vld [vmem:[#allocation2 + $0x2988] sm:$0xff]  ;;  %v3469_v4 = vld [vmem:[#allocation2 + $0x2898] sm:$0xff] }
 0x5a4   :  { %9045 = vmatprep.subr.bf16.mxu0 %v9044_v11  ;;  %v3148_v11 = vld [vmem:[#allocation2 + $0x1e90] sm:$0xff]  ;;  %v8952_v57 = vpack.c.bf16 %v3435_v53, %v3403_v52  ;;  %v3434_v46 = vld [vmem:[#allocation2 + $0x2780] sm:$0xff] }
 0x5a6   :  { %8919 = vmatpush1.bf16.msra.mxu1 %v8918_v18  ;;  %v3245_v18 = vld [vmem:[#allocation2 + $0x2198] sm:$0xff] }
 0x5a7   :  { %9047 = vmatpush1.bf16.msra.mxu0 %v9046_v21  ;;  %8921 = vmatprep.subr.bf16.mxu1 %v8920_v22  ;;  %v8938_v21 = vpack.c.bf16 %v3178_v10, %v3146_v9  ;;  %v9066_v22 = vpack.c.bf16 %v3180_v14, %v3148_v11  ;;  %v8956_v9 = vpack.c.bf16 %v3499_v3, %v3467_v1  ;;  %v3466_v10 = vld [vmem:[#allocation2 + $0x2880] sm:$0xff]  ;;  %v3757_v1 = vld [vmem:[#allocation2 + $0x3198] sm:$0xff] }
 0x5a8   :  { %9049 = vmatprep.subr.bf16.mxu0 %v9048_v17  ;;  %v9068_v17 = vpack.c.bf16 %v3245_v18, %v3213_v20  ;;  %v3498_v11 = vld [vmem:[#allocation2 + $0x2980] sm:$0xff]  ;;  %v3563_v20 = vld [vmem:[#allocation2 + $0x2b88] sm:$0xff]  ;;  %v3533_v18 = vld [vmem:[#allocation2 + $0x2a98] sm:$0xff] }
 0x5a9   :  { %v8960_v19 = vpack.c.bf16 %v3563_v20, %v3531_v16  ;;  %v9966_v16 = vld [vmem:[%s11971_s0 + $0x10] sm:$0xff] }
 0x5aa   :  { %8923 = vmatpush1.bf16.msra.mxu1 %v8922_v32  ;;  %v3277_v32 = vld [vmem:[#allocation2 + $0x2298] sm:$0xff] }
 0x5ab   :  { %9051 = vmatpush1.bf16.msra.mxu0 %v9050_v33  ;;  %8925 = vmatprep.subr.bf16.mxu1 %v8924_v35  ;;  %v3309_v33 = vld [vmem:[#allocation2 + $0x2398] sm:$0xff]  ;;  %v9070_v35 = vpack.c.bf16 %v3244_v26, %v3212_v25  ;;  %v3532_v25 = vld [vmem:[#allocation2 + $0x2a90] sm:$0xff] }
 0x5ac   :  { %9053 = vmatprep.subr.bf16.mxu0 %v9052_v39  ;;  %v8944_v39 = vpack.c.bf16 %v3307_v30, %v3275_v28  ;;  %v9072_v42 = vpack.c.bf16 %v3309_v33, %v3277_v32  ;;  %v3564_v28 = vld [vmem:[#allocation2 + $0x2b90] sm:$0xff]  ;;  %v3595_v30 = vld [vmem:[#allocation2 + $0x2c88] sm:$0xff]  ;;  %v3597_v32 = vld [vmem:[#allocation2 + $0x2c98] sm:$0xff] }
 0x5ad   :  { %v3629_v33 = vld [vmem:[#allocation2 + $0x2d98] sm:$0xff] }
 0x5ae   :  { %8927 = vmatpush1.bf16.msra.mxu1 %v8926_v31  ;;  %v3373_v31 = vld [vmem:[#allocation2 + $0x2598] sm:$0xff]  ;;  %v9092_v41 = vpack.c.bf16 %v3629_v33, %v3597_v32 }
 0x5af   :  { %9055 = vmatpush1.bf16.msra.mxu0 %v9054_v45  ;;  %8929 = vmatprep.subr.bf16.mxu1 %v8928_v47  ;;  %v8946_v45 = vpack.c.bf16 %v3306_v37, %v3274_v36  ;;  %v9074_v47 = vpack.c.bf16 %v3308_v38, %v3276_v44  ;;  %v9076_v60 = vpack.c.bf16 %v3373_v31, %v3341_v43  ;;  %v3594_v44 = vld [vmem:[#allocation2 + $0x2c80] sm:$0xff]  ;;  %v3596_v38 = vld [vmem:[#allocation2 + $0x2c90] sm:$0xff]  ;;  %v3659_v43 = vld [vmem:[#allocation2 + $0x2e88] sm:$0xff] }
 0x5b0   :  { %9057 = vmatprep.subr.bf16.mxu0 %v9056_v51  ;;  %v3340_v51 = vld [vmem:[#allocation2 + $0x2490] sm:$0xff]  ;;  %v9090_v36 = vpack.c.bf16 %v3564_v28, %v3532_v25  ;;  %v3691_v31 = vld [vmem:[#allocation2 + $0x2f88] sm:$0xff]  ;;  %v3853_v32 = vld [vmem:[#allocation2 + $0x3498] sm:$0xff] }
 0x5b1   :  { %v8968_v53 = vpack.c.bf16 %v3691_v31, %v3659_v43  ;;  %v3788_v25 = vld [vmem:[#allocation2 + $0x3290] sm:$0xff]  ;;  %v3885_v33 = vld [vmem:[#allocation2 + $0x3598] sm:$0xff]  ;;  %v3947_v43 = vld [vmem:[#allocation2 + $0x3788] sm:$0xff] }
 0x5b2   :  { %8931 = vmatpush1.bf16.msra.mxu1 %v8930_v34  ;;  %v3437_v34 = vld [vmem:[#allocation2 + $0x2798] sm:$0xff]  ;;  %v3820_v28 = vld [vmem:[#allocation2 + $0x3390] sm:$0xff] }
 0x5b3   :  { %9059 = vmatpush1.bf16.msra.mxu0 %v9058_v54  ;;  %8933 = vmatprep.subr.bf16.mxu1 %v8932_v56  ;;  %v8950_v54 = vpack.c.bf16 %v3370_v50, %v3338_v49  ;;  %v9078_v56 = vpack.c.bf16 %v3372_v61, %v3340_v51  ;;  %v9080_v62 = vpack.c.bf16 %v3437_v34, %v3405_v55  ;;  %v3693_v49 = vld [vmem:[#allocation2 + $0x2f98] sm:$0xff]  ;;  %v3658_v55 = vld [vmem:[#allocation2 + $0x2e80] sm:$0xff] }
 0x5b4   :  { %9061 = vmatprep.subr.bf16.mxu0 %v9060_v59  ;;  %v3404_v59 = vld [vmem:[#allocation2 + $0x2690] sm:$0xff]  ;;  %v3690_v34 = vld [vmem:[#allocation2 + $0x2f80] sm:$0xff]  ;;  %v3917_v31 = vld [vmem:[#allocation2 + $0x3698] sm:$0xff] }
 0x5b5   :  { %v8970_v3 = vpack.c.bf16 %v3690_v34, %v3658_v55  ;;  %v4011_v55 = vld [vmem:[#allocation2 + $0x3988] sm:$0xff]  ;;  %v3981_v34 = vld [vmem:[#allocation2 + $0x3898] sm:$0xff] }
 0x5b6   :  { %8935 = vmatpush1.bf16.msra.mxu1 %v8934_v5  ;;  %v3501_v5 = vld [vmem:[#allocation2 + $0x2998] sm:$0xff] }
 0x5b7   :  { %9063 = vmatpush1.bf16.msra.mxu0 %v9062_v6  ;;  %8937 = vmatprep.subr.bf16.mxu1 %v8936_v7  ;;  %v8954_v6 = vpack.c.bf16 %v3434_v46, %v3402_v58  ;;  %v9082_v7 = vpack.c.bf16 %v3436_v63, %v3404_v59  ;;  %v9084_v14 = vpack.c.bf16 %v3501_v5, %v3469_v4  ;;  %v3692_v58 = vld [vmem:[#allocation2 + $0x2f90] sm:$0xff]  ;;  %v3723_v46 = vld [vmem:[#allocation2 + $0x3088] sm:$0xff]  ;;  %v3725_v63 = vld [vmem:[#allocation2 + $0x3098] sm:$0xff] }
 0x5b8   :  { %9065 = vmatprep.subr.bf16.mxu0 %v9064_v12  ;;  %v3468_v12 = vld [vmem:[#allocation2 + $0x2890] sm:$0xff]  ;;  %v3755_v59 = vld [vmem:[#allocation2 + $0x3188] sm:$0xff] }
 0x5ba   :  { %8939 = vmatpush1.bf16.msra.mxu1 %v8938_v21  ;;  %v3565_v21 = vld [vmem:[#allocation2 + $0x2b98] sm:$0xff] }
 0x5bb   :  { %9067 = vmatpush1.bf16.msra.mxu0 %v9066_v22  ;;  %8941 = vmatprep.subr.bf16.mxu1 %v8940_v23  ;;  %v8958_v22 = vpack.c.bf16 %v3498_v11, %v3466_v10  ;;  %v9086_v23 = vpack.c.bf16 %v3500_v15, %v3468_v12  ;;  %v9088_v26 = vpack.c.bf16 %v3565_v21, %v3533_v18  ;;  %v3724_v10 = vld [vmem:[#allocation2 + $0x3090] sm:$0xff]  ;;  %v3819_v15 = vld [vmem:[#allocation2 + $0x3388] sm:$0xff]  ;;  %v3789_v18 = vld [vmem:[#allocation2 + $0x3298] sm:$0xff] }
 0x5bc   :  { %9069 = vmatprep.subr.bf16.mxu0 %v9068_v17  ;;  %v3562_v17 = vld [vmem:[#allocation2 + $0x2b80] sm:$0xff]  ;;  %v9100_v11 = vpack.c.bf16 %v3757_v1, %v3725_v63  ;;  %v3756_v12 = vld [vmem:[#allocation2 + $0x3190] sm:$0xff]  ;;  %v3821_v21 = vld [vmem:[#allocation2 + $0x3398] sm:$0xff] }
 0x5bd   :  { %5419 = vmatmul.mubr.f32.vlgmr.msra.gmra.mrb[28].mxu1 %v11846_v8  ;;  %v4012_v1 = vld [vmem:[#allocation2 + $0x3990] sm:$0xff] }
 0x5be   :  { %5561 = vmatmul.mubr.f32.vlgmr.msra.gmra.mrb[26].mxu0 %v11846_v8  ;;  %8943 = vmatpush1.bf16.msra.mxu1 %v8942_v0  ;;  %v3627_v0 = vld [vmem:[#allocation2 + $0x2d88] sm:$0xff] }
 0x5bf   :  { %5489 = vmatprep.mubr.f32.mxu1 %v11852_v29  ;;  %9071 = vmatpush1.bf16.msra.mxu0 %v9070_v35  ;;  %v8962_v35 = vpack.c.bf16 %v3562_v17, %v3530_v24  ;;  %v8964_v37 = vpack.c.bf16 %v3627_v0, %v3595_v30  ;;  %v3786_v24 = vld [vmem:[#allocation2 + $0x3280] sm:$0xff]  ;;  %v3851_v30 = vld [vmem:[#allocation2 + $0x3488] sm:$0xff] }
 0x5c0   :  { %5631 = vmatprep.mubr.f32.mxu0 %v11852_v29  ;;  %8945 = vmatprep.subr.bf16.mxu1 %v8944_v39  ;;  %v3626_v39 = vld [vmem:[#allocation2 + $0x2d80] sm:$0xff]  ;;  %v3883_v0 = vld [vmem:[#allocation2 + $0x3588] sm:$0xff] }
 0x5c1   :  { %9073 = vmatprep.subr.bf16.mxu0 %v9072_v42  ;;  %v3628_v42 = vld [vmem:[#allocation2 + $0x2d90] sm:$0xff]  ;;  %v3818_v17 = vld [vmem:[#allocation2 + $0x3380] sm:$0xff] }
 0x5c2   :  { %8947 = vmatpush1.bf16.msra.mxu1 %v8946_v45  ;;  %v9094_v52 = vpack.c.bf16 %v3628_v42, %v3596_v38  ;;  %v3852_v38 = vld [vmem:[#allocation2 + $0x3490] sm:$0xff]  ;;  %v3915_v42 = vld [vmem:[#allocation2 + $0x3688] sm:$0xff] }
 0x5c3   :  { %9075 = vmatpush1.bf16.msra.mxu0 %v9074_v47  ;;  %8949 = vmatprep.subr.bf16.mxu1 %v8948_v48  ;;  %v3661_v48 = vld [vmem:[#allocation2 + $0x2e98] sm:$0xff] }
 0x5c4   :  { %9077 = vmatprep.subr.bf16.mxu0 %v9076_v60  ;;  %v8966_v60 = vpack.c.bf16 %v3626_v39, %v3594_v44  ;;  %v3850_v44 = vld [vmem:[#allocation2 + $0x3480] sm:$0xff] }
 0x5c5   :  { %v3882_v39 = vld [vmem:[#allocation2 + $0x3580] sm:$0xff] }
 0x5c6   :  { %8951 = vmatpush1.bf16.msra.mxu1 %v8950_v54  ;;  %v3660_v54 = vld [vmem:[#allocation2 + $0x2e90] sm:$0xff] }
 0x5c7   :  { %9079 = vmatpush1.bf16.msra.mxu0 %v9078_v56  ;;  %8953 = vmatprep.subr.bf16.mxu1 %v8952_v57  ;;  %v9096_v57 = vpack.c.bf16 %v3693_v49, %v3661_v48  ;;  %v9098_v5 = vpack.c.bf16 %v3692_v58, %v3660_v54  ;;  %v8984_v49 = vpack.c.bf16 %v3947_v43, %v3915_v42  ;;  %v4013_v54 = vld [vmem:[#allocation2 + $0x3998] sm:$0xff]  ;;  %v4204_v42 = vld [vmem:[#allocation2 + $0x3f90] sm:$0xff]  ;;  %v2191_v43 = vld [vmem:[#allocation2 + $0xa8] sm:$0xff] }
 0x5c8   :  { %9081 = vmatprep.subr.bf16.mxu0 %v9080_v62  ;;  %v9116_v63 = vpack.c.bf16 %v4013_v54, %v3981_v34  ;;  %v2287_v34 = vld [vmem:[#allocation2 + $0x3a8] sm:$0xff] }
 0x5ca   :  { %8955 = vmatpush1.bf16.msra.mxu1 %v8954_v6  ;;  %v8972_v6 = vpack.c.bf16 %v3755_v59, %v3723_v46  ;;  %v3978_v46 = vld [vmem:[#allocation2 + $0x3880] sm:$0xff] }
 0x5cb   :  { %9083 = vmatpush1.bf16.msra.mxu0 %v9082_v7  ;;  %8957 = vmatprep.subr.bf16.mxu1 %v8956_v9  ;;  %v3722_v7 = vld [vmem:[#allocation2 + $0x3080] sm:$0xff] }
 0x5cc   :  { %9085 = vmatprep.subr.bf16.mxu0 %v9084_v14  ;;  %v3754_v9 = vld [vmem:[#allocation2 + $0x3180] sm:$0xff]  ;;  %v3787_v14 = vld [vmem:[#allocation2 + $0x3288] sm:$0xff] }
 0x5cd   :  { %v4010_v59 = vld [vmem:[#allocation2 + $0x3980] sm:$0xff] }
 0x5ce   :  { %8959 = vmatpush1.bf16.msra.mxu1 %v8958_v22  ;;  %v8974_v22 = vpack.c.bf16 %v3754_v9, %v3722_v7  ;;  %v8990_v7 = vpack.c.bf16 %v4010_v59, %v3978_v46  ;;  %v2254_v46 = vld [vmem:[#allocation2 + $0x2a0] sm:$0xff] }
 0x5cf   :  { %9087 = vmatpush1.bf16.msra.mxu0 %v9086_v23  ;;  %8961 = vmatprep.subr.bf16.mxu1 %v8960_v19  ;;  %v9102_v23 = vpack.c.bf16 %v3756_v12, %v3724_v10  ;;  %v8976_v19 = vpack.c.bf16 %v3819_v15, %v3787_v14  ;;  %v4074_v12 = vld [vmem:[#allocation2 + $0x3b80] sm:$0xff]  ;;  %v4044_v14 = vld [vmem:[#allocation2 + $0x3a90] sm:$0xff] }
 0x5d0   :  { %v4923_v40 = vpop.f32.mrb[24].mxu1  ;;  %9089 = vmatprep.subr.bf16.mxu0 %v9088_v26  ;;  %v9104_v26 = vpack.c.bf16 %v3821_v21, %v3789_v18  ;;  %v4139_v18 = vld [vmem:[#allocation2 + $0x3d88] sm:$0xff]  ;;  %v4109_v21 = vld [vmem:[#allocation2 + $0x3c98] sm:$0xff]  ;;  %v2286_v59 = vld [vmem:[#allocation2 + $0x3a0] sm:$0xff] }
 0x5d1   :  { %v5065_v45 = vpop.f32.mrb[22].mxu0  ;;  %v4925_v47 = vpop.f32.mrb[25].mxu1 }
 0x5d2   :  { %v6556_v50 = vcombine.low %v4923_v40, %v4925_v47  ;;  %v5067_v51 = vpop.f32.mrb[23].mxu0  ;;  %8963 = vmatpush1.bf16.msra.mxu1 %v8962_v35  ;;  %v8978_v35 = vpack.c.bf16 %v3818_v17, %v3786_v24  ;;  %v9108_v40 = vpack.c.bf16 %v3885_v33, %v3853_v32  ;;  %v8982_v47 = vpack.c.bf16 %v3882_v39, %v3850_v44  ;;  %v4106_v17 = vld [vmem:[#allocation2 + $0x3c80] sm:$0xff]  ;;  %v4203_v32 = vld [vmem:[#allocation2 + $0x3f88] sm:$0xff]  ;;  %v4173_v33 = vld [vmem:[#allocation2 + $0x3e98] sm:$0xff] }
 0x5d3   :  { %v6557_v61 = vcombine.low %v5065_v45, %v5067_v51  ;;  %9091 = vmatpush1.bf16.msra.mxu0 %v9090_v36  ;;  %8965 = vmatprep.subr.bf16.mxu1 %v8964_v37  ;;  %v9106_v36 = vpack.c.bf16 %v3820_v28, %v3788_v25  ;;  %v8980_v37 = vpack.c.bf16 %v3883_v0, %v3851_v30  ;;  %v3949_v45 = vld [vmem:[#allocation2 + $0x3798] sm:$0xff]  ;;  %v3946_v51 = vld [vmem:[#allocation2 + $0x3780] sm:$0xff]  ;;  %v4140_v30 = vld [vmem:[#allocation2 + $0x3d90] sm:$0xff] }
 0x5d4   :  { %v6564_v56 = vrot.slane %v6556_v50, %v10238_v13  ;;  %9093 = vmatprep.subr.bf16.mxu0 %v9092_v41  ;;  %v3884_v41 = vld [vmem:[#allocation2 + $0x3590] sm:$0xff]  ;;  %v3914_v50 = vld [vmem:[#allocation2 + $0x3680] sm:$0xff]  ;;  %v4171_v0 = vld [vmem:[#allocation2 + $0x3e88] sm:$0xff] }
 0x5d5   :  { %v6571_v62 = vrot.slane %v6557_v61, %v10238_v13  ;;  %v9110_v48 = vpack.c.bf16 %v3884_v41, %v3852_v38  ;;  %v9112_v61 = vpack.c.bf16 %v3949_v45, %v3917_v31  ;;  %v4138_v25 = vld [vmem:[#allocation2 + $0x3d80] sm:$0xff]  ;;  %v9000_v44 = vpack.c.bf16 %v4203_v32, %v4171_v0  ;;  %v2223_v31 = vld [vmem:[#allocation2 + $0x1a8] sm:$0xff]  ;;  %v2193_v45 = vld [vmem:[#allocation2 + $0xb8] sm:$0xff] }
 0x5d6   :  { %8967 = vmatpush1.bf16.msra.mxu1 %v8966_v60  ;;  %v3916_v60 = vld [vmem:[#allocation2 + $0x3690] sm:$0xff]  ;;  %v4170_v39 = vld [vmem:[#allocation2 + $0x3e80] sm:$0xff]  ;;  %v2447_v32 = vld [vmem:[#allocation2 + $0x8a8] sm:$0xff] }
 0x5d7   :  { %v6572_v4 = vcombine.low %v6564_v56, %v6571_v62  ;;  %9095 = vmatpush1.bf16.msra.mxu0 %v9094_v52  ;;  %8969 = vmatprep.subr.bf16.mxu1 %v8968_v53  ;;  %v3948_v52 = vld [vmem:[#allocation2 + $0x3790] sm:$0xff]  ;;  %v3979_v53 = vld [vmem:[#allocation2 + $0x3888] sm:$0xff]  ;;  %v8986_v56 = vpack.c.bf16 %v3946_v51, %v3914_v50  ;;  %v4202_v38 = vld [vmem:[#allocation2 + $0x3f80] sm:$0xff]  ;;  %v9132_v50 = vpack.c.bf16 %v2223_v31, %v2191_v43 }
 0x5d8   :  { %9097 = vmatprep.subr.bf16.mxu0 %v9096_v57  ;;  %v9114_v57 = vpack.c.bf16 %v3948_v52, %v3916_v60  ;;  %v8988_v58 = vpack.c.bf16 %v4011_v55, %v3979_v53  ;;  %v3980_v62 = vld [vmem:[#allocation2 + $0x3890] sm:$0xff]  ;;  %v2190_v51 = vld [vmem:[#allocation2 + $0xa0] sm:$0xff]  ;;  %v2255_v55 = vld [vmem:[#allocation2 + $0x2a8] sm:$0xff] }
 0x5d9   :  { %v6668_v20 = vmul.f32 %v9966_v16, %v6572_v4  ;;  %v4075_v4 = vld [vmem:[#allocation2 + $0x3b88] sm:$0xff]  ;;  %v9118_v9 = vpack.c.bf16 %v4012_v1, %v3980_v62  ;;  %v4076_v16 = vld [vmem:[#allocation2 + $0x3b90] sm:$0xff]  ;;  %v2222_v60 = vld [vmem:[#allocation2 + $0x1a0] sm:$0xff] }
 0x5da   :  { %8971 = vmatpush1.bf16.msra.mxu1 %v8970_v3  ;;  %v4043_v3 = vld [vmem:[#allocation2 + $0x3a88] sm:$0xff]  ;;  %v2192_v52 = vld [vmem:[#allocation2 + $0xb0] sm:$0xff]  ;;  %v9134_v54 = vpack.c.bf16 %v2222_v60, %v2190_v51  ;;  %v2510_v60 = vld [vmem:[#allocation2 + $0xaa0] sm:$0xff] }
 0x5db   :  { %6676 = vst [vmem:[#allocation5 + $0x10] sm:$0xff] %v6668_v20  ;;  %9099 = vmatpush1.bf16.msra.mxu0 %v9098_v5  ;;  %8973 = vmatprep.subr.bf16.mxu1 %v8972_v6  ;;  %v4045_v5 = vld [vmem:[#allocation2 + $0x3a98] sm:$0xff]  ;;  %v8992_v10 = vpack.c.bf16 %v4075_v4, %v4043_v3  ;;  %v4107_v20 = vld [vmem:[#allocation2 + $0x3c88] sm:$0xff]  ;;  %v2224_v53 = vld [vmem:[#allocation2 + $0x1b0] sm:$0xff] }
 0x5dc   :  { %9101 = vmatprep.subr.bf16.mxu0 %v9100_v11  ;;  %v4077_v6 = vld [vmem:[#allocation2 + $0x3b98] sm:$0xff]  ;;  %v4042_v11 = vld [vmem:[#allocation2 + $0x3a80] sm:$0xff]  ;;  %v8996_v24 = vpack.c.bf16 %v4139_v18, %v4107_v20  ;;  %v2256_v62 = vld [vmem:[#allocation2 + $0x2b0] sm:$0xff] }
 0x5dd   :  { %v9120_v15 = vpack.c.bf16 %v4077_v6, %v4045_v5  ;;  %v2288_v1 = vld [vmem:[#allocation2 + $0x3b0] sm:$0xff]  ;;  %v2319_v3 = vld [vmem:[#allocation2 + $0x4a8] sm:$0xff]  ;;  %v2321_v6 = vld [vmem:[#allocation2 + $0x4b8] sm:$0xff] }
 0x5de   :  { %8975 = vmatpush1.bf16.msra.mxu1 %v8974_v22  ;;  %v4141_v22 = vld [vmem:[#allocation2 + $0x3d98] sm:$0xff]  ;;  %v2351_v4 = vld [vmem:[#allocation2 + $0x5a8] sm:$0xff]  ;;  %v2352_v20 = vld [vmem:[#allocation2 + $0x5b0] sm:$0xff] }
 0x5df   :  { %9103 = vmatpush1.bf16.msra.mxu0 %v9102_v23  ;;  %8977 = vmatprep.subr.bf16.mxu1 %v8976_v19  ;;  %v8994_v23 = vpack.c.bf16 %v4074_v12, %v4042_v11  ;;  %v9122_v19 = vpack.c.bf16 %v4076_v16, %v4044_v14  ;;  %v9124_v28 = vpack.c.bf16 %v4141_v22, %v4109_v21  ;;  %v2318_v12 = vld [vmem:[#allocation2 + $0x4a0] sm:$0xff]  ;;  %v2383_v18 = vld [vmem:[#allocation2 + $0x6a8] sm:$0xff]  ;;  %v2385_v22 = vld [vmem:[#allocation2 + $0x6b8] sm:$0xff] }
 0x5e0   :  { %9105 = vmatprep.subr.bf16.mxu0 %v9104_v26  ;;  %v4108_v26 = vld [vmem:[#allocation2 + $0x3c90] sm:$0xff]  ;;  %v9140_v11 = vpack.c.bf16 %v2351_v4, %v2319_v3  ;;  %v2350_v14 = vld [vmem:[#allocation2 + $0x5a0] sm:$0xff]  ;;  %v2415_v21 = vld [vmem:[#allocation2 + $0x7a8] sm:$0xff] }
 0x5e1   :  { %v2416_v0 = vld [vmem:[#allocation2 + $0x7b0] sm:$0xff]  ;;  %v2511_v31 = vld [vmem:[#allocation2 + $0xaa8] sm:$0xff] }
 0x5e2   :  { %8979 = vmatpush1.bf16.msra.mxu1 %v8978_v35  ;;  %v4205_v35 = vld [vmem:[#allocation2 + $0x3f98] sm:$0xff]  ;;  %v2480_v43 = vld [vmem:[#allocation2 + $0x9b0] sm:$0xff] }
 0x5e3   :  { %9107 = vmatpush1.bf16.msra.mxu0 %v9106_v36  ;;  %8981 = vmatprep.subr.bf16.mxu1 %v8980_v37  ;;  %v8998_v36 = vpack.c.bf16 %v4138_v25, %v4106_v17  ;;  %v9126_v37 = vpack.c.bf16 %v4140_v30, %v4108_v26  ;;  %v9128_v41 = vpack.c.bf16 %v4205_v35, %v4173_v33  ;;  %v2382_v25 = vld [vmem:[#allocation2 + $0x6a0] sm:$0xff]  ;;  %v2479_v33 = vld [vmem:[#allocation2 + $0x9a8] sm:$0xff]  ;;  %v2449_v35 = vld [vmem:[#allocation2 + $0x8b8] sm:$0xff] }
 0x5e4   :  { %9109 = vmatprep.subr.bf16.mxu0 %v9108_v40  ;;  %v4172_v40 = vld [vmem:[#allocation2 + $0x3e90] sm:$0xff]  ;;  %v9144_v17 = vpack.c.bf16 %v2415_v21, %v2383_v18  ;;  %v2414_v26 = vld [vmem:[#allocation2 + $0x7a0] sm:$0xff]  ;;  %v2703_v21 = vld [vmem:[#allocation2 + $0x10a8] sm:$0xff] }
 0x5e5   :  { %v2608_v4 = vld [vmem:[#allocation2 + $0xdb0] sm:$0xff] }
 0x5e6   :  { %8983 = vmatpush1.bf16.msra.mxu1 %v8982_v47  ;;  %v2225_v47 = vld [vmem:[#allocation2 + $0x1b8] sm:$0xff]  ;;  %v2672_v18 = vld [vmem:[#allocation2 + $0xfb0] sm:$0xff] }
 0x5e7   :  { %9111 = vmatpush1.bf16.msra.mxu0 %v9110_v48  ;;  %8985 = vmatprep.subr.bf16.mxu1 %v8984_v49  ;;  %v9002_v48 = vpack.c.bf16 %v4202_v38, %v4170_v39  ;;  %v9130_v49 = vpack.c.bf16 %v4204_v42, %v4172_v40  ;;  %v9148_v39 = vpack.c.bf16 %v2479_v33, %v2447_v32  ;;  %v2446_v38 = vld [vmem:[#allocation2 + $0x8a0] sm:$0xff]  ;;  %v2736_v32 = vld [vmem:[#allocation2 + $0x11b0] sm:$0xff]  ;;  %v2767_v33 = vld [vmem:[#allocation2 + $0x12a8] sm:$0xff] }
 0x5e8   :  { %9113 = vmatprep.subr.bf16.mxu0 %v9112_v61  ;;  %v9260_v61 = vpack.c.bf16 %v2225_v47, %v2193_v45  ;;  %v2478_v40 = vld [vmem:[#allocation2 + $0x9a0] sm:$0xff]  ;;  %v2543_v45 = vld [vmem:[#allocation2 + $0xba8] sm:$0xff]  ;;  %v2513_v47 = vld [vmem:[#allocation2 + $0xab8] sm:$0xff] }
 0x5e9   :  { %v9152_v51 = vpack.c.bf16 %v2543_v45, %v2511_v31  ;;  %v2800_v31 = vld [vmem:[#allocation2 + $0x13b0] sm:$0xff]  ;;  %v2831_v45 = vld [vmem:[#allocation2 + $0x14a8] sm:$0xff] }
 0x5ea   :  { %8987 = vmatpush1.bf16.msra.mxu1 %v8986_v56  ;;  %v2257_v56 = vld [vmem:[#allocation2 + $0x2b8] sm:$0xff] }
 0x5eb   :  { %9115 = vmatpush1.bf16.msra.mxu0 %v9114_v57  ;;  %8989 = vmatprep.subr.bf16.mxu1 %v8988_v58  ;;  %v2289_v57 = vld [vmem:[#allocation2 + $0x3b8] sm:$0xff]  ;;  %v9262_v58 = vpack.c.bf16 %v2224_v53, %v2192_v52  ;;  %v2512_v52 = vld [vmem:[#allocation2 + $0xab0] sm:$0xff] }
 0x5ec   :  { %9117 = vmatprep.subr.bf16.mxu0 %v9116_v63  ;;  %v9136_v63 = vpack.c.bf16 %v2287_v34, %v2255_v55  ;;  %v9264_v5 = vpack.c.bf16 %v2289_v57, %v2257_v56  ;;  %v2544_v55 = vld [vmem:[#allocation2 + $0xbb0] sm:$0xff]  ;;  %v2575_v34 = vld [vmem:[#allocation2 + $0xca8] sm:$0xff]  ;;  %v2577_v56 = vld [vmem:[#allocation2 + $0xcb8] sm:$0xff] }
 0x5ed   :  { %v2609_v57 = vld [vmem:[#allocation2 + $0xdb8] sm:$0xff] }
 0x5ee   :  { %8991 = vmatpush1.bf16.msra.mxu1 %v8990_v7  ;;  %v2353_v7 = vld [vmem:[#allocation2 + $0x5b8] sm:$0xff]  ;;  %v9284_v3 = vpack.c.bf16 %v2609_v57, %v2577_v56  ;;  %v2927_v56 = vld [vmem:[#allocation2 + $0x17a8] sm:$0xff] }
 0x5ef   :  { %9119 = vmatpush1.bf16.msra.mxu0 %v9118_v9  ;;  %8993 = vmatprep.subr.bf16.mxu1 %v8992_v10  ;;  %v9138_v9 = vpack.c.bf16 %v2286_v59, %v2254_v46  ;;  %v9266_v10 = vpack.c.bf16 %v2288_v1, %v2256_v62  ;;  %v9268_v16 = vpack.c.bf16 %v2353_v7, %v2321_v6  ;;  %v2574_v62 = vld [vmem:[#allocation2 + $0xca0] sm:$0xff]  ;;  %v2576_v1 = vld [vmem:[#allocation2 + $0xcb0] sm:$0xff]  ;;  %v2671_v6 = vld [vmem:[#allocation2 + $0xfa8] sm:$0xff] }
 0x5f0   :  { %9121 = vmatprep.subr.bf16.mxu0 %v9120_v15  ;;  %v2320_v15 = vld [vmem:[#allocation2 + $0x4b0] sm:$0xff]  ;;  %v9282_v46 = vpack.c.bf16 %v2544_v55, %v2512_v52  ;;  %v2641_v7 = vld [vmem:[#allocation2 + $0xeb8] sm:$0xff]  ;;  %v2862_v52 = vld [vmem:[#allocation2 + $0x15a0] sm:$0xff] }
 0x5f1   :  { %v2897_v57 = vld [vmem:[#allocation2 + $0x16b8] sm:$0xff] }
 0x5f2   :  { %8995 = vmatpush1.bf16.msra.mxu1 %v8994_v23  ;;  %v2417_v23 = vld [vmem:[#allocation2 + $0x7b8] sm:$0xff] }
 0x5f3   :  { %9123 = vmatpush1.bf16.msra.mxu0 %v9122_v19  ;;  %8997 = vmatprep.subr.bf16.mxu1 %v8996_v24  ;;  %v9142_v19 = vpack.c.bf16 %v2350_v14, %v2318_v12  ;;  %v9270_v24 = vpack.c.bf16 %v2352_v20, %v2320_v15  ;;  %v9272_v30 = vpack.c.bf16 %v2417_v23, %v2385_v22  ;;  %v2638_v14 = vld [vmem:[#allocation2 + $0xea0] sm:$0xff]  ;;  %v2735_v22 = vld [vmem:[#allocation2 + $0x11a8] sm:$0xff]  ;;  %v2705_v23 = vld [vmem:[#allocation2 + $0x10b8] sm:$0xff] }
 0x5f4   :  { %9125 = vmatprep.subr.bf16.mxu0 %v9124_v28  ;;  %v2384_v28 = vld [vmem:[#allocation2 + $0x6b0] sm:$0xff]  ;;  %v2670_v15 = vld [vmem:[#allocation2 + $0xfa0] sm:$0xff] }
 0x5f6   :  { %8999 = vmatpush1.bf16.msra.mxu1 %v8998_v36  ;;  %v2481_v36 = vld [vmem:[#allocation2 + $0x9b8] sm:$0xff] }
 0x5f7   :  { %9127 = vmatpush1.bf16.msra.mxu0 %v9126_v37  ;;  %9001 = vmatprep.subr.bf16.mxu1 %v9000_v44  ;;  %v9146_v37 = vpack.c.bf16 %v2414_v26, %v2382_v25  ;;  %v9274_v44 = vpack.c.bf16 %v2416_v0, %v2384_v28  ;;  %v9276_v42 = vpack.c.bf16 %v2481_v36, %v2449_v35  ;;  %v2702_v26 = vld [vmem:[#allocation2 + $0x10a0] sm:$0xff]  ;;  %v2799_v35 = vld [vmem:[#allocation2 + $0x13a8] sm:$0xff]  ;;  %v2769_v36 = vld [vmem:[#allocation2 + $0x12b8] sm:$0xff] }
 0x5f8   :  { %9129 = vmatprep.subr.bf16.mxu0 %v9128_v41  ;;  %v2448_v41 = vld [vmem:[#allocation2 + $0x8b0] sm:$0xff]  ;;  %v9164_v25 = vpack.c.bf16 %v2735_v22, %v2703_v21  ;;  %v2734_v28 = vld [vmem:[#allocation2 + $0x11a0] sm:$0xff]  ;;  %v3023_v22 = vld [vmem:[#allocation2 + $0x1aa8] sm:$0xff] }
 0x5f9   :  { %v2992_v21 = vld [vmem:[#allocation2 + $0x19b0] sm:$0xff] }
 0x5fa   :  { %9003 = vmatpush1.bf16.msra.mxu1 %v9002_v48  ;;  %v2545_v48 = vld [vmem:[#allocation2 + $0xbb8] sm:$0xff] }
 0x5fb   :  { %9131 = vmatpush1.bf16.msra.mxu0 %v9130_v49  ;;  %9133 = vmatprep.subr.bf16.mxu1 %v9132_v50  ;;  %v9150_v49 = vpack.c.bf16 %v2478_v40, %v2446_v38  ;;  %v9278_v50 = vpack.c.bf16 %v2480_v43, %v2448_v41  ;;  %v9280_v53 = vpack.c.bf16 %v2545_v48, %v2513_v47  ;;  %v2766_v40 = vld [vmem:[#allocation2 + $0x12a0] sm:$0xff]  ;;  %v2863_v47 = vld [vmem:[#allocation2 + $0x15a8] sm:$0xff]  ;;  %v2833_v48 = vld [vmem:[#allocation2 + $0x14b8] sm:$0xff] }
 0x5fc   :  { %9261 = vmatprep.subr.bf16.mxu0 %v9260_v61  ;;  %v2542_v61 = vld [vmem:[#allocation2 + $0xba0] sm:$0xff]  ;;  %v9168_v38 = vpack.c.bf16 %v2799_v35, %v2767_v33  ;;  %v3056_v33 = vld [vmem:[#allocation2 + $0x1bb0] sm:$0xff]  ;;  %v3087_v35 = vld [vmem:[#allocation2 + $0x1ca8] sm:$0xff] }
 0x5fd   :  { %5490 = vmatmul.mubr.f32.vlgmr.msra.gmra.mrb[28].mxu1 %v11859_v27  ;;  %v2798_v41 = vld [vmem:[#allocation2 + $0x13a0] sm:$0xff] }
 0x5fe   :  { %5632 = vmatmul.mubr.f32.vlgmr.msra.gmra.mrb[26].mxu0 %v11859_v27  ;;  %9135 = vmatpush1.bf16.msra.mxu1 %v9134_v54  ;;  %v2607_v54 = vld [vmem:[#allocation2 + $0xda8] sm:$0xff] }
 0x5ff   :  { %5702 = vmatprep.mubr.f32.mxu1 %v11844_v2  ;;  %9263 = vmatpush1.bf16.msra.mxu0 %v9262_v58  ;;  %v9154_v58 = vpack.c.bf16 %v2542_v61, %v2510_v60  ;;  %v9156_v59 = vpack.c.bf16 %v2607_v54, %v2575_v34  ;;  %v9172_v60 = vpack.c.bf16 %v2863_v47, %v2831_v45  ;;  %v2830_v61 = vld [vmem:[#allocation2 + $0x14a0] sm:$0xff]  ;;  %v2864_v34 = vld [vmem:[#allocation2 + $0x15b0] sm:$0xff]  ;;  %v2895_v54 = vld [vmem:[#allocation2 + $0x16a8] sm:$0xff] }
 0x600   :  { %5844 = vmatprep.mubr.f32.mxu0 %v11844_v2  ;;  %9137 = vmatprep.subr.bf16.mxu1 %v9136_v63  ;;  %v2606_v63 = vld [vmem:[#allocation2 + $0xda0] sm:$0xff]  ;;  %v3120_v45 = vld [vmem:[#allocation2 + $0x1db0] sm:$0xff]  ;;  %v3151_v47 = vld [vmem:[#allocation2 + $0x1ea8] sm:$0xff] }
 0x601   :  { %9265 = vmatprep.subr.bf16.mxu0 %v9264_v5  ;;  %v2639_v5 = vld [vmem:[#allocation2 + $0xea8] sm:$0xff] }
 0x602   :  { %9139 = vmatpush1.bf16.msra.mxu1 %v9138_v9  ;;  %v2673_v9 = vld [vmem:[#allocation2 + $0xfb8] sm:$0xff]  ;;  %v9160_v12 = vpack.c.bf16 %v2671_v6, %v2639_v5  ;;  %v2928_v5 = vld [vmem:[#allocation2 + $0x17b0] sm:$0xff]  ;;  %v2959_v6 = vld [vmem:[#allocation2 + $0x18a8] sm:$0xff] }
 0x603   :  { %9267 = vmatpush1.bf16.msra.mxu0 %v9266_v10  ;;  %9141 = vmatprep.subr.bf16.mxu1 %v9140_v11  ;;  %v9158_v10 = vpack.c.bf16 %v2606_v63, %v2574_v62  ;;  %v9286_v11 = vpack.c.bf16 %v2608_v4, %v2576_v1  ;;  %v9288_v20 = vpack.c.bf16 %v2673_v9, %v2641_v7  ;;  %v2894_v63 = vld [vmem:[#allocation2 + $0x16a0] sm:$0xff]  ;;  %v2991_v7 = vld [vmem:[#allocation2 + $0x19a8] sm:$0xff]  ;;  %v2961_v9 = vld [vmem:[#allocation2 + $0x18b8] sm:$0xff] }
 0x604   :  { %9269 = vmatprep.subr.bf16.mxu0 %v9268_v16  ;;  %v2640_v16 = vld [vmem:[#allocation2 + $0xeb0] sm:$0xff]  ;;  %v9176_v62 = vpack.c.bf16 %v2927_v56, %v2895_v54  ;;  %v2926_v1 = vld [vmem:[#allocation2 + $0x17a0] sm:$0xff]  ;;  %v3215_v56 = vld [vmem:[#allocation2 + $0x20a8] sm:$0xff] }
 0x605   :  { %v3184_v54 = vld [vmem:[#allocation2 + $0x1fb0] sm:$0xff] }
 0x606   :  { %9143 = vmatpush1.bf16.msra.mxu1 %v9142_v19  ;;  %v2737_v19 = vld [vmem:[#allocation2 + $0x11b8] sm:$0xff] }
 0x607   :  { %9271 = vmatpush1.bf16.msra.mxu0 %v9270_v24  ;;  %9145 = vmatprep.subr.bf16.mxu1 %v9144_v17  ;;  %v9162_v24 = vpack.c.bf16 %v2670_v15, %v2638_v14  ;;  %v9290_v17 = vpack.c.bf16 %v2672_v18, %v2640_v16  ;;  %v9292_v0 = vpack.c.bf16 %v2737_v19, %v2705_v23  ;;  %v2958_v15 = vld [vmem:[#allocation2 + $0x18a0] sm:$0xff]  ;;  %v3055_v23 = vld [vmem:[#allocation2 + $0x1ba8] sm:$0xff]  ;;  %v3025_v19 = vld [vmem:[#allocation2 + $0x1ab8] sm:$0xff] }
 0x608   :  { %9273 = vmatprep.subr.bf16.mxu0 %v9272_v30  ;;  %v2704_v30 = vld [vmem:[#allocation2 + $0x10b0] sm:$0xff]  ;;  %v9180_v14 = vpack.c.bf16 %v2991_v7, %v2959_v6  ;;  %v2990_v16 = vld [vmem:[#allocation2 + $0x19a0] sm:$0xff]  ;;  %v3279_v7 = vld [vmem:[#allocation2 + $0x22a8] sm:$0xff] }
 0x609   :  { %v3248_v6 = vld [vmem:[#allocation2 + $0x21b0] sm:$0xff] }
 0x60a   :  { %9147 = vmatpush1.bf16.msra.mxu1 %v9146_v37  ;;  %v2801_v37 = vld [vmem:[#allocation2 + $0x13b8] sm:$0xff] }
 0x60b   :  { %9275 = vmatpush1.bf16.msra.mxu0 %v9274_v44  ;;  %9149 = vmatprep.subr.bf16.mxu1 %v9148_v39  ;;  %v9166_v44 = vpack.c.bf16 %v2734_v28, %v2702_v26  ;;  %v9294_v39 = vpack.c.bf16 %v2736_v32, %v2704_v30  ;;  %v9296_v43 = vpack.c.bf16 %v2801_v37, %v2769_v36  ;;  %v3022_v28 = vld [vmem:[#allocation2 + $0x1aa0] sm:$0xff]  ;;  %v3119_v36 = vld [vmem:[#allocation2 + $0x1da8] sm:$0xff]  ;;  %v3089_v37 = vld [vmem:[#allocation2 + $0x1cb8] sm:$0xff] }
 0x60c   :  { %9277 = vmatprep.subr.bf16.mxu0 %v9276_v42  ;;  %v2768_v42 = vld [vmem:[#allocation2 + $0x12b0] sm:$0xff]  ;;  %v9184_v26 = vpack.c.bf16 %v3055_v23, %v3023_v22  ;;  %v3054_v30 = vld [vmem:[#allocation2 + $0x1ba0] sm:$0xff]  ;;  %v3343_v22 = vld [vmem:[#allocation2 + $0x24a8] sm:$0xff] }
 0x60d   :  { %v3375_v23 = vld [vmem:[#allocation2 + $0x25a8] sm:$0xff] }
 0x60e   :  { %9151 = vmatpush1.bf16.msra.mxu1 %v9150_v49  ;;  %v2865_v49 = vld [vmem:[#allocation2 + $0x15b8] sm:$0xff] }
 0x60f   :  { %9279 = vmatpush1.bf16.msra.mxu0 %v9278_v50  ;;  %9153 = vmatprep.subr.bf16.mxu1 %v9152_v51  ;;  %v9170_v50 = vpack.c.bf16 %v2798_v41, %v2766_v40  ;;  %v9298_v51 = vpack.c.bf16 %v2800_v31, %v2768_v42  ;;  %v9300_v55 = vpack.c.bf16 %v2865_v49, %v2833_v48  ;;  %v3086_v41 = vld [vmem:[#allocation2 + $0x1ca0] sm:$0xff]  ;;  %v3183_v48 = vld [vmem:[#allocation2 + $0x1fa8] sm:$0xff]  ;;  %v3153_v49 = vld [vmem:[#allocation2 + $0x1eb8] sm:$0xff] }
 0x610   :  { %9281 = vmatprep.subr.bf16.mxu0 %v9280_v53  ;;  %v2832_v53 = vld [vmem:[#allocation2 + $0x14b0] sm:$0xff]  ;;  %v9188_v40 = vpack.c.bf16 %v3119_v36, %v3087_v35  ;;  %v3118_v42 = vld [vmem:[#allocation2 + $0x1da0] sm:$0xff]  ;;  %v3407_v36 = vld [vmem:[#allocation2 + $0x26a8] sm:$0xff] }
 0x611   :  { %v3376_v35 = vld [vmem:[#allocation2 + $0x25b0] sm:$0xff] }
 0x612   :  { %9155 = vmatpush1.bf16.msra.mxu1 %v9154_v58  ;;  %v2929_v58 = vld [vmem:[#allocation2 + $0x17b8] sm:$0xff] }
 0x613   :  { %9283 = vmatpush1.bf16.msra.mxu0 %v9282_v46  ;;  %9157 = vmatprep.subr.bf16.mxu1 %v9156_v59  ;;  %v9174_v46 = vpack.c.bf16 %v2862_v52, %v2830_v61  ;;  %v9302_v59 = vpack.c.bf16 %v2864_v34, %v2832_v53  ;;  %v9304_v4 = vpack.c.bf16 %v2929_v58, %v2897_v57  ;;  %v3150_v52 = vld [vmem:[#allocation2 + $0x1ea0] sm:$0xff]  ;;  %v3247_v57 = vld [vmem:[#allocation2 + $0x21a8] sm:$0xff]  ;;  %v3217_v58 = vld [vmem:[#allocation2 + $0x20b8] sm:$0xff] }
 0x614   :  { %9285 = vmatprep.subr.bf16.mxu0 %v9284_v3  ;;  %v2896_v3 = vld [vmem:[#allocation2 + $0x16b0] sm:$0xff]  ;;  %v9192_v61 = vpack.c.bf16 %v3183_v48, %v3151_v47  ;;  %v3182_v53 = vld [vmem:[#allocation2 + $0x1fa0] sm:$0xff]  ;;  %v3471_v48 = vld [vmem:[#allocation2 + $0x28a8] sm:$0xff] }
 0x615   :  { %v3440_v47 = vld [vmem:[#allocation2 + $0x27b0] sm:$0xff] }
 0x616   :  { %9159 = vmatpush1.bf16.msra.mxu1 %v9158_v10  ;;  %v2993_v10 = vld [vmem:[#allocation2 + $0x19b8] sm:$0xff] }
 0x617   :  { %9287 = vmatpush1.bf16.msra.mxu0 %v9286_v11  ;;  %9161 = vmatprep.subr.bf16.mxu1 %v9160_v12  ;;  %v9178_v11 = vpack.c.bf16 %v2926_v1, %v2894_v63  ;;  %v9306_v12 = vpack.c.bf16 %v2928_v5, %v2896_v3  ;;  %v9308_v18 = vpack.c.bf16 %v2993_v10, %v2961_v9  ;;  %v3214_v1 = vld [vmem:[#allocation2 + $0x20a0] sm:$0xff]  ;;  %v3216_v5 = vld [vmem:[#allocation2 + $0x20b0] sm:$0xff]  ;;  %v3311_v9 = vld [vmem:[#allocation2 + $0x23a8] sm:$0xff] }
 0x618   :  { %9289 = vmatprep.subr.bf16.mxu0 %v9288_v20  ;;  %v2960_v20 = vld [vmem:[#allocation2 + $0x18b0] sm:$0xff]  ;;  %v9196_v63 = vpack.c.bf16 %v3247_v57, %v3215_v56  ;;  %v3246_v3 = vld [vmem:[#allocation2 + $0x21a0] sm:$0xff]  ;;  %v3535_v57 = vld [vmem:[#allocation2 + $0x2aa8] sm:$0xff] }
 0x619   :  { %v9198_v10 = vpack.c.bf16 %v3246_v3, %v3214_v1  ;;  %v3504_v56 = vld [vmem:[#allocation2 + $0x29b0] sm:$0xff]  ;;  %v3534_v3 = vld [vmem:[#allocation2 + $0x2aa0] sm:$0xff] }
 0x61a   :  { %9163 = vmatpush1.bf16.msra.mxu1 %v9162_v24  ;;  %v3057_v24 = vld [vmem:[#allocation2 + $0x1bb8] sm:$0xff] }
 0x61b   :  { %9291 = vmatpush1.bf16.msra.mxu0 %v9290_v17  ;;  %9165 = vmatprep.subr.bf16.mxu1 %v9164_v25  ;;  %v9182_v17 = vpack.c.bf16 %v2990_v16, %v2958_v15  ;;  %v9310_v25 = vpack.c.bf16 %v2992_v21, %v2960_v20  ;;  %v9312_v32 = vpack.c.bf16 %v3057_v24, %v3025_v19  ;;  %v3278_v15 = vld [vmem:[#allocation2 + $0x22a0] sm:$0xff]  ;;  %v3280_v20 = vld [vmem:[#allocation2 + $0x22b0] sm:$0xff]  ;;  %v3345_v24 = vld [vmem:[#allocation2 + $0x24b8] sm:$0xff] }
 0x61c   :  { %9293 = vmatprep.subr.bf16.mxu0 %v9292_v0  ;;  %v3024_v0 = vld [vmem:[#allocation2 + $0x1ab0] sm:$0xff]  ;;  %v3310_v16 = vld [vmem:[#allocation2 + $0x23a0] sm:$0xff] }
 0x61d   :  { %v3312_v21 = vld [vmem:[#allocation2 + $0x23b0] sm:$0xff] }
 0x61e   :  { %9167 = vmatpush1.bf16.msra.mxu1 %v9166_v44  ;;  %v3121_v44 = vld [vmem:[#allocation2 + $0x1db8] sm:$0xff] }
 0x61f   :  { %9295 = vmatpush1.bf16.msra.mxu0 %v9294_v39  ;;  %9169 = vmatprep.subr.bf16.mxu1 %v9168_v38  ;;  %v9186_v39 = vpack.c.bf16 %v3054_v30, %v3022_v28  ;;  %v9314_v38 = vpack.c.bf16 %v3056_v33, %v3024_v0  ;;  %v9316_v31 = vpack.c.bf16 %v3121_v44, %v3089_v37  ;;  %v3342_v30 = vld [vmem:[#allocation2 + $0x24a0] sm:$0xff]  ;;  %v3439_v37 = vld [vmem:[#allocation2 + $0x27a8] sm:$0xff]  ;;  %v3409_v44 = vld [vmem:[#allocation2 + $0x26b8] sm:$0xff] }
 0x620   :  { %9297 = vmatprep.subr.bf16.mxu0 %v9296_v43  ;;  %v3088_v43 = vld [vmem:[#allocation2 + $0x1cb0] sm:$0xff]  ;;  %v9204_v28 = vpack.c.bf16 %v3375_v23, %v3343_v22  ;;  %v3374_v0 = vld [vmem:[#allocation2 + $0x25a0] sm:$0xff] }
 0x622   :  { %9171 = vmatpush1.bf16.msra.mxu1 %v9170_v50  ;;  %v3185_v50 = vld [vmem:[#allocation2 + $0x1fb8] sm:$0xff] }
 0x623   :  { %9299 = vmatpush1.bf16.msra.mxu0 %v9298_v51  ;;  %9173 = vmatprep.subr.bf16.mxu1 %v9172_v60  ;;  %v9190_v51 = vpack.c.bf16 %v3118_v42, %v3086_v41  ;;  %v9318_v60 = vpack.c.bf16 %v3120_v45, %v3088_v43  ;;  %v9320_v34 = vpack.c.bf16 %v3185_v50, %v3153_v49  ;;  %v3406_v42 = vld [vmem:[#allocation2 + $0x26a0] sm:$0xff]  ;;  %v3503_v49 = vld [vmem:[#allocation2 + $0x29a8] sm:$0xff]  ;;  %v3473_v50 = vld [vmem:[#allocation2 + $0x28b8] sm:$0xff] }
 0x624   :  { %9301 = vmatprep.subr.bf16.mxu0 %v9300_v55  ;;  %v3152_v55 = vld [vmem:[#allocation2 + $0x1eb0] sm:$0xff]  ;;  %v9208_v41 = vpack.c.bf16 %v3439_v37, %v3407_v36  ;;  %v3438_v43 = vld [vmem:[#allocation2 + $0x27a0] sm:$0xff] }
 0x626   :  { %9175 = vmatpush1.bf16.msra.mxu1 %v9174_v46  ;;  %v3249_v46 = vld [vmem:[#allocation2 + $0x21b8] sm:$0xff] }
 0x627   :  { %9303 = vmatpush1.bf16.msra.mxu0 %v9302_v59  ;;  %9177 = vmatprep.subr.bf16.mxu1 %v9176_v62  ;;  %v9194_v59 = vpack.c.bf16 %v3182_v53, %v3150_v52  ;;  %v9322_v62 = vpack.c.bf16 %v3184_v54, %v3152_v55  ;;  %v9212_v52 = vpack.c.bf16 %v3503_v49, %v3471_v48  ;;  %v3470_v53 = vld [vmem:[#allocation2 + $0x28a0] sm:$0xff]  ;;  %v3761_v48 = vld [vmem:[#allocation2 + $0x31b8] sm:$0xff] }
 0x628   :  { %9305 = vmatprep.subr.bf16.mxu0 %v9304_v4  ;;  %v9324_v4 = vpack.c.bf16 %v3249_v46, %v3217_v58  ;;  %v3502_v55 = vld [vmem:[#allocation2 + $0x29a0] sm:$0xff]  ;;  %v3567_v58 = vld [vmem:[#allocation2 + $0x2ba8] sm:$0xff]  ;;  %v3537_v46 = vld [vmem:[#allocation2 + $0x2ab8] sm:$0xff] }
 0x629   :  { %v9216_v1 = vpack.c.bf16 %v3567_v58, %v3535_v57  ;;  %v9967_v57 = vld [vmem:[%s11971_s0 + $0x18] sm:$0xff] }
 0x62a   :  { %9179 = vmatpush1.bf16.msra.mxu1 %v9178_v11  ;;  %v3281_v11 = vld [vmem:[#allocation2 + $0x22b8] sm:$0xff] }
 0x62b   :  { %9307 = vmatpush1.bf16.msra.mxu0 %v9306_v12  ;;  %9181 = vmatprep.subr.bf16.mxu1 %v9180_v14  ;;  %v3313_v12 = vld [vmem:[#allocation2 + $0x23b8] sm:$0xff]  ;;  %v9326_v14 = vpack.c.bf16 %v3248_v6, %v3216_v5  ;;  %v3536_v5 = vld [vmem:[#allocation2 + $0x2ab0] sm:$0xff] }
 0x62c   :  { %9309 = vmatprep.subr.bf16.mxu0 %v9308_v18  ;;  %v9200_v18 = vpack.c.bf16 %v3311_v9, %v3279_v7  ;;  %v9328_v19 = vpack.c.bf16 %v3313_v12, %v3281_v11  ;;  %v3568_v7 = vld [vmem:[#allocation2 + $0x2bb0] sm:$0xff]  ;;  %v3599_v9 = vld [vmem:[#allocation2 + $0x2ca8] sm:$0xff]  ;;  %v3601_v11 = vld [vmem:[#allocation2 + $0x2cb8] sm:$0xff] }
 0x62d   :  { %v3633_v12 = vld [vmem:[#allocation2 + $0x2db8] sm:$0xff] }
 0x62e   :  { %9183 = vmatpush1.bf16.msra.mxu1 %v9182_v17  ;;  %v3377_v17 = vld [vmem:[#allocation2 + $0x25b8] sm:$0xff]  ;;  %v9348_v23 = vpack.c.bf16 %v3633_v12, %v3601_v11 }
 0x62f   :  { %9311 = vmatpush1.bf16.msra.mxu0 %v9310_v25  ;;  %9185 = vmatprep.subr.bf16.mxu1 %v9184_v26  ;;  %v9202_v25 = vpack.c.bf16 %v3310_v16, %v3278_v15  ;;  %v9330_v26 = vpack.c.bf16 %v3312_v21, %v3280_v20  ;;  %v9332_v33 = vpack.c.bf16 %v3377_v17, %v3345_v24  ;;  %v3598_v20 = vld [vmem:[#allocation2 + $0x2ca0] sm:$0xff]  ;;  %v3600_v21 = vld [vmem:[#allocation2 + $0x2cb0] sm:$0xff]  ;;  %v3663_v24 = vld [vmem:[#allocation2 + $0x2ea8] sm:$0xff] }
 0x630   :  { %9313 = vmatprep.subr.bf16.mxu0 %v9312_v32  ;;  %v3344_v32 = vld [vmem:[#allocation2 + $0x24b0] sm:$0xff]  ;;  %v9346_v15 = vpack.c.bf16 %v3568_v7, %v3536_v5  ;;  %v3695_v17 = vld [vmem:[#allocation2 + $0x2fa8] sm:$0xff]  ;;  %v3857_v11 = vld [vmem:[#allocation2 + $0x34b8] sm:$0xff] }
 0x631   :  { %v9224_v37 = vpack.c.bf16 %v3695_v17, %v3663_v24  ;;  %v3792_v5 = vld [vmem:[#allocation2 + $0x32b0] sm:$0xff]  ;;  %v3889_v12 = vld [vmem:[#allocation2 + $0x35b8] sm:$0xff]  ;;  %v3951_v24 = vld [vmem:[#allocation2 + $0x37a8] sm:$0xff] }
 0x632   :  { %9187 = vmatpush1.bf16.msra.mxu1 %v9186_v39  ;;  %v3441_v39 = vld [vmem:[#allocation2 + $0x27b8] sm:$0xff]  ;;  %v3824_v7 = vld [vmem:[#allocation2 + $0x33b0] sm:$0xff] }
 0x633   :  { %9315 = vmatpush1.bf16.msra.mxu0 %v9314_v38  ;;  %9189 = vmatprep.subr.bf16.mxu1 %v9188_v40  ;;  %v9206_v38 = vpack.c.bf16 %v3374_v0, %v3342_v30  ;;  %v9334_v40 = vpack.c.bf16 %v3376_v35, %v3344_v32  ;;  %v9336_v45 = vpack.c.bf16 %v3441_v39, %v3409_v44  ;;  %v3697_v30 = vld [vmem:[#allocation2 + $0x2fb8] sm:$0xff]  ;;  %v3662_v44 = vld [vmem:[#allocation2 + $0x2ea0] sm:$0xff] }
 0x634   :  { %9317 = vmatprep.subr.bf16.mxu0 %v9316_v31  ;;  %v3408_v31 = vld [vmem:[#allocation2 + $0x26b0] sm:$0xff]  ;;  %v3694_v39 = vld [vmem:[#allocation2 + $0x2fa0] sm:$0xff]  ;;  %v3921_v17 = vld [vmem:[#allocation2 + $0x36b8] sm:$0xff] }
 0x635   :  { %v9226_v49 = vpack.c.bf16 %v3694_v39, %v3662_v44  ;;  %v4015_v44 = vld [vmem:[#allocation2 + $0x39a8] sm:$0xff]  ;;  %v3985_v39 = vld [vmem:[#allocation2 + $0x38b8] sm:$0xff] }
 0x636   :  { %9191 = vmatpush1.bf16.msra.mxu1 %v9190_v51  ;;  %v3505_v51 = vld [vmem:[#allocation2 + $0x29b8] sm:$0xff] }
 0x637   :  { %9319 = vmatpush1.bf16.msra.mxu0 %v9318_v60  ;;  %9193 = vmatprep.subr.bf16.mxu1 %v9192_v61  ;;  %v9210_v60 = vpack.c.bf16 %v3438_v43, %v3406_v42  ;;  %v9338_v61 = vpack.c.bf16 %v3440_v47, %v3408_v31  ;;  %v9340_v54 = vpack.c.bf16 %v3505_v51, %v3473_v50  ;;  %v3696_v42 = vld [vmem:[#allocation2 + $0x2fb0] sm:$0xff]  ;;  %v3727_v43 = vld [vmem:[#allocation2 + $0x30a8] sm:$0xff]  ;;  %v3729_v47 = vld [vmem:[#allocation2 + $0x30b8] sm:$0xff] }
 0x638   :  { %9321 = vmatprep.subr.bf16.mxu0 %v9320_v34  ;;  %v3472_v34 = vld [vmem:[#allocation2 + $0x28b0] sm:$0xff]  ;;  %v3759_v31 = vld [vmem:[#allocation2 + $0x31a8] sm:$0xff] }
 0x63a   :  { %9195 = vmatpush1.bf16.msra.mxu1 %v9194_v59  ;;  %v3569_v59 = vld [vmem:[#allocation2 + $0x2bb8] sm:$0xff] }
 0x63b   :  { %9323 = vmatpush1.bf16.msra.mxu0 %v9322_v62  ;;  %9197 = vmatprep.subr.bf16.mxu1 %v9196_v63  ;;  %v9214_v62 = vpack.c.bf16 %v3502_v55, %v3470_v53  ;;  %v9342_v63 = vpack.c.bf16 %v3504_v56, %v3472_v34  ;;  %v9344_v6 = vpack.c.bf16 %v3569_v59, %v3537_v46  ;;  %v3728_v53 = vld [vmem:[#allocation2 + $0x30b0] sm:$0xff]  ;;  %v3823_v56 = vld [vmem:[#allocation2 + $0x33a8] sm:$0xff]  ;;  %v3793_v46 = vld [vmem:[#allocation2 + $0x32b8] sm:$0xff] }
 0x63c   :  { %9325 = vmatprep.subr.bf16.mxu0 %v9324_v4  ;;  %v3566_v4 = vld [vmem:[#allocation2 + $0x2ba0] sm:$0xff]  ;;  %v9356_v55 = vpack.c.bf16 %v3761_v48, %v3729_v47  ;;  %v3760_v34 = vld [vmem:[#allocation2 + $0x31b0] sm:$0xff]  ;;  %v3825_v59 = vld [vmem:[#allocation2 + $0x33b8] sm:$0xff] }
 0x63d   :  { %5703 = vmatmul.mubr.f32.vlgmr.msra.gmra.mrb[30].mxu1 %v11846_v8  ;;  %v4016_v48 = vld [vmem:[#allocation2 + $0x39b0] sm:$0xff] }
 0x63e   :  { %5845 = vmatmul.mubr.f32.vlgmr.msra.gmra.mrb[28].mxu0 %v11846_v8  ;;  %9199 = vmatpush1.bf16.msra.mxu1 %v9198_v10  ;;  %v3631_v10 = vld [vmem:[#allocation2 + $0x2da8] sm:$0xff] }
 0x63f   :  { %5773 = vmatprep.mubr.f32.mxu1 %v11852_v29  ;;  %9327 = vmatpush1.bf16.msra.mxu0 %v9326_v14  ;;  %v9218_v14 = vpack.c.bf16 %v3566_v4, %v3534_v3  ;;  %v9220_v16 = vpack.c.bf16 %v3631_v10, %v3599_v9  ;;  %v3790_v3 = vld [vmem:[#allocation2 + $0x32a0] sm:$0xff]  ;;  %v3855_v9 = vld [vmem:[#allocation2 + $0x34a8] sm:$0xff] }
 0x640   :  { %5915 = vmatprep.mubr.f32.mxu0 %v11852_v29  ;;  %9201 = vmatprep.subr.bf16.mxu1 %v9200_v18  ;;  %v3630_v18 = vld [vmem:[#allocation2 + $0x2da0] sm:$0xff]  ;;  %v3887_v10 = vld [vmem:[#allocation2 + $0x35a8] sm:$0xff] }
 0x641   :  { %9329 = vmatprep.subr.bf16.mxu0 %v9328_v19  ;;  %v3632_v19 = vld [vmem:[#allocation2 + $0x2db0] sm:$0xff]  ;;  %v3822_v4 = vld [vmem:[#allocation2 + $0x33a0] sm:$0xff] }
 0x642   :  { %9203 = vmatpush1.bf16.msra.mxu1 %v9202_v25  ;;  %v9350_v36 = vpack.c.bf16 %v3632_v19, %v3600_v21  ;;  %v3856_v21 = vld [vmem:[#allocation2 + $0x34b0] sm:$0xff]  ;;  %v3919_v19 = vld [vmem:[#allocation2 + $0x36a8] sm:$0xff] }
 0x643   :  { %9331 = vmatpush1.bf16.msra.mxu0 %v9330_v26  ;;  %9205 = vmatprep.subr.bf16.mxu1 %v9204_v28  ;;  %v3665_v28 = vld [vmem:[#allocation2 + $0x2eb8] sm:$0xff] }
 0x644   :  { %9333 = vmatprep.subr.bf16.mxu0 %v9332_v33  ;;  %v9222_v33 = vpack.c.bf16 %v3630_v18, %v3598_v20  ;;  %v3854_v20 = vld [vmem:[#allocation2 + $0x34a0] sm:$0xff] }
 0x645   :  { %v3886_v18 = vld [vmem:[#allocation2 + $0x35a0] sm:$0xff] }
 0x646   :  { %9207 = vmatpush1.bf16.msra.mxu1 %v9206_v38  ;;  %v3664_v38 = vld [vmem:[#allocation2 + $0x2eb0] sm:$0xff] }
 0x647   :  { %9335 = vmatpush1.bf16.msra.mxu0 %v9334_v40  ;;  %9209 = vmatprep.subr.bf16.mxu1 %v9208_v41  ;;  %v9352_v41 = vpack.c.bf16 %v3697_v30, %v3665_v28  ;;  %v9354_v51 = vpack.c.bf16 %v3696_v42, %v3664_v38  ;;  %v9240_v30 = vpack.c.bf16 %v3951_v24, %v3919_v19  ;;  %v4017_v38 = vld [vmem:[#allocation2 + $0x39b8] sm:$0xff]  ;;  %v4208_v19 = vld [vmem:[#allocation2 + $0x3fb0] sm:$0xff]  ;;  %v2195_v24 = vld [vmem:[#allocation2 + $0xc8] sm:$0xff] }
 0x648   :  { %9337 = vmatprep.subr.bf16.mxu0 %v9336_v45  ;;  %v9372_v47 = vpack.c.bf16 %v4017_v38, %v3985_v39  ;;  %v2291_v39 = vld [vmem:[#allocation2 + $0x3c8] sm:$0xff] }
 0x64a   :  { %9211 = vmatpush1.bf16.msra.mxu1 %v9210_v60  ;;  %v9228_v60 = vpack.c.bf16 %v3759_v31, %v3727_v43  ;;  %v3982_v43 = vld [vmem:[#allocation2 + $0x38a0] sm:$0xff] }
 0x64b   :  { %9339 = vmatpush1.bf16.msra.mxu0 %v9338_v61  ;;  %9213 = vmatprep.subr.bf16.mxu1 %v9212_v52  ;;  %v3726_v61 = vld [vmem:[#allocation2 + $0x30a0] sm:$0xff] }
 0x64c   :  { %9341 = vmatprep.subr.bf16.mxu0 %v9340_v54  ;;  %v3758_v52 = vld [vmem:[#allocation2 + $0x31a0] sm:$0xff]  ;;  %v3791_v54 = vld [vmem:[#allocation2 + $0x32a8] sm:$0xff] }
 0x64d   :  { %v4014_v31 = vld [vmem:[#allocation2 + $0x39a0] sm:$0xff] }
 0x64e   :  { %9215 = vmatpush1.bf16.msra.mxu1 %v9214_v62  ;;  %v9230_v62 = vpack.c.bf16 %v3758_v52, %v3726_v61  ;;  %v9246_v61 = vpack.c.bf16 %v4014_v31, %v3982_v43  ;;  %v2258_v43 = vld [vmem:[#allocation2 + $0x2c0] sm:$0xff] }
 0x64f   :  { %9343 = vmatpush1.bf16.msra.mxu0 %v9342_v63  ;;  %9217 = vmatprep.subr.bf16.mxu1 %v9216_v1  ;;  %v9358_v63 = vpack.c.bf16 %v3760_v34, %v3728_v53  ;;  %v9232_v1 = vpack.c.bf16 %v3823_v56, %v3791_v54  ;;  %v4078_v34 = vld [vmem:[#allocation2 + $0x3ba0] sm:$0xff]  ;;  %v4048_v54 = vld [vmem:[#allocation2 + $0x3ab0] sm:$0xff] }
 0x650   :  { %v5207_v22 = vpop.f32.mrb[26].mxu1  ;;  %9345 = vmatprep.subr.bf16.mxu0 %v9344_v6  ;;  %v9360_v6 = vpack.c.bf16 %v3825_v59, %v3793_v46  ;;  %v4143_v46 = vld [vmem:[#allocation2 + $0x3da8] sm:$0xff]  ;;  %v4113_v59 = vld [vmem:[#allocation2 + $0x3cb8] sm:$0xff]  ;;  %v2290_v31 = vld [vmem:[#allocation2 + $0x3c0] sm:$0xff] }
 0x651   :  { %v5349_v25 = vpop.f32.mrb[24].mxu0  ;;  %v5209_v26 = vpop.f32.mrb[27].mxu1 }
 0x652   :  { %v6573_v0 = vcombine.low %v5207_v22, %v5209_v26  ;;  %v5351_v32 = vpop.f32.mrb[25].mxu0  ;;  %9219 = vmatpush1.bf16.msra.mxu1 %v9218_v14  ;;  %v9234_v14 = vpack.c.bf16 %v3822_v4, %v3790_v3  ;;  %v9364_v22 = vpack.c.bf16 %v3889_v12, %v3857_v11  ;;  %v9238_v26 = vpack.c.bf16 %v3886_v18, %v3854_v20  ;;  %v4110_v4 = vld [vmem:[#allocation2 + $0x3ca0] sm:$0xff]  ;;  %v4207_v11 = vld [vmem:[#allocation2 + $0x3fa8] sm:$0xff]  ;;  %v4177_v12 = vld [vmem:[#allocation2 + $0x3eb8] sm:$0xff] }
 0x653   :  { %v6574_v35 = vcombine.low %v5349_v25, %v5351_v32  ;;  %9347 = vmatpush1.bf16.msra.mxu0 %v9346_v15  ;;  %9221 = vmatprep.subr.bf16.mxu1 %v9220_v16  ;;  %v9362_v15 = vpack.c.bf16 %v3824_v7, %v3792_v5  ;;  %v9236_v16 = vpack.c.bf16 %v3887_v10, %v3855_v9  ;;  %v3953_v25 = vld [vmem:[#allocation2 + $0x37b8] sm:$0xff]  ;;  %v3950_v32 = vld [vmem:[#allocation2 + $0x37a0] sm:$0xff]  ;;  %v4144_v9 = vld [vmem:[#allocation2 + $0x3db0] sm:$0xff] }
 0x654   :  { %v6581_v40 = vrot.slane %v6573_v0, %v10238_v13  ;;  %9349 = vmatprep.subr.bf16.mxu0 %v9348_v23  ;;  %v3888_v23 = vld [vmem:[#allocation2 + $0x35b0] sm:$0xff]  ;;  %v3918_v0 = vld [vmem:[#allocation2 + $0x36a0] sm:$0xff]  ;;  %v4175_v10 = vld [vmem:[#allocation2 + $0x3ea8] sm:$0xff] }
 0x655   :  { %v6588_v45 = vrot.slane %v6574_v35, %v10238_v13  ;;  %v9366_v28 = vpack.c.bf16 %v3888_v23, %v3856_v21  ;;  %v9368_v35 = vpack.c.bf16 %v3953_v25, %v3921_v17  ;;  %v4142_v5 = vld [vmem:[#allocation2 + $0x3da0] sm:$0xff]  ;;  %v9256_v20 = vpack.c.bf16 %v4207_v11, %v4175_v10  ;;  %v2227_v17 = vld [vmem:[#allocation2 + $0x1c8] sm:$0xff]  ;;  %v2197_v25 = vld [vmem:[#allocation2 + $0xd8] sm:$0xff] }
 0x656   :  { %9223 = vmatpush1.bf16.msra.mxu1 %v9222_v33  ;;  %v3920_v33 = vld [vmem:[#allocation2 + $0x36b0] sm:$0xff]  ;;  %v4174_v18 = vld [vmem:[#allocation2 + $0x3ea0] sm:$0xff]  ;;  %v2451_v11 = vld [vmem:[#allocation2 + $0x8c8] sm:$0xff] }
 0x657   :  { %v6589_v50 = vcombine.low %v6581_v40, %v6588_v45  ;;  %9351 = vmatpush1.bf16.msra.mxu0 %v9350_v36  ;;  %9225 = vmatprep.subr.bf16.mxu1 %v9224_v37  ;;  %v3952_v36 = vld [vmem:[#allocation2 + $0x37b0] sm:$0xff]  ;;  %v3983_v37 = vld [vmem:[#allocation2 + $0x38a8] sm:$0xff]  ;;  %v9242_v40 = vpack.c.bf16 %v3950_v32, %v3918_v0  ;;  %v4206_v21 = vld [vmem:[#allocation2 + $0x3fa0] sm:$0xff]  ;;  %v9388_v0 = vpack.c.bf16 %v2227_v17, %v2195_v24 }
 0x658   :  { %9353 = vmatprep.subr.bf16.mxu0 %v9352_v41  ;;  %v9370_v41 = vpack.c.bf16 %v3952_v36, %v3920_v33  ;;  %v9244_v42 = vpack.c.bf16 %v4015_v44, %v3983_v37  ;;  %v3984_v45 = vld [vmem:[#allocation2 + $0x38b0] sm:$0xff]  ;;  %v2194_v32 = vld [vmem:[#allocation2 + $0xc0] sm:$0xff]  ;;  %v2259_v44 = vld [vmem:[#allocation2 + $0x2c8] sm:$0xff] }
 0x659   :  { %v6669_v58 = vmul.f32 %v9967_v57, %v6589_v50  ;;  %v4079_v50 = vld [vmem:[#allocation2 + $0x3ba8] sm:$0xff]  ;;  %v9374_v52 = vpack.c.bf16 %v4016_v48, %v3984_v45  ;;  %v4080_v57 = vld [vmem:[#allocation2 + $0x3bb0] sm:$0xff]  ;;  %v2226_v33 = vld [vmem:[#allocation2 + $0x1c0] sm:$0xff] }
 0x65a   :  { %9227 = vmatpush1.bf16.msra.mxu1 %v9226_v49  ;;  %v4047_v49 = vld [vmem:[#allocation2 + $0x3aa8] sm:$0xff]  ;;  %v2196_v36 = vld [vmem:[#allocation2 + $0xd0] sm:$0xff]  ;;  %v9390_v38 = vpack.c.bf16 %v2226_v33, %v2194_v32  ;;  %v2514_v33 = vld [vmem:[#allocation2 + $0xac0] sm:$0xff] }
 0x65b   :  { %6677 = vst [vmem:[#allocation5 + $0x18] sm:$0xff] %v6669_v58  ;;  %9355 = vmatpush1.bf16.msra.mxu0 %v9354_v51  ;;  %9229 = vmatprep.subr.bf16.mxu1 %v9228_v60  ;;  %v4049_v51 = vld [vmem:[#allocation2 + $0x3ab8] sm:$0xff]  ;;  %v9248_v53 = vpack.c.bf16 %v4079_v50, %v4047_v49  ;;  %v4111_v58 = vld [vmem:[#allocation2 + $0x3ca8] sm:$0xff]  ;;  %v2228_v37 = vld [vmem:[#allocation2 + $0x1d0] sm:$0xff] }
 0x65c   :  { %9357 = vmatprep.subr.bf16.mxu0 %v9356_v55  ;;  %v4081_v60 = vld [vmem:[#allocation2 + $0x3bb8] sm:$0xff]  ;;  %v4046_v55 = vld [vmem:[#allocation2 + $0x3aa0] sm:$0xff]  ;;  %v9252_v3 = vpack.c.bf16 %v4143_v46, %v4111_v58  ;;  %v2260_v45 = vld [vmem:[#allocation2 + $0x2d0] sm:$0xff] }
 0x65d   :  { %v9376_v56 = vpack.c.bf16 %v4081_v60, %v4049_v51  ;;  %v2292_v48 = vld [vmem:[#allocation2 + $0x3d0] sm:$0xff]  ;;  %v2323_v49 = vld [vmem:[#allocation2 + $0x4c8] sm:$0xff]  ;;  %v2325_v60 = vld [vmem:[#allocation2 + $0x4d8] sm:$0xff] }
 0x65e   :  { %9231 = vmatpush1.bf16.msra.mxu1 %v9230_v62  ;;  %v4145_v62 = vld [vmem:[#allocation2 + $0x3db8] sm:$0xff]  ;;  %v2355_v50 = vld [vmem:[#allocation2 + $0x5c8] sm:$0xff]  ;;  %v2356_v58 = vld [vmem:[#allocation2 + $0x5d0] sm:$0xff] }
 0x65f   :  { %9359 = vmatpush1.bf16.msra.mxu0 %v9358_v63  ;;  %9233 = vmatprep.subr.bf16.mxu1 %v9232_v1  ;;  %v9250_v63 = vpack.c.bf16 %v4078_v34, %v4046_v55  ;;  %v9378_v1 = vpack.c.bf16 %v4080_v57, %v4048_v54  ;;  %v9380_v7 = vpack.c.bf16 %v4145_v62, %v4113_v59  ;;  %v2322_v34 = vld [vmem:[#allocation2 + $0x4c0] sm:$0xff]  ;;  %v2387_v46 = vld [vmem:[#allocation2 + $0x6c8] sm:$0xff]  ;;  %v2389_v62 = vld [vmem:[#allocation2 + $0x6d8] sm:$0xff] }
 0x660   :  { %9361 = vmatprep.subr.bf16.mxu0 %v9360_v6  ;;  %v4112_v6 = vld [vmem:[#allocation2 + $0x3cb0] sm:$0xff]  ;;  %v9396_v55 = vpack.c.bf16 %v2355_v50, %v2323_v49  ;;  %v2354_v54 = vld [vmem:[#allocation2 + $0x5c0] sm:$0xff]  ;;  %v2419_v59 = vld [vmem:[#allocation2 + $0x7c8] sm:$0xff] }
 0x661   :  { %v2420_v10 = vld [vmem:[#allocation2 + $0x7d0] sm:$0xff]  ;;  %v2515_v17 = vld [vmem:[#allocation2 + $0xac8] sm:$0xff] }
 0x662   :  { %9235 = vmatpush1.bf16.msra.mxu1 %v9234_v14  ;;  %v4209_v14 = vld [vmem:[#allocation2 + $0x3fb8] sm:$0xff]  ;;  %v2484_v24 = vld [vmem:[#allocation2 + $0x9d0] sm:$0xff] }
 0x663   :  { %9363 = vmatpush1.bf16.msra.mxu0 %v9362_v15  ;;  %9237 = vmatprep.subr.bf16.mxu1 %v9236_v16  ;;  %v9254_v15 = vpack.c.bf16 %v4142_v5, %v4110_v4  ;;  %v9382_v16 = vpack.c.bf16 %v4144_v9, %v4112_v6  ;;  %v9384_v23 = vpack.c.bf16 %v4209_v14, %v4177_v12  ;;  %v2386_v5 = vld [vmem:[#allocation2 + $0x6c0] sm:$0xff]  ;;  %v2483_v12 = vld [vmem:[#allocation2 + $0x9c8] sm:$0xff]  ;;  %v2453_v14 = vld [vmem:[#allocation2 + $0x8d8] sm:$0xff] }
 0x664   :  { %9365 = vmatprep.subr.bf16.mxu0 %v9364_v22  ;;  %v4176_v22 = vld [vmem:[#allocation2 + $0x3eb0] sm:$0xff]  ;;  %v9400_v4 = vpack.c.bf16 %v2419_v59, %v2387_v46  ;;  %v2418_v6 = vld [vmem:[#allocation2 + $0x7c0] sm:$0xff]  ;;  %v2707_v59 = vld [vmem:[#allocation2 + $0x10c8] sm:$0xff] }
 0x665   :  { %v2612_v50 = vld [vmem:[#allocation2 + $0xdd0] sm:$0xff] }
 0x666   :  { %9239 = vmatpush1.bf16.msra.mxu1 %v9238_v26  ;;  %v2229_v26 = vld [vmem:[#allocation2 + $0x1d8] sm:$0xff]  ;;  %v2676_v46 = vld [vmem:[#allocation2 + $0xfd0] sm:$0xff] }
 0x667   :  { %9367 = vmatpush1.bf16.msra.mxu0 %v9366_v28  ;;  %9241 = vmatprep.subr.bf16.mxu1 %v9240_v30  ;;  %v9258_v28 = vpack.c.bf16 %v4206_v21, %v4174_v18  ;;  %v9386_v30 = vpack.c.bf16 %v4208_v19, %v4176_v22  ;;  %v9404_v18 = vpack.c.bf16 %v2483_v12, %v2451_v11  ;;  %v2450_v21 = vld [vmem:[#allocation2 + $0x8c0] sm:$0xff]  ;;  %v2740_v11 = vld [vmem:[#allocation2 + $0x11d0] sm:$0xff]  ;;  %v2771_v12 = vld [vmem:[#allocation2 + $0x12c8] sm:$0xff] }
 0x668   :  { %9369 = vmatprep.subr.bf16.mxu0 %v9368_v35  ;;  %v9516_v35 = vpack.c.bf16 %v2229_v26, %v2197_v25  ;;  %v2482_v22 = vld [vmem:[#allocation2 + $0x9c0] sm:$0xff]  ;;  %v2547_v25 = vld [vmem:[#allocation2 + $0xbc8] sm:$0xff]  ;;  %v2517_v26 = vld [vmem:[#allocation2 + $0xad8] sm:$0xff] }
 0x669   :  { %v9408_v32 = vpack.c.bf16 %v2547_v25, %v2515_v17  ;;  %v2804_v17 = vld [vmem:[#allocation2 + $0x13d0] sm:$0xff]  ;;  %v2835_v25 = vld [vmem:[#allocation2 + $0x14c8] sm:$0xff] }
 0x66a   :  { %9243 = vmatpush1.bf16.msra.mxu1 %v9242_v40  ;;  %v2261_v40 = vld [vmem:[#allocation2 + $0x2d8] sm:$0xff] }
 0x66b   :  { %9371 = vmatpush1.bf16.msra.mxu0 %v9370_v41  ;;  %9245 = vmatprep.subr.bf16.mxu1 %v9244_v42  ;;  %v2293_v41 = vld [vmem:[#allocation2 + $0x3d8] sm:$0xff]  ;;  %v9518_v42 = vpack.c.bf16 %v2228_v37, %v2196_v36  ;;  %v2516_v36 = vld [vmem:[#allocation2 + $0xad0] sm:$0xff] }
 0x66c   :  { %9373 = vmatprep.subr.bf16.mxu0 %v9372_v47  ;;  %v9392_v47 = vpack.c.bf16 %v2291_v39, %v2259_v44  ;;  %v9520_v51 = vpack.c.bf16 %v2293_v41, %v2261_v40  ;;  %v2548_v44 = vld [vmem:[#allocation2 + $0xbd0] sm:$0xff]  ;;  %v2579_v39 = vld [vmem:[#allocation2 + $0xcc8] sm:$0xff]  ;;  %v2581_v40 = vld [vmem:[#allocation2 + $0xcd8] sm:$0xff] }
 0x66d   :  { %v2613_v41 = vld [vmem:[#allocation2 + $0xdd8] sm:$0xff] }
 0x66e   :  { %9247 = vmatpush1.bf16.msra.mxu1 %v9246_v61  ;;  %v2357_v61 = vld [vmem:[#allocation2 + $0x5d8] sm:$0xff]  ;;  %v9540_v49 = vpack.c.bf16 %v2613_v41, %v2581_v40  ;;  %v2931_v40 = vld [vmem:[#allocation2 + $0x17c8] sm:$0xff] }
 0x66f   :  { %9375 = vmatpush1.bf16.msra.mxu0 %v9374_v52  ;;  %9249 = vmatprep.subr.bf16.mxu1 %v9248_v53  ;;  %v9394_v52 = vpack.c.bf16 %v2290_v31, %v2258_v43  ;;  %v9522_v53 = vpack.c.bf16 %v2292_v48, %v2260_v45  ;;  %v9524_v57 = vpack.c.bf16 %v2357_v61, %v2325_v60  ;;  %v2578_v45 = vld [vmem:[#allocation2 + $0xcc0] sm:$0xff]  ;;  %v2580_v48 = vld [vmem:[#allocation2 + $0xcd0] sm:$0xff]  ;;  %v2675_v60 = vld [vmem:[#allocation2 + $0xfc8] sm:$0xff] }
 0x670   :  { %9377 = vmatprep.subr.bf16.mxu0 %v9376_v56  ;;  %v2324_v56 = vld [vmem:[#allocation2 + $0x4d0] sm:$0xff]  ;;  %v9538_v43 = vpack.c.bf16 %v2548_v44, %v2516_v36  ;;  %v2645_v61 = vld [vmem:[#allocation2 + $0xed8] sm:$0xff]  ;;  %v2866_v36 = vld [vmem:[#allocation2 + $0x15c0] sm:$0xff] }
 0x671   :  { %v2901_v41 = vld [vmem:[#allocation2 + $0x16d8] sm:$0xff] }
 0x672   :  { %9251 = vmatpush1.bf16.msra.mxu1 %v9250_v63  ;;  %v2421_v63 = vld [vmem:[#allocation2 + $0x7d8] sm:$0xff] }
 0x673   :  { %9379 = vmatpush1.bf16.msra.mxu0 %v9378_v1  ;;  %9253 = vmatprep.subr.bf16.mxu1 %v9252_v3  ;;  %v9398_v1 = vpack.c.bf16 %v2354_v54, %v2322_v34  ;;  %v9526_v3 = vpack.c.bf16 %v2356_v58, %v2324_v56  ;;  %v9528_v9 = vpack.c.bf16 %v2421_v63, %v2389_v62  ;;  %v2642_v54 = vld [vmem:[#allocation2 + $0xec0] sm:$0xff]  ;;  %v2739_v62 = vld [vmem:[#allocation2 + $0x11c8] sm:$0xff]  ;;  %v2709_v63 = vld [vmem:[#allocation2 + $0x10d8] sm:$0xff] }
 0x674   :  { %9381 = vmatprep.subr.bf16.mxu0 %v9380_v7  ;;  %v2388_v7 = vld [vmem:[#allocation2 + $0x6d0] sm:$0xff]  ;;  %v2674_v56 = vld [vmem:[#allocation2 + $0xfc0] sm:$0xff] }
 0x676   :  { %9255 = vmatpush1.bf16.msra.mxu1 %v9254_v15  ;;  %v2485_v15 = vld [vmem:[#allocation2 + $0x9d8] sm:$0xff] }
 0x677   :  { %9383 = vmatpush1.bf16.msra.mxu0 %v9382_v16  ;;  %9257 = vmatprep.subr.bf16.mxu1 %v9256_v20  ;;  %v9402_v16 = vpack.c.bf16 %v2418_v6, %v2386_v5  ;;  %v9530_v20 = vpack.c.bf16 %v2420_v10, %v2388_v7  ;;  %v9532_v19 = vpack.c.bf16 %v2485_v15, %v2453_v14  ;;  %v2706_v6 = vld [vmem:[#allocation2 + $0x10c0] sm:$0xff]  ;;  %v2803_v14 = vld [vmem:[#allocation2 + $0x13c8] sm:$0xff]  ;;  %v2773_v15 = vld [vmem:[#allocation2 + $0x12d8] sm:$0xff] }
 0x678   :  { %9385 = vmatprep.subr.bf16.mxu0 %v9384_v23  ;;  %v2452_v23 = vld [vmem:[#allocation2 + $0x8d0] sm:$0xff]  ;;  %v9420_v5 = vpack.c.bf16 %v2739_v62, %v2707_v59  ;;  %v2738_v7 = vld [vmem:[#allocation2 + $0x11c0] sm:$0xff]  ;;  %v3027_v62 = vld [vmem:[#allocation2 + $0x1ac8] sm:$0xff] }
 0x679   :  { %v2996_v59 = vld [vmem:[#allocation2 + $0x19d0] sm:$0xff] }
 0x67a   :  { %9259 = vmatpush1.bf16.msra.mxu1 %v9258_v28  ;;  %v2549_v28 = vld [vmem:[#allocation2 + $0xbd8] sm:$0xff] }
 0x67b   :  { %9387 = vmatpush1.bf16.msra.mxu0 %v9386_v30  ;;  %9389 = vmatprep.subr.bf16.mxu1 %v9388_v0  ;;  %v9406_v30 = vpack.c.bf16 %v2482_v22, %v2450_v21  ;;  %v9534_v0 = vpack.c.bf16 %v2484_v24, %v2452_v23  ;;  %v9536_v37 = vpack.c.bf16 %v2549_v28, %v2517_v26  ;;  %v2770_v22 = vld [vmem:[#allocation2 + $0x12c0] sm:$0xff]  ;;  %v2867_v26 = vld [vmem:[#allocation2 + $0x15c8] sm:$0xff]  ;;  %v2837_v28 = vld [vmem:[#allocation2 + $0x14d8] sm:$0xff] }
 0x67c   :  { %9517 = vmatprep.subr.bf16.mxu0 %v9516_v35  ;;  %v2546_v35 = vld [vmem:[#allocation2 + $0xbc0] sm:$0xff]  ;;  %v9424_v21 = vpack.c.bf16 %v2803_v14, %v2771_v12  ;;  %v3060_v12 = vld [vmem:[#allocation2 + $0x1bd0] sm:$0xff]  ;;  %v3091_v14 = vld [vmem:[#allocation2 + $0x1cc8] sm:$0xff] }
 0x67d   :  { %5774 = vmatmul.mubr.f32.vlgmr.msra.gmra.mrb[30].mxu1 %v11859_v27  ;;  %v2802_v23 = vld [vmem:[#allocation2 + $0x13c0] sm:$0xff] }
 0x67e   :  { %5916 = vmatmul.mubr.f32.vlgmr.msra.gmra.mrb[28].mxu0 %v11859_v27  ;;  %9391 = vmatpush1.bf16.msra.mxu1 %v9390_v38  ;;  %v2611_v38 = vld [vmem:[#allocation2 + $0xdc8] sm:$0xff] }
 0x67f   :  { %5986 = vmatprep.mubr.f32.mxu1 %v11844_v2  ;;  %9519 = vmatpush1.bf16.msra.mxu0 %v9518_v42  ;;  %v9410_v42 = vpack.c.bf16 %v2546_v35, %v2514_v33  ;;  %v9412_v31 = vpack.c.bf16 %v2611_v38, %v2579_v39  ;;  %v9428_v33 = vpack.c.bf16 %v2867_v26, %v2835_v25  ;;  %v2834_v35 = vld [vmem:[#allocation2 + $0x14c0] sm:$0xff]  ;;  %v2868_v39 = vld [vmem:[#allocation2 + $0x15d0] sm:$0xff]  ;;  %v2899_v38 = vld [vmem:[#allocation2 + $0x16c8] sm:$0xff] }
 0x680   :  { %6128 = vmatprep.mubr.f32.mxu0 %v11844_v2  ;;  %9393 = vmatprep.subr.bf16.mxu1 %v9392_v47  ;;  %v2610_v47 = vld [vmem:[#allocation2 + $0xdc0] sm:$0xff]  ;;  %v3124_v25 = vld [vmem:[#allocation2 + $0x1dd0] sm:$0xff]  ;;  %v3155_v26 = vld [vmem:[#allocation2 + $0x1ec8] sm:$0xff] }
 0x681   :  { %9521 = vmatprep.subr.bf16.mxu0 %v9520_v51  ;;  %v2643_v51 = vld [vmem:[#allocation2 + $0xec8] sm:$0xff] }
 0x682   :  { %9395 = vmatpush1.bf16.msra.mxu1 %v9394_v52  ;;  %v2677_v52 = vld [vmem:[#allocation2 + $0xfd8] sm:$0xff]  ;;  %v9416_v34 = vpack.c.bf16 %v2675_v60, %v2643_v51  ;;  %v2932_v51 = vld [vmem:[#allocation2 + $0x17d0] sm:$0xff]  ;;  %v2963_v60 = vld [vmem:[#allocation2 + $0x18c8] sm:$0xff] }
 0x683   :  { %9523 = vmatpush1.bf16.msra.mxu0 %v9522_v53  ;;  %9397 = vmatprep.subr.bf16.mxu1 %v9396_v55  ;;  %v9414_v53 = vpack.c.bf16 %v2610_v47, %v2578_v45  ;;  %v9542_v55 = vpack.c.bf16 %v2612_v50, %v2580_v48  ;;  %v9544_v58 = vpack.c.bf16 %v2677_v52, %v2645_v61  ;;  %v2898_v47 = vld [vmem:[#allocation2 + $0x16c0] sm:$0xff]  ;;  %v2995_v61 = vld [vmem:[#allocation2 + $0x19c8] sm:$0xff]  ;;  %v2965_v52 = vld [vmem:[#allocation2 + $0x18d8] sm:$0xff] }
 0x684   :  { %9525 = vmatprep.subr.bf16.mxu0 %v9524_v57  ;;  %v2644_v57 = vld [vmem:[#allocation2 + $0xed0] sm:$0xff]  ;;  %v9432_v45 = vpack.c.bf16 %v2931_v40, %v2899_v38  ;;  %v2930_v48 = vld [vmem:[#allocation2 + $0x17c0] sm:$0xff]  ;;  %v3219_v40 = vld [vmem:[#allocation2 + $0x20c8] sm:$0xff] }
 0x685   :  { %v3188_v38 = vld [vmem:[#allocation2 + $0x1fd0] sm:$0xff] }
 0x686   :  { %9399 = vmatpush1.bf16.msra.mxu1 %v9398_v1  ;;  %v2741_v1 = vld [vmem:[#allocation2 + $0x11d8] sm:$0xff] }
 0x687   :  { %9527 = vmatpush1.bf16.msra.mxu0 %v9526_v3  ;;  %9401 = vmatprep.subr.bf16.mxu1 %v9400_v4  ;;  %v9418_v3 = vpack.c.bf16 %v2674_v56, %v2642_v54  ;;  %v9546_v4 = vpack.c.bf16 %v2676_v46, %v2644_v57  ;;  %v9548_v10 = vpack.c.bf16 %v2741_v1, %v2709_v63  ;;  %v2962_v56 = vld [vmem:[#allocation2 + $0x18c0] sm:$0xff]  ;;  %v3059_v63 = vld [vmem:[#allocation2 + $0x1bc8] sm:$0xff]  ;;  %v3029_v1 = vld [vmem:[#allocation2 + $0x1ad8] sm:$0xff] }
 0x688   :  { %9529 = vmatprep.subr.bf16.mxu0 %v9528_v9  ;;  %v2708_v9 = vld [vmem:[#allocation2 + $0x10d0] sm:$0xff]  ;;  %v9436_v54 = vpack.c.bf16 %v2995_v61, %v2963_v60  ;;  %v2994_v57 = vld [vmem:[#allocation2 + $0x19c0] sm:$0xff]  ;;  %v3283_v61 = vld [vmem:[#allocation2 + $0x22c8] sm:$0xff] }
 0x689   :  { %v3252_v60 = vld [vmem:[#allocation2 + $0x21d0] sm:$0xff] }
 0x68a   :  { %9403 = vmatpush1.bf16.msra.mxu1 %v9402_v16  ;;  %v2805_v16 = vld [vmem:[#allocation2 + $0x13d8] sm:$0xff] }
 0x68b   :  { %9531 = vmatpush1.bf16.msra.mxu0 %v9530_v20  ;;  %9405 = vmatprep.subr.bf16.mxu1 %v9404_v18  ;;  %v9422_v20 = vpack.c.bf16 %v2738_v7, %v2706_v6  ;;  %v9550_v18 = vpack.c.bf16 %v2740_v11, %v2708_v9  ;;  %v9552_v24 = vpack.c.bf16 %v2805_v16, %v2773_v15  ;;  %v3026_v7 = vld [vmem:[#allocation2 + $0x1ac0] sm:$0xff]  ;;  %v3123_v15 = vld [vmem:[#allocation2 + $0x1dc8] sm:$0xff]  ;;  %v3093_v16 = vld [vmem:[#allocation2 + $0x1cd8] sm:$0xff] }
 0x68c   :  { %9533 = vmatprep.subr.bf16.mxu0 %v9532_v19  ;;  %v2772_v19 = vld [vmem:[#allocation2 + $0x12d0] sm:$0xff]  ;;  %v9440_v6 = vpack.c.bf16 %v3059_v63, %v3027_v62  ;;  %v3058_v9 = vld [vmem:[#allocation2 + $0x1bc0] sm:$0xff]  ;;  %v3347_v62 = vld [vmem:[#allocation2 + $0x24c8] sm:$0xff] }
 0x68d   :  { %v3379_v63 = vld [vmem:[#allocation2 + $0x25c8] sm:$0xff] }
 0x68e   :  { %9407 = vmatpush1.bf16.msra.mxu1 %v9406_v30  ;;  %v2869_v30 = vld [vmem:[#allocation2 + $0x15d8] sm:$0xff] }
 0x68f   :  { %9535 = vmatpush1.bf16.msra.mxu0 %v9534_v0  ;;  %9409 = vmatprep.subr.bf16.mxu1 %v9408_v32  ;;  %v9426_v0 = vpack.c.bf16 %v2802_v23, %v2770_v22  ;;  %v9554_v32 = vpack.c.bf16 %v2804_v17, %v2772_v19  ;;  %v9556_v44 = vpack.c.bf16 %v2869_v30, %v2837_v28  ;;  %v3090_v23 = vld [vmem:[#allocation2 + $0x1cc0] sm:$0xff]  ;;  %v3187_v28 = vld [vmem:[#allocation2 + $0x1fc8] sm:$0xff]  ;;  %v3157_v30 = vld [vmem:[#allocation2 + $0x1ed8] sm:$0xff] }
 0x690   :  { %9537 = vmatprep.subr.bf16.mxu0 %v9536_v37  ;;  %v2836_v37 = vld [vmem:[#allocation2 + $0x14d0] sm:$0xff]  ;;  %v9444_v22 = vpack.c.bf16 %v3123_v15, %v3091_v14  ;;  %v3122_v19 = vld [vmem:[#allocation2 + $0x1dc0] sm:$0xff]  ;;  %v3411_v15 = vld [vmem:[#allocation2 + $0x26c8] sm:$0xff] }
 0x691   :  { %v3380_v14 = vld [vmem:[#allocation2 + $0x25d0] sm:$0xff] }
 0x692   :  { %9411 = vmatpush1.bf16.msra.mxu1 %v9410_v42  ;;  %v2933_v42 = vld [vmem:[#allocation2 + $0x17d8] sm:$0xff] }
 0x693   :  { %9539 = vmatpush1.bf16.msra.mxu0 %v9538_v43  ;;  %9413 = vmatprep.subr.bf16.mxu1 %v9412_v31  ;;  %v9430_v43 = vpack.c.bf16 %v2866_v36, %v2834_v35  ;;  %v9558_v31 = vpack.c.bf16 %v2868_v39, %v2836_v37  ;;  %v9560_v50 = vpack.c.bf16 %v2933_v42, %v2901_v41  ;;  %v3154_v36 = vld [vmem:[#allocation2 + $0x1ec0] sm:$0xff]  ;;  %v3251_v41 = vld [vmem:[#allocation2 + $0x21c8] sm:$0xff]  ;;  %v3221_v42 = vld [vmem:[#allocation2 + $0x20d8] sm:$0xff] }
 0x694   :  { %9541 = vmatprep.subr.bf16.mxu0 %v9540_v49  ;;  %v2900_v49 = vld [vmem:[#allocation2 + $0x16d0] sm:$0xff]  ;;  %v9448_v35 = vpack.c.bf16 %v3187_v28, %v3155_v26  ;;  %v3186_v37 = vld [vmem:[#allocation2 + $0x1fc0] sm:$0xff]  ;;  %v3475_v28 = vld [vmem:[#allocation2 + $0x28c8] sm:$0xff] }
 0x695   :  { %v3444_v26 = vld [vmem:[#allocation2 + $0x27d0] sm:$0xff] }
 0x696   :  { %9415 = vmatpush1.bf16.msra.mxu1 %v9414_v53  ;;  %v2997_v53 = vld [vmem:[#allocation2 + $0x19d8] sm:$0xff] }
 0x697   :  { %9543 = vmatpush1.bf16.msra.mxu0 %v9542_v55  ;;  %9417 = vmatprep.subr.bf16.mxu1 %v9416_v34  ;;  %v9434_v55 = vpack.c.bf16 %v2930_v48, %v2898_v47  ;;  %v9562_v34 = vpack.c.bf16 %v2932_v51, %v2900_v49  ;;  %v9564_v46 = vpack.c.bf16 %v2997_v53, %v2965_v52  ;;  %v3218_v48 = vld [vmem:[#allocation2 + $0x20c0] sm:$0xff]  ;;  %v3220_v51 = vld [vmem:[#allocation2 + $0x20d0] sm:$0xff]  ;;  %v3315_v52 = vld [vmem:[#allocation2 + $0x23c8] sm:$0xff] }
 0x698   :  { %9545 = vmatprep.subr.bf16.mxu0 %v9544_v58  ;;  %v2964_v58 = vld [vmem:[#allocation2 + $0x18d0] sm:$0xff]  ;;  %v9452_v47 = vpack.c.bf16 %v3251_v41, %v3219_v40  ;;  %v3250_v49 = vld [vmem:[#allocation2 + $0x21c0] sm:$0xff]  ;;  %v3539_v41 = vld [vmem:[#allocation2 + $0x2ac8] sm:$0xff] }
 0x699   :  { %v9454_v53 = vpack.c.bf16 %v3250_v49, %v3218_v48  ;;  %v3508_v40 = vld [vmem:[#allocation2 + $0x29d0] sm:$0xff]  ;;  %v3538_v49 = vld [vmem:[#allocation2 + $0x2ac0] sm:$0xff] }
 0x69a   :  { %9419 = vmatpush1.bf16.msra.mxu1 %v9418_v3  ;;  %v3061_v3 = vld [vmem:[#allocation2 + $0x1bd8] sm:$0xff] }
 0x69b   :  { %9547 = vmatpush1.bf16.msra.mxu0 %v9546_v4  ;;  %9421 = vmatprep.subr.bf16.mxu1 %v9420_v5  ;;  %v9438_v4 = vpack.c.bf16 %v2994_v57, %v2962_v56  ;;  %v9566_v5 = vpack.c.bf16 %v2996_v59, %v2964_v58  ;;  %v9568_v11 = vpack.c.bf16 %v3061_v3, %v3029_v1  ;;  %v3282_v56 = vld [vmem:[#allocation2 + $0x22c0] sm:$0xff]  ;;  %v3284_v58 = vld [vmem:[#allocation2 + $0x22d0] sm:$0xff]  ;;  %v3349_v3 = vld [vmem:[#allocation2 + $0x24d8] sm:$0xff] }
 0x69c   :  { %9549 = vmatprep.subr.bf16.mxu0 %v9548_v10  ;;  %v3028_v10 = vld [vmem:[#allocation2 + $0x1ad0] sm:$0xff]  ;;  %v3314_v57 = vld [vmem:[#allocation2 + $0x23c0] sm:$0xff] }
 0x69d   :  { %v3316_v59 = vld [vmem:[#allocation2 + $0x23d0] sm:$0xff] }
 0x69e   :  { %9423 = vmatpush1.bf16.msra.mxu1 %v9422_v20  ;;  %v3125_v20 = vld [vmem:[#allocation2 + $0x1dd8] sm:$0xff] }
 0x69f   :  { %9551 = vmatpush1.bf16.msra.mxu0 %v9550_v18  ;;  %9425 = vmatprep.subr.bf16.mxu1 %v9424_v21  ;;  %v9442_v18 = vpack.c.bf16 %v3058_v9, %v3026_v7  ;;  %v9570_v21 = vpack.c.bf16 %v3060_v12, %v3028_v10  ;;  %v9572_v17 = vpack.c.bf16 %v3125_v20, %v3093_v16  ;;  %v3346_v9 = vld [vmem:[#allocation2 + $0x24c0] sm:$0xff]  ;;  %v3443_v16 = vld [vmem:[#allocation2 + $0x27c8] sm:$0xff]  ;;  %v3413_v20 = vld [vmem:[#allocation2 + $0x26d8] sm:$0xff] }
 0x6a0   :  { %9553 = vmatprep.subr.bf16.mxu0 %v9552_v24  ;;  %v3092_v24 = vld [vmem:[#allocation2 + $0x1cd0] sm:$0xff]  ;;  %v9460_v7 = vpack.c.bf16 %v3379_v63, %v3347_v62  ;;  %v3378_v10 = vld [vmem:[#allocation2 + $0x25c0] sm:$0xff] }
 0x6a2   :  { %9427 = vmatpush1.bf16.msra.mxu1 %v9426_v0  ;;  %v3189_v0 = vld [vmem:[#allocation2 + $0x1fd8] sm:$0xff] }
 0x6a3   :  { %9555 = vmatpush1.bf16.msra.mxu0 %v9554_v32  ;;  %9429 = vmatprep.subr.bf16.mxu1 %v9428_v33  ;;  %v9446_v32 = vpack.c.bf16 %v3122_v19, %v3090_v23  ;;  %v9574_v33 = vpack.c.bf16 %v3124_v25, %v3092_v24  ;;  %v9576_v39 = vpack.c.bf16 %v3189_v0, %v3157_v30  ;;  %v3410_v19 = vld [vmem:[#allocation2 + $0x26c0] sm:$0xff]  ;;  %v3507_v30 = vld [vmem:[#allocation2 + $0x29c8] sm:$0xff]  ;;  %v3477_v0 = vld [vmem:[#allocation2 + $0x28d8] sm:$0xff] }
 0x6a4   :  { %9557 = vmatprep.subr.bf16.mxu0 %v9556_v44  ;;  %v3156_v44 = vld [vmem:[#allocation2 + $0x1ed0] sm:$0xff]  ;;  %v9464_v23 = vpack.c.bf16 %v3443_v16, %v3411_v15  ;;  %v3442_v24 = vld [vmem:[#allocation2 + $0x27c0] sm:$0xff] }
 0x6a6   :  { %9431 = vmatpush1.bf16.msra.mxu1 %v9430_v43  ;;  %v3253_v43 = vld [vmem:[#allocation2 + $0x21d8] sm:$0xff] }
 0x6a7   :  { %9559 = vmatpush1.bf16.msra.mxu0 %v9558_v31  ;;  %9433 = vmatprep.subr.bf16.mxu1 %v9432_v45  ;;  %v9450_v31 = vpack.c.bf16 %v3186_v37, %v3154_v36  ;;  %v9578_v45 = vpack.c.bf16 %v3188_v38, %v3156_v44  ;;  %v9468_v36 = vpack.c.bf16 %v3507_v30, %v3475_v28  ;;  %v3474_v37 = vld [vmem:[#allocation2 + $0x28c0] sm:$0xff]  ;;  %v3765_v28 = vld [vmem:[#allocation2 + $0x31d8] sm:$0xff] }
 0x6a8   :  { %9561 = vmatprep.subr.bf16.mxu0 %v9560_v50  ;;  %v9580_v50 = vpack.c.bf16 %v3253_v43, %v3221_v42  ;;  %v3506_v44 = vld [vmem:[#allocation2 + $0x29c0] sm:$0xff]  ;;  %v3571_v42 = vld [vmem:[#allocation2 + $0x2bc8] sm:$0xff]  ;;  %v3541_v43 = vld [vmem:[#allocation2 + $0x2ad8] sm:$0xff] }
 0x6a9   :  { %v9472_v48 = vpack.c.bf16 %v3571_v42, %v3539_v41  ;;  %v9968_v41 = vld [vmem:[%s11971_s0 + $0x20] sm:$0xff] }
 0x6aa   :  { %9435 = vmatpush1.bf16.msra.mxu1 %v9434_v55  ;;  %v3285_v55 = vld [vmem:[#allocation2 + $0x22d8] sm:$0xff] }
 0x6ab   :  { %9563 = vmatpush1.bf16.msra.mxu0 %v9562_v34  ;;  %9437 = vmatprep.subr.bf16.mxu1 %v9436_v54  ;;  %v3317_v34 = vld [vmem:[#allocation2 + $0x23d8] sm:$0xff]  ;;  %v9582_v54 = vpack.c.bf16 %v3252_v60, %v3220_v51  ;;  %v3540_v51 = vld [vmem:[#allocation2 + $0x2ad0] sm:$0xff] }
 0x6ac   :  { %9565 = vmatprep.subr.bf16.mxu0 %v9564_v46  ;;  %v9456_v46 = vpack.c.bf16 %v3315_v52, %v3283_v61  ;;  %v9584_v1 = vpack.c.bf16 %v3317_v34, %v3285_v55  ;;  %v3572_v61 = vld [vmem:[#allocation2 + $0x2bd0] sm:$0xff]  ;;  %v3603_v52 = vld [vmem:[#allocation2 + $0x2cc8] sm:$0xff]  ;;  %v3605_v55 = vld [vmem:[#allocation2 + $0x2cd8] sm:$0xff] }
 0x6ad   :  { %v3637_v34 = vld [vmem:[#allocation2 + $0x2dd8] sm:$0xff] }
 0x6ae   :  { %9439 = vmatpush1.bf16.msra.mxu1 %v9438_v4  ;;  %v3381_v4 = vld [vmem:[#allocation2 + $0x25d8] sm:$0xff]  ;;  %v9604_v63 = vpack.c.bf16 %v3637_v34, %v3605_v55 }
 0x6af   :  { %9567 = vmatpush1.bf16.msra.mxu0 %v9566_v5  ;;  %9441 = vmatprep.subr.bf16.mxu1 %v9440_v6  ;;  %v9458_v5 = vpack.c.bf16 %v3314_v57, %v3282_v56  ;;  %v9586_v6 = vpack.c.bf16 %v3316_v59, %v3284_v58  ;;  %v9588_v12 = vpack.c.bf16 %v3381_v4, %v3349_v3  ;;  %v3602_v58 = vld [vmem:[#allocation2 + $0x2cc0] sm:$0xff]  ;;  %v3604_v59 = vld [vmem:[#allocation2 + $0x2cd0] sm:$0xff]  ;;  %v3667_v3 = vld [vmem:[#allocation2 + $0x2ec8] sm:$0xff] }
 0x6b0   :  { %9569 = vmatprep.subr.bf16.mxu0 %v9568_v11  ;;  %v3348_v11 = vld [vmem:[#allocation2 + $0x24d0] sm:$0xff]  ;;  %v9602_v56 = vpack.c.bf16 %v3572_v61, %v3540_v51  ;;  %v3699_v4 = vld [vmem:[#allocation2 + $0x2fc8] sm:$0xff]  ;;  %v3861_v55 = vld [vmem:[#allocation2 + $0x34d8] sm:$0xff] }
 0x6b1   :  { %v9480_v16 = vpack.c.bf16 %v3699_v4, %v3667_v3  ;;  %v3796_v51 = vld [vmem:[#allocation2 + $0x32d0] sm:$0xff]  ;;  %v3893_v34 = vld [vmem:[#allocation2 + $0x35d8] sm:$0xff]  ;;  %v3955_v3 = vld [vmem:[#allocation2 + $0x37c8] sm:$0xff] }
 0x6b2   :  { %9443 = vmatpush1.bf16.msra.mxu1 %v9442_v18  ;;  %v3445_v18 = vld [vmem:[#allocation2 + $0x27d8] sm:$0xff]  ;;  %v3828_v61 = vld [vmem:[#allocation2 + $0x33d0] sm:$0xff] }
 0x6b3   :  { %9571 = vmatpush1.bf16.msra.mxu0 %v9570_v21  ;;  %9445 = vmatprep.subr.bf16.mxu1 %v9444_v22  ;;  %v9462_v21 = vpack.c.bf16 %v3378_v10, %v3346_v9  ;;  %v9590_v22 = vpack.c.bf16 %v3380_v14, %v3348_v11  ;;  %v9592_v25 = vpack.c.bf16 %v3445_v18, %v3413_v20  ;;  %v3701_v9 = vld [vmem:[#allocation2 + $0x2fd8] sm:$0xff]  ;;  %v3666_v20 = vld [vmem:[#allocation2 + $0x2ec0] sm:$0xff] }
 0x6b4   :  { %9573 = vmatprep.subr.bf16.mxu0 %v9572_v17  ;;  %v3412_v17 = vld [vmem:[#allocation2 + $0x26d0] sm:$0xff]  ;;  %v3698_v18 = vld [vmem:[#allocation2 + $0x2fc0] sm:$0xff]  ;;  %v3925_v4 = vld [vmem:[#allocation2 + $0x36d8] sm:$0xff] }
 0x6b5   :  { %v9482_v30 = vpack.c.bf16 %v3698_v18, %v3666_v20  ;;  %v4019_v20 = vld [vmem:[#allocation2 + $0x39c8] sm:$0xff]  ;;  %v3989_v18 = vld [vmem:[#allocation2 + $0x38d8] sm:$0xff] }
 0x6b6   :  { %9447 = vmatpush1.bf16.msra.mxu1 %v9446_v32  ;;  %v3509_v32 = vld [vmem:[#allocation2 + $0x29d8] sm:$0xff] }
 0x6b7   :  { %9575 = vmatpush1.bf16.msra.mxu0 %v9574_v33  ;;  %9449 = vmatprep.subr.bf16.mxu1 %v9448_v35  ;;  %v9466_v33 = vpack.c.bf16 %v3442_v24, %v3410_v19  ;;  %v9594_v35 = vpack.c.bf16 %v3444_v26, %v3412_v17  ;;  %v9596_v38 = vpack.c.bf16 %v3509_v32, %v3477_v0  ;;  %v3700_v19 = vld [vmem:[#allocation2 + $0x2fd0] sm:$0xff]  ;;  %v3731_v24 = vld [vmem:[#allocation2 + $0x30c8] sm:$0xff]  ;;  %v3733_v26 = vld [vmem:[#allocation2 + $0x30d8] sm:$0xff] }
 0x6b8   :  { %9577 = vmatprep.subr.bf16.mxu0 %v9576_v39  ;;  %v3476_v39 = vld [vmem:[#allocation2 + $0x28d0] sm:$0xff]  ;;  %v3763_v17 = vld [vmem:[#allocation2 + $0x31c8] sm:$0xff] }
 0x6ba   :  { %9451 = vmatpush1.bf16.msra.mxu1 %v9450_v31  ;;  %v3573_v31 = vld [vmem:[#allocation2 + $0x2bd8] sm:$0xff] }
 0x6bb   :  { %9579 = vmatpush1.bf16.msra.mxu0 %v9578_v45  ;;  %9453 = vmatprep.subr.bf16.mxu1 %v9452_v47  ;;  %v9470_v45 = vpack.c.bf16 %v3506_v44, %v3474_v37  ;;  %v9598_v47 = vpack.c.bf16 %v3508_v40, %v3476_v39  ;;  %v9600_v60 = vpack.c.bf16 %v3573_v31, %v3541_v43  ;;  %v3732_v37 = vld [vmem:[#allocation2 + $0x30d0] sm:$0xff]  ;;  %v3827_v40 = vld [vmem:[#allocation2 + $0x33c8] sm:$0xff]  ;;  %v3797_v43 = vld [vmem:[#allocation2 + $0x32d8] sm:$0xff] }
 0x6bc   :  { %9581 = vmatprep.subr.bf16.mxu0 %v9580_v50  ;;  %v3570_v50 = vld [vmem:[#allocation2 + $0x2bc0] sm:$0xff]  ;;  %v9612_v44 = vpack.c.bf16 %v3765_v28, %v3733_v26  ;;  %v3764_v39 = vld [vmem:[#allocation2 + $0x31d0] sm:$0xff]  ;;  %v3829_v31 = vld [vmem:[#allocation2 + $0x33d8] sm:$0xff] }
 0x6bd   :  { %5987 = vmatmul.mubr.f32.vlgmr.msra.gmra.mrb[32].mxu1 %v11846_v8  ;;  %v4020_v28 = vld [vmem:[#allocation2 + $0x39d0] sm:$0xff] }
 0x6be   :  { %6129 = vmatmul.mubr.f32.vlgmr.msra.gmra.mrb[30].mxu0 %v11846_v8  ;;  %9455 = vmatpush1.bf16.msra.mxu1 %v9454_v53  ;;  %v3635_v53 = vld [vmem:[#allocation2 + $0x2dc8] sm:$0xff] }
 0x6bf   :  { %6057 = vmatprep.mubr.f32.mxu1 %v11852_v29  ;;  %9583 = vmatpush1.bf16.msra.mxu0 %v9582_v54  ;;  %v9474_v54 = vpack.c.bf16 %v3570_v50, %v3538_v49  ;;  %v9476_v57 = vpack.c.bf16 %v3635_v53, %v3603_v52  ;;  %v3794_v49 = vld [vmem:[#allocation2 + $0x32c0] sm:$0xff]  ;;  %v3859_v52 = vld [vmem:[#allocation2 + $0x34c8] sm:$0xff] }
 0x6c0   :  { %6199 = vmatprep.mubr.f32.mxu0 %v11852_v29  ;;  %9457 = vmatprep.subr.bf16.mxu1 %v9456_v46  ;;  %v3634_v46 = vld [vmem:[#allocation2 + $0x2dc0] sm:$0xff]  ;;  %v3891_v53 = vld [vmem:[#allocation2 + $0x35c8] sm:$0xff] }
 0x6c1   :  { %9585 = vmatprep.subr.bf16.mxu0 %v9584_v1  ;;  %v3636_v1 = vld [vmem:[#allocation2 + $0x2dd0] sm:$0xff]  ;;  %v3826_v50 = vld [vmem:[#allocation2 + $0x33c0] sm:$0xff] }
 0x6c2   :  { %9459 = vmatpush1.bf16.msra.mxu1 %v9458_v5  ;;  %v9606_v15 = vpack.c.bf16 %v3636_v1, %v3604_v59  ;;  %v3860_v59 = vld [vmem:[#allocation2 + $0x34d0] sm:$0xff]  ;;  %v3923_v1 = vld [vmem:[#allocation2 + $0x36c8] sm:$0xff] }
 0x6c3   :  { %9587 = vmatpush1.bf16.msra.mxu0 %v9586_v6  ;;  %9461 = vmatprep.subr.bf16.mxu1 %v9460_v7  ;;  %v3669_v7 = vld [vmem:[#allocation2 + $0x2ed8] sm:$0xff] }
 0x6c4   :  { %9589 = vmatprep.subr.bf16.mxu0 %v9588_v12  ;;  %v9478_v12 = vpack.c.bf16 %v3634_v46, %v3602_v58  ;;  %v3858_v58 = vld [vmem:[#allocation2 + $0x34c0] sm:$0xff] }
 0x6c5   :  { %v3890_v46 = vld [vmem:[#allocation2 + $0x35c0] sm:$0xff] }
 0x6c6   :  { %9463 = vmatpush1.bf16.msra.mxu1 %v9462_v21  ;;  %v3668_v21 = vld [vmem:[#allocation2 + $0x2ed0] sm:$0xff] }
 0x6c7   :  { %9591 = vmatpush1.bf16.msra.mxu0 %v9590_v22  ;;  %9465 = vmatprep.subr.bf16.mxu1 %v9464_v23  ;;  %v9608_v23 = vpack.c.bf16 %v3701_v9, %v3669_v7  ;;  %v9610_v32 = vpack.c.bf16 %v3700_v19, %v3668_v21  ;;  %v9496_v9 = vpack.c.bf16 %v3955_v3, %v3923_v1  ;;  %v4021_v21 = vld [vmem:[#allocation2 + $0x39d8] sm:$0xff]  ;;  %v4212_v1 = vld [vmem:[#allocation2 + $0x3fd0] sm:$0xff]  ;;  %v2199_v3 = vld [vmem:[#allocation2 + $0xe8] sm:$0xff] }
 0x6c8   :  { %9593 = vmatprep.subr.bf16.mxu0 %v9592_v25  ;;  %v9628_v26 = vpack.c.bf16 %v4021_v21, %v3989_v18  ;;  %v2295_v18 = vld [vmem:[#allocation2 + $0x3e8] sm:$0xff] }
 0x6ca   :  { %9467 = vmatpush1.bf16.msra.mxu1 %v9466_v33  ;;  %v9484_v33 = vpack.c.bf16 %v3763_v17, %v3731_v24  ;;  %v3986_v24 = vld [vmem:[#allocation2 + $0x38c0] sm:$0xff] }
 0x6cb   :  { %9595 = vmatpush1.bf16.msra.mxu0 %v9594_v35  ;;  %9469 = vmatprep.subr.bf16.mxu1 %v9468_v36  ;;  %v3730_v35 = vld [vmem:[#allocation2 + $0x30c0] sm:$0xff] }
 0x6cc   :  { %9597 = vmatprep.subr.bf16.mxu0 %v9596_v38  ;;  %v3762_v36 = vld [vmem:[#allocation2 + $0x31c0] sm:$0xff]  ;;  %v3795_v38 = vld [vmem:[#allocation2 + $0x32c8] sm:$0xff] }
 0x6cd   :  { %v4018_v17 = vld [vmem:[#allocation2 + $0x39c0] sm:$0xff] }
 0x6ce   :  { %9471 = vmatpush1.bf16.msra.mxu1 %v9470_v45  ;;  %v9486_v45 = vpack.c.bf16 %v3762_v36, %v3730_v35  ;;  %v9502_v35 = vpack.c.bf16 %v4018_v17, %v3986_v24  ;;  %v2262_v24 = vld [vmem:[#allocation2 + $0x2e0] sm:$0xff] }
 0x6cf   :  { %9599 = vmatpush1.bf16.msra.mxu0 %v9598_v47  ;;  %9473 = vmatprep.subr.bf16.mxu1 %v9472_v48  ;;  %v9614_v47 = vpack.c.bf16 %v3764_v39, %v3732_v37  ;;  %v9488_v48 = vpack.c.bf16 %v3827_v40, %v3795_v38  ;;  %v4082_v39 = vld [vmem:[#allocation2 + $0x3bc0] sm:$0xff]  ;;  %v4052_v38 = vld [vmem:[#allocation2 + $0x3ad0] sm:$0xff] }
 0x6d0   :  { %v5491_v62 = vpop.f32.mrb[28].mxu1  ;;  %9601 = vmatprep.subr.bf16.mxu0 %v9600_v60  ;;  %v9616_v60 = vpack.c.bf16 %v3829_v31, %v3797_v43  ;;  %v4147_v43 = vld [vmem:[#allocation2 + $0x3dc8] sm:$0xff]  ;;  %v4117_v31 = vld [vmem:[#allocation2 + $0x3cd8] sm:$0xff]  ;;  %v2294_v17 = vld [vmem:[#allocation2 + $0x3e0] sm:$0xff] }
 0x6d1   :  { %v5633_v5 = vpop.f32.mrb[26].mxu0  ;;  %v5493_v6 = vpop.f32.mrb[29].mxu1 }
 0x6d2   :  { %v6590_v10 = vcombine.low %v5491_v62, %v5493_v6  ;;  %v5635_v11 = vpop.f32.mrb[27].mxu0  ;;  %9475 = vmatpush1.bf16.msra.mxu1 %v9474_v54  ;;  %v9490_v54 = vpack.c.bf16 %v3826_v50, %v3794_v49  ;;  %v9620_v62 = vpack.c.bf16 %v3893_v34, %v3861_v55  ;;  %v9494_v6 = vpack.c.bf16 %v3890_v46, %v3858_v58  ;;  %v4114_v50 = vld [vmem:[#allocation2 + $0x3cc0] sm:$0xff]  ;;  %v4211_v55 = vld [vmem:[#allocation2 + $0x3fc8] sm:$0xff]  ;;  %v4181_v34 = vld [vmem:[#allocation2 + $0x3ed8] sm:$0xff] }
 0x6d3   :  { %v6591_v14 = vcombine.low %v5633_v5, %v5635_v11  ;;  %9603 = vmatpush1.bf16.msra.mxu0 %v9602_v56  ;;  %9477 = vmatprep.subr.bf16.mxu1 %v9476_v57  ;;  %v9618_v56 = vpack.c.bf16 %v3828_v61, %v3796_v51  ;;  %v9492_v57 = vpack.c.bf16 %v3891_v53, %v3859_v52  ;;  %v3957_v5 = vld [vmem:[#allocation2 + $0x37d8] sm:$0xff]  ;;  %v3954_v11 = vld [vmem:[#allocation2 + $0x37c0] sm:$0xff]  ;;  %v4148_v52 = vld [vmem:[#allocation2 + $0x3dd0] sm:$0xff] }
 0x6d4   :  { %v6598_v22 = vrot.slane %v6590_v10, %v10238_v13  ;;  %9605 = vmatprep.subr.bf16.mxu0 %v9604_v63  ;;  %v3892_v63 = vld [vmem:[#allocation2 + $0x35d0] sm:$0xff]  ;;  %v3922_v10 = vld [vmem:[#allocation2 + $0x36c0] sm:$0xff]  ;;  %v4179_v53 = vld [vmem:[#allocation2 + $0x3ec8] sm:$0xff] }
 0x6d5   :  { %v6605_v25 = vrot.slane %v6591_v14, %v10238_v13  ;;  %v9622_v7 = vpack.c.bf16 %v3892_v63, %v3860_v59  ;;  %v9624_v14 = vpack.c.bf16 %v3957_v5, %v3925_v4  ;;  %v4146_v51 = vld [vmem:[#allocation2 + $0x3dc0] sm:$0xff]  ;;  %v9512_v58 = vpack.c.bf16 %v4211_v55, %v4179_v53  ;;  %v2231_v4 = vld [vmem:[#allocation2 + $0x1e8] sm:$0xff]  ;;  %v2201_v5 = vld [vmem:[#allocation2 + $0xf8] sm:$0xff] }
 0x6d6   :  { %9479 = vmatpush1.bf16.msra.mxu1 %v9478_v12  ;;  %v3924_v12 = vld [vmem:[#allocation2 + $0x36d0] sm:$0xff]  ;;  %v4178_v46 = vld [vmem:[#allocation2 + $0x3ec0] sm:$0xff]  ;;  %v2455_v53 = vld [vmem:[#allocation2 + $0x8e8] sm:$0xff] }
 0x6d7   :  { %v6606_v0 = vcombine.low %v6598_v22, %v6605_v25  ;;  %9607 = vmatpush1.bf16.msra.mxu0 %v9606_v15  ;;  %9481 = vmatprep.subr.bf16.mxu1 %v9480_v16  ;;  %v3956_v15 = vld [vmem:[#allocation2 + $0x37d0] sm:$0xff]  ;;  %v3987_v16 = vld [vmem:[#allocation2 + $0x38c8] sm:$0xff]  ;;  %v9498_v22 = vpack.c.bf16 %v3954_v11, %v3922_v10  ;;  %v4210_v59 = vld [vmem:[#allocation2 + $0x3fc0] sm:$0xff]  ;;  %v9644_v10 = vpack.c.bf16 %v2231_v4, %v2199_v3 }
 0x6d8   :  { %9609 = vmatprep.subr.bf16.mxu0 %v9608_v23  ;;  %v9626_v23 = vpack.c.bf16 %v3956_v15, %v3924_v12  ;;  %v9500_v19 = vpack.c.bf16 %v4019_v20, %v3987_v16  ;;  %v3988_v25 = vld [vmem:[#allocation2 + $0x38d0] sm:$0xff]  ;;  %v2198_v11 = vld [vmem:[#allocation2 + $0xe0] sm:$0xff]  ;;  %v2263_v20 = vld [vmem:[#allocation2 + $0x2e8] sm:$0xff] }
 0x6d9   :  { %v6670_v42 = vmul.f32 %v9968_v41, %v6606_v0  ;;  %v4083_v0 = vld [vmem:[#allocation2 + $0x3bc8] sm:$0xff]  ;;  %v9630_v36 = vpack.c.bf16 %v4020_v28, %v3988_v25  ;;  %v4084_v41 = vld [vmem:[#allocation2 + $0x3bd0] sm:$0xff]  ;;  %v2230_v12 = vld [vmem:[#allocation2 + $0x1e0] sm:$0xff] }
 0x6da   :  { %9483 = vmatpush1.bf16.msra.mxu1 %v9482_v30  ;;  %v4051_v30 = vld [vmem:[#allocation2 + $0x3ac8] sm:$0xff]  ;;  %v2200_v15 = vld [vmem:[#allocation2 + $0xf0] sm:$0xff]  ;;  %v9646_v21 = vpack.c.bf16 %v2230_v12, %v2198_v11  ;;  %v2518_v11 = vld [vmem:[#allocation2 + $0xae0] sm:$0xff] }
 0x6db   :  { %6678 = vst [vmem:[#allocation5 + $0x20] sm:$0xff] %v6670_v42  ;;  %9611 = vmatpush1.bf16.msra.mxu0 %v9610_v32  ;;  %9485 = vmatprep.subr.bf16.mxu1 %v9484_v33  ;;  %v4053_v32 = vld [vmem:[#allocation2 + $0x3ad8] sm:$0xff]  ;;  %v9504_v37 = vpack.c.bf16 %v4083_v0, %v4051_v30  ;;  %v4115_v42 = vld [vmem:[#allocation2 + $0x3cc8] sm:$0xff]  ;;  %v2232_v16 = vld [vmem:[#allocation2 + $0x1f0] sm:$0xff] }
 0x6dc   :  { %9613 = vmatprep.subr.bf16.mxu0 %v9612_v44  ;;  %v4085_v33 = vld [vmem:[#allocation2 + $0x3bd8] sm:$0xff]  ;;  %v4050_v44 = vld [vmem:[#allocation2 + $0x3ac0] sm:$0xff]  ;;  %v9508_v49 = vpack.c.bf16 %v4147_v43, %v4115_v42  ;;  %v2264_v25 = vld [vmem:[#allocation2 + $0x2f0] sm:$0xff] }
 0x6dd   :  { %v9632_v40 = vpack.c.bf16 %v4085_v33, %v4053_v32  ;;  %v2296_v28 = vld [vmem:[#allocation2 + $0x3f0] sm:$0xff]  ;;  %v2327_v30 = vld [vmem:[#allocation2 + $0x4e8] sm:$0xff]  ;;  %v2329_v33 = vld [vmem:[#allocation2 + $0x4f8] sm:$0xff] }
 0x6de   :  { %9487 = vmatpush1.bf16.msra.mxu1 %v9486_v45  ;;  %v4149_v45 = vld [vmem:[#allocation2 + $0x3dd8] sm:$0xff]  ;;  %v2359_v0 = vld [vmem:[#allocation2 + $0x5e8] sm:$0xff]  ;;  %v2360_v42 = vld [vmem:[#allocation2 + $0x5f0] sm:$0xff] }
 0x6df   :  { %9615 = vmatpush1.bf16.msra.mxu0 %v9614_v47  ;;  %9489 = vmatprep.subr.bf16.mxu1 %v9488_v48  ;;  %v9506_v47 = vpack.c.bf16 %v4082_v39, %v4050_v44  ;;  %v9634_v48 = vpack.c.bf16 %v4084_v41, %v4052_v38  ;;  %v9636_v61 = vpack.c.bf16 %v4149_v45, %v4117_v31  ;;  %v2326_v39 = vld [vmem:[#allocation2 + $0x4e0] sm:$0xff]  ;;  %v2391_v43 = vld [vmem:[#allocation2 + $0x6e8] sm:$0xff]  ;;  %v2393_v45 = vld [vmem:[#allocation2 + $0x6f8] sm:$0xff] }
 0x6e0   :  { %9617 = vmatprep.subr.bf16.mxu0 %v9616_v60  ;;  %v4116_v60 = vld [vmem:[#allocation2 + $0x3cd0] sm:$0xff]  ;;  %v9652_v44 = vpack.c.bf16 %v2359_v0, %v2327_v30  ;;  %v2358_v38 = vld [vmem:[#allocation2 + $0x5e0] sm:$0xff]  ;;  %v2423_v31 = vld [vmem:[#allocation2 + $0x7e8] sm:$0xff] }
 0x6e1   :  { %v2487_v55 = vld [vmem:[#allocation2 + $0x9e8] sm:$0xff]  ;;  %v2550_v12 = vld [vmem:[#allocation2 + $0xbe0] sm:$0xff]  ;;  %v2616_v30 = vld [vmem:[#allocation2 + $0xdf0] sm:$0xff] }
 0x6e2   :  { %9491 = vmatpush1.bf16.msra.mxu1 %v9490_v54  ;;  %v4213_v54 = vld [vmem:[#allocation2 + $0x3fd8] sm:$0xff]  ;;  %v2519_v3 = vld [vmem:[#allocation2 + $0xae8] sm:$0xff] }
 0x6e3   :  { %9619 = vmatpush1.bf16.msra.mxu0 %v9618_v56  ;;  %9493 = vmatprep.subr.bf16.mxu1 %v9492_v57  ;;  %v9510_v56 = vpack.c.bf16 %v4146_v51, %v4114_v50  ;;  %v9638_v57 = vpack.c.bf16 %v4148_v52, %v4116_v60  ;;  %v9640_v63 = vpack.c.bf16 %v4213_v54, %v4181_v34  ;;  %v2390_v51 = vld [vmem:[#allocation2 + $0x6e0] sm:$0xff]  ;;  %v2457_v34 = vld [vmem:[#allocation2 + $0x8f8] sm:$0xff]  ;;  %v2551_v4 = vld [vmem:[#allocation2 + $0xbe8] sm:$0xff] }
 0x6e4   :  { %9621 = vmatprep.subr.bf16.mxu0 %v9620_v62  ;;  %v4180_v62 = vld [vmem:[#allocation2 + $0x3ed0] sm:$0xff]  ;;  %v9656_v50 = vpack.c.bf16 %v2423_v31, %v2391_v43  ;;  %v2422_v60 = vld [vmem:[#allocation2 + $0x7e0] sm:$0xff]  ;;  %v2489_v54 = vld [vmem:[#allocation2 + $0x9f8] sm:$0xff] }
 0x6e5   :  { %v2647_v0 = vld [vmem:[#allocation2 + $0xee8] sm:$0xff] }
 0x6e6   :  { %9495 = vmatpush1.bf16.msra.mxu1 %v9494_v6  ;;  %v2233_v6 = vld [vmem:[#allocation2 + $0x1f8] sm:$0xff]  ;;  %v2711_v43 = vld [vmem:[#allocation2 + $0x10e8] sm:$0xff] }
 0x6e7   :  { %9623 = vmatpush1.bf16.msra.mxu0 %v9622_v7  ;;  %9497 = vmatprep.subr.bf16.mxu1 %v9496_v9  ;;  %v9514_v7 = vpack.c.bf16 %v4210_v59, %v4178_v46  ;;  %v9642_v9 = vpack.c.bf16 %v4212_v1, %v4180_v62  ;;  %v2454_v46 = vld [vmem:[#allocation2 + $0x8e0] sm:$0xff]  ;;  %v2456_v62 = vld [vmem:[#allocation2 + $0x8f0] sm:$0xff]  ;;  %v2743_v31 = vld [vmem:[#allocation2 + $0x11e8] sm:$0xff] }
 0x6e8   :  { %9625 = vmatprep.subr.bf16.mxu0 %v9624_v14  ;;  %v9772_v14 = vpack.c.bf16 %v2233_v6, %v2201_v5  ;;  %v2486_v59 = vld [vmem:[#allocation2 + $0x9e0] sm:$0xff]  ;;  %v2488_v1 = vld [vmem:[#allocation2 + $0x9f0] sm:$0xff]  ;;  %v2521_v5 = vld [vmem:[#allocation2 + $0xaf8] sm:$0xff] }
 0x6e9   :  { %v2553_v6 = vld [vmem:[#allocation2 + $0xbf8] sm:$0xff] }
 0x6ea   :  { %9499 = vmatpush1.bf16.msra.mxu1 %v9498_v22  ;;  %v2265_v22 = vld [vmem:[#allocation2 + $0x2f8] sm:$0xff] }
 0x6eb   :  { %9627 = vmatpush1.bf16.msra.mxu0 %v9626_v23  ;;  %9501 = vmatprep.subr.bf16.mxu1 %v9500_v19  ;;  %v2297_v23 = vld [vmem:[#allocation2 + $0x3f8] sm:$0xff]  ;;  %v9774_v19 = vpack.c.bf16 %v2232_v16, %v2200_v15  ;;  %v9792_v15 = vpack.c.bf16 %v2553_v6, %v2521_v5  ;;  %v2552_v16 = vld [vmem:[#allocation2 + $0xbf0] sm:$0xff] }
 0x6ec   :  { %9629 = vmatprep.subr.bf16.mxu0 %v9628_v26  ;;  %v9648_v26 = vpack.c.bf16 %v2295_v18, %v2263_v20  ;;  %v9776_v32 = vpack.c.bf16 %v2297_v23, %v2265_v22  ;;  %v2583_v20 = vld [vmem:[#allocation2 + $0xce8] sm:$0xff]  ;;  %v2617_v22 = vld [vmem:[#allocation2 + $0xdf8] sm:$0xff]  ;;  %v9666_v23 = vpack.c.bf16 %v2550_v12, %v2518_v11  ;;  %v2838_v11 = vld [vmem:[#allocation2 + $0x14e0] sm:$0xff] }
 0x6ed   :  { %v2615_v18 = vld [vmem:[#allocation2 + $0xde8] sm:$0xff]  ;;  %v2841_v5 = vld [vmem:[#allocation2 + $0x14f8] sm:$0xff]  ;;  %v2870_v12 = vld [vmem:[#allocation2 + $0x15e0] sm:$0xff] }
 0x6ee   :  { %9503 = vmatpush1.bf16.msra.mxu1 %v9502_v35  ;;  %v2361_v35 = vld [vmem:[#allocation2 + $0x5f8] sm:$0xff] }
 0x6ef   :  { %9631 = vmatpush1.bf16.msra.mxu0 %v9630_v36  ;;  %9505 = vmatprep.subr.bf16.mxu1 %v9504_v37  ;;  %v9650_v36 = vpack.c.bf16 %v2294_v17, %v2262_v24  ;;  %v9778_v37 = vpack.c.bf16 %v2296_v28, %v2264_v25  ;;  %v9780_v41 = vpack.c.bf16 %v2361_v35, %v2329_v33  ;;  %v2582_v17 = vld [vmem:[#allocation2 + $0xce0] sm:$0xff]  ;;  %v2649_v33 = vld [vmem:[#allocation2 + $0xef8] sm:$0xff] }
 0x6f0   :  { %9633 = vmatprep.subr.bf16.mxu0 %v9632_v40  ;;  %v2328_v40 = vld [vmem:[#allocation2 + $0x4f0] sm:$0xff]  ;;  %v9668_v24 = vpack.c.bf16 %v2615_v18, %v2583_v20  ;;  %v2614_v25 = vld [vmem:[#allocation2 + $0xde0] sm:$0xff]  ;;  %v2681_v35 = vld [vmem:[#allocation2 + $0xff8] sm:$0xff] }
 0x6f1   :  { %v2873_v6 = vld [vmem:[#allocation2 + $0x15f8] sm:$0xff]  ;;  %v2903_v20 = vld [vmem:[#allocation2 + $0x16e8] sm:$0xff] }
 0x6f2   :  { %9507 = vmatpush1.bf16.msra.mxu1 %v9506_v47  ;;  %v2425_v47 = vld [vmem:[#allocation2 + $0x7f8] sm:$0xff]  ;;  %v2935_v18 = vld [vmem:[#allocation2 + $0x17e8] sm:$0xff] }
 0x6f3   :  { %9635 = vmatpush1.bf16.msra.mxu0 %v9634_v48  ;;  %9509 = vmatprep.subr.bf16.mxu1 %v9508_v49  ;;  %v9654_v48 = vpack.c.bf16 %v2358_v38, %v2326_v39  ;;  %v9782_v49 = vpack.c.bf16 %v2360_v42, %v2328_v40  ;;  %v9784_v52 = vpack.c.bf16 %v2425_v47, %v2393_v45  ;;  %v2646_v39 = vld [vmem:[#allocation2 + $0xee0] sm:$0xff]  ;;  %v2648_v40 = vld [vmem:[#allocation2 + $0xef0] sm:$0xff]  ;;  %v2713_v45 = vld [vmem:[#allocation2 + $0x10f8] sm:$0xff] }
 0x6f4   :  { %9637 = vmatprep.subr.bf16.mxu0 %v9636_v61  ;;  %v2392_v61 = vld [vmem:[#allocation2 + $0x6f0] sm:$0xff]  ;;  %v2678_v38 = vld [vmem:[#allocation2 + $0xfe0] sm:$0xff]  ;;  %v2745_v47 = vld [vmem:[#allocation2 + $0x11f8] sm:$0xff] }
 0x6f5   :  { %v2680_v42 = vld [vmem:[#allocation2 + $0xff0] sm:$0xff] }
 0x6f6   :  { %9511 = vmatpush1.bf16.msra.mxu1 %v9510_v56  ;;  %v9658_v56 = vpack.c.bf16 %v2422_v60, %v2390_v51  ;;  %v2710_v51 = vld [vmem:[#allocation2 + $0x10e0] sm:$0xff] }
 0x6f7   :  { %9639 = vmatpush1.bf16.msra.mxu0 %v9638_v57  ;;  %9513 = vmatprep.subr.bf16.mxu1 %v9512_v58  ;;  %v9660_v58 = vpack.c.bf16 %v2487_v55, %v2455_v53  ;;  %v2742_v60 = vld [vmem:[#allocation2 + $0x11e0] sm:$0xff]  ;;  %v2775_v53 = vld [vmem:[#allocation2 + $0x12e8] sm:$0xff] }
 0x6f8   :  { %9641 = vmatprep.subr.bf16.mxu0 %v9640_v63  ;;  %v9788_v63 = vpack.c.bf16 %v2489_v54, %v2457_v34  ;;  %v2807_v55 = vld [vmem:[#allocation2 + $0x13e8] sm:$0xff]  ;;  %v2777_v34 = vld [vmem:[#allocation2 + $0x12f8] sm:$0xff] }
 0x6f9   :  { %v2809_v54 = vld [vmem:[#allocation2 + $0x13f8] sm:$0xff] }
 0x6fa   :  { %9515 = vmatpush1.bf16.msra.mxu1 %v9514_v7  ;;  %v9662_v7 = vpack.c.bf16 %v2486_v59, %v2454_v46  ;;  %v2774_v46 = vld [vmem:[#allocation2 + $0x12e0] sm:$0xff] }
 0x6fb   :  { %9643 = vmatpush1.bf16.msra.mxu0 %v9642_v9  ;;  %9645 = vmatprep.subr.bf16.mxu1 %v9644_v10  ;;  %v9790_v9 = vpack.c.bf16 %v2488_v1, %v2456_v62  ;;  %v9664_v10 = vpack.c.bf16 %v2551_v4, %v2519_v3  ;;  %v2806_v59 = vld [vmem:[#allocation2 + $0x13e0] sm:$0xff]  ;;  %v2776_v62 = vld [vmem:[#allocation2 + $0x12f0] sm:$0xff]  ;;  %v2839_v3 = vld [vmem:[#allocation2 + $0x14e8] sm:$0xff] }
 0x6fc   :  { %9773 = vmatprep.subr.bf16.mxu0 %v9772_v14  ;;  %v2520_v14 = vld [vmem:[#allocation2 + $0xaf0] sm:$0xff]  ;;  %v2871_v4 = vld [vmem:[#allocation2 + $0x15e8] sm:$0xff] }
 0x6fd   :  { %6058 = vmatmul.mubr.f32.vlgmr.msra.gmra.mrb[32].mxu1 %v11859_v27  ;;  %v2808_v1 = vld [vmem:[#allocation2 + $0x13f0] sm:$0xff] }
 0x6fe   :  { %6200 = vmatmul.mubr.f32.vlgmr.msra.gmra.mrb[30].mxu0 %v11859_v27  ;;  %9647 = vmatpush1.bf16.msra.mxu1 %v9646_v21  ;;  %v2585_v21 = vld [vmem:[#allocation2 + $0xcf8] sm:$0xff] }
 0x6ff   :  { %6270 = vmatprep.mubr.f32.mxu1 %v11844_v2  ;;  %9775 = vmatpush1.bf16.msra.mxu0 %v9774_v19  ;;  %v9794_v19 = vpack.c.bf16 %v2552_v16, %v2520_v14  ;;  %v9796_v28 = vpack.c.bf16 %v2617_v22, %v2585_v21  ;;  %v2840_v14 = vld [vmem:[#allocation2 + $0x14f0] sm:$0xff]  ;;  %v2905_v21 = vld [vmem:[#allocation2 + $0x16f8] sm:$0xff] }
 0x700   :  { %6412 = vmatprep.mubr.f32.mxu0 %v11844_v2  ;;  %9649 = vmatprep.subr.bf16.mxu1 %v9648_v26  ;;  %v2424_v2 = vld [vmem:[#allocation2 + $0x7f0] sm:$0xff]  ;;  %v2937_v22 = vld [vmem:[#allocation2 + $0x17f8] sm:$0xff] }
 0x701   :  { %9777 = vmatprep.subr.bf16.mxu0 %v9776_v32  ;;  %v9786_v57 = vpack.c.bf16 %v2424_v2, %v2392_v61  ;;  %v2584_v26 = vld [vmem:[#allocation2 + $0xcf0] sm:$0xff]  ;;  %v2679_v32 = vld [vmem:[#allocation2 + $0xfe8] sm:$0xff] }
 0x702   :  { %9651 = vmatpush1.bf16.msra.mxu1 %v9650_v36  ;;  %v9670_v36 = vpack.c.bf16 %v2614_v25, %v2582_v17  ;;  %v2712_v61 = vld [vmem:[#allocation2 + $0x10f0] sm:$0xff]  ;;  %v2902_v17 = vld [vmem:[#allocation2 + $0x16e0] sm:$0xff] }
 0x703   :  { %9779 = vmatpush1.bf16.msra.mxu0 %v9778_v37  ;;  %9653 = vmatprep.subr.bf16.mxu1 %v9652_v44  ;;  %v9798_v37 = vpack.c.bf16 %v2616_v30, %v2584_v26  ;;  %v9672_v44 = vpack.c.bf16 %v2679_v32, %v2647_v0  ;;  %v2744_v2 = vld [vmem:[#allocation2 + $0x11f0] sm:$0xff]  ;;  %v2934_v25 = vld [vmem:[#allocation2 + $0x17e0] sm:$0xff]  ;;  %v2967_v0 = vld [vmem:[#allocation2 + $0x18e8] sm:$0xff] }
 0x704   :  { %9781 = vmatprep.subr.bf16.mxu0 %v9780_v41  ;;  %v9800_v41 = vpack.c.bf16 %v2681_v35, %v2649_v33  ;;  %v2872_v16 = vld [vmem:[#allocation2 + $0x15f0] sm:$0xff]  ;;  %v2999_v32 = vld [vmem:[#allocation2 + $0x19e8] sm:$0xff]  ;;  %v2969_v33 = vld [vmem:[#allocation2 + $0x18f8] sm:$0xff] }
 0x705   :  { %v2904_v26 = vld [vmem:[#allocation2 + $0x16f0] sm:$0xff]  ;;  %v3001_v35 = vld [vmem:[#allocation2 + $0x19f8] sm:$0xff] }
 0x706   :  { %9655 = vmatpush1.bf16.msra.mxu1 %v9654_v48  ;;  %v9674_v48 = vpack.c.bf16 %v2678_v38, %v2646_v39  ;;  %v2936_v30 = vld [vmem:[#allocation2 + $0x17f0] sm:$0xff]  ;;  %v2966_v39 = vld [vmem:[#allocation2 + $0x18e0] sm:$0xff] }
 0x707   :  { %9783 = vmatpush1.bf16.msra.mxu0 %v9782_v49  ;;  %9657 = vmatprep.subr.bf16.mxu1 %v9656_v50  ;;  %v9802_v49 = vpack.c.bf16 %v2680_v42, %v2648_v40  ;;  %v9676_v50 = vpack.c.bf16 %v2743_v31, %v2711_v43  ;;  %v2998_v38 = vld [vmem:[#allocation2 + $0x19e0] sm:$0xff]  ;;  %v2968_v40 = vld [vmem:[#allocation2 + $0x18f0] sm:$0xff]  ;;  %v3031_v43 = vld [vmem:[#allocation2 + $0x1ae8] sm:$0xff] }
 0x708   :  { %9785 = vmatprep.subr.bf16.mxu0 %v9784_v52  ;;  %v9804_v52 = vpack.c.bf16 %v2745_v47, %v2713_v45  ;;  %v3000_v42 = vld [vmem:[#allocation2 + $0x19f0] sm:$0xff]  ;;  %v3063_v31 = vld [vmem:[#allocation2 + $0x1be8] sm:$0xff]  ;;  %v3033_v45 = vld [vmem:[#allocation2 + $0x1af8] sm:$0xff] }
 0x709   :  { %v3065_v47 = vld [vmem:[#allocation2 + $0x1bf8] sm:$0xff] }
 0x70a   :  { %9659 = vmatpush1.bf16.msra.mxu1 %v9658_v56  ;;  %v9678_v56 = vpack.c.bf16 %v2742_v60, %v2710_v51  ;;  %v3030_v51 = vld [vmem:[#allocation2 + $0x1ae0] sm:$0xff] }
 0x70b   :  { %9787 = vmatpush1.bf16.msra.mxu0 %v9786_v57  ;;  %9661 = vmatprep.subr.bf16.mxu1 %v9660_v58  ;;  %v9806_v57 = vpack.c.bf16 %v2744_v2, %v2712_v61  ;;  %v9680_v58 = vpack.c.bf16 %v2807_v55, %v2775_v53  ;;  %v3062_v60 = vld [vmem:[#allocation2 + $0x1be0] sm:$0xff]  ;;  %v3032_v61 = vld [vmem:[#allocation2 + $0x1af0] sm:$0xff]  ;;  %v3095_v53 = vld [vmem:[#allocation2 + $0x1ce8] sm:$0xff] }
 0x70c   :  { %9789 = vmatprep.subr.bf16.mxu0 %v9788_v63  ;;  %v9808_v63 = vpack.c.bf16 %v2809_v54, %v2777_v34  ;;  %v3064_v2 = vld [vmem:[#allocation2 + $0x1bf0] sm:$0xff]  ;;  %v3127_v55 = vld [vmem:[#allocation2 + $0x1de8] sm:$0xff]  ;;  %v3097_v34 = vld [vmem:[#allocation2 + $0x1cf8] sm:$0xff] }
 0x70d   :  { %v3129_v54 = vld [vmem:[#allocation2 + $0x1df8] sm:$0xff] }
 0x70e   :  { %9663 = vmatpush1.bf16.msra.mxu1 %v9662_v7  ;;  %v9682_v7 = vpack.c.bf16 %v2806_v59, %v2774_v46  ;;  %v3094_v46 = vld [vmem:[#allocation2 + $0x1ce0] sm:$0xff] }
 0x70f   :  { %9791 = vmatpush1.bf16.msra.mxu0 %v9790_v9  ;;  %9665 = vmatprep.subr.bf16.mxu1 %v9664_v10  ;;  %v9810_v9 = vpack.c.bf16 %v2808_v1, %v2776_v62  ;;  %v9684_v10 = vpack.c.bf16 %v2871_v4, %v2839_v3  ;;  %v3126_v59 = vld [vmem:[#allocation2 + $0x1de0] sm:$0xff]  ;;  %v3096_v62 = vld [vmem:[#allocation2 + $0x1cf0] sm:$0xff]  ;;  %v3159_v3 = vld [vmem:[#allocation2 + $0x1ee8] sm:$0xff] }
 0x710   :  { %9793 = vmatprep.subr.bf16.mxu0 %v9792_v15  ;;  %v9812_v15 = vpack.c.bf16 %v2873_v6, %v2841_v5  ;;  %v3128_v1 = vld [vmem:[#allocation2 + $0x1df0] sm:$0xff]  ;;  %v3191_v4 = vld [vmem:[#allocation2 + $0x1fe8] sm:$0xff]  ;;  %v3161_v5 = vld [vmem:[#allocation2 + $0x1ef8] sm:$0xff] }
 0x711   :  { %v3193_v6 = vld [vmem:[#allocation2 + $0x1ff8] sm:$0xff] }
 0x712   :  { %9667 = vmatpush1.bf16.msra.mxu1 %v9666_v23  ;;  %v9686_v23 = vpack.c.bf16 %v2870_v12, %v2838_v11  ;;  %v3158_v11 = vld [vmem:[#allocation2 + $0x1ee0] sm:$0xff] }
 0x713   :  { %9795 = vmatpush1.bf16.msra.mxu0 %v9794_v19  ;;  %9669 = vmatprep.subr.bf16.mxu1 %v9668_v24  ;;  %v9814_v19 = vpack.c.bf16 %v2872_v16, %v2840_v14  ;;  %v9688_v24 = vpack.c.bf16 %v2935_v18, %v2903_v20  ;;  %v3190_v12 = vld [vmem:[#allocation2 + $0x1fe0] sm:$0xff]  ;;  %v3160_v14 = vld [vmem:[#allocation2 + $0x1ef0] sm:$0xff]  ;;  %v3223_v20 = vld [vmem:[#allocation2 + $0x20e8] sm:$0xff] }
 0x714   :  { %9797 = vmatprep.subr.bf16.mxu0 %v9796_v28  ;;  %v9816_v28 = vpack.c.bf16 %v2937_v22, %v2905_v21  ;;  %v3192_v16 = vld [vmem:[#allocation2 + $0x1ff0] sm:$0xff]  ;;  %v3255_v18 = vld [vmem:[#allocation2 + $0x21e8] sm:$0xff]  ;;  %v3225_v21 = vld [vmem:[#allocation2 + $0x20f8] sm:$0xff] }
 0x715   :  { %v3257_v22 = vld [vmem:[#allocation2 + $0x21f8] sm:$0xff] }
 0x716   :  { %9671 = vmatpush1.bf16.msra.mxu1 %v9670_v36  ;;  %v9690_v36 = vpack.c.bf16 %v2934_v25, %v2902_v17  ;;  %v3222_v17 = vld [vmem:[#allocation2 + $0x20e0] sm:$0xff] }
 0x717   :  { %9799 = vmatpush1.bf16.msra.mxu0 %v9798_v37  ;;  %9673 = vmatprep.subr.bf16.mxu1 %v9672_v44  ;;  %v9818_v37 = vpack.c.bf16 %v2936_v30, %v2904_v26  ;;  %v9692_v44 = vpack.c.bf16 %v2999_v32, %v2967_v0  ;;  %v3254_v25 = vld [vmem:[#allocation2 + $0x21e0] sm:$0xff]  ;;  %v9836_v26 = vpack.c.bf16 %v3257_v22, %v3225_v21  ;;  %v3256_v30 = vld [vmem:[#allocation2 + $0x21f0] sm:$0xff]  ;;  %v3287_v0 = vld [vmem:[#allocation2 + $0x22e8] sm:$0xff] }
 0x718   :  { %9801 = vmatprep.subr.bf16.mxu0 %v9800_v41  ;;  %v9820_v41 = vpack.c.bf16 %v3001_v35, %v2969_v33  ;;  %v3319_v32 = vld [vmem:[#allocation2 + $0x23e8] sm:$0xff]  ;;  %v9710_v33 = vpack.c.bf16 %v3254_v25, %v3222_v17  ;;  %v3289_v35 = vld [vmem:[#allocation2 + $0x22f8] sm:$0xff]  ;;  %v3544_v17 = vld [vmem:[#allocation2 + $0x2af0] sm:$0xff] }
 0x71a   :  { %9675 = vmatpush1.bf16.msra.mxu1 %v9674_v48  ;;  %v9694_v48 = vpack.c.bf16 %v2998_v38, %v2966_v39  ;;  %v3318_v39 = vld [vmem:[#allocation2 + $0x23e0] sm:$0xff]  ;;  %v3288_v38 = vld [vmem:[#allocation2 + $0x22f0] sm:$0xff] }
 0x71b   :  { %9803 = vmatpush1.bf16.msra.mxu0 %v9802_v49  ;;  %9677 = vmatprep.subr.bf16.mxu1 %v9676_v50  ;;  %v9822_v49 = vpack.c.bf16 %v3000_v42, %v2968_v40  ;;  %v9696_v50 = vpack.c.bf16 %v3063_v31, %v3031_v43  ;;  %v9712_v40 = vpack.c.bf16 %v3319_v32, %v3287_v0  ;;  %v3351_v42 = vld [vmem:[#allocation2 + $0x24e8] sm:$0xff]  ;;  %v3609_v0 = vld [vmem:[#allocation2 + $0x2cf8] sm:$0xff] }
 0x71c   :  { %9805 = vmatprep.subr.bf16.mxu0 %v9804_v52  ;;  %v9824_v52 = vpack.c.bf16 %v3065_v47, %v3033_v45  ;;  %v3383_v43 = vld [vmem:[#allocation2 + $0x25e8] sm:$0xff]  ;;  %v3353_v45 = vld [vmem:[#allocation2 + $0x24f8] sm:$0xff] }
 0x71d   :  { %v3385_v47 = vld [vmem:[#allocation2 + $0x25f8] sm:$0xff] }
 0x71e   :  { %9679 = vmatpush1.bf16.msra.mxu1 %v9678_v56  ;;  %v9698_v56 = vpack.c.bf16 %v3062_v60, %v3030_v51  ;;  %v3350_v51 = vld [vmem:[#allocation2 + $0x24e0] sm:$0xff]  ;;  %v3641_v32 = vld [vmem:[#allocation2 + $0x2df8] sm:$0xff] }
 0x71f   :  { %9807 = vmatpush1.bf16.msra.mxu0 %v9806_v57  ;;  %9681 = vmatprep.subr.bf16.mxu1 %v9680_v58  ;;  %v9826_v57 = vpack.c.bf16 %v3064_v2, %v3032_v61  ;;  %v9700_v58 = vpack.c.bf16 %v3127_v55, %v3095_v53  ;;  %v3382_v60 = vld [vmem:[#allocation2 + $0x25e0] sm:$0xff]  ;;  %v3352_v61 = vld [vmem:[#allocation2 + $0x24f0] sm:$0xff]  ;;  %v3415_v53 = vld [vmem:[#allocation2 + $0x26e8] sm:$0xff] }
 0x720   :  { %9809 = vmatprep.subr.bf16.mxu0 %v9808_v63  ;;  %v9828_v63 = vpack.c.bf16 %v3129_v54, %v3097_v34  ;;  %v3384_v2 = vld [vmem:[#allocation2 + $0x25f0] sm:$0xff]  ;;  %v3447_v55 = vld [vmem:[#allocation2 + $0x27e8] sm:$0xff]  ;;  %v3417_v34 = vld [vmem:[#allocation2 + $0x26f8] sm:$0xff]  ;;  %v9718_v54 = vpack.c.bf16 %v3382_v60, %v3350_v51 }
 0x722   :  { %9683 = vmatpush1.bf16.msra.mxu1 %v9682_v7  ;;  %v9702_v7 = vpack.c.bf16 %v3126_v59, %v3094_v46  ;;  %v3446_v46 = vld [vmem:[#allocation2 + $0x27e0] sm:$0xff]  ;;  %v3416_v59 = vld [vmem:[#allocation2 + $0x26f0] sm:$0xff] }
 0x723   :  { %9811 = vmatpush1.bf16.msra.mxu0 %v9810_v9  ;;  %9685 = vmatprep.subr.bf16.mxu1 %v9684_v10  ;;  %v9830_v9 = vpack.c.bf16 %v3128_v1, %v3096_v62  ;;  %v9704_v10 = vpack.c.bf16 %v3191_v4, %v3159_v3  ;;  %v3511_v1 = vld [vmem:[#allocation2 + $0x29e8] sm:$0xff]  ;;  %v3481_v3 = vld [vmem:[#allocation2 + $0x28f8] sm:$0xff] }
 0x724   :  { %9813 = vmatprep.subr.bf16.mxu0 %v9812_v15  ;;  %v9832_v15 = vpack.c.bf16 %v3193_v6, %v3161_v5  ;;  %v3513_v4 = vld [vmem:[#allocation2 + $0x29f8] sm:$0xff] }
 0x726   :  { %9687 = vmatpush1.bf16.msra.mxu1 %v9686_v23  ;;  %v9706_v23 = vpack.c.bf16 %v3190_v12, %v3158_v11  ;;  %v3480_v11 = vld [vmem:[#allocation2 + $0x28f0] sm:$0xff]  ;;  %v9852_v12 = vpack.c.bf16 %v3513_v4, %v3481_v3  ;;  %v3734_v3 = vld [vmem:[#allocation2 + $0x30e0] sm:$0xff] }
 0x727   :  { %9815 = vmatpush1.bf16.msra.mxu0 %v9814_v19  ;;  %9689 = vmatprep.subr.bf16.mxu1 %v9688_v24  ;;  %v9834_v19 = vpack.c.bf16 %v3192_v16, %v3160_v14  ;;  %v9708_v24 = vpack.c.bf16 %v3255_v18, %v3223_v20  ;;  %v3512_v14 = vld [vmem:[#allocation2 + $0x29f0] sm:$0xff]  ;;  %v3575_v16 = vld [vmem:[#allocation2 + $0x2be8] sm:$0xff]  ;;  %v3545_v20 = vld [vmem:[#allocation2 + $0x2af8] sm:$0xff] }
 0x728   :  { %9817 = vmatprep.subr.bf16.mxu0 %v9816_v28  ;;  %v3224_v28 = vld [vmem:[#allocation2 + $0x20f0] sm:$0xff]  ;;  %v3577_v18 = vld [vmem:[#allocation2 + $0x2bf8] sm:$0xff]  ;;  %v9854_v22 = vpack.c.bf16 %v3512_v14, %v3480_v11  ;;  %v3766_v4 = vld [vmem:[#allocation2 + $0x31e0] sm:$0xff] }
 0x729   :  { %v9856_v25 = vpack.c.bf16 %v3577_v18, %v3545_v20  ;;  %v9969_v11 = vld [vmem:[%s11971_s0 + $0x28] sm:$0xff]  ;;  %v3801_v14 = vld [vmem:[#allocation2 + $0x32f8] sm:$0xff] }
 0x72a   :  { %9691 = vmatpush1.bf16.msra.mxu1 %v9690_v36  ;;  %v3321_v36 = vld [vmem:[#allocation2 + $0x23f8] sm:$0xff] }
 0x72b   :  { %9819 = vmatpush1.bf16.msra.mxu0 %v9818_v37  ;;  %9693 = vmatprep.subr.bf16.mxu1 %v9692_v44  ;;  %v9838_v37 = vpack.c.bf16 %v3256_v30, %v3224_v28  ;;  %v3286_v44 = vld [vmem:[#allocation2 + $0x22e0] sm:$0xff]  ;;  %v9840_v31 = vpack.c.bf16 %v3321_v36, %v3289_v35  ;;  %v3607_v28 = vld [vmem:[#allocation2 + $0x2ce8] sm:$0xff] }
 0x72c   :  { %9821 = vmatprep.subr.bf16.mxu0 %v9820_v41  ;;  %v3320_v41 = vld [vmem:[#allocation2 + $0x23f0] sm:$0xff]  ;;  %v3639_v30 = vld [vmem:[#allocation2 + $0x2de8] sm:$0xff] }
 0x72d   :  { %v9732_v36 = vpack.c.bf16 %v3639_v30, %v3607_v28  ;;  %v3897_v28 = vld [vmem:[#allocation2 + $0x35f8] sm:$0xff] }
 0x72e   :  { %9695 = vmatpush1.bf16.msra.mxu1 %v9694_v48  ;;  %v9714_v48 = vpack.c.bf16 %v3318_v39, %v3286_v44  ;;  %v3638_v44 = vld [vmem:[#allocation2 + $0x2de0] sm:$0xff]  ;;  %v3608_v39 = vld [vmem:[#allocation2 + $0x2cf0] sm:$0xff] }
 0x72f   :  { %9823 = vmatpush1.bf16.msra.mxu0 %v9822_v49  ;;  %9697 = vmatprep.subr.bf16.mxu1 %v9696_v50  ;;  %v9842_v49 = vpack.c.bf16 %v3320_v41, %v3288_v38  ;;  %v9716_v50 = vpack.c.bf16 %v3383_v43, %v3351_v42  ;;  %v3640_v41 = vld [vmem:[#allocation2 + $0x2df0] sm:$0xff]  ;;  %v3671_v42 = vld [vmem:[#allocation2 + $0x2ee8] sm:$0xff] }
 0x730   :  { %9825 = vmatprep.subr.bf16.mxu0 %v9824_v52  ;;  %v9844_v52 = vpack.c.bf16 %v3385_v47, %v3353_v45  ;;  %v3703_v43 = vld [vmem:[#allocation2 + $0x2fe8] sm:$0xff]  ;;  %v3673_v47 = vld [vmem:[#allocation2 + $0x2ef8] sm:$0xff] }
 0x732   :  { %9699 = vmatpush1.bf16.msra.mxu1 %v9698_v56  ;;  %v9846_v56 = vpack.c.bf16 %v3384_v2, %v3352_v61  ;;  %v9862_v61 = vpack.c.bf16 %v3640_v41, %v3608_v39  ;;  %v3670_v2 = vld [vmem:[#allocation2 + $0x2ee0] sm:$0xff]  ;;  %v3927_v39 = vld [vmem:[#allocation2 + $0x36e8] sm:$0xff]  ;;  %v3961_v41 = vld [vmem:[#allocation2 + $0x37f8] sm:$0xff] }
 0x733   :  { %9827 = vmatpush1.bf16.msra.mxu0 %v9826_v57  ;;  %9701 = vmatprep.subr.bf16.mxu1 %v9700_v58  ;;  %v9720_v57 = vpack.c.bf16 %v3447_v55, %v3415_v53  ;;  %v3414_v58 = vld [vmem:[#allocation2 + $0x26e0] sm:$0xff]  ;;  %v3672_v55 = vld [vmem:[#allocation2 + $0x2ef0] sm:$0xff] }
 0x734   :  { %9829 = vmatprep.subr.bf16.mxu0 %v9828_v63  ;;  %v3479_v63 = vld [vmem:[#allocation2 + $0x28e8] sm:$0xff]  ;;  %v9722_v5 = vpack.c.bf16 %v3446_v46, %v3414_v58  ;;  %v3702_v53 = vld [vmem:[#allocation2 + $0x2fe0] sm:$0xff]  ;;  %v3737_v46 = vld [vmem:[#allocation2 + $0x30f8] sm:$0xff] }
 0x736   :  { %9703 = vmatpush1.bf16.msra.mxu1 %v9702_v7  ;;  %v9724_v7 = vpack.c.bf16 %v3511_v1, %v3479_v63 }
 0x737   :  { %9831 = vmatpush1.bf16.msra.mxu0 %v9830_v9  ;;  %9705 = vmatprep.subr.bf16.mxu1 %v9704_v10  ;;  %v3478_v9 = vld [vmem:[#allocation2 + $0x28e0] sm:$0xff] }
 0x738   :  { %9833 = vmatprep.subr.bf16.mxu0 %v9832_v15  ;;  %v3510_v10 = vld [vmem:[#allocation2 + $0x29e0] sm:$0xff]  ;;  %v3543_v15 = vld [vmem:[#allocation2 + $0x2ae8] sm:$0xff] }
 0x739   :  { %v9726_v21 = vpack.c.bf16 %v3510_v10, %v3478_v9  ;;  %v3799_v9 = vld [vmem:[#allocation2 + $0x32e8] sm:$0xff] }
 0x73a   :  { %9707 = vmatpush1.bf16.msra.mxu1 %v9706_v23  ;;  %v9728_v23 = vpack.c.bf16 %v3575_v16, %v3543_v15  ;;  %v3831_v10 = vld [vmem:[#allocation2 + $0x33e8] sm:$0xff]  ;;  %v3833_v15 = vld [vmem:[#allocation2 + $0x33f8] sm:$0xff]  ;;  %v9742_v16 = vpack.c.bf16 %v3766_v4, %v3734_v3  ;;  %v4054_v3 = vld [vmem:[#allocation2 + $0x3ae0] sm:$0xff] }
 0x73b   :  { %9835 = vmatpush1.bf16.msra.mxu0 %v9834_v19  ;;  %9709 = vmatprep.subr.bf16.mxu1 %v9708_v24  ;;  %v3542_v19 = vld [vmem:[#allocation2 + $0x2ae0] sm:$0xff]  ;;  %v9744_v18 = vpack.c.bf16 %v3831_v10, %v3799_v9  ;;  %v4119_v9 = vld [vmem:[#allocation2 + $0x3ce8] sm:$0xff] }
 0x73c   :  { %9837 = vmatprep.subr.bf16.mxu0 %v9836_v26  ;;  %v3574_v24 = vld [vmem:[#allocation2 + $0x2be0] sm:$0xff]  ;;  %v3576_v26 = vld [vmem:[#allocation2 + $0x2bf0] sm:$0xff]  ;;  %v4151_v10 = vld [vmem:[#allocation2 + $0x3de8] sm:$0xff] }
 0x73d   :  { %6271 = vmatmul.mubr.f32.vlgmr.msra.gmra.mrb[34].mxu1 %v11846_v8  ;;  %v9858_v35 = vpack.c.bf16 %v3576_v26, %v3544_v17  ;;  %v3863_v17 = vld [vmem:[#allocation2 + $0x34e8] sm:$0xff]  ;;  %v3865_v26 = vld [vmem:[#allocation2 + $0x34f8] sm:$0xff]  ;;  %v4086_v4 = vld [vmem:[#allocation2 + $0x3be0] sm:$0xff] }
 0x73e   :  { %6413 = vmatmul.mubr.f32.vlgmr.msra.gmra.mrb[32].mxu0 %v11846_v8  ;;  %9711 = vmatpush1.bf16.msra.mxu1 %v9710_v33  ;;  %v3449_v8 = vld [vmem:[#allocation2 + $0x27f8] sm:$0xff]  ;;  %v9730_v33 = vpack.c.bf16 %v3574_v24, %v3542_v19  ;;  %v9872_v19 = vpack.c.bf16 %v3833_v15, %v3801_v14  ;;  %v3832_v24 = vld [vmem:[#allocation2 + $0x33f0] sm:$0xff]  ;;  %v9762_v14 = vpack.c.bf16 %v4086_v4, %v4054_v3 }
 0x73f   :  { %6341 = vmatprep.mubr.f32.mxu1 %v11852_v29  ;;  %9839 = vmatpush1.bf16.msra.mxu0 %v9838_v37  ;;  %v9848_v62 = vpack.c.bf16 %v3449_v8, %v3417_v34  ;;  %v3606_v37 = vld [vmem:[#allocation2 + $0x2ce0] sm:$0xff] }
 0x740   :  { %6483 = vmatprep.mubr.f32.mxu0 %v11852_v29  ;;  %9713 = vmatprep.subr.bf16.mxu1 %v9712_v40  ;;  %v3448_v29 = vld [vmem:[#allocation2 + $0x27f0] sm:$0xff]  ;;  %v9860_v40 = vpack.c.bf16 %v3641_v32, %v3609_v0  ;;  %v9734_v51 = vpack.c.bf16 %v3638_v44, %v3606_v37  ;;  %v9876_v37 = vpack.c.bf16 %v3897_v28, %v3865_v26 }
 0x741   :  { %9841 = vmatprep.subr.bf16.mxu0 %v9840_v31  ;;  %v9850_v6 = vpack.c.bf16 %v3448_v29, %v3416_v59  ;;  %v3769_v59 = vld [vmem:[#allocation2 + $0x31f8] sm:$0xff]  ;;  %v3896_v44 = vld [vmem:[#allocation2 + $0x35f0] sm:$0xff] }
 0x742   :  { %9715 = vmatpush1.bf16.msra.mxu1 %v9714_v48  ;;  %v3705_v48 = vld [vmem:[#allocation2 + $0x2ff8] sm:$0xff] }
 0x743   :  { %9843 = vmatpush1.bf16.msra.mxu0 %v9842_v49  ;;  %9717 = vmatprep.subr.bf16.mxu1 %v9716_v50  ;;  %v9864_v8 = vpack.c.bf16 %v3705_v48, %v3673_v47  ;;  %v3958_v47 = vld [vmem:[#allocation2 + $0x37e0] sm:$0xff]  ;;  %v3928_v48 = vld [vmem:[#allocation2 + $0x36f0] sm:$0xff] }
 0x744   :  { %9845 = vmatprep.subr.bf16.mxu0 %v9844_v52  ;;  %v9736_v52 = vpack.c.bf16 %v3703_v43, %v3671_v42 }
 0x746   :  { %9719 = vmatpush1.bf16.msra.mxu1 %v9718_v54  ;;  %v3704_v54 = vld [vmem:[#allocation2 + $0x2ff0] sm:$0xff] }
 0x747   :  { %9847 = vmatpush1.bf16.msra.mxu0 %v9846_v56  ;;  %9721 = vmatprep.subr.bf16.mxu1 %v9720_v57  ;;  %v3735_v56 = vld [vmem:[#allocation2 + $0x30e8] sm:$0xff]  ;;  %v9866_v63 = vpack.c.bf16 %v3704_v54, %v3672_v55  ;;  %v3992_v54 = vld [vmem:[#allocation2 + $0x38f0] sm:$0xff] }
 0x748   :  { %9849 = vmatprep.subr.bf16.mxu0 %v9848_v62  ;;  %v3767_v57 = vld [vmem:[#allocation2 + $0x31e8] sm:$0xff]  ;;  %v9738_v62 = vpack.c.bf16 %v3702_v53, %v3670_v2 }
 0x749   :  { %v9740_v1 = vpack.c.bf16 %v3767_v57, %v3735_v56  ;;  %v4024_v57 = vld [vmem:[#allocation2 + $0x39f0] sm:$0xff] }
 0x74a   :  { %9723 = vmatpush1.bf16.msra.mxu1 %v9722_v5  ;;  %v3736_v5 = vld [vmem:[#allocation2 + $0x30f0] sm:$0xff] }
 0x74b   :  { %9851 = vmatpush1.bf16.msra.mxu0 %v9850_v6  ;;  %9725 = vmatprep.subr.bf16.mxu1 %v9724_v7  ;;  %v9868_v6 = vpack.c.bf16 %v3769_v59, %v3737_v46  ;;  %v3768_v7 = vld [vmem:[#allocation2 + $0x31f0] sm:$0xff]  ;;  %v4087_v46 = vld [vmem:[#allocation2 + $0x3be8] sm:$0xff]  ;;  %v4057_v59 = vld [vmem:[#allocation2 + $0x3af8] sm:$0xff] }
 0x74c   :  { %9853 = vmatprep.subr.bf16.mxu0 %v9852_v12  ;;  %v9870_v20 = vpack.c.bf16 %v3768_v7, %v3736_v5  ;;  %v4056_v5 = vld [vmem:[#allocation2 + $0x3af0] sm:$0xff] }
 0x74d   :  { %v4088_v7 = vld [vmem:[#allocation2 + $0x3bf0] sm:$0xff] }
 0x74e   :  { %9727 = vmatpush1.bf16.msra.mxu1 %v9726_v21  ;;  %v3798_v21 = vld [vmem:[#allocation2 + $0x32e0] sm:$0xff]  ;;  %v9890_v15 = vpack.c.bf16 %v4088_v7, %v4056_v5 }
 0x74f   :  { %9855 = vmatpush1.bf16.msra.mxu0 %v9854_v22  ;;  %9729 = vmatprep.subr.bf16.mxu1 %v9728_v23  ;;  %v3830_v22 = vld [vmem:[#allocation2 + $0x33e0] sm:$0xff]  ;;  %v3800_v23 = vld [vmem:[#allocation2 + $0x32f0] sm:$0xff] }
 0x750   :  { %v5775_v38 = vpop.f32.mrb[30].mxu1  ;;  %9857 = vmatprep.subr.bf16.mxu0 %v9856_v25  ;;  %v3895_v25 = vld [vmem:[#allocation2 + $0x35e8] sm:$0xff]  ;;  %v9746_v30 = vpack.c.bf16 %v3830_v22, %v3798_v21  ;;  %v9874_v0 = vpack.c.bf16 %v3832_v24, %v3800_v23  ;;  %v4120_v21 = vld [vmem:[#allocation2 + $0x3cf0] sm:$0xff] }
 0x751   :  { %v5917_v31 = vpop.f32.mrb[28].mxu0  ;;  %v5777_v45 = vpop.f32.mrb[31].mxu1  ;;  %v9748_v32 = vpack.c.bf16 %v3895_v25, %v3863_v17  ;;  %v4152_v23 = vld [vmem:[#allocation2 + $0x3df0] sm:$0xff]  ;;  %v4215_v24 = vld [vmem:[#allocation2 + $0x3fe8] sm:$0xff]  ;;  %v4185_v17 = vld [vmem:[#allocation2 + $0x3ef8] sm:$0xff] }
 0x752   :  { %v6607_v49 = vcombine.low %v5775_v38, %v5777_v45  ;;  %v5919_v50 = vpop.f32.mrb[29].mxu0  ;;  %9731 = vmatpush1.bf16.msra.mxu1 %v9730_v33  ;;  %v3862_v33 = vld [vmem:[#allocation2 + $0x34e0] sm:$0xff]  ;;  %v3959_v38 = vld [vmem:[#allocation2 + $0x37e8] sm:$0xff]  ;;  %v4217_v25 = vld [vmem:[#allocation2 + $0x3ff8] sm:$0xff]  ;;  %v9894_v28 = vpack.c.bf16 %v4152_v23, %v4120_v21 }
 0x753   :  { %v6608_v60 = vcombine.low %v5917_v31, %v5919_v50  ;;  %9859 = vmatpush1.bf16.msra.mxu0 %v9858_v35  ;;  %9733 = vmatprep.subr.bf16.mxu1 %v9732_v36  ;;  %v3894_v35 = vld [vmem:[#allocation2 + $0x35e0] sm:$0xff]  ;;  %v3864_v36 = vld [vmem:[#allocation2 + $0x34f0] sm:$0xff]  ;;  %v9752_v31 = vpack.c.bf16 %v3959_v38, %v3927_v39 }
 0x754   :  { %v6615_v34 = vrot.slane %v6607_v49, %v10238_v13  ;;  %9861 = vmatprep.subr.bf16.mxu0 %v9860_v40  ;;  %v3929_v40 = vld [vmem:[#allocation2 + $0x36f8] sm:$0xff]  ;;  %v9750_v42 = vpack.c.bf16 %v3894_v35, %v3862_v33  ;;  %v9878_v43 = vpack.c.bf16 %v3896_v44, %v3864_v36  ;;  %v3926_v45 = vld [vmem:[#allocation2 + $0x36e0] sm:$0xff]  ;;  %v3960_v50 = vld [vmem:[#allocation2 + $0x37f0] sm:$0xff]  ;;  %v9896_v33 = vpack.c.bf16 %v4217_v25, %v4185_v17 }
 0x755   :  { %v6622_v58 = vrot.slane %v6608_v60, %v10238_v13  ;;  %v9880_v49 = vpack.c.bf16 %v3961_v41, %v3929_v40  ;;  %v4023_v60 = vld [vmem:[#allocation2 + $0x39e8] sm:$0xff]  ;;  %v9754_v2 = vpack.c.bf16 %v3958_v47, %v3926_v45  ;;  %v9882_v53 = vpack.c.bf16 %v3960_v50, %v3928_v48  ;;  %v4184_v35 = vld [vmem:[#allocation2 + $0x3ef0] sm:$0xff] }
 0x756   :  { %9735 = vmatpush1.bf16.msra.mxu1 %v9734_v51  ;;  %v3991_v51 = vld [vmem:[#allocation2 + $0x38e8] sm:$0xff]  ;;  %v4216_v36 = vld [vmem:[#allocation2 + $0x3ff0] sm:$0xff] }
 0x757   :  { %v6623_v29 = vcombine.low %v6615_v34, %v6622_v58  ;;  %9863 = vmatpush1.bf16.msra.mxu0 %v9862_v61  ;;  %9737 = vmatprep.subr.bf16.mxu1 %v9736_v52  ;;  %v3993_v61 = vld [vmem:[#allocation2 + $0x38f8] sm:$0xff]  ;;  %v9756_v55 = vpack.c.bf16 %v4023_v60, %v3991_v51  ;;  %v3990_v34 = vld [vmem:[#allocation2 + $0x38e0] sm:$0xff]  ;;  %v4055_v58 = vld [vmem:[#allocation2 + $0x3ae8] sm:$0xff]  ;;  %v9898_v44 = vpack.c.bf16 %v4216_v36, %v4184_v35 }
 0x758   :  { %9865 = vmatprep.subr.bf16.mxu0 %v9864_v8  ;;  %v4025_v52 = vld [vmem:[#allocation2 + $0x39f8] sm:$0xff]  ;;  %v4022_v8 = vld [vmem:[#allocation2 + $0x39e0] sm:$0xff]  ;;  %v9970_v48 = vld [vmem:[%s11971_s0 + $0x30] sm:$0xff] }
 0x759   :  { %v6671_v12 = vmul.f32 %v9969_v11, %v6623_v29  ;;  %v9884_v56 = vpack.c.bf16 %v4025_v52, %v3993_v61  ;;  %v9758_v29 = vpack.c.bf16 %v4022_v8, %v3990_v34  ;;  %v4121_v11 = vld [vmem:[#allocation2 + $0x3cf8] sm:$0xff] }
 0x75a   :  { %9739 = vmatpush1.bf16.msra.mxu1 %v9738_v62  ;;  %v4089_v62 = vld [vmem:[#allocation2 + $0x3bf8] sm:$0xff] }
 0x75b   :  { %6679 = vst [vmem:[#allocation5 + $0x28] sm:$0xff] %v6671_v12  ;;  %9867 = vmatpush1.bf16.msra.mxu0 %v9866_v63  ;;  %9741 = vmatprep.subr.bf16.mxu1 %v9740_v1  ;;  %v9886_v63 = vpack.c.bf16 %v4024_v57, %v3992_v54  ;;  %v9760_v1 = vpack.c.bf16 %v4087_v46, %v4055_v58  ;;  %v4153_v12 = vld [vmem:[#allocation2 + $0x3df8] sm:$0xff] }
 0x75c   :  { %9869 = vmatprep.subr.bf16.mxu0 %v9868_v6  ;;  %v9888_v6 = vpack.c.bf16 %v4089_v62, %v4057_v59  ;;  %v9892_v22 = vpack.c.bf16 %v4153_v12, %v4121_v11  ;;  %v9971_v34 = vld [vmem:[%s11971_s0 + $0x38] sm:$0xff] }
 0x75e   :  { %9743 = vmatpush1.bf16.msra.mxu1 %v9742_v16  ;;  %v9764_v16 = vpack.c.bf16 %v4151_v10, %v4119_v9 }
 0x75f   :  { %9871 = vmatpush1.bf16.msra.mxu0 %v9870_v20  ;;  %9745 = vmatprep.subr.bf16.mxu1 %v9744_v18  ;;  %v4118_v20 = vld [vmem:[#allocation2 + $0x3ce0] sm:$0xff] }
 0x760   :  { %9873 = vmatprep.subr.bf16.mxu0 %v9872_v19  ;;  %v4150_v18 = vld [vmem:[#allocation2 + $0x3de0] sm:$0xff]  ;;  %v4183_v19 = vld [vmem:[#allocation2 + $0x3ee8] sm:$0xff] }
 0x761   :  { %v9766_v26 = vpack.c.bf16 %v4150_v18, %v4118_v20 }
 0x762   :  { %9747 = vmatpush1.bf16.msra.mxu1 %v9746_v30  ;;  %v9768_v30 = vpack.c.bf16 %v4215_v24, %v4183_v19 }
 0x763   :  { %9875 = vmatpush1.bf16.msra.mxu0 %v9874_v0  ;;  %9749 = vmatprep.subr.bf16.mxu1 %v9748_v32  ;;  %v4182_v0 = vld [vmem:[#allocation2 + $0x3ee0] sm:$0xff] }
 0x764   :  { %9877 = vmatprep.subr.bf16.mxu0 %v9876_v37  ;;  %v4214_v32 = vld [vmem:[#allocation2 + $0x3fe0] sm:$0xff] }
 0x765   :  { %v9770_v37 = vpack.c.bf16 %v4214_v32, %v4182_v0 }
 0x766   :  { %9751 = vmatpush1.bf16.msra.mxu1 %v9750_v42 }
 0x767   :  { %9879 = vmatpush1.bf16.msra.mxu0 %v9878_v43  ;;  %9753 = vmatprep.subr.bf16.mxu1 %v9752_v31 }
 0x768   :  { %9881 = vmatprep.subr.bf16.mxu0 %v9880_v49 }
 0x76a   :  { %9755 = vmatpush1.bf16.msra.mxu1 %v9754_v2 }
 0x76b   :  { %9883 = vmatpush1.bf16.msra.mxu0 %v9882_v53  ;;  %9757 = vmatprep.subr.bf16.mxu1 %v9756_v55 }
 0x76c   :  { %9885 = vmatprep.subr.bf16.mxu0 %v9884_v56 }
 0x76e   :  { %9759 = vmatpush1.bf16.msra.mxu1 %v9758_v29 }
 0x76f   :  { %9887 = vmatpush1.bf16.msra.mxu0 %v9886_v63  ;;  %9761 = vmatprep.subr.bf16.mxu1 %v9760_v1 }
 0x770   :  { %9889 = vmatprep.subr.bf16.mxu0 %v9888_v6 }
 0x772   :  { %9763 = vmatpush1.bf16.msra.mxu1 %v9762_v14 }
 0x773   :  { %9891 = vmatpush1.bf16.msra.mxu0 %v9890_v15  ;;  %9765 = vmatprep.subr.bf16.mxu1 %v9764_v16 }
 0x774   :  { %9893 = vmatprep.subr.bf16.mxu0 %v9892_v22 }
 0x776   :  { %9767 = vmatpush1.bf16.msra.mxu1 %v9766_v26 }
 0x777   :  { %9895 = vmatpush1.bf16.msra.mxu0 %v9894_v28  ;;  %9769 = vmatprep.subr.bf16.mxu1 %v9768_v30 }
 0x778   :  { %9897 = vmatprep.subr.bf16.mxu0 %v9896_v33 }
 0x77a   :  { %9771 = vmatpush1.bf16.msra.mxu1 %v9770_v37 }
 0x77b   :  { %9899 = vmatpush1.bf16.msra.mxu0 %v9898_v44 }
 0x77d   :  { %6342 = vmatmul.mubr.f32.vlgmr.msra.gmra.mrb[34].mxu1 %v11859_v27 }
 0x77e   :  { %6484 = vmatmul.mubr.f32.vlgmr.msra.gmra.mrb[32].mxu0 %v11859_v27 }
 0x7d0   :  { %v6059_v39 = vpop.f32.mrb[32].mxu1 }
 0x7d1   :  { %v6201_v38 = vpop.f32.mrb[30].mxu0  ;;  %v6061_v40 = vpop.f32.mrb[33].mxu1 }
 0x7d2   :  { %v6624_v41 = vcombine.low %v6059_v39, %v6061_v40  ;;  %v6203_v42 = vpop.f32.mrb[31].mxu0 }
 0x7d3   :  { %v6625_v43 = vcombine.low %v6201_v38, %v6203_v42 }
 0x7d4   :  { %v6632_v31 = vrot.slane %v6624_v41, %v10238_v13 }
 0x7d5   :  { %v6639_v45 = vrot.slane %v6625_v43, %v10238_v13 }
 0x7d7   :  { %v6640_v47 = vcombine.low %v6632_v31, %v6639_v45 }
 0x7d9   :  { %v6672_v49 = vmul.f32 %v9970_v48, %v6640_v47 }
 0x7db   :  { %6680 = vst [vmem:[#allocation5 + $0x30] sm:$0xff] %v6672_v49 }
 0x850   :  { %v6343_v50 = vpop.f32.mrb[34].mxu1 }
 0x851   :  { %v6485_v51 = vpop.f32.mrb[32].mxu0  ;;  %v6345_v27 = vpop.f32.mrb[35].mxu1 }
 0x852   :  { %v6641_v60 = vcombine.low %v6343_v50, %v6345_v27  ;;  %v6487_v61 = vpop.f32.mrb[33].mxu0 }
 0x853   :  { %v6642_v52 = vcombine.low %v6485_v51, %v6487_v61 }
 0x854   :  { %v6649_v2 = vrot.slane %v6641_v60, %v10238_v13 }
 0x855   :  { %v6656_v53 = vrot.slane %v6642_v52, %v10238_v13 }
 0x857   :  { %v6657_v55 = vcombine.low %v6649_v2, %v6656_v53 }
 0x859   :  { %v6673_v8 = vmul.f32 %v9971_v34, %v6657_v55 }
 0x85b   :  { %6681 = vst [vmem:[#allocation5 + $0x38] sm:$0xff] %v6673_v8 }
 0x85c   :  { %10005 = shalt.err (!%p10002_p12)
}
 0x85d   :  { %s10006_s25 = scalar_lea.hbm %s11979_s8, 1024 }
 0x85e   :  { %p10007_p13 = scmp.ne.s32.totalorder %s11979_s8, %s10006_s25  ;;  %p10010_p0 = scmp.lt.u32.totalorder %s10006_s25, %s11979_s8 }
 0x860   :  { %p10012_p1 = pnand %p10010_p0, %p10007_p13 }
 0x862   :  { %10015 = shalt.err (!%p10012_p1)
}
 0x863   :  { %6691 = dma.vmem_to_hbm [thread:$0]  %s6689_s20, 1024, %s11979_s8, [#allocation4]  }
 0x864   :  { %10018 = dma.done.wait [#allocation4], 1024  }
 0x865   :  { %10019 = vsyncadd [#allocation4], 4294966272 }
 0x866   :  { %6695 = vsyncpa [#allocation3], 1 }
 0x867   :  { %6696 = vsyncpa [#allocation4], 1 }

</bundles_post_ra>
